<compile_context>
chip_gen: v5e
topology: v5e:2x2
jax: 0.10.0
libtpu: 0.0.40
codegen_flags: <defaults>
</compile_context>

<pallas_src>
import jax
import jax.numpy as jnp
from jax import lax
from jax.experimental import pallas as pl
from jax.experimental.pallas import tpu as pltpu

EPS = 1e-5
BLOCK_SP = [(1, 0), (2, 1), (2, 1), (2, 1)]   # (stride, padding) of the 4 BN blocks
FINAL_SP = (2, 1)
KSIZE = 4


# ----------------------------- Pallas kernels ------------------------------------

def _conv_bn_relu_kernel(w_ref, p_ref, g_ref, b_ref, o_ref):
    # w: (C_out, K) bf16, p: (K, M) bf16, g/b: (C_out, 1) f32 -> o: (C_out, M) f32
    y = jnp.dot(w_ref[...], p_ref[...], preferred_element_type=jnp.float32)
    mean = jnp.mean(y, axis=1, keepdims=True)
    var = jnp.mean(jnp.square(y - mean), axis=1, keepdims=True)  # biased (torch BN)
    scale = g_ref[...] * lax.rsqrt(var + EPS)
    shift = b_ref[...] - mean * scale
    o_ref[...] = jnp.maximum(y * scale + shift, 0.0)


def _conv_tanh_kernel(w_ref, p_ref, o_ref):
    o_ref[...] = jnp.tanh(
        jnp.dot(w_ref[...], p_ref[...], preferred_element_type=jnp.float32))


# ----------------------------- Pallas wrappers ------------------------------------

def pallas_conv_bn_relu(w_mat, patches_t, gamma, beta):
    """Fused (C_out,K)@(K,M) + batch-stat BN + ReLU; entire layer VMEM-resident."""
    C, K = w_mat.shape
    M = patches_t.shape[1]
    return pl.pallas_call(
        _conv_bn_relu_kernel,
        out_shape=jax.ShapeDtypeStruct((C, M), jnp.float32),
        grid=(1,),
        in_specs=[pl.BlockSpec((C, K), lambda i: (0, 0)),
                  pl.BlockSpec((K, M), lambda i: (0, 0)),
                  pl.BlockSpec((C, 1), lambda i: (0, 0)),
                  pl.BlockSpec((C, 1), lambda i: (0, 0))],
        out_specs=pl.BlockSpec((C, M), lambda i: (0, 0)),
        compiler_params=pltpu.CompilerParams(dimension_semantics=("arbitrary",)),
    )(w_mat.astype(jnp.bfloat16), patches_t.astype(jnp.bfloat16),
      gamma.reshape(C, 1).astype(jnp.float32),
      beta.reshape(C, 1).astype(jnp.float32))


def _col_tile(m, target=4096):
    """Largest power-of-two, multiple-of-128 column tile <= target dividing m;
    prefers >= 2 grid steps so a parallel grid axis can feed both v7x cores."""
    if m % 128 != 0:
        return m
    best = m
    t = 128
    while t <= min(m, target):
        if m % t == 0:
            best = t
        t *= 2
    if best == m and m % 256 == 0:
        best = m // 2
    return best


def pallas_conv_tanh(w_mat, patches_t):
    C, K = w_mat.shape
    M = patches_t.shape[1]
    tm = _col_tile(M)
    return pl.pallas_call(
        _conv_tanh_kernel,
        out_shape=jax.ShapeDtypeStruct((C, M), jnp.float32),
        grid=(M // tm,),
        in_specs=[pl.BlockSpec((C, K), lambda j: (0, 0)),
                  pl.BlockSpec((K, tm), lambda j: (0, j))],
        out_specs=pl.BlockSpec((C, tm), lambda j: (0, j)),
        compiler_params=pltpu.CompilerParams(dimension_semantics=("parallel",)),
    )(w_mat.astype(jnp.bfloat16), patches_t.astype(jnp.bfloat16))


# ------------------------------ JAX glue (im2col, C-major) ------------------------

def conv_transpose_im2col_T(x, stride, padding, k):
    """x: (C, N, H, W) -> patches^T (C*k*k, N*Ho*Wo) of the equivalent stride-1 conv."""
    C, N, H, W = x.shape
    if stride > 1:
        xd = jnp.zeros((C, N, (H - 1) * stride + 1, (W - 1) * stride + 1), x.dtype)
        xd = xd.at[:, :, ::stride, ::stride].set(x)
    else:
        xd = x
    pad = k - 1 - padding
    xp = jnp.pad(xd, ((0, 0), (0, 0), (pad, pad), (pad, pad)))
    Hp, Wp = xp.shape[2], xp.shape[3]
    Ho, Wo = Hp - k + 1, Wp - k + 1
    # TODO(synk): replace zero-dilated im2col with the 4-sub-convolution (sub-pixel)
    # decomposition for stride-2 layers to cut K (and patch DMA bytes) ~4x.
    cols = [xp[:, :, a:a + Ho, b:b + Wo] for a in range(k) for b in range(k)]
    patches = jnp.stack(cols, axis=1)                 # (C, k*k, N, Ho, Wo)
    return patches.reshape(C * k * k, N * Ho * Wo), (N, Ho, Wo)


def convT_weight_matrix_T(w):
    """w: (C_in, C_out, k, k) torch ConvTranspose2d weight -> (C_out, C_in*k*k)."""
    C_in, C_out, k, _ = w.shape
    wf = w[:, :, ::-1, ::-1]                          # spatial flip for forward conv
    return wf.transpose(1, 0, 2, 3).reshape(C_out, C_in * k * k)


# ------------------------------ Generator forward ---------------------------------

def generator_forward(x, params):
    # Single layout change at entry: NCHW -> C-major (C, N, H, W).
    h = x.transpose(1, 0, 2, 3)
    for (w, gamma, beta), (stride, pad) in zip(params["blocks"], BLOCK_SP):
        p, (N, Ho, Wo) = conv_transpose_im2col_T(h, stride, pad, KSIZE)
        y = pallas_conv_bn_relu(convT_weight_matrix_T(w), p, gamma, beta)
        h = y.reshape(-1, N, Ho, Wo)
    p, (N, Ho, Wo) = conv_transpose_im2col_T(h, FINAL_SP[0], FINAL_SP[1], KSIZE)
    y = pallas_conv_tanh(convT_weight_matrix_T(params["final_w"]), p)
    # Single layout change at exit: back to NCHW.
    return y.reshape(-1, N, Ho, Wo).transpose(1, 0, 2, 3)


def reference_forward(x, params):
    """Plain-jnp reference with identical math (same im2col, bf16 matmul inputs)."""
    h = x.transpose(1, 0, 2, 3)
    for (w, gamma, beta), (stride, pad) in zip(params["blocks"], BLOCK_SP):
        p, (N, Ho, Wo) = conv_transpose_im2col_T(h, stride, pad, KSIZE)
        wm = convT_weight_matrix_T(w)
        y = jnp.dot(wm.astype(jnp.bfloat16), p.astype(jnp.bfloat16),
                    preferred_element_type=jnp.float32)
        mean = jnp.mean(y, axis=1, keepdims=True)
        var = jnp.mean(jnp.square(y - mean), axis=1, keepdims=True)
        y = (y - mean) * (gamma[:, None] / jnp.sqrt(var + EPS)) + beta[:, None]
        y = jnp.maximum(y, 0.0)
        h = y.reshape(-1, N, Ho, Wo)
    p, (N, Ho, Wo) = conv_transpose_im2col_T(h, FINAL_SP[0], FINAL_SP[1], KSIZE)
    wm = convT_weight_matrix_T(params["final_w"])
    y = jnp.tanh(jnp.dot(wm.astype(jnp.bfloat16), p.astype(jnp.bfloat16),
                         preferred_element_type=jnp.float32))
    return y.reshape(-1, N, Ho, Wo).transpose(1, 0, 2, 3)


# ------------------------------ Parameter init -------------------------------------

def init_params(key, channels_noise, img_channels, gen_feat):
    dims = [(channels_noise, gen_feat * 8),
            (gen_feat * 8, gen_feat * 4),
            (gen_feat * 4, gen_feat * 2),
            (gen_feat * 2, gen_feat)]
    keys = jax.random.split(key, len(dims) * 3 + 1)
    blocks = []
    for idx, (cin, cout) in enumerate(dims):
        kw, kg, kb = keys[3 * idx], keys[3 * idx + 1], keys[3 * idx + 2]
        w = 0.02 * jax.random.normal(kw, (cin, cout, KSIZE, KSIZE), jnp.float32)
        gamma = 1.0 + 0.1 * jax.random.normal(kg, (cout,), jnp.float32)
        beta = 0.1 * jax.random.normal(kb, (cout,), jnp.float32)
        blocks.append((w, gamma, beta))
    w_final = 0.02 * jax.random.normal(
        keys[-1], (gen_feat, img_channels, KSIZE, KSIZE), jnp.float32)
    return {"blocks": blocks, "final_w": w_final}


if __name__ == "__main__":
    channels_noise, img_channels, gen_feat = 8, 3, 8
    key = jax.random.PRNGKey(0)
    kx, kp = jax.random.split(key)
    x = jax.random.normal(kx, (2, channels_noise, 1, 1), jnp.float32)
    params = init_params(kp, channels_noise, img_channels, gen_feat)

    out = jax.jit(generator_forward)(x, params)
    out = jax.block_until_ready(out)
    assert out.shape == (2, img_channels, 64, 64), out.shape

    ref = reference_forward(x, params)
    max_err = float(jnp.max(jnp.abs(out - ref)))
    assert jnp.allclose(out, ref, atol=2e-2, rtol=2e-2), max_err

    print("KERNEL_OK")
</pallas_src>

<mosaic_0001>
module attributes {stable_mosaic.version = 11 : i64} {
  func.func @_conv_bn_relu_kernel(%arg0: i32, %arg1: memref<64x128xbf16, #tpu.memory_space<vmem>>, %arg2: memref<128x32xbf16, #tpu.memory_space<vmem>>, %arg3: memref<64x1xf32, #tpu.memory_space<vmem>>, %arg4: memref<64x1xf32, #tpu.memory_space<vmem>>, %arg5: memref<64x32xf32, #tpu.memory_space<vmem>>) attributes {dimension_semantics = [#tpu.dimension_semantics<arbitrary>], iteration_bounds = array<i64: 1>, scalar_prefetch = 0 : i64, scratch_operands = 0 : i64, tpu.core_type = #tpu.core_type<tc>, window_params = [{pipeline_mode = #tpu.pipeline_mode<synchronous>, transform_indices = @transform_0, window_bounds = array<i64: 64, 128>}, {pipeline_mode = #tpu.pipeline_mode<synchronous>, transform_indices = @transform_1, window_bounds = array<i64: 128, 32>}, {pipeline_mode = #tpu.pipeline_mode<synchronous>, transform_indices = @transform_2, window_bounds = array<i64: 64, 1>}, {pipeline_mode = #tpu.pipeline_mode<synchronous>, transform_indices = @transform_3, window_bounds = array<i64: 64, 1>}, {pipeline_mode = #tpu.pipeline_mode<synchronous>, transform_indices = @transform_4, window_bounds = array<i64: 64, 32>}]} {
    %c0 = arith.constant 0 : index
    %c0_0 = arith.constant 0 : index
    %0 = vector.load %arg1[%c0, %c0_0] : memref<64x128xbf16, #tpu.memory_space<vmem>>, vector<64x128xbf16>
    %c0_1 = arith.constant 0 : index
    %c0_2 = arith.constant 0 : index
    %1 = vector.load %arg2[%c0_1, %c0_2] : memref<128x32xbf16, #tpu.memory_space<vmem>>, vector<128x32xbf16>
    %cst = arith.constant dense<0.000000e+00> : vector<64x32xf32>
    %2 = tpu.matmul %0, %1, %cst {dimension_numbers = #tpu.dot_dimension_numbers<[1], [0], [0], [1], [0, 0, 1, 1], [], []>} : vector<64x128xbf16>, vector<128x32xbf16>, vector<64x32xf32> -> vector<64x32xf32>
    %cst_3 = arith.constant dense<0.000000e+00> : vector<64xf32>
    %3 = vector.multi_reduction <add>, %2, %cst_3 [1] : vector<64x32xf32> to vector<64xf32>
    %4 = vector.shape_cast %3 : vector<64xf32> to vector<64x1xf32>
    %cst_4 = arith.constant 3.200000e+01 : f32
    %5 = vector.broadcast %cst_4 : f32 to vector<64x1xf32>
    %6 = arith.divf %4, %5 : vector<64x1xf32>
    %7 = vector.broadcast %6 : vector<64x1xf32> to vector<64x32xf32>
    %8 = arith.subf %2, %7 : vector<64x32xf32>
    %9 = arith.mulf %8, %8 : vector<64x32xf32>
    %cst_5 = arith.constant dense<0.000000e+00> : vector<64xf32>
    %10 = vector.multi_reduction <add>, %9, %cst_5 [1] : vector<64x32xf32> to vector<64xf32>
    %11 = vector.shape_cast %10 : vector<64xf32> to vector<64x1xf32>
    %cst_6 = arith.constant 3.200000e+01 : f32
    %12 = vector.broadcast %cst_6 : f32 to vector<64x1xf32>
    %13 = arith.divf %11, %12 : vector<64x1xf32>
    %c0_7 = arith.constant 0 : index
    %c0_8 = arith.constant 0 : index
    %14 = vector.load %arg3[%c0_7, %c0_8] : memref<64x1xf32, #tpu.memory_space<vmem>>, vector<64x1xf32>
    %cst_9 = arith.constant 9.99999974E-6 : f32
    %15 = vector.broadcast %cst_9 : f32 to vector<64x1xf32>
    %16 = arith.addf %13, %15 : vector<64x1xf32>
    %17 = math.rsqrt %16 : vector<64x1xf32>
    %18 = arith.mulf %14, %17 : vector<64x1xf32>
    %c0_10 = arith.constant 0 : index
    %c0_11 = arith.constant 0 : index
    %19 = vector.load %arg4[%c0_10, %c0_11] : memref<64x1xf32, #tpu.memory_space<vmem>>, vector<64x1xf32>
    %20 = arith.mulf %6, %18 : vector<64x1xf32>
    %21 = arith.subf %19, %20 : vector<64x1xf32>
    %22 = vector.broadcast %18 : vector<64x1xf32> to vector<64x32xf32>
    %23 = arith.mulf %2, %22 : vector<64x32xf32>
    %24 = vector.broadcast %21 : vector<64x1xf32> to vector<64x32xf32>
    %25 = arith.addf %23, %24 : vector<64x32xf32>
    %cst_12 = arith.constant 0.000000e+00 : f32
    %26 = vector.broadcast %cst_12 : f32 to vector<64x32xf32>
    %27 = arith.maximumf %25, %26 : vector<64x32xf32>
    %c0_13 = arith.constant 0 : index
    %c0_14 = arith.constant 0 : index
    %28 = vector.load %arg5[%c0_13, %c0_14] : memref<64x32xf32, #tpu.memory_space<vmem>>, vector<64x32xf32>
    tpu.vector_store %arg5[%c0_13, %c0_14], %27 {strides = array<i32>} : memref<64x32xf32, #tpu.memory_space<vmem>>, vector<64x32xf32>,
    return
  }
  func.func @transform_0(%arg0: i32) -> (i32, i32) {
    %c0_i32 = arith.constant 0 : i32
    %c0_i32_0 = arith.constant 0 : i32
    %c0_i32_1 = arith.constant 0 : i32
    return %c0_i32, %c0_i32_0 : i32, i32
  }
  func.func @transform_1(%arg0: i32) -> (i32, i32) {
    %c0_i32 = arith.constant 0 : i32
    %c0_i32_0 = arith.constant 0 : i32
    %c0_i32_1 = arith.constant 0 : i32
    return %c0_i32, %c0_i32_0 : i32, i32
  }
  func.func @transform_2(%arg0: i32) -> (i32, i32) {
    %c0_i32 = arith.constant 0 : i32
    %c0_i32_0 = arith.constant 0 : i32
    %c0_i32_1 = arith.constant 0 : i32
    return %c0_i32, %c0_i32_0 : i32, i32
  }
  func.func @transform_3(%arg0: i32) -> (i32, i32) {
    %c0_i32 = arith.constant 0 : i32
    %c0_i32_0 = arith.constant 0 : i32
    %c0_i32_1 = arith.constant 0 : i32
    return %c0_i32, %c0_i32_0 : i32, i32
  }
  func.func @transform_4(%arg0: i32) -> (i32, i32) {
    %c0_i32 = arith.constant 0 : i32
    %c0_i32_0 = arith.constant 0 : i32
    %c0_i32_1 = arith.constant 0 : i32
    return %c0_i32, %c0_i32_0 : i32, i32
  }
}

module attributes {stable_mosaic.version = 11 : i64} {
  func.func @_conv_bn_relu_kernel(%arg0: i32, %arg1: memref<32x1024xbf16, #tpu.memory_space<vmem>>, %arg2: memref<1024x128xbf16, #tpu.memory_space<vmem>>, %arg3: memref<32x1xf32, #tpu.memory_space<vmem>>, %arg4: memref<32x1xf32, #tpu.memory_space<vmem>>, %arg5: memref<32x128xf32, #tpu.memory_space<vmem>>) attributes {dimension_semantics = [#tpu.dimension_semantics<arbitrary>], iteration_bounds = array<i64: 1>, scalar_prefetch = 0 : i64, scratch_operands = 0 : i64, tpu.core_type = #tpu.core_type<tc>, window_params = [{pipeline_mode = #tpu.pipeline_mode<synchronous>, transform_indices = @transform_0, window_bounds = array<i64: 32, 1024>}, {pipeline_mode = #tpu.pipeline_mode<synchronous>, transform_indices = @transform_1, window_bounds = array<i64: 1024, 128>}, {pipeline_mode = #tpu.pipeline_mode<synchronous>, transform_indices = @transform_2, window_bounds = array<i64: 32, 1>}, {pipeline_mode = #tpu.pipeline_mode<synchronous>, transform_indices = @transform_3, window_bounds = array<i64: 32, 1>}, {pipeline_mode = #tpu.pipeline_mode<synchronous>, transform_indices = @transform_4, window_bounds = array<i64: 32, 128>}]} {
    %c0 = arith.constant 0 : index
    %c0_0 = arith.constant 0 : index
    %0 = vector.load %arg1[%c0, %c0_0] : memref<32x1024xbf16, #tpu.memory_space<vmem>>, vector<32x1024xbf16>
    %c0_1 = arith.constant 0 : index
    %c0_2 = arith.constant 0 : index
    %1 = vector.load %arg2[%c0_1, %c0_2] : memref<1024x128xbf16, #tpu.memory_space<vmem>>, vector<1024x128xbf16>
    %cst = arith.constant dense<0.000000e+00> : vector<32x128xf32>
    %2 = tpu.matmul %0, %1, %cst {dimension_numbers = #tpu.dot_dimension_numbers<[1], [0], [0], [1], [0, 0, 1, 1], [], []>} : vector<32x1024xbf16>, vector<1024x128xbf16>, vector<32x128xf32> -> vector<32x128xf32>
    %cst_3 = arith.constant dense<0.000000e+00> : vector<32xf32>
    %3 = vector.multi_reduction <add>, %2, %cst_3 [1] : vector<32x128xf32> to vector<32xf32>
    %4 = vector.shape_cast %3 : vector<32xf32> to vector<32x1xf32>
    %cst_4 = arith.constant 1.280000e+02 : f32
    %5 = vector.broadcast %cst_4 : f32 to vector<32x1xf32>
    %6 = arith.divf %4, %5 : vector<32x1xf32>
    %7 = vector.broadcast %6 : vector<32x1xf32> to vector<32x128xf32>
    %8 = arith.subf %2, %7 : vector<32x128xf32>
    %9 = arith.mulf %8, %8 : vector<32x128xf32>
    %cst_5 = arith.constant dense<0.000000e+00> : vector<32xf32>
    %10 = vector.multi_reduction <add>, %9, %cst_5 [1] : vector<32x128xf32> to vector<32xf32>
    %11 = vector.shape_cast %10 : vector<32xf32> to vector<32x1xf32>
    %cst_6 = arith.constant 1.280000e+02 : f32
    %12 = vector.broadcast %cst_6 : f32 to vector<32x1xf32>
    %13 = arith.divf %11, %12 : vector<32x1xf32>
    %c0_7 = arith.constant 0 : index
    %c0_8 = arith.constant 0 : index
    %14 = vector.load %arg3[%c0_7, %c0_8] : memref<32x1xf32, #tpu.memory_space<vmem>>, vector<32x1xf32>
    %cst_9 = arith.constant 9.99999974E-6 : f32
    %15 = vector.broadcast %cst_9 : f32 to vector<32x1xf32>
    %16 = arith.addf %13, %15 : vector<32x1xf32>
    %17 = math.rsqrt %16 : vector<32x1xf32>
    %18 = arith.mulf %14, %17 : vector<32x1xf32>
    %c0_10 = arith.constant 0 : index
    %c0_11 = arith.constant 0 : index
    %19 = vector.load %arg4[%c0_10, %c0_11] : memref<32x1xf32, #tpu.memory_space<vmem>>, vector<32x1xf32>
    %20 = arith.mulf %6, %18 : vector<32x1xf32>
    %21 = arith.subf %19, %20 : vector<32x1xf32>
    %22 = vector.broadcast %18 : vector<32x1xf32> to vector<32x128xf32>
    %23 = arith.mulf %2, %22 : vector<32x128xf32>
    %24 = vector.broadcast %21 : vector<32x1xf32> to vector<32x128xf32>
    %25 = arith.addf %23, %24 : vector<32x128xf32>
    %cst_12 = arith.constant 0.000000e+00 : f32
    %26 = vector.broadcast %cst_12 : f32 to vector<32x128xf32>
    %27 = arith.maximumf %25, %26 : vector<32x128xf32>
    %c0_13 = arith.constant 0 : index
    %c0_14 = arith.constant 0 : index
    %28 = vector.load %arg5[%c0_13, %c0_14] : memref<32x128xf32, #tpu.memory_space<vmem>>, vector<32x128xf32>
    tpu.vector_store %arg5[%c0_13, %c0_14], %27 {strides = array<i32>} : memref<32x128xf32, #tpu.memory_space<vmem>>, vector<32x128xf32>,
    return
  }
  func.func @transform_0(%arg0: i32) -> (i32, i32) {
    %c0_i32 = arith.constant 0 : i32
    %c0_i32_0 = arith.constant 0 : i32
    %c0_i32_1 = arith.constant 0 : i32
    return %c0_i32, %c0_i32_0 : i32, i32
  }
  func.func @transform_1(%arg0: i32) -> (i32, i32) {
    %c0_i32 = arith.constant 0 : i32
    %c0_i32_0 = arith.constant 0 : i32
    %c0_i32_1 = arith.constant 0 : i32
    return %c0_i32, %c0_i32_0 : i32, i32
  }
  func.func @transform_2(%arg0: i32) -> (i32, i32) {
    %c0_i32 = arith.constant 0 : i32
    %c0_i32_0 = arith.constant 0 : i32
    %c0_i32_1 = arith.constant 0 : i32
    return %c0_i32, %c0_i32_0 : i32, i32
  }
  func.func @transform_3(%arg0: i32) -> (i32, i32) {
    %c0_i32 = arith.constant 0 : i32
    %c0_i32_0 = arith.constant 0 : i32
    %c0_i32_1 = arith.constant 0 : i32
    return %c0_i32, %c0_i32_0 : i32, i32
  }
  func.func @transform_4(%arg0: i32) -> (i32, i32) {
    %c0_i32 = arith.constant 0 : i32
    %c0_i32_0 = arith.constant 0 : i32
    %c0_i32_1 = arith.constant 0 : i32
    return %c0_i32, %c0_i32_0 : i32, i32
  }
}

module attributes {stable_mosaic.version = 11 : i64} {
  func.func @_conv_bn_relu_kernel(%arg0: i32, %arg1: memref<16x512xbf16, #tpu.memory_space<vmem>>, %arg2: memref<512x512xbf16, #tpu.memory_space<vmem>>, %arg3: memref<16x1xf32, #tpu.memory_space<vmem>>, %arg4: memref<16x1xf32, #tpu.memory_space<vmem>>, %arg5: memref<16x512xf32, #tpu.memory_space<vmem>>) attributes {dimension_semantics = [#tpu.dimension_semantics<arbitrary>], iteration_bounds = array<i64: 1>, scalar_prefetch = 0 : i64, scratch_operands = 0 : i64, tpu.core_type = #tpu.core_type<tc>, window_params = [{pipeline_mode = #tpu.pipeline_mode<synchronous>, transform_indices = @transform_0, window_bounds = array<i64: 16, 512>}, {pipeline_mode = #tpu.pipeline_mode<synchronous>, transform_indices = @transform_1, window_bounds = array<i64: 512, 512>}, {pipeline_mode = #tpu.pipeline_mode<synchronous>, transform_indices = @transform_2, window_bounds = array<i64: 16, 1>}, {pipeline_mode = #tpu.pipeline_mode<synchronous>, transform_indices = @transform_3, window_bounds = array<i64: 16, 1>}, {pipeline_mode = #tpu.pipeline_mode<synchronous>, transform_indices = @transform_4, window_bounds = array<i64: 16, 512>}]} {
    %c0 = arith.constant 0 : index
    %c0_0 = arith.constant 0 : index
    %0 = vector.load %arg1[%c0, %c0_0] : memref<16x512xbf16, #tpu.memory_space<vmem>>, vector<16x512xbf16>
    %c0_1 = arith.constant 0 : index
    %c0_2 = arith.constant 0 : index
    %1 = vector.load %arg2[%c0_1, %c0_2] : memref<512x512xbf16, #tpu.memory_space<vmem>>, vector<512x512xbf16>
    %cst = arith.constant dense<0.000000e+00> : vector<16x512xf32>
    %2 = tpu.matmul %0, %1, %cst {dimension_numbers = #tpu.dot_dimension_numbers<[1], [0], [0], [1], [0, 0, 1, 1], [], []>} : vector<16x512xbf16>, vector<512x512xbf16>, vector<16x512xf32> -> vector<16x512xf32>
    %cst_3 = arith.constant dense<0.000000e+00> : vector<16xf32>
    %3 = vector.multi_reduction <add>, %2, %cst_3 [1] : vector<16x512xf32> to vector<16xf32>
    %4 = vector.shape_cast %3 : vector<16xf32> to vector<16x1xf32>
    %cst_4 = arith.constant 5.120000e+02 : f32
    %5 = vector.broadcast %cst_4 : f32 to vector<16x1xf32>
    %6 = arith.divf %4, %5 : vector<16x1xf32>
    %7 = vector.broadcast %6 : vector<16x1xf32> to vector<16x512xf32>
    %8 = arith.subf %2, %7 : vector<16x512xf32>
    %9 = arith.mulf %8, %8 : vector<16x512xf32>
    %cst_5 = arith.constant dense<0.000000e+00> : vector<16xf32>
    %10 = vector.multi_reduction <add>, %9, %cst_5 [1] : vector<16x512xf32> to vector<16xf32>
    %11 = vector.shape_cast %10 : vector<16xf32> to vector<16x1xf32>
    %cst_6 = arith.constant 5.120000e+02 : f32
    %12 = vector.broadcast %cst_6 : f32 to vector<16x1xf32>
    %13 = arith.divf %11, %12 : vector<16x1xf32>
    %c0_7 = arith.constant 0 : index
    %c0_8 = arith.constant 0 : index
    %14 = vector.load %arg3[%c0_7, %c0_8] : memref<16x1xf32, #tpu.memory_space<vmem>>, vector<16x1xf32>
    %cst_9 = arith.constant 9.99999974E-6 : f32
    %15 = vector.broadcast %cst_9 : f32 to vector<16x1xf32>
    %16 = arith.addf %13, %15 : vector<16x1xf32>
    %17 = math.rsqrt %16 : vector<16x1xf32>
    %18 = arith.mulf %14, %17 : vector<16x1xf32>
    %c0_10 = arith.constant 0 : index
    %c0_11 = arith.constant 0 : index
    %19 = vector.load %arg4[%c0_10, %c0_11] : memref<16x1xf32, #tpu.memory_space<vmem>>, vector<16x1xf32>
    %20 = arith.mulf %6, %18 : vector<16x1xf32>
    %21 = arith.subf %19, %20 : vector<16x1xf32>
    %22 = vector.broadcast %18 : vector<16x1xf32> to vector<16x512xf32>
    %23 = arith.mulf %2, %22 : vector<16x512xf32>
    %24 = vector.broadcast %21 : vector<16x1xf32> to vector<16x512xf32>
    %25 = arith.addf %23, %24 : vector<16x512xf32>
    %cst_12 = arith.constant 0.000000e+00 : f32
    %26 = vector.broadcast %cst_12 : f32 to vector<16x512xf32>
    %27 = arith.maximumf %25, %26 : vector<16x512xf32>
    %c0_13 = arith.constant 0 : index
    %c0_14 = arith.constant 0 : index
    %28 = vector.load %arg5[%c0_13, %c0_14] : memref<16x512xf32, #tpu.memory_space<vmem>>, vector<16x512xf32>
    tpu.vector_store %arg5[%c0_13, %c0_14], %27 {strides = array<i32>} : memref<16x512xf32, #tpu.memory_space<vmem>>, vector<16x512xf32>,
    return
  }
  func.func @transform_0(%arg0: i32) -> (i32, i32) {
    %c0_i32 = arith.constant 0 : i32
    %c0_i32_0 = arith.constant 0 : i32
    %c0_i32_1 = arith.constant 0 : i32
    return %c0_i32, %c0_i32_0 : i32, i32
  }
  func.func @transform_1(%arg0: i32) -> (i32, i32) {
    %c0_i32 = arith.constant 0 : i32
    %c0_i32_0 = arith.constant 0 : i32
    %c0_i32_1 = arith.constant 0 : i32
    return %c0_i32, %c0_i32_0 : i32, i32
  }
  func.func @transform_2(%arg0: i32) -> (i32, i32) {
    %c0_i32 = arith.constant 0 : i32
    %c0_i32_0 = arith.constant 0 : i32
    %c0_i32_1 = arith.constant 0 : i32
    return %c0_i32, %c0_i32_0 : i32, i32
  }
  func.func @transform_3(%arg0: i32) -> (i32, i32) {
    %c0_i32 = arith.constant 0 : i32
    %c0_i32_0 = arith.constant 0 : i32
    %c0_i32_1 = arith.constant 0 : i32
    return %c0_i32, %c0_i32_0 : i32, i32
  }
  func.func @transform_4(%arg0: i32) -> (i32, i32) {
    %c0_i32 = arith.constant 0 : i32
    %c0_i32_0 = arith.constant 0 : i32
    %c0_i32_1 = arith.constant 0 : i32
    return %c0_i32, %c0_i32_0 : i32, i32
  }
}

module attributes {stable_mosaic.version = 11 : i64} {
  func.func @_conv_bn_relu_kernel(%arg0: i32, %arg1: memref<8x256xbf16, #tpu.memory_space<vmem>>, %arg2: memref<256x2048xbf16, #tpu.memory_space<vmem>>, %arg3: memref<8x1xf32, #tpu.memory_space<vmem>>, %arg4: memref<8x1xf32, #tpu.memory_space<vmem>>, %arg5: memref<8x2048xf32, #tpu.memory_space<vmem>>) attributes {dimension_semantics = [#tpu.dimension_semantics<arbitrary>], iteration_bounds = array<i64: 1>, scalar_prefetch = 0 : i64, scratch_operands = 0 : i64, tpu.core_type = #tpu.core_type<tc>, window_params = [{pipeline_mode = #tpu.pipeline_mode<synchronous>, transform_indices = @transform_0, window_bounds = array<i64: 8, 256>}, {pipeline_mode = #tpu.pipeline_mode<synchronous>, transform_indices = @transform_1, window_bounds = array<i64: 256, 2048>}, {pipeline_mode = #tpu.pipeline_mode<synchronous>, transform_indices = @transform_2, window_bounds = array<i64: 8, 1>}, {pipeline_mode = #tpu.pipeline_mode<synchronous>, transform_indices = @transform_3, window_bounds = array<i64: 8, 1>}, {pipeline_mode = #tpu.pipeline_mode<synchronous>, transform_indices = @transform_4, window_bounds = array<i64: 8, 2048>}]} {
    %c0 = arith.constant 0 : index
    %c0_0 = arith.constant 0 : index
    %0 = vector.load %arg1[%c0, %c0_0] : memref<8x256xbf16, #tpu.memory_space<vmem>>, vector<8x256xbf16>
    %c0_1 = arith.constant 0 : index
    %c0_2 = arith.constant 0 : index
    %1 = vector.load %arg2[%c0_1, %c0_2] : memref<256x2048xbf16, #tpu.memory_space<vmem>>, vector<256x2048xbf16>
    %cst = arith.constant dense<0.000000e+00> : vector<8x2048xf32>
    %2 = tpu.matmul %0, %1, %cst {dimension_numbers = #tpu.dot_dimension_numbers<[1], [0], [0], [1], [0, 0, 1, 1], [], []>} : vector<8x256xbf16>, vector<256x2048xbf16>, vector<8x2048xf32> -> vector<8x2048xf32>
    %cst_3 = arith.constant dense<0.000000e+00> : vector<8xf32>
    %3 = vector.multi_reduction <add>, %2, %cst_3 [1] : vector<8x2048xf32> to vector<8xf32>
    %4 = vector.shape_cast %3 : vector<8xf32> to vector<8x1xf32>
    %cst_4 = arith.constant 2.048000e+03 : f32
    %5 = vector.broadcast %cst_4 : f32 to vector<8x1xf32>
    %6 = arith.divf %4, %5 : vector<8x1xf32>
    %7 = vector.broadcast %6 : vector<8x1xf32> to vector<8x2048xf32>
    %8 = arith.subf %2, %7 : vector<8x2048xf32>
    %9 = arith.mulf %8, %8 : vector<8x2048xf32>
    %cst_5 = arith.constant dense<0.000000e+00> : vector<8xf32>
    %10 = vector.multi_reduction <add>, %9, %cst_5 [1] : vector<8x2048xf32> to vector<8xf32>
    %11 = vector.shape_cast %10 : vector<8xf32> to vector<8x1xf32>
    %cst_6 = arith.constant 2.048000e+03 : f32
    %12 = vector.broadcast %cst_6 : f32 to vector<8x1xf32>
    %13 = arith.divf %11, %12 : vector<8x1xf32>
    %c0_7 = arith.constant 0 : index
    %c0_8 = arith.constant 0 : index
    %14 = vector.load %arg3[%c0_7, %c0_8] : memref<8x1xf32, #tpu.memory_space<vmem>>, vector<8x1xf32>
    %cst_9 = arith.constant 9.99999974E-6 : f32
    %15 = vector.broadcast %cst_9 : f32 to vector<8x1xf32>
    %16 = arith.addf %13, %15 : vector<8x1xf32>
    %17 = math.rsqrt %16 : vector<8x1xf32>
    %18 = arith.mulf %14, %17 : vector<8x1xf32>
    %c0_10 = arith.constant 0 : index
    %c0_11 = arith.constant 0 : index
    %19 = vector.load %arg4[%c0_10, %c0_11] : memref<8x1xf32, #tpu.memory_space<vmem>>, vector<8x1xf32>
    %20 = arith.mulf %6, %18 : vector<8x1xf32>
    %21 = arith.subf %19, %20 : vector<8x1xf32>
    %22 = vector.broadcast %18 : vector<8x1xf32> to vector<8x2048xf32>
    %23 = arith.mulf %2, %22 : vector<8x2048xf32>
    %24 = vector.broadcast %21 : vector<8x1xf32> to vector<8x2048xf32>
    %25 = arith.addf %23, %24 : vector<8x2048xf32>
    %cst_12 = arith.constant 0.000000e+00 : f32
    %26 = vector.broadcast %cst_12 : f32 to vector<8x2048xf32>
    %27 = arith.maximumf %25, %26 : vector<8x2048xf32>
    %c0_13 = arith.constant 0 : index
    %c0_14 = arith.constant 0 : index
    %28 = vector.load %arg5[%c0_13, %c0_14] : memref<8x2048xf32, #tpu.memory_space<vmem>>, vector<8x2048xf32>
    tpu.vector_store %arg5[%c0_13, %c0_14], %27 {strides = array<i32>} : memref<8x2048xf32, #tpu.memory_space<vmem>>, vector<8x2048xf32>,
    return
  }
  func.func @transform_0(%arg0: i32) -> (i32, i32) {
    %c0_i32 = arith.constant 0 : i32
    %c0_i32_0 = arith.constant 0 : i32
    %c0_i32_1 = arith.constant 0 : i32
    return %c0_i32, %c0_i32_0 : i32, i32
  }
  func.func @transform_1(%arg0: i32) -> (i32, i32) {
    %c0_i32 = arith.constant 0 : i32
    %c0_i32_0 = arith.constant 0 : i32
    %c0_i32_1 = arith.constant 0 : i32
    return %c0_i32, %c0_i32_0 : i32, i32
  }
  func.func @transform_2(%arg0: i32) -> (i32, i32) {
    %c0_i32 = arith.constant 0 : i32
    %c0_i32_0 = arith.constant 0 : i32
    %c0_i32_1 = arith.constant 0 : i32
    return %c0_i32, %c0_i32_0 : i32, i32
  }
  func.func @transform_3(%arg0: i32) -> (i32, i32) {
    %c0_i32 = arith.constant 0 : i32
    %c0_i32_0 = arith.constant 0 : i32
    %c0_i32_1 = arith.constant 0 : i32
    return %c0_i32, %c0_i32_0 : i32, i32
  }
  func.func @transform_4(%arg0: i32) -> (i32, i32) {
    %c0_i32 = arith.constant 0 : i32
    %c0_i32_0 = arith.constant 0 : i32
    %c0_i32_1 = arith.constant 0 : i32
    return %c0_i32, %c0_i32_0 : i32, i32
  }
}

module attributes {stable_mosaic.version = 11 : i64} {
  func.func @_conv_tanh_kernel(%arg0: i32, %arg1: memref<3x128xbf16, #tpu.memory_space<vmem>>, %arg2: memref<128x4096xbf16, #tpu.memory_space<vmem>>, %arg3: memref<3x4096xf32, #tpu.memory_space<vmem>>) attributes {dimension_semantics = [#tpu.dimension_semantics<parallel>], iteration_bounds = array<i64: 2>, scalar_prefetch = 0 : i64, scratch_operands = 0 : i64, tpu.core_type = #tpu.core_type<tc>, window_params = [{pipeline_mode = #tpu.pipeline_mode<synchronous>, transform_indices = @transform_0, window_bounds = array<i64: 3, 128>}, {transform_indices = @transform_1, window_bounds = array<i64: 128, 4096>}, {transform_indices = @transform_2, window_bounds = array<i64: 3, 4096>}]} {
    %c0 = arith.constant 0 : index
    %c0_0 = arith.constant 0 : index
    %0 = vector.load %arg1[%c0, %c0_0] : memref<3x128xbf16, #tpu.memory_space<vmem>>, vector<3x128xbf16>
    %c0_1 = arith.constant 0 : index
    %c0_2 = arith.constant 0 : index
    %1 = vector.load %arg2[%c0_1, %c0_2] : memref<128x4096xbf16, #tpu.memory_space<vmem>>, vector<128x4096xbf16>
    %cst = arith.constant dense<0.000000e+00> : vector<3x4096xf32>
    %2 = tpu.matmul %0, %1, %cst {dimension_numbers = #tpu.dot_dimension_numbers<[1], [0], [0], [1], [0, 0, 1, 1], [], []>} : vector<3x128xbf16>, vector<128x4096xbf16>, vector<3x4096xf32> -> vector<3x4096xf32>
    %3 = math.tanh %2 : vector<3x4096xf32>
    %c0_3 = arith.constant 0 : index
    %c0_4 = arith.constant 0 : index
    %4 = vector.load %arg3[%c0_3, %c0_4] : memref<3x4096xf32, #tpu.memory_space<vmem>>, vector<3x4096xf32>
    tpu.vector_store %arg3[%c0_3, %c0_4], %3 {strides = array<i32>} : memref<3x4096xf32, #tpu.memory_space<vmem>>, vector<3x4096xf32>,
    return
  }
  func.func @transform_0(%arg0: i32) -> (i32, i32) {
    %c0_i32 = arith.constant 0 : i32
    %c0_i32_0 = arith.constant 0 : i32
    %c0_i32_1 = arith.constant 0 : i32
    return %c0_i32, %c0_i32_0 : i32, i32
  }
  func.func @transform_1(%arg0: i32) -> (i32, i32) {
    %c0_i32 = arith.constant 0 : i32
    %c0_i32_0 = arith.constant 0 : i32
    return %c0_i32, %arg0 : i32, i32
  }
  func.func @transform_2(%arg0: i32) -> (i32, i32) {
    %c0_i32 = arith.constant 0 : i32
    %c0_i32_0 = arith.constant 0 : i32
    return %c0_i32, %arg0 : i32, i32
  }
}

</mosaic_0001>

<bundles_post_ra>
// kernel: generator_forward.5
= control target key start
LH: loop header
LB: loop body
LE: loop exit
PB: predicated region body
PF: predicated region fallthrough
CT: control target
= control target key end

     0   :  { %vm142_vm0 = vcmask 261120   ;;  %v581_v28 = vmov 32.0   ;;  %s877_s1 = inlined_call_operand.vmem [shape: bf16[128,32], index: 1, kind: input, shape index: {}]   ;;  %s878_s0 = inlined_call_operand.vmem [shape: bf16[64,128], index: 0, kind: input, shape index: {}]   ;;  %s879_s2 = inlined_call_operand.vmem [shape: f32[64,1], index: 2, kind: input, shape index: {}]   ;;  %s880_s3 = inlined_call_operand.vmem [shape: f32[64,1], index: 3, kind: input, shape index: {}]   ;;  %s881_s4 = inlined_call_operand.vmem [shape: f32[64,32], index: 4, kind: output, shape index: {}]  }
   0x1   :  { %v533_v0 = vld [vmem:[%s877_s1 + $0x38] sm:$0xff]  ;;  %v532_v1 = vld [vmem:[%s877_s1 + $0x30] sm:$0xff]  ;;  %v531_v2 = vld [vmem:[%s877_s1 + $0x28] sm:$0xff]  ;;  %563 = vrcp.f32 %v581_v28 }
   0x2   :  { %113 = vmatpush.bf16.msra.mxu0 %v533_v0  ;;  %534 = vmatpush.bf16.msra.mxu1 %v533_v0  ;;  %v530_v3 = vld [vmem:[%s877_s1 + $0x20] sm:$0xff]  ;;  %v529_v4 = vld [vmem:[%s877_s1 + $0x18] sm:$0xff]  ;;  %v528_v5 = vld [vmem:[%s877_s1 + $0x10] sm:$0xff] }
   0x3   :  { %535 = vmatpush.bf16.msra.mxu2 %v533_v0  ;;  %536 = vmatpush.bf16.msra.mxu3 %v533_v0  ;;  %v527_v6 = vld [vmem:[%s877_s1 + $0x8] sm:$0xff]  ;;  %v526_v7 = vld [vmem:[%s877_s1] sm:$0xff]  ;;  %v524_v10 = vld [vmem:[%s878_s0 + $0x10] sm:$0xff] }
   0x4   :  { %v522_v8 = vld [vmem:[%s878_s0] sm:$0xff]  ;;  %v523_v9 = vld [vmem:[%s878_s0 + $0x8] sm:$0xff]  ;;  %v525_v11 = vld [vmem:[%s878_s0 + $0x18] sm:$0xff] }
   0x6   :  { %114 = vmatpush.bf16.msra.mxu0 %v532_v1  ;;  %537 = vmatpush.bf16.msra.mxu1 %v532_v1 }
   0x7   :  { %538 = vmatpush.bf16.msra.mxu2 %v532_v1  ;;  %539 = vmatpush.bf16.msra.mxu3 %v532_v1  ;;  %v564_v29 = vpop.eup %563 }
   0x8   :  { %v168_v30 = vmul.f32 32.0, %v564_v29  ;;  %vm172_vm1 = vweird.f32 %v564_v29 }
   0xa   :  { %115 = vmatpush.bf16.msra.mxu0 %v531_v2  ;;  %540 = vmatpush.bf16.msra.mxu1 %v531_v2  ;;  %v169_v31 = vsub.f32 1.0, %v168_v30 }
   0xb   :  { %541 = vmatpush.bf16.msra.mxu2 %v531_v2  ;;  %542 = vmatpush.bf16.msra.mxu3 %v531_v2 }
   0xc   :  { %v170_v32 = vmul.f32 %v564_v29, %v169_v31 }
   0xe   :  { %116 = vmatpush.bf16.msra.mxu0 %v530_v3  ;;  %543 = vmatpush.bf16.msra.mxu1 %v530_v3  ;;  %v171_v33 = vadd.f32 %v564_v29, %v170_v32 }
   0xf   :  { %544 = vmatpush.bf16.msra.mxu2 %v530_v3  ;;  %545 = vmatpush.bf16.msra.mxu3 %v530_v3 }
  0x10   :  { %v676_v34 = vsel %vm172_vm1, %v564_v29, %v171_v33 }
  0x12   :  { %117 = vmatpush.bf16.msra.mxu0 %v529_v4  ;;  %546 = vmatpush.bf16.msra.mxu1 %v529_v4 }
  0x13   :  { %547 = vmatpush.bf16.msra.mxu2 %v529_v4  ;;  %548 = vmatpush.bf16.msra.mxu3 %v529_v4 }
  0x16   :  { %118 = vmatpush.bf16.msra.mxu0 %v528_v5  ;;  %549 = vmatpush.bf16.msra.mxu1 %v528_v5 }
  0x17   :  { %550 = vmatpush.bf16.msra.mxu2 %v528_v5  ;;  %551 = vmatpush.bf16.msra.mxu3 %v528_v5 }
  0x1a   :  { %119 = vmatpush.bf16.msra.mxu0 %v527_v6  ;;  %552 = vmatpush.bf16.msra.mxu1 %v527_v6 }
  0x1b   :  { %553 = vmatpush.bf16.msra.mxu2 %v527_v6  ;;  %554 = vmatpush.bf16.msra.mxu3 %v527_v6 }
  0x1e   :  { %120 = vmatpush.bf16.msra.mxu0 %v526_v7  ;;  %555 = vmatpush.bf16.msra.mxu1 %v526_v7 }
  0x1f   :  { %556 = vmatpush.bf16.msra.mxu2 %v526_v7  ;;  %557 = vmatpush.bf16.msra.mxu3 %v526_v7 }
  0x21   :  { %121 = vmatmul.bf16.vlgmr.msra.gmra.mxu0 %v522_v8  ;;  %126 = vmatmul.bf16.vlgmr.msra.gmra.mxu1 %v523_v9 }
  0x22   :  { %131 = vmatmul.bf16.vlgmr.msra.gmra.mxu2 %v524_v10  ;;  %136 = vmatmul.bf16.vlgmr.msra.gmra.mxu3 %v525_v11  ;;  %v582_v11 = vmov 0  }
  0x23   :  { %561 = vset.pattern.permute.xlu0 %v582_v11  ;;  %560 = vset.pattern.permute.xlu1 %v582_v11 }
  0x24   :  { %562 = vset.pattern.permute.xlu2 %v582_v11 }
  0x9e   :  { %v644_v12 = vpop.f32.mrf.mxu0  ;;  %v646_v13 = vpop.f32.mrf.mxu1 }
  0x9f   :  { %v149_v14 = vsel %vm142_vm0, %v646_v13, 0.0  ;;  %v143_v15 = vsel %vm142_vm0, %v644_v12, 0.0 }
  0xa0   :  { %150 = vadd.xlane.f32.xlu1 %v149_v14  ;;  %144 = vadd.xlane.f32.xlu0 %v143_v15 }
  0xa5   :  { %v652_v16 = vpop.f32.mrf.mxu2  ;;  %v654_v17 = vpop.f32.mrf.mxu3 }
  0xa6   :  { %v155_v18 = vsel %vm142_vm0, %v652_v16, 0.0  ;;  %v658_v19 = vpop.f32.mrf.mxu0  ;;  %v660_v20 = vpop.f32.mrf.mxu1  ;;  %v161_v25 = vsel %vm142_vm0, %v654_v17, 0.0 }
  0xa7   :  { %156 = vadd.xlane.f32.xlu2 %v155_v18  ;;  %v152_v21 = vsel %vm142_vm0, %v660_v20, 0.0  ;;  %v146_v22 = vsel %vm142_vm0, %v658_v19, 0.0 }
  0xa8   :  { %153 = vadd.xlane.f32.xlu1 %v152_v21  ;;  %147 = vadd.xlane.f32.xlu0 %v146_v22 }
  0xad   :  { %v666_v23 = vpop.f32.mrf.mxu2  ;;  %v668_v24 = vpop.f32.mrf.mxu3 }
  0xae   :  { %v158_v26 = vsel %vm142_vm0, %v666_v23, 0.0  ;;  %v164_v27 = vsel %vm142_vm0, %v668_v24, 0.0 }
  0xaf   :  { %159 = vadd.xlane.f32.xlu2 %v158_v26 }
  0xb0   :  { %165 = vadd.xlane.f32.xlu1 %v164_v27  ;;  %162 = vadd.xlane.f32.xlu0 %v161_v25 }
 0x113   :  { %v151_v35 = vpop.xlane.xlu1 %150  ;;  %v145_v36 = vpop.xlane.xlu0 %144 }
 0x114   :  { %v679_v37 = vmul.f32 %v676_v34, %v151_v35  ;;  %v682_v38 = vmul.f32 %v676_v34, %v145_v36 }
 0x116   :  { %v184_v39 = vsub.f32 %v646_v13, %v679_v37  ;;  %v182_v40 = vsub.f32 %v644_v12, %v682_v38 }
 0x118   :  { %v192_v41 = vmul.f32 %v184_v39, %v184_v39  ;;  %v190_v42 = vmul.f32 %v182_v40, %v182_v40 }
 0x11a   :  { %v157_v43 = vpop.xlane.xlu2 %156  ;;  %v204_v44 = vsel %vm142_vm0, %v192_v41, 0.0  ;;  %v198_v45 = vsel %vm142_vm0, %v190_v42, 0.0 }
 0x11b   :  { %v691_v46 = vmul.f32 %v676_v34, %v157_v43  ;;  %205 = vadd.xlane.f32.xlu1 %v204_v44  ;;  %v154_v47 = vpop.xlane.xlu1 %153  ;;  %199 = vadd.xlane.f32.xlu2 %v198_v45  ;;  %v148_v48 = vpop.xlane.xlu0 %147 }
 0x11c   :  { %v696_v50 = vmul.f32 %v676_v34, %v148_v48  ;;  %v713_v62 = vmul.f32 %v676_v34, %v154_v47 }
 0x11d   :  { %v186_v49 = vsub.f32 %v652_v16, %v691_v46 }
 0x11e   :  { %v183_v52 = vsub.f32 %v658_v19, %v696_v50  ;;  %v185_v5 = vsub.f32 %v660_v20, %v713_v62 }
 0x11f   :  { %v194_v51 = vmul.f32 %v186_v49, %v186_v49 }
 0x120   :  { %v191_v61 = vmul.f32 %v183_v52, %v183_v52  ;;  %v193_v8 = vmul.f32 %v185_v5, %v185_v5 }
 0x121   :  { %v210_v53 = vsel %vm142_vm0, %v194_v51, 0.0 }
 0x122   :  { %v160_v54 = vpop.xlane.xlu2 %159  ;;  %211 = vadd.xlane.f32.xlu0 %v210_v53  ;;  %v201_v4 = vsel %vm142_vm0, %v191_v61, 0.0  ;;  %v207_v10 = vsel %vm142_vm0, %v193_v8, 0.0  ;;  %v230_v61 = vld [vmem:[%s879_s2] sm:$0xff] }
 0x123   :  { %v702_v55 = vmul.f32 %v676_v34, %v160_v54  ;;  %v166_v56 = vpop.xlane.xlu1 %165  ;;  %v163_v57 = vpop.xlane.xlu0 %162 }
 0x124   :  { %v705_v58 = vmul.f32 %v676_v34, %v163_v57  ;;  %v710_v60 = vmul.f32 %v676_v34, %v166_v56  ;;  %v232_v56 = vld [vmem:[%s879_s2 + $0x10] sm:$0xff] }
 0x125   :  { %v187_v59 = vsub.f32 %v666_v23, %v702_v55 }
 0x126   :  { %v188_v63 = vsub.f32 %v654_v17, %v705_v58  ;;  %v189_v2 = vsub.f32 %v668_v24, %v710_v60 }
 0x127   :  { %v195_v0 = vmul.f32 %v187_v59, %v187_v59 }
 0x128   :  { %v196_v1 = vmul.f32 %v188_v63, %v188_v63  ;;  %v197_v7 = vmul.f32 %v189_v2, %v189_v2 }
 0x129   :  { %v213_v3 = vsel %vm142_vm0, %v195_v0, 0.0 }
 0x12a   :  { %214 = vadd.xlane.f32.xlu1 %v213_v3  ;;  %202 = vadd.xlane.f32.xlu0 %v201_v4  ;;  %v216_v6 = vsel %vm142_vm0, %v196_v1, 0.0  ;;  %v219_v9 = vsel %vm142_vm0, %v197_v7, 0.0 }
 0x12b   :  { %217 = vadd.xlane.f32.xlu2 %v216_v6 }
 0x132   :  { %220 = vadd.xlane.f32.xlu0 %v219_v9 }
 0x133   :  { %208 = vadd.xlane.f32.xlu2 %v207_v10 }
 0x18e   :  { %v206_v14 = vpop.xlane.xlu1 %205  ;;  %v200_v15 = vpop.xlane.xlu2 %199 }
 0x18f   :  { %v224_v18 = vmul.f32 %v206_v14, %v676_v34  ;;  %v222_v21 = vmul.f32 %v200_v15, %v676_v34 }
 0x191   :  { %v240_v22 = vadd.f32 1e-05, %v224_v18  ;;  %v238_v25 = vadd.f32 1e-05, %v222_v21  ;;  %v336_v21 = vld [vmem:[%s880_s3 + $0x10] sm:$0xff] }
 0x193   :  { %565 = vrsqrt.f32 %v240_v22  ;;  %vm272_vm4 = vweird.f32 %v240_v22  ;;  %vm252_vm6 = vweird.f32 %v238_v25 }
 0x194   :  { %567 = vrsqrt.f32 %v238_v25 }
 0x195   :  { %v212_v26 = vpop.xlane.xlu0 %211 }
 0x196   :  { %v226_v27 = vmul.f32 %v212_v26, %v676_v34 }
 0x198   :  { %v242_v28 = vadd.f32 1e-05, %v226_v27 }
 0x199   :  { %v566_v29 = vpop.eup %565 }
 0x19a   :  { %v568_v30 = vpop.eup %567  ;;  %v267_v31 = vmul.f32 %v566_v29, %v240_v22  ;;  %569 = vrsqrt.f32 %v242_v28  ;;  %vm273_vm2 = vweird.f32 %v566_v29  ;;  %vm292_vm9 = vweird.f32 %v242_v28 }
 0x19b   :  { %v247_v32 = vmul.f32 %v568_v30, %v238_v25  ;;  %vm253_vm3 = vweird.f32 %v568_v30  ;;  %vm274_vm5 = vmor %vm272_vm4, %vm273_vm2 }
 0x19c   :  { %v268_v33 = vmul.f32 %v566_v29, %v267_v31  ;;  %vm254_vm7 = vmor %vm252_vm6, %vm253_vm3 }
 0x19d   :  { %v248_v35 = vmul.f32 %v568_v30, %v247_v32  ;;  %v215_v36 = vpop.xlane.xlu1 %214  ;;  %v203_v39 = vpop.xlane.xlu0 %202 }
 0x19e   :  { %v269_v40 = vmul.f32 0.5, %v268_v33  ;;  %v227_v41 = vmul.f32 %v215_v36, %v676_v34  ;;  %v223_v42 = vmul.f32 %v203_v39, %v676_v34  ;;  %v218_v43 = vpop.xlane.xlu2 %217  ;;  %v338_v39 = vld [vmem:[%s880_s3 + $0x20] sm:$0xff] }
 0x19f   :  { %v249_v44 = vmul.f32 0.5, %v248_v35  ;;  %v228_v45 = vmul.f32 %v218_v43, %v676_v34 }
 0x1a0   :  { %v570_v47 = vpop.eup %569  ;;  %v270_v48 = vsub.f32 1.5, %v269_v40  ;;  %v732_v49 = vadd.f32 1e-05, %v223_v42  ;;  %v734_v53 = vadd.f32 1e-05, %v227_v41 }
 0x1a1   :  { %v250_v51 = vsub.f32 1.5, %v249_v44  ;;  %v287_v52 = vmul.f32 %v570_v47, %v242_v28  ;;  %v736_v54 = vadd.f32 1e-05, %v228_v45  ;;  %vm293_vm8 = vweird.f32 %v570_v47 }
 0x1a2   :  { %v271_v57 = vmul.f32 %v566_v29, %v270_v48  ;;  %571 = vrsqrt.f32 %v732_v49  ;;  %vm294_vm10 = vmor %vm292_vm9, %vm293_vm8  ;;  %vm262_vm12 = vweird.f32 %v732_v49  ;;  %vm302_vm9 = vweird.f32 %v734_v53 }
 0x1a3   :  { %v288_v59 = vmul.f32 %v570_v47, %v287_v52  ;;  %v251_v63 = vmul.f32 %v568_v30, %v250_v51  ;;  %573 = vrsqrt.f32 %v736_v54  ;;  %v231_v51 = vld [vmem:[%s879_s2 + $0x8] sm:$0xff]  ;;  %vm312_vm1 = vweird.f32 %v736_v54 }
 0x1a4   :  { %v275_v0 = vsel %vm274_vm5, %v566_v29, %v271_v57  ;;  %575 = vrsqrt.f32 %v734_v53  ;;  %v334_v29 = vld [vmem:[%s880_s3] sm:$0xff] }
 0x1a5   :  { %v289_v1 = vmul.f32 0.5, %v288_v59  ;;  %v221_v2 = vpop.xlane.xlu0 %220  ;;  %v255_v3 = vsel %vm254_vm7, %v568_v30, %v251_v63  ;;  %v328_v4 = vmul.f32 %v275_v0, %v232_v56 }
 0x1a6   :  { %v229_v5 = vmul.f32 %v221_v2, %v676_v34  ;;  %v209_v6 = vpop.xlane.xlu2 %208  ;;  %v326_v7 = vmul.f32 %v255_v3, %v230_v61 }
 0x1a7   :  { %v290_v8 = vsub.f32 1.5, %v289_v1  ;;  %v225_v9 = vmul.f32 %v209_v6, %v676_v34  ;;  %370 = vperm.xlu0 %561, %v328_v4   ;;  %v344_v11 = vmul.f32 %v328_v4, %v679_v37  ;;  %v234_v37 = vld [vmem:[%s879_s2 + $0x20] sm:$0xff] }
 0x1a8   :  { %v750_v10 = vadd.f32 1e-05, %v229_v5  ;;  %360 = vperm.xlu1 %560, %v326_v7   ;;  %v572_v14 = vpop.eup %571  ;;  %v342_v25 = vmul.f32 %v326_v7, %v682_v38 }
 0x1a9   :  { %v291_v15 = vmul.f32 %v570_v47, %v290_v8  ;;  %v753_v18 = vadd.f32 1e-05, %v225_v9  ;;  %v758_v22 = vpop.eup %573  ;;  %v257_v34 = vmul.f32 %v572_v14, %v732_v49  ;;  %v352_v31 = vsub.f32 %v336_v21, %v344_v11  ;;  %v335_v49 = vld [vmem:[%s880_s3 + $0x8] sm:$0xff]  ;;  %v237_v11 = vld [vmem:[%s879_s2 + $0x38] sm:$0xff] }
 0x1aa   :  { %577 = vrsqrt.f32 %v750_v10  ;;  %v766_v26 = vpop.eup %575  ;;  %v307_v28 = vmul.f32 %v758_v22, %v736_v54  ;;  %v350_v36 = vsub.f32 %v334_v29, %v342_v25  ;;  %vm263_vm11 = vweird.f32 %v572_v14 }
 0x1ab   :  { %v295_v27 = vsel %vm294_vm10, %v570_v47, %v291_v15  ;;  %v258_v30 = vmul.f32 %v572_v14, %v257_v34  ;;  %579 = vrsqrt.f32 %v753_v18  ;;  %v297_v33 = vmul.f32 %v766_v26, %v734_v53  ;;  %418 = vperm.xlu2 %562, %v352_v31   ;;  %vm264_vm13 = vmor %vm262_vm12, %vm263_vm11  ;;  %v233_v15 = vld [vmem:[%s879_s2 + $0x18] sm:$0xff] }
 0x1ac   :  { %v308_v38 = vmul.f32 %v758_v22, %v307_v28  ;;  %v330_v32 = vmul.f32 %v295_v27, %v234_v37  ;;  %vm313_vm14 = vweird.f32 %v758_v22  ;;  %vm322_vm2 = vweird.f32 %v750_v10  ;;  %v337_v31 = vld [vmem:[%s880_s3 + $0x18] sm:$0xff] }
 0x1ad   :  { %v259_v35 = vmul.f32 0.5, %v258_v30  ;;  %v298_v48 = vmul.f32 %v766_v26, %v297_v33  ;;  %vm796_vm3 = vmor %vm312_vm1, %vm313_vm14  ;;  %vm282_vm6 = vweird.f32 %v753_v18  ;;  %vm303_vm8 = vweird.f32 %v766_v26 }
 0x1ae   :  { %v309_v40 = vmul.f32 0.5, %v308_v38  ;;  %v346_v41 = vmul.f32 %v330_v32, %v691_v46  ;;  %vm304_vm10 = vmor %vm302_vm9, %vm303_vm8 }
 0x1af   :  { %v260_v43 = vsub.f32 1.5, %v259_v35  ;;  %v299_v1 = vmul.f32 0.5, %v298_v48 }
 0x1b0   :  { %v578_v42 = vpop.eup %577  ;;  %408 = vperm.xlu1 %560, %v350_v36   ;;  %v354_v45 = vsub.f32 %v338_v39, %v346_v41  ;;  %v310_v56 = vsub.f32 1.5, %v309_v40  ;;  %v339_v39 = vld [vmem:[%s880_s3 + $0x28] sm:$0xff] }
 0x1b1   :  { %v317_v44 = vmul.f32 %v578_v42, %v750_v10  ;;  %v580_v47 = vpop.eup %579  ;;  %v261_v52 = vmul.f32 %v572_v14, %v260_v43  ;;  %vm323_vm15 = vweird.f32 %v578_v42  ;;  %v236_v10 = vld [vmem:[%s879_s2 + $0x30] sm:$0xff] }
 0x1b2   :  { %v277_v57 = vmul.f32 %v580_v47, %v753_v18  ;;  %428 = vperm.xlu0 %561, %v354_v45   ;;  %v311_v5 = vmul.f32 %v758_v22, %v310_v56  ;;  %vm283_vm4 = vweird.f32 %v580_v47  ;;  %vm324_vm5 = vmor %vm322_vm2, %vm323_vm15  ;;  %v341_v18 = vld [vmem:[%s880_s3 + $0x38] sm:$0xff] }
 0x1b3   :  { %v318_v46 = vmul.f32 %v578_v42, %v317_v44  ;;  %v265_v59 = vsel %vm264_vm13, %v572_v14, %v261_v52  ;;  %vm284_vm7 = vmor %vm282_vm6, %vm283_vm4 }
 0x1b4   :  { %v278_v63 = vmul.f32 %v580_v47, %v277_v57  ;;  %v327_v0 = vmul.f32 %v265_v59, %v231_v51  ;;  %v315_v14 = vsel %vm796_vm3, %v758_v22, %v311_v5 }
 0x1b5   :  { %v319_v61 = vmul.f32 0.5, %v318_v46  ;;  %v332_v37 = vmul.f32 %v315_v14, %v236_v10 }
 0x1b6   :  { %v279_v3 = vmul.f32 0.5, %v278_v63  ;;  %365 = vperm.xlu2 %562, %v327_v0   ;;  %v343_v4 = vmul.f32 %v327_v0, %v696_v50  ;;  %v300_v50 = vsub.f32 1.5, %v299_v1 }
 0x1b7   :  { %v320_v2 = vsub.f32 1.5, %v319_v61  ;;  %v348_v53 = vmul.f32 %v332_v37, %v705_v58 }
 0x1b8   :  { %380 = vperm.xlu1 %560, %v330_v32   ;;  %v280_v8 = vsub.f32 1.5, %v279_v3  ;;  %v351_v9 = vsub.f32 %v335_v49, %v343_v4  ;;  %v301_v22 = vmul.f32 %v766_v26, %v300_v50 }
 0x1b9   :  { %v321_v7 = vmul.f32 %v578_v42, %v320_v2 }
 0x1ba   :  { %413 = vperm.xlu0 %561, %v351_v9   ;;  %v281_v21 = vmul.f32 %v580_v47, %v280_v8  ;;  %v305_v38 = vsel %vm304_vm10, %v766_v26, %v301_v22 }
 0x1bb   :  { %v325_v54 = vsel %vm324_vm5, %v578_v42, %v321_v7 }
 0x1bc   :  { %v333_v34 = vmul.f32 %v325_v54, %v237_v11  ;;  %v285_v25 = vsel %vm284_vm7, %v580_v47, %v281_v21 }
 0x1bd   :  { %v329_v27 = vmul.f32 %v285_v25, %v233_v15 }
 0x1be   :  { %v349_v28 = vmul.f32 %v333_v34, %v710_v60  ;;  %v235_v60 = vld [vmem:[%s879_s2 + $0x28] sm:$0xff] }
 0x1bf   :  { %375 = vperm.xlu2 %562, %v329_v27   ;;  %v345_v30 = vmul.f32 %v329_v27, %v713_v62  ;;  %v331_v33 = vmul.f32 %v305_v38, %v235_v60  ;;  %v340_v62 = vld [vmem:[%s880_s3 + $0x30] sm:$0xff] }
 0x1c0   :  { %390 = vperm.xlu1 %560, %v332_v37   ;;  %v357_v29 = vsub.f32 %v341_v18, %v349_v28  ;;  %v356_v35 = vsub.f32 %v340_v62, %v348_v53 }
 0x1c1   :  { %v353_v32 = vsub.f32 %v337_v31, %v345_v30  ;;  %v347_v36 = vmul.f32 %v331_v33, %v702_v55 }
 0x1c2   :  { %443 = vperm.xlu0 %561, %v357_v29  }
 0x1c3   :  { %v355_v26 = vsub.f32 %v339_v39, %v347_v36 }
 0x1c7   :  { %385 = vperm.xlu2 %562, %v331_v33  }
 0x1c8   :  { %423 = vperm.xlu1 %560, %v353_v32  }
 0x1cf   :  { %395 = vperm.xlu2 %562, %v333_v34  }
 0x1d0   :  { %438 = vperm.xlu1 %560, %v356_v35  }
 0x1d7   :  { %433 = vperm.xlu2 %562, %v355_v26  }
 0x205   :  { %v419_v40 = vpop.permute.xlu2 %418 }
 0x210   :  { %v366_v41 = vpop.permute.xlu2 %365 }
 0x211   :  { %v399_v61 = vmul.f32 %v366_v41, %v658_v19 }
 0x219   :  { %v371_v42 = vpop.permute.xlu0 %370  ;;  %v376_v58 = vpop.permute.xlu2 %375 }
 0x21a   :  { %v361_v43 = vpop.permute.xlu1 %360  ;;  %v400_v44 = vmul.f32 %v371_v42, %v646_v13  ;;  %v401_v8 = vmul.f32 %v376_v58, %v660_v20 }
 0x21b   :  { %v398_v55 = vmul.f32 %v361_v43, %v644_v12 }
 0x21c   :  { %v448_v45 = vadd.f32 %v419_v40, %v400_v44 }
 0x21e   :  { %v456_v47 = vmax.f32 %v448_v45, 0.0 }
 0x220   :  { %464 = vst.msk [vmem:[%s881_s4 + $0x10] sm:$0xff] %vm142_vm0, %v456_v47 }
 0x221   :  { %v386_v51 = vpop.permute.xlu2 %385 }
 0x222   :  { %v409_v48 = vpop.permute.xlu1 %408  ;;  %v403_v2 = vmul.f32 %v386_v51, %v666_v23 }
 0x223   :  { %v446_v52 = vadd.f32 %v409_v48, %v398_v55 }
 0x224   :  { %v429_v46 = vpop.permute.xlu0 %428 }
 0x225   :  { %v454_v56 = vmax.f32 %v446_v52, 0.0 }
 0x227   :  { %462 = vst.msk [vmem:[%s881_s4] sm:$0xff] %vm142_vm0, %v454_v56 }
 0x229   :  { %v396_v57 = vpop.permute.xlu2 %395 }
 0x22a   :  { %v381_v13 = vpop.permute.xlu1 %380  ;;  %v405_v4 = vmul.f32 %v396_v57, %v668_v24 }
 0x22b   :  { %v402_v59 = vmul.f32 %v381_v13, %v652_v16 }
 0x22c   :  { %v414_v0 = vpop.permute.xlu0 %413 }
 0x22d   :  { %v450_v63 = vadd.f32 %v429_v46, %v402_v59  ;;  %v447_v1 = vadd.f32 %v414_v0, %v399_v61 }
 0x22f   :  { %v458_v12 = vmax.f32 %v450_v63, 0.0  ;;  %v455_v49 = vmax.f32 %v447_v1, 0.0 }
 0x231   :  { %466 = vst.msk [vmem:[%s881_s4 + $0x20] sm:$0xff] %vm142_vm0, %v458_v12  ;;  %v434_v3 = vpop.permute.xlu2 %433 }
 0x232   :  { %463 = vst.msk [vmem:[%s881_s4 + $0x8] sm:$0xff] %vm142_vm0, %v455_v49  ;;  %v391_v16 = vpop.permute.xlu1 %390  ;;  %v451_v19 = vadd.f32 %v434_v3, %v403_v2 }
 0x233   :  { %v404_v24 = vmul.f32 %v391_v16, %v654_v17 }
 0x234   :  { %v459_v5 = vmax.f32 %v451_v19, 0.0  ;;  %v444_v6 = vpop.permute.xlu0 %443 }
 0x235   :  { %v453_v7 = vadd.f32 %v444_v6, %v405_v4 }
 0x236   :  { %467 = vst.msk [vmem:[%s881_s4 + $0x28] sm:$0xff] %vm142_vm0, %v459_v5 }
 0x237   :  { %v461_v23 = vmax.f32 %v453_v7, 0.0 }
 0x239   :  { %469 = vst.msk [vmem:[%s881_s4 + $0x38] sm:$0xff] %vm142_vm0, %v461_v23 }
 0x23a   :  { %v424_v9 = vpop.permute.xlu1 %423 }
 0x23b   :  { %v449_v11 = vadd.f32 %v424_v9, %v401_v8 }
 0x23d   :  { %v457_v50 = vmax.f32 %v449_v11, 0.0 }
 0x23f   :  { %465 = vst.msk [vmem:[%s881_s4 + $0x18] sm:$0xff] %vm142_vm0, %v457_v50 }
 0x242   :  { %v439_v54 = vpop.permute.xlu1 %438 }
 0x243   :  { %v452_v10 = vadd.f32 %v439_v54, %v404_v24 }
 0x245   :  { %v460_v14 = vmax.f32 %v452_v10, 0.0 }
 0x247   :  { %468 = vst.msk [vmem:[%s881_s4 + $0x30] sm:$0xff] %vm142_vm0, %v460_v14 }

// kernel: generator_forward.6
= control target key start
LH: loop header
LB: loop body
LE: loop exit
PB: predicated region body
PF: predicated region fallthrough
CT: control target
= control target key end

     0   :  { %s1738_s1 = inlined_call_operand.vmem [shape: bf16[1024,128], index: 1, kind: input, shape index: {}]   ;;  %s1739_s0 = inlined_call_operand.vmem [shape: bf16[32,1024], index: 0, kind: input, shape index: {}]   ;;  %s1740_s2 = inlined_call_operand.vmem [shape: f32[32,1], index: 2, kind: input, shape index: {}]   ;;  %s1741_s3 = inlined_call_operand.vmem [shape: f32[32,1], index: 3, kind: input, shape index: {}]   ;;  %s1742_s4 = inlined_call_operand.vmem [shape: f32[32,128], index: 4, kind: output, shape index: {}]  }
   0x1   :  { %v1283_v0 = vld [vmem:[%s1738_s1 + $0x38] sm:$0xff]  ;;  %v1282_v4 = vld [vmem:[%s1738_s1 + $0x30] sm:$0xff]  ;;  %v1281_v8 = vld [vmem:[%s1738_s1 + $0x28] sm:$0xff] }
   0x2   :  { %v1291_v1 = vld [vmem:[%s1738_s1 + $0x78] sm:$0xff]  ;;  %625 = vmatpush.bf16.msra.mxu0 %v1283_v0  ;;  %v1290_v5 = vld [vmem:[%s1738_s1 + $0x70] sm:$0xff]  ;;  %v1289_v9 = vld [vmem:[%s1738_s1 + $0x68] sm:$0xff] }
   0x3   :  { %v1299_v2 = vld [vmem:[%s1738_s1 + $0xb8] sm:$0xff]  ;;  %644 = vmatpush.bf16.msra.mxu1 %v1291_v1  ;;  %v1298_v6 = vld [vmem:[%s1738_s1 + $0xb0] sm:$0xff]  ;;  %v1297_v10 = vld [vmem:[%s1738_s1 + $0xa8] sm:$0xff] }
   0x4   :  { %v1307_v3 = vld [vmem:[%s1738_s1 + $0xf8] sm:$0xff]  ;;  %663 = vmatpush.bf16.msra.mxu2 %v1299_v2  ;;  %v1306_v7 = vld [vmem:[%s1738_s1 + $0xf0] sm:$0xff]  ;;  %v1305_v11 = vld [vmem:[%s1738_s1 + $0xe8] sm:$0xff] }
   0x5   :  { %682 = vmatpush.bf16.msra.mxu3 %v1307_v3  ;;  %v1280_v12 = vld [vmem:[%s1738_s1 + $0x20] sm:$0xff]  ;;  %v1279_v16 = vld [vmem:[%s1738_s1 + $0x18] sm:$0xff]  ;;  %v1278_v20 = vld [vmem:[%s1738_s1 + $0x10] sm:$0xff] }
   0x6   :  { %626 = vmatpush.bf16.msra.mxu0 %v1282_v4  ;;  %v1288_v13 = vld [vmem:[%s1738_s1 + $0x60] sm:$0xff]  ;;  %v1287_v17 = vld [vmem:[%s1738_s1 + $0x58] sm:$0xff]  ;;  %v1286_v21 = vld [vmem:[%s1738_s1 + $0x50] sm:$0xff] }
   0x7   :  { %645 = vmatpush.bf16.msra.mxu1 %v1290_v5  ;;  %v1296_v14 = vld [vmem:[%s1738_s1 + $0xa0] sm:$0xff]  ;;  %v1295_v18 = vld [vmem:[%s1738_s1 + $0x98] sm:$0xff]  ;;  %v1294_v22 = vld [vmem:[%s1738_s1 + $0x90] sm:$0xff] }
   0x8   :  { %664 = vmatpush.bf16.msra.mxu2 %v1298_v6  ;;  %v1304_v15 = vld [vmem:[%s1738_s1 + $0xe0] sm:$0xff]  ;;  %v1303_v19 = vld [vmem:[%s1738_s1 + $0xd8] sm:$0xff]  ;;  %v1302_v23 = vld [vmem:[%s1738_s1 + $0xd0] sm:$0xff] }
   0x9   :  { %683 = vmatpush.bf16.msra.mxu3 %v1306_v7  ;;  %v1277_v24 = vld [vmem:[%s1738_s1 + $0x8] sm:$0xff]  ;;  %v1276_v28 = vld [vmem:[%s1738_s1] sm:$0xff]  ;;  %v1331_v40 = vld [vmem:[%s1738_s1 + $0x1b8] sm:$0xff] }
   0xa   :  { %627 = vmatpush.bf16.msra.mxu0 %v1281_v8  ;;  %v1285_v25 = vld [vmem:[%s1738_s1 + $0x48] sm:$0xff]  ;;  %v1284_v29 = vld [vmem:[%s1738_s1 + $0x40] sm:$0xff]  ;;  %v1315_v41 = vld [vmem:[%s1738_s1 + $0x138] sm:$0xff] }
   0xb   :  { %646 = vmatpush.bf16.msra.mxu1 %v1289_v9  ;;  %v1293_v26 = vld [vmem:[%s1738_s1 + $0x88] sm:$0xff]  ;;  %v1292_v30 = vld [vmem:[%s1738_s1 + $0x80] sm:$0xff]  ;;  %v1323_v46 = vld [vmem:[%s1738_s1 + $0x178] sm:$0xff] }
   0xc   :  { %665 = vmatpush.bf16.msra.mxu2 %v1297_v10  ;;  %v1301_v27 = vld [vmem:[%s1738_s1 + $0xc8] sm:$0xff]  ;;  %v1300_v31 = vld [vmem:[%s1738_s1 + $0xc0] sm:$0xff]  ;;  %v1339_v47 = vld [vmem:[%s1738_s1 + $0x1f8] sm:$0xff] }
   0xd   :  { %684 = vmatpush.bf16.msra.mxu3 %v1305_v11  ;;  %v942_v32 = vld [vmem:[%s1739_s0] sm:$0xf]  ;;  %v1260_v34 = vld [vmem:[%s1739_s0 + $0x4] sm:$0xf]  ;;  %v950_v36 = vld [vmem:[%s1739_s0 + $0x8] sm:$0xf] }
   0xe   :  { %628 = vmatpush.bf16.msra.mxu0 %v1280_v12  ;;  %v1264_v33 = vld [vmem:[%s1739_s0 + $0x1c] sm:$0xf0]  ;;  %v944_v35 = vld [vmem:[%s1739_s0 + $0x20] sm:$0xf0]  ;;  %v1265_v37 = vld [vmem:[%s1739_s0 + $0x24] sm:$0xf0] }
   0xf   :  { %647 = vmatpush.bf16.msra.mxu1 %v1288_v13  ;;  %v1261_v38 = vld [vmem:[%s1739_s0 + $0xc] sm:$0xf]  ;;  %v943_v42 = vor.u32 %v1264_v33, %v942_v32  ;;  %v947_v43 = vor.u32 %v1260_v34, %v944_v35  ;;  %v951_v44 = vor.u32 %v1265_v37, %v950_v36  ;;  %v1330_v48 = vld [vmem:[%s1738_s1 + $0x1b0] sm:$0xff]  ;;  %v1328_v56 = vld [vmem:[%s1738_s1 + $0x1a0] sm:$0xff] }
  0x10   :  { %666 = vmatpush.bf16.msra.mxu2 %v1296_v14  ;;  %v952_v39 = vld [vmem:[%s1739_s0 + $0x28] sm:$0xf0]  ;;  %v1314_v49 = vld [vmem:[%s1738_s1 + $0x130] sm:$0xff]  ;;  %v1312_v57 = vld [vmem:[%s1738_s1 + $0x120] sm:$0xff] }
  0x11   :  { %685 = vmatpush.bf16.msra.mxu3 %v1304_v15  ;;  %v955_v45 = vor.u32 %v1261_v38, %v952_v39  ;;  %v1322_v50 = vld [vmem:[%s1738_s1 + $0x170] sm:$0xff]  ;;  %v1329_v52 = vld [vmem:[%s1738_s1 + $0x1a8] sm:$0xff]  ;;  %v1320_v58 = vld [vmem:[%s1738_s1 + $0x160] sm:$0xff] }
  0x12   :  { %629 = vmatpush.bf16.msra.mxu0 %v1279_v16  ;;  %v1338_v51 = vld [vmem:[%s1738_s1 + $0x1f0] sm:$0xff]  ;;  %v1313_v53 = vld [vmem:[%s1738_s1 + $0x128] sm:$0xff]  ;;  %v1336_v59 = vld [vmem:[%s1738_s1 + $0x1e0] sm:$0xff] }
  0x13   :  { %648 = vmatpush.bf16.msra.mxu1 %v1287_v17  ;;  %v1321_v54 = vld [vmem:[%s1738_s1 + $0x168] sm:$0xff]  ;;  %v974_v60 = vld [vmem:[%s1739_s0 + $0x40] sm:$0xf]  ;;  %v1268_v62 = vld [vmem:[%s1739_s0 + $0x44] sm:$0xf] }
  0x14   :  { %667 = vmatpush.bf16.msra.mxu2 %v1295_v18  ;;  %v1337_v55 = vld [vmem:[%s1738_s1 + $0x1e8] sm:$0xff]  ;;  %v1272_v61 = vld [vmem:[%s1739_s0 + $0x5c] sm:$0xf0]  ;;  %v976_v63 = vld [vmem:[%s1739_s0 + $0x60] sm:$0xf0] }
  0x15   :  { %686 = vmatpush.bf16.msra.mxu3 %v1303_v19  ;;  %v982_v0 = vld [vmem:[%s1739_s0 + $0x48] sm:$0xf]  ;;  %v1269_v2 = vld [vmem:[%s1739_s0 + $0x4c] sm:$0xf]  ;;  %v1327_v4 = vld [vmem:[%s1738_s1 + $0x198] sm:$0xff]  ;;  %v975_v6 = vor.u32 %v1272_v61, %v974_v60  ;;  %v979_v7 = vor.u32 %v1268_v62, %v976_v63 }
  0x16   :  { %630 = vmatpush.bf16.msra.mxu0 %v1278_v20  ;;  %v1273_v1 = vld [vmem:[%s1739_s0 + $0x64] sm:$0xf0]  ;;  %v984_v3 = vld [vmem:[%s1739_s0 + $0x68] sm:$0xf0]  ;;  %v1311_v5 = vld [vmem:[%s1738_s1 + $0x118] sm:$0xff] }
  0x17   :  { %649 = vmatpush.bf16.msra.mxu1 %v1286_v21  ;;  %v983_v8 = vor.u32 %v1273_v1, %v982_v0  ;;  %v987_v9 = vor.u32 %v1269_v2, %v984_v3  ;;  %v1319_v10 = vld [vmem:[%s1738_s1 + $0x158] sm:$0xff]  ;;  %v1326_v12 = vld [vmem:[%s1738_s1 + $0x190] sm:$0xff]  ;;  %v1325_v16 = vld [vmem:[%s1738_s1 + $0x188] sm:$0xff] }
  0x18   :  { %668 = vmatpush.bf16.msra.mxu2 %v1294_v22  ;;  %v1335_v11 = vld [vmem:[%s1738_s1 + $0x1d8] sm:$0xff]  ;;  %v1310_v13 = vld [vmem:[%s1738_s1 + $0x110] sm:$0xff]  ;;  %v1309_v17 = vld [vmem:[%s1738_s1 + $0x108] sm:$0xff] }
  0x19   :  { %687 = vmatpush.bf16.msra.mxu3 %v1302_v23  ;;  %v1318_v14 = vld [vmem:[%s1738_s1 + $0x150] sm:$0xff]  ;;  %v1317_v18 = vld [vmem:[%s1738_s1 + $0x148] sm:$0xff]  ;;  %v1324_v20 = vld [vmem:[%s1738_s1 + $0x180] sm:$0xff] }
  0x1a   :  { %631 = vmatpush.bf16.msra.mxu0 %v1277_v24  ;;  %v1334_v15 = vld [vmem:[%s1738_s1 + $0x1d0] sm:$0xff]  ;;  %v1333_v19 = vld [vmem:[%s1738_s1 + $0x1c8] sm:$0xff]  ;;  %v1308_v21 = vld [vmem:[%s1738_s1 + $0x100] sm:$0xff] }
  0x1b   :  { %650 = vmatpush.bf16.msra.mxu1 %v1285_v25  ;;  %v1316_v22 = vld [vmem:[%s1738_s1 + $0x140] sm:$0xff]  ;;  %v958_v24 = vld [vmem:[%s1739_s0 + $0x10] sm:$0xf]  ;;  %v1270_v38 = vld [vmem:[%s1739_s0 + $0x54] sm:$0xf] }
  0x1c   :  { %669 = vmatpush.bf16.msra.mxu2 %v1293_v26  ;;  %v1332_v23 = vld [vmem:[%s1738_s1 + $0x1c0] sm:$0xff]  ;;  %v1266_v25 = vld [vmem:[%s1739_s0 + $0x2c] sm:$0xf0]  ;;  %v1262_v26 = vld [vmem:[%s1739_s0 + $0x14] sm:$0xf] }
  0x1d   :  { %688 = vmatpush.bf16.msra.mxu3 %v1301_v27  ;;  %v960_v27 = vld [vmem:[%s1739_s0 + $0x30] sm:$0xf0]  ;;  %v959_v32 = vor.u32 %v1266_v25, %v958_v24  ;;  %v990_v36 = vld [vmem:[%s1739_s0 + $0x50] sm:$0xf] }
  0x1e   :  { %632 = vmatpush.bf16.msra.mxu0 %v1276_v28  ;;  %v966_v28 = vld [vmem:[%s1739_s0 + $0x18] sm:$0xf]  ;;  %v963_v33 = vor.u32 %v1262_v26, %v960_v27  ;;  %v1274_v37 = vld [vmem:[%s1739_s0 + $0x6c] sm:$0xf0]  ;;  %v992_v39 = vld [vmem:[%s1739_s0 + $0x70] sm:$0xf0] }
  0x1f   :  { %651 = vmatpush.bf16.msra.mxu1 %v1284_v29  ;;  %v1267_v29 = vld [vmem:[%s1739_s0 + $0x34] sm:$0xf0] }
  0x20   :  { %670 = vmatpush.bf16.msra.mxu2 %v1292_v30  ;;  %v1263_v30 = vld [vmem:[%s1739_s0 + $0x1c] sm:$0xf]  ;;  %v967_v34 = vor.u32 %v1267_v29, %v966_v28 }
  0x21   :  { %689 = vmatpush.bf16.msra.mxu3 %v1300_v31  ;;  %633 = vmatmul.bf16.vlgmr.msra.gmra.mxu0 %v943_v42  ;;  %v968_v31 = vld [vmem:[%s1739_s0 + $0x38] sm:$0xf0] }
  0x22   :  { %701 = vmatpush.bf16.msrb.mxu0 %v1315_v41  ;;  %652 = vmatmul.bf16.vlgmr.msra.gmra.mxu1 %v947_v43  ;;  %v971_v35 = vor.u32 %v1263_v30, %v968_v31  ;;  %v1275_v41 = vld [vmem:[%s1739_s0 + $0x74] sm:$0xf0]  ;;  %v1271_v42 = vld [vmem:[%s1739_s0 + $0x5c] sm:$0xf] }
  0x23   :  { %671 = vmatmul.bf16.vlgmr.msra.gmra.mxu2 %v951_v44  ;;  %720 = vmatpush.bf16.msrb.mxu1 %v1323_v46  ;;  %v1000_v43 = vld [vmem:[%s1739_s0 + $0x78] sm:$0xf0]  ;;  %v991_v44 = vor.u32 %v1274_v37, %v990_v36 }
  0x24   :  { %739 = vmatpush.bf16.msrb.mxu2 %v1331_v40  ;;  %690 = vmatmul.bf16.vlgmr.msra.gmra.mxu3 %v955_v45  ;;  %v998_v40 = vld [vmem:[%s1739_s0 + $0x58] sm:$0xf]  ;;  %v995_v45 = vor.u32 %v1270_v38, %v992_v39 }
  0x25   :  { %758 = vmatpush.bf16.msrb.mxu3 %v1339_v47  ;;  %v999_v46 = vor.u32 %v1275_v41, %v998_v40  ;;  %v1003_v47 = vor.u32 %v1271_v42, %v1000_v43 }
  0x26   :  { %702 = vmatpush.bf16.msrb.mxu0 %v1314_v49 }
  0x27   :  { %721 = vmatpush.bf16.msrb.mxu1 %v1322_v50 }
  0x28   :  { %740 = vmatpush.bf16.msrb.mxu2 %v1330_v48 }
  0x29   :  { %759 = vmatpush.bf16.msrb.mxu3 %v1338_v51 }
  0x2a   :  { %703 = vmatpush.bf16.msrb.mxu0 %v1313_v53 }
  0x2b   :  { %722 = vmatpush.bf16.msrb.mxu1 %v1321_v54 }
  0x2c   :  { %741 = vmatpush.bf16.msrb.mxu2 %v1329_v52 }
  0x2d   :  { %760 = vmatpush.bf16.msrb.mxu3 %v1337_v55 }
  0x2e   :  { %704 = vmatpush.bf16.msrb.mxu0 %v1312_v57 }
  0x2f   :  { %723 = vmatpush.bf16.msrb.mxu1 %v1320_v58 }
  0x30   :  { %742 = vmatpush.bf16.msrb.mxu2 %v1328_v56 }
  0x31   :  { %761 = vmatpush.bf16.msrb.mxu3 %v1336_v59  ;;  %638 = vmatmul.bf16.gmra.mxu0 %v975_v6 }
  0x32   :  { %705 = vmatpush.bf16.msrb.mxu0 %v1311_v5  ;;  %657 = vmatmul.bf16.gmra.mxu1 %v979_v7 }
  0x33   :  { %676 = vmatmul.bf16.gmra.mxu2 %v983_v8  ;;  %724 = vmatpush.bf16.msrb.mxu1 %v1319_v10 }
  0x34   :  { %743 = vmatpush.bf16.msrb.mxu2 %v1327_v4  ;;  %695 = vmatmul.bf16.gmra.mxu3 %v987_v9 }
  0x35   :  { %762 = vmatpush.bf16.msrb.mxu3 %v1335_v11 }
  0x36   :  { %706 = vmatpush.bf16.msrb.mxu0 %v1310_v13 }
  0x37   :  { %725 = vmatpush.bf16.msrb.mxu1 %v1318_v14 }
  0x38   :  { %744 = vmatpush.bf16.msrb.mxu2 %v1326_v12 }
  0x39   :  { %763 = vmatpush.bf16.msrb.mxu3 %v1334_v15 }
  0x3a   :  { %707 = vmatpush.bf16.msrb.mxu0 %v1309_v17 }
  0x3b   :  { %726 = vmatpush.bf16.msrb.mxu1 %v1317_v18 }
  0x3c   :  { %745 = vmatpush.bf16.msrb.mxu2 %v1325_v16 }
  0x3d   :  { %764 = vmatpush.bf16.msrb.mxu3 %v1333_v19 }
  0x3e   :  { %708 = vmatpush.bf16.msrb.mxu0 %v1308_v21 }
  0x3f   :  { %727 = vmatpush.bf16.msrb.mxu1 %v1316_v22 }
  0x40   :  { %746 = vmatpush.bf16.msrb.mxu2 %v1324_v20 }
  0x41   :  { %765 = vmatpush.bf16.msrb.mxu3 %v1332_v23  ;;  %709 = vmatmul.bf16.vlgmr.msrb.gmra.mxu0 %v959_v32 }
  0x42   :  { %728 = vmatmul.bf16.vlgmr.msrb.gmra.mxu1 %v963_v33 }
  0x43   :  { %747 = vmatmul.bf16.vlgmr.msrb.gmra.mxu2 %v967_v34 }
  0x44   :  { %766 = vmatmul.bf16.vlgmr.msrb.gmra.mxu3 %v971_v35 }
  0x51   :  { %714 = vmatmul.bf16.gmra.mxu0 %v991_v44  ;;  %v1355_v44 = vmov 128.0  }
  0x52   :  { %733 = vmatmul.bf16.gmra.mxu1 %v995_v45  ;;  %1345 = vrcp.f32 %v1355_v44 }
  0x53   :  { %752 = vmatmul.bf16.gmra.mxu2 %v999_v46 }
  0x54   :  { %771 = vmatmul.bf16.gmra.mxu3 %v1003_v47 }
  0x58   :  { %v1346_v45 = vpop.eup %1345 }
  0x59   :  { %v786_v46 = vmul.f32 128.0, %v1346_v45  ;;  %vm790_vm0 = vweird.f32 %v1346_v45 }
  0x5b   :  { %v787_v47 = vsub.f32 1.0, %v786_v46 }
  0x9e   :  { %v634_v48 = vpop.f32.mrf.mxu0 }
  0x9f   :  { %v653_v49 = vpop.f32.mrf.mxu1 }
  0xa0   :  { %v654_v62 = vadd.f32 %v653_v49, %v634_v48  ;;  %v788_v48 = vmul.f32 %v1346_v45, %v787_v47 }
  0xa2   :  { %v789_v49 = vadd.f32 %v1346_v45, %v788_v48 }
  0xa6   :  { %v672_v50 = vpop.f32.mrf.mxu2  ;;  %v636_v52 = vpop.f32.mrf.mxu0 }
  0xa7   :  { %v691_v51 = vpop.f32.mrf.mxu3  ;;  %v655_v53 = vpop.f32.mrf.mxu1  ;;  %v673_v63 = vadd.f32 %v672_v50, %v654_v62  ;;  %v791_v50 = vsel %vm790_vm0, %v1346_v45, %v789_v49  ;;  %v869_v45 = vld [vmem:[%s1741_s3 + $0x8] sm:$0xff] }
  0xa8   :  { %v656_v5 = vadd.f32 %v655_v53, %v636_v52 }
  0xa9   :  { %v692_v2 = vadd.f32 %v691_v51, %v673_v63 }
  0xae   :  { %v674_v54 = vpop.f32.mrf.mxu2  ;;  %v639_v56 = vpop.f32.mrf.mxu0 }
  0xaf   :  { %v693_v55 = vpop.f32.mrf.mxu3  ;;  %v658_v57 = vpop.f32.mrf.mxu1  ;;  %v675_v7 = vadd.f32 %v674_v54, %v656_v5 }
  0xb0   :  { %v659_v15 = vadd.f32 %v658_v57, %v639_v56 }
  0xb1   :  { %v694_v10 = vadd.f32 %v693_v55, %v675_v7 }
  0xb6   :  { %v677_v58 = vpop.f32.mrf.mxu2  ;;  %v641_v60 = vpop.f32.mrf.mxu0 }
  0xb7   :  { %v696_v59 = vpop.f32.mrf.mxu3  ;;  %v660_v61 = vpop.f32.mrf.mxu1  ;;  %v678_v18 = vadd.f32 %v677_v58, %v659_v15 }
  0xb8   :  { %v661_v25 = vadd.f32 %v660_v61, %v641_v60 }
  0xb9   :  { %v697_v21 = vadd.f32 %v696_v59, %v678_v18 }
  0xbe   :  { %v679_v0 = vpop.f32.mrf.mxu2  ;;  %v710_v3 = vpop.f32.mrf.mxu0 }
  0xbf   :  { %v698_v1 = vpop.f32.mrf.mxu3  ;;  %v729_v4 = vpop.f32.mrf.mxu1  ;;  %v711_v6 = vadd.f32 %v710_v3, %v692_v2  ;;  %v680_v29 = vadd.f32 %v679_v0, %v661_v25  ;;  %v1356_v3 = vmov 0  }
  0xc0   :  { %1342 = vset.pattern.permute.xlu2 %v1356_v3  ;;  %1343 = vset.pattern.permute.xlu0 %v1356_v3 }
  0xc1   :  { %v730_v8 = vadd.f32 %v729_v4, %v711_v6  ;;  %v699_v32 = vadd.f32 %v698_v1, %v680_v29  ;;  %1344 = vset.pattern.permute.xlu1 %v1356_v3 }
  0xc6   :  { %v748_v9 = vpop.f32.mrf.mxu2  ;;  %v712_v13 = vpop.f32.mrf.mxu0 }
  0xc7   :  { %v749_v11 = vadd.f32 %v748_v9, %v730_v8  ;;  %v767_v12 = vpop.f32.mrf.mxu3  ;;  %v731_v14 = vpop.f32.mrf.mxu1  ;;  %v713_v17 = vadd.f32 %v712_v13, %v694_v10 }
  0xc9   :  { %v1670_v16 = vadd.f32 %v767_v12, %v749_v11  ;;  %v732_v19 = vadd.f32 %v731_v14, %v713_v17 }
  0xcb   :  { %777 = vadd.xlane.f32.xlu0 %v1670_v16 }
  0xce   :  { %v750_v20 = vpop.f32.mrf.mxu2  ;;  %v715_v24 = vpop.f32.mrf.mxu0 }
  0xcf   :  { %v751_v22 = vadd.f32 %v750_v20, %v732_v19  ;;  %v769_v23 = vpop.f32.mrf.mxu3  ;;  %v716_v27 = vadd.f32 %v715_v24, %v697_v21  ;;  %v734_v28 = vpop.f32.mrf.mxu1  ;;  %v816_v21 = vld [vmem:[%s1740_s2] sm:$0xff] }
  0xd1   :  { %v1673_v26 = vadd.f32 %v769_v23, %v751_v22  ;;  %v735_v30 = vadd.f32 %v734_v28, %v716_v27 }
  0xd3   :  { %779 = vadd.xlane.f32.xlu0 %v1673_v26 }
  0xd6   :  { %v753_v31 = vpop.f32.mrf.mxu2  ;;  %v717_v35 = vpop.f32.mrf.mxu0 }
  0xd7   :  { %v754_v33 = vadd.f32 %v753_v31, %v735_v30  ;;  %v772_v34 = vpop.f32.mrf.mxu3  ;;  %v718_v37 = vadd.f32 %v717_v35, %v699_v32  ;;  %v736_v38 = vpop.f32.mrf.mxu1  ;;  %v868_v35 = vld [vmem:[%s1741_s3] sm:$0xff] }
  0xd9   :  { %v1676_v36 = vadd.f32 %v772_v34, %v754_v33  ;;  %v737_v39 = vadd.f32 %v736_v38, %v718_v37  ;;  %v817_v37 = vld [vmem:[%s1740_s2 + $0x8] sm:$0xff] }
  0xdb   :  { %781 = vadd.xlane.f32.xlu1 %v1676_v36 }
  0xde   :  { %v755_v40 = vpop.f32.mrf.mxu2 }
  0xdf   :  { %v756_v41 = vadd.f32 %v755_v40, %v737_v39  ;;  %v774_v42 = vpop.f32.mrf.mxu3 }
  0xe1   :  { %v1679_v43 = vadd.f32 %v774_v42, %v756_v41 }
  0xe3   :  { %783 = vadd.xlane.f32.xlu1 %v1679_v43 }
 0x13e   :  { %v778_v51 = vpop.xlane.xlu0 %777 }
 0x13f   :  { %v792_v52 = vmul.f32 %v791_v50, %v778_v51 }
 0x141   :  { %v796_v53 = vsub.f32 %v1670_v16, %v792_v52 }
 0x143   :  { %v800_v54 = vmul.f32 %v796_v53, %v796_v53 }
 0x145   :  { %804 = vadd.xlane.f32.xlu2 %v800_v54  ;;  %v818_v54 = vld [vmem:[%s1740_s2 + $0x10] sm:$0xff] }
 0x146   :  { %v780_v55 = vpop.xlane.xlu0 %779 }
 0x147   :  { %v1683_v56 = vmul.f32 %v791_v50, %v780_v55 }
 0x149   :  { %v797_v57 = vsub.f32 %v1673_v26, %v1683_v56 }
 0x14b   :  { %v801_v58 = vmul.f32 %v797_v57, %v797_v57 }
 0x14d   :  { %806 = vadd.xlane.f32.xlu2 %v801_v58 }
 0x14e   :  { %v782_v59 = vpop.xlane.xlu1 %781 }
 0x14f   :  { %v1687_v60 = vmul.f32 %v791_v50, %v782_v59 }
 0x151   :  { %v798_v61 = vsub.f32 %v1676_v36, %v1687_v60 }
 0x153   :  { %v802_v62 = vmul.f32 %v798_v61, %v798_v61 }
 0x155   :  { %808 = vadd.xlane.f32.xlu0 %v802_v62 }
 0x156   :  { %v784_v63 = vpop.xlane.xlu1 %783 }
 0x157   :  { %v1691_v0 = vmul.f32 %v791_v50, %v784_v63  ;;  %v871_v63 = vld [vmem:[%s1741_s3 + $0x18] sm:$0xff] }
 0x159   :  { %v799_v1 = vsub.f32 %v1679_v43, %v1691_v0 }
 0x15b   :  { %v803_v2 = vmul.f32 %v799_v1, %v799_v1 }
 0x15d   :  { %810 = vadd.xlane.f32.xlu1 %v803_v2 }
 0x1b8   :  { %v805_v4 = vpop.xlane.xlu2 %804 }
 0x1b9   :  { %v812_v5 = vmul.f32 %v805_v4, %v791_v50  ;;  %v870_v4 = vld [vmem:[%s1741_s3 + $0x10] sm:$0xff] }
 0x1bb   :  { %v820_v6 = vadd.f32 1e-05, %v812_v5 }
 0x1bd   :  { %1347 = vrsqrt.f32 %v820_v6  ;;  %vm830_vm2 = vweird.f32 %v820_v6 }
 0x1c0   :  { %v807_v7 = vpop.xlane.xlu2 %806 }
 0x1c1   :  { %v813_v8 = vmul.f32 %v807_v7, %v791_v50 }
 0x1c3   :  { %v1348_v9 = vpop.eup %1347  ;;  %v821_v10 = vadd.f32 1e-05, %v813_v8 }
 0x1c4   :  { %v825_v11 = vmul.f32 %v1348_v9, %v820_v6  ;;  %vm831_vm1 = vweird.f32 %v1348_v9 }
 0x1c5   :  { %1349 = vrsqrt.f32 %v821_v10  ;;  %vm832_vm3 = vmor %vm830_vm2, %vm831_vm1  ;;  %vm840_vm5 = vweird.f32 %v821_v10 }
 0x1c6   :  { %v826_v12 = vmul.f32 %v1348_v9, %v825_v11 }
 0x1c8   :  { %v827_v13 = vmul.f32 0.5, %v826_v12  ;;  %v809_v14 = vpop.xlane.xlu0 %808 }
 0x1c9   :  { %v814_v15 = vmul.f32 %v809_v14, %v791_v50 }
 0x1ca   :  { %v828_v17 = vsub.f32 1.5, %v827_v13 }
 0x1cb   :  { %v1350_v18 = vpop.eup %1349  ;;  %v822_v19 = vadd.f32 1e-05, %v814_v15 }
 0x1cc   :  { %v835_v20 = vmul.f32 %v1350_v18, %v821_v10  ;;  %v829_v22 = vmul.f32 %v1348_v9, %v828_v17  ;;  %vm841_vm4 = vweird.f32 %v1350_v18 }
 0x1cd   :  { %1351 = vrsqrt.f32 %v822_v19  ;;  %vm842_vm6 = vmor %vm840_vm5, %vm841_vm4  ;;  %vm850_vm8 = vweird.f32 %v822_v19 }
 0x1ce   :  { %v836_v23 = vmul.f32 %v1350_v18, %v835_v20  ;;  %v833_v24 = vsel %vm832_vm3, %v1348_v9, %v829_v22 }
 0x1cf   :  { %v864_v25 = vmul.f32 %v833_v24, %v816_v21 }
 0x1d0   :  { %v837_v27 = vmul.f32 0.5, %v836_v23  ;;  %v811_v28 = vpop.xlane.xlu1 %810 }
 0x1d1   :  { %v815_v29 = vmul.f32 %v811_v28, %v791_v50  ;;  %882 = vperm.xlu2 %1342, %v864_v25   ;;  %v872_v33 = vmul.f32 %v864_v25, %v792_v52 }
 0x1d2   :  { %v838_v30 = vsub.f32 1.5, %v837_v27 }
 0x1d3   :  { %v1352_v31 = vpop.eup %1351  ;;  %v823_v32 = vadd.f32 1e-05, %v815_v29  ;;  %v876_v41 = vsub.f32 %v868_v35, %v872_v33 }
 0x1d4   :  { %v845_v34 = vmul.f32 %v1352_v31, %v822_v19  ;;  %v839_v38 = vmul.f32 %v1350_v18, %v838_v30  ;;  %vm851_vm7 = vweird.f32 %v1352_v31 }
 0x1d5   :  { %1353 = vrsqrt.f32 %v823_v32  ;;  %vm852_vm9 = vmor %vm850_vm8, %vm851_vm7  ;;  %vm860_vm11 = vweird.f32 %v823_v32 }
 0x1d6   :  { %v846_v39 = vmul.f32 %v1352_v31, %v845_v34  ;;  %v843_v40 = vsel %vm842_vm6, %v1350_v18, %v839_v38 }
 0x1d7   :  { %v865_v42 = vmul.f32 %v843_v40, %v817_v37 }
 0x1d8   :  { %v847_v44 = vmul.f32 0.5, %v846_v39 }
 0x1d9   :  { %906 = vperm.xlu2 %1342, %v876_v41   ;;  %887 = vperm.xlu0 %1343, %v865_v42   ;;  %v873_v46 = vmul.f32 %v865_v42, %v1683_v56  ;;  %v819_v56 = vld [vmem:[%s1740_s2 + $0x18] sm:$0xff] }
 0x1da   :  { %v848_v47 = vsub.f32 1.5, %v847_v44 }
 0x1db   :  { %v1354_v48 = vpop.eup %1353  ;;  %v877_v49 = vsub.f32 %v869_v45, %v873_v46 }
 0x1dc   :  { %v855_v50 = vmul.f32 %v1354_v48, %v823_v32  ;;  %v849_v51 = vmul.f32 %v1352_v31, %v848_v47  ;;  %vm861_vm10 = vweird.f32 %v1354_v48 }
 0x1dd   :  { %911 = vperm.xlu1 %1344, %v877_v49   ;;  %vm862_vm12 = vmor %vm860_vm11, %vm861_vm10 }
 0x1de   :  { %v856_v52 = vmul.f32 %v1354_v48, %v855_v50  ;;  %v853_v55 = vsel %vm852_vm9, %v1352_v31, %v849_v51 }
 0x1df   :  { %v866_v58 = vmul.f32 %v853_v55, %v818_v54 }
 0x1e0   :  { %v857_v53 = vmul.f32 0.5, %v856_v52 }
 0x1e1   :  { %v874_v3 = vmul.f32 %v866_v58, %v1687_v60 }
 0x1e2   :  { %v858_v57 = vsub.f32 1.5, %v857_v53 }
 0x1e3   :  { %v878_v5 = vsub.f32 %v870_v4, %v874_v3 }
 0x1e4   :  { %v859_v59 = vmul.f32 %v1354_v48, %v858_v57 }
 0x1e5   :  { %892 = vperm.xlu1 %1344, %v866_v58  }
 0x1e6   :  { %v863_v61 = vsel %vm862_vm12, %v1354_v48, %v859_v59 }
 0x1e7   :  { %v867_v62 = vmul.f32 %v863_v61, %v819_v56 }
 0x1e9   :  { %897 = vperm.xlu2 %1342, %v867_v62   ;;  %v875_v1 = vmul.f32 %v867_v62, %v1691_v0 }
 0x1eb   :  { %v879_v2 = vsub.f32 %v871_v63, %v875_v1 }
 0x1ed   :  { %921 = vperm.xlu1 %1344, %v879_v2  }
 0x1f1   :  { %916 = vperm.xlu2 %1342, %v878_v5  }
 0x22b   :  { %v883_v6 = vpop.permute.xlu2 %882 }
 0x22c   :  { %v900_v7 = vmul.f32 %v883_v6, %v1670_v16 }
 0x233   :  { %v907_v8 = vpop.permute.xlu2 %906 }
 0x234   :  { %v924_v9 = vadd.f32 %v907_v8, %v900_v7 }
 0x236   :  { %v928_v10 = vmax.f32 %v924_v9, 0.0 }
 0x238   :  { %932 = vst [vmem:[%s1742_s4] sm:$0xff] %v928_v10 }
 0x243   :  { %v898_v11 = vpop.permute.xlu2 %897 }
 0x244   :  { %v903_v20 = vmul.f32 %v898_v11, %v1679_v43 }
 0x24b   :  { %v888_v0 = vpop.permute.xlu0 %887  ;;  %v917_v17 = vpop.permute.xlu2 %916 }
 0x24c   :  { %v901_v60 = vmul.f32 %v888_v0, %v1673_v26 }
 0x24f   :  { %v912_v12 = vpop.permute.xlu1 %911 }
 0x250   :  { %v925_v13 = vadd.f32 %v912_v12, %v901_v60 }
 0x252   :  { %v929_v14 = vmax.f32 %v925_v13, 0.0 }
 0x254   :  { %933 = vst [vmem:[%s1742_s4 + $0x8] sm:$0xff] %v929_v14 }
 0x257   :  { %v893_v15 = vpop.permute.xlu1 %892 }
 0x258   :  { %v902_v16 = vmul.f32 %v893_v15, %v1676_v36 }
 0x25a   :  { %v926_v18 = vadd.f32 %v917_v17, %v902_v16 }
 0x25c   :  { %v930_v19 = vmax.f32 %v926_v18, 0.0 }
 0x25e   :  { %934 = vst [vmem:[%s1742_s4 + $0x10] sm:$0xff] %v930_v19 }
 0x25f   :  { %v922_v26 = vpop.permute.xlu1 %921 }
 0x260   :  { %v927_v21 = vadd.f32 %v922_v26, %v903_v20 }
 0x262   :  { %v931_v22 = vmax.f32 %v927_v21, 0.0 }
 0x264   :  { %935 = vst [vmem:[%s1742_s4 + $0x18] sm:$0xff] %v931_v22 }

// kernel: generator_forward.7
= control target key start
LH: loop header
LB: loop body
LE: loop exit
PB: predicated region body
PF: predicated region fallthrough
CT: control target
= control target key end

     0   :  { %s2758_s1 = inlined_call_operand.vmem [shape: bf16[512,512], index: 1, kind: input, shape index: {}]   ;;  %s2759_s0 = inlined_call_operand.vmem [shape: bf16[16,512], index: 0, kind: input, shape index: {}]   ;;  %s2760_s2 = inlined_call_operand.vmem [shape: f32[16,1], index: 2, kind: input, shape index: {}]   ;;  %s2761_s3 = inlined_call_operand.vmem [shape: f32[16,1], index: 3, kind: input, shape index: {}]   ;;  %s2762_s4 = inlined_call_operand.vmem [shape: f32[16,512], index: 4, kind: output, shape index: {}]  }
   0x1   :  { %v1298_v0 = vld [vmem:[%s2758_s1 + $0xe0] sm:$0xf]  ;;  %v1730_v1 = vld [vmem:[%s2758_s1 + $0xec] sm:$0xf0] }
   0x2   :  { %v1426_v2 = vld [vmem:[%s2758_s1 + $0x1e0] sm:$0xf]  ;;  %v1299_v3 = vor.u32 %v1730_v1, %v1298_v0  ;;  %v1762_v4 = vld [vmem:[%s2758_s1 + $0x1ec] sm:$0xf0] }
   0x3   :  { %v1554_v5 = vld [vmem:[%s2758_s1 + $0x2e0] sm:$0xf]  ;;  %v1794_v6 = vld [vmem:[%s2758_s1 + $0x2ec] sm:$0xf0]  ;;  %v1427_v7 = vor.u32 %v1762_v4, %v1426_v2 }
   0x4   :  { %v1555_v8 = vor.u32 %v1794_v6, %v1554_v5  ;;  %v1682_v9 = vld [vmem:[%s2758_s1 + $0x3e0] sm:$0xf]  ;;  %v1826_v10 = vld [vmem:[%s2758_s1 + $0x3ec] sm:$0xf0]  ;;  %809 = vmatpush.bf16.msra.mxu0 %v1299_v3 }
   0x5   :  { %v1282_v11 = vld [vmem:[%s2758_s1 + $0xc0] sm:$0xf]  ;;  %v1683_v12 = vor.u32 %v1826_v10, %v1682_v9  ;;  %v1726_v13 = vld [vmem:[%s2758_s1 + $0xcc] sm:$0xf0]  ;;  %823 = vmatpush.bf16.msra.mxu1 %v1427_v7 }
   0x6   :  { %v1410_v14 = vld [vmem:[%s2758_s1 + $0x1c0] sm:$0xf]  ;;  %v1758_v15 = vld [vmem:[%s2758_s1 + $0x1cc] sm:$0xf0]  ;;  %837 = vmatpush.bf16.msra.mxu2 %v1555_v8  ;;  %v1283_v16 = vor.u32 %v1726_v13, %v1282_v11 }
   0x7   :  { %v1411_v17 = vor.u32 %v1758_v15, %v1410_v14  ;;  %v1538_v18 = vld [vmem:[%s2758_s1 + $0x2c0] sm:$0xf]  ;;  %v1790_v19 = vld [vmem:[%s2758_s1 + $0x2cc] sm:$0xf0]  ;;  %851 = vmatpush.bf16.msra.mxu3 %v1683_v12 }
   0x8   :  { %v1666_v20 = vld [vmem:[%s2758_s1 + $0x3c0] sm:$0xf]  ;;  %v1539_v21 = vor.u32 %v1790_v19, %v1538_v18  ;;  %v1822_v22 = vld [vmem:[%s2758_s1 + $0x3cc] sm:$0xf0]  ;;  %810 = vmatpush.bf16.msra.mxu0 %v1283_v16 }
   0x9   :  { %v1266_v23 = vld [vmem:[%s2758_s1 + $0xa0] sm:$0xf]  ;;  %v1722_v24 = vld [vmem:[%s2758_s1 + $0xac] sm:$0xf0]  ;;  %v1667_v25 = vor.u32 %v1822_v22, %v1666_v20  ;;  %824 = vmatpush.bf16.msra.mxu1 %v1411_v17 }
   0xa   :  { %v1394_v26 = vld [vmem:[%s2758_s1 + $0x1a0] sm:$0xf]  ;;  %v1754_v27 = vld [vmem:[%s2758_s1 + $0x1ac] sm:$0xf0]  ;;  %v1267_v29 = vor.u32 %v1722_v24, %v1266_v23  ;;  %838 = vmatpush.bf16.msra.mxu2 %v1539_v21 }
   0xb   :  { %v1522_v28 = vld [vmem:[%s2758_s1 + $0x2a0] sm:$0xf]  ;;  %v1786_v30 = vld [vmem:[%s2758_s1 + $0x2ac] sm:$0xf0]  ;;  %v1395_v33 = vor.u32 %v1754_v27, %v1394_v26  ;;  %852 = vmatpush.bf16.msra.mxu3 %v1667_v25 }
   0xc   :  { %v1650_v31 = vld [vmem:[%s2758_s1 + $0x3a0] sm:$0xf]  ;;  %v1818_v32 = vld [vmem:[%s2758_s1 + $0x3ac] sm:$0xf0]  ;;  %v1523_v34 = vor.u32 %v1786_v30, %v1522_v28  ;;  %811 = vmatpush.bf16.msra.mxu0 %v1267_v29  ;;  %v1728_v28 = vld [vmem:[%s2758_s1 + $0xe4] sm:$0xf] }
   0xd   :  { %v1250_v35 = vld [vmem:[%s2758_s1 + $0x80] sm:$0xf]  ;;  %v1718_v36 = vld [vmem:[%s2758_s1 + $0x8c] sm:$0xf0]  ;;  %v1651_v38 = vor.u32 %v1818_v32, %v1650_v31  ;;  %825 = vmatpush.bf16.msra.mxu1 %v1395_v33  ;;  %v1300_v29 = vld [vmem:[%s2758_s1 + $0xf0] sm:$0xf0] }
   0xe   :  { %v1378_v37 = vld [vmem:[%s2758_s1 + $0x180] sm:$0xf]  ;;  %v1750_v39 = vld [vmem:[%s2758_s1 + $0x18c] sm:$0xf0]  ;;  %v1251_v44 = vor.u32 %v1718_v36, %v1250_v35  ;;  %839 = vmatpush.bf16.msra.mxu2 %v1523_v34  ;;  %v1760_v30 = vld [vmem:[%s2758_s1 + $0x1e4] sm:$0xf] }
   0xf   :  { %v1506_v40 = vld [vmem:[%s2758_s1 + $0x280] sm:$0xf]  ;;  %v1782_v41 = vld [vmem:[%s2758_s1 + $0x28c] sm:$0xf0]  ;;  %v1379_v45 = vor.u32 %v1750_v39, %v1378_v37  ;;  %853 = vmatpush.bf16.msra.mxu3 %v1651_v38  ;;  %v1428_v32 = vld [vmem:[%s2758_s1 + $0x1f0] sm:$0xf0] }
  0x10   :  { %v1634_v42 = vld [vmem:[%s2758_s1 + $0x380] sm:$0xf]  ;;  %v1814_v43 = vld [vmem:[%s2758_s1 + $0x38c] sm:$0xf0]  ;;  %v1507_v46 = vor.u32 %v1782_v41, %v1506_v40  ;;  %812 = vmatpush.bf16.msra.mxu0 %v1251_v44  ;;  %v1792_v33 = vld [vmem:[%s2758_s1 + $0x2e4] sm:$0xf]  ;;  %v1303_v40 = vor.u32 %v1728_v28, %v1300_v29 }
  0x11   :  { %v1234_v47 = vld [vmem:[%s2758_s1 + $0x60] sm:$0xf]  ;;  %v1714_v48 = vld [vmem:[%s2758_s1 + $0x6c] sm:$0xf0]  ;;  %v1635_v50 = vor.u32 %v1814_v43, %v1634_v42  ;;  %826 = vmatpush.bf16.msra.mxu1 %v1379_v45  ;;  %v1556_v34 = vld [vmem:[%s2758_s1 + $0x2f0] sm:$0xf0]  ;;  %v1431_v43 = vor.u32 %v1760_v30, %v1428_v32 }
  0x12   :  { %v1362_v49 = vld [vmem:[%s2758_s1 + $0x160] sm:$0xf]  ;;  %v1746_v51 = vld [vmem:[%s2758_s1 + $0x16c] sm:$0xf0]  ;;  %v1235_v56 = vor.u32 %v1714_v48, %v1234_v47  ;;  %840 = vmatpush.bf16.msra.mxu2 %v1507_v46  ;;  %v1824_v37 = vld [vmem:[%s2758_s1 + $0x3e4] sm:$0xf]  ;;  %v1559_v44 = vor.u32 %v1792_v33, %v1556_v34 }
  0x13   :  { %v1490_v52 = vld [vmem:[%s2758_s1 + $0x260] sm:$0xf]  ;;  %v1778_v53 = vld [vmem:[%s2758_s1 + $0x26c] sm:$0xf0]  ;;  %v1363_v57 = vor.u32 %v1746_v51, %v1362_v49  ;;  %854 = vmatpush.bf16.msra.mxu3 %v1635_v50  ;;  %v1684_v38 = vld [vmem:[%s2758_s1 + $0x3f0] sm:$0xf0] }
  0x14   :  { %v1618_v54 = vld [vmem:[%s2758_s1 + $0x360] sm:$0xf]  ;;  %v1810_v55 = vld [vmem:[%s2758_s1 + $0x36c] sm:$0xf0]  ;;  %v1491_v58 = vor.u32 %v1778_v53, %v1490_v52  ;;  %813 = vmatpush.bf16.msra.mxu0 %v1235_v56  ;;  %v1724_v41 = vld [vmem:[%s2758_s1 + $0xc4] sm:$0xf]  ;;  %v1687_v48 = vor.u32 %v1824_v37, %v1684_v38 }
  0x15   :  { %v1218_v59 = vld [vmem:[%s2758_s1 + $0x40] sm:$0xf]  ;;  %v1710_v60 = vld [vmem:[%s2758_s1 + $0x4c] sm:$0xf0]  ;;  %v1619_v62 = vor.u32 %v1810_v55, %v1618_v54  ;;  %827 = vmatpush.bf16.msra.mxu1 %v1363_v57  ;;  %v1284_v42 = vld [vmem:[%s2758_s1 + $0xd0] sm:$0xf0] }
  0x16   :  { %v1346_v61 = vld [vmem:[%s2758_s1 + $0x140] sm:$0xf]  ;;  %v1742_v63 = vld [vmem:[%s2758_s1 + $0x14c] sm:$0xf0]  ;;  %v1219_v4 = vor.u32 %v1710_v60, %v1218_v59  ;;  %841 = vmatpush.bf16.msra.mxu2 %v1491_v58  ;;  %v1756_v45 = vld [vmem:[%s2758_s1 + $0x1c4] sm:$0xf]  ;;  %v1287_v55 = vor.u32 %v1724_v41, %v1284_v42 }
  0x17   :  { %v1474_v0 = vld [vmem:[%s2758_s1 + $0x240] sm:$0xf]  ;;  %v1774_v1 = vld [vmem:[%s2758_s1 + $0x24c] sm:$0xf0]  ;;  %v1347_v5 = vor.u32 %v1742_v63, %v1346_v61  ;;  %855 = vmatpush.bf16.msra.mxu3 %v1619_v62  ;;  %v1412_v46 = vld [vmem:[%s2758_s1 + $0x1d0] sm:$0xf0] }
  0x18   :  { %v1602_v2 = vld [vmem:[%s2758_s1 + $0x340] sm:$0xf]  ;;  %v1806_v3 = vld [vmem:[%s2758_s1 + $0x34c] sm:$0xf0]  ;;  %v1475_v6 = vor.u32 %v1774_v1, %v1474_v0  ;;  %814 = vmatpush.bf16.msra.mxu0 %v1219_v4  ;;  %v1788_v47 = vld [vmem:[%s2758_s1 + $0x2c4] sm:$0xf]  ;;  %v1415_v60 = vor.u32 %v1756_v45, %v1412_v46 }
  0x19   :  { %v1202_v7 = vld [vmem:[%s2758_s1 + $0x20] sm:$0xf]  ;;  %v1706_v8 = vld [vmem:[%s2758_s1 + $0x2c] sm:$0xf0]  ;;  %v1603_v10 = vor.u32 %v1806_v3, %v1602_v2  ;;  %828 = vmatpush.bf16.msra.mxu1 %v1347_v5  ;;  %v1540_v49 = vld [vmem:[%s2758_s1 + $0x2d0] sm:$0xf0] }
  0x1a   :  { %v1330_v9 = vld [vmem:[%s2758_s1 + $0x120] sm:$0xf]  ;;  %v1738_v11 = vld [vmem:[%s2758_s1 + $0x12c] sm:$0xf0]  ;;  %v1203_v16 = vor.u32 %v1706_v8, %v1202_v7  ;;  %842 = vmatpush.bf16.msra.mxu2 %v1475_v6  ;;  %v1820_v50 = vld [vmem:[%s2758_s1 + $0x3c4] sm:$0xf]  ;;  %v1543_v61 = vor.u32 %v1788_v47, %v1540_v49 }
  0x1b   :  { %v1458_v12 = vld [vmem:[%s2758_s1 + $0x220] sm:$0xf]  ;;  %v1770_v13 = vld [vmem:[%s2758_s1 + $0x22c] sm:$0xf0]  ;;  %v1331_v19 = vor.u32 %v1738_v11, %v1330_v9  ;;  %856 = vmatpush.bf16.msra.mxu3 %v1603_v10  ;;  %v1668_v51 = vld [vmem:[%s2758_s1 + $0x3d0] sm:$0xf0] }
  0x1c   :  { %v1586_v14 = vld [vmem:[%s2758_s1 + $0x320] sm:$0xf]  ;;  %v1802_v15 = vld [vmem:[%s2758_s1 + $0x32c] sm:$0xf0]  ;;  %v1459_v20 = vor.u32 %v1770_v13, %v1458_v12  ;;  %815 = vmatpush.bf16.msra.mxu0 %v1203_v16  ;;  %v1720_v52 = vld [vmem:[%s2758_s1 + $0xa4] sm:$0xf]  ;;  %v1671_v1 = vor.u32 %v1820_v50, %v1668_v51 }
  0x1d   :  { %v1186_v17 = vld [vmem:[%s2758_s1] sm:$0xf]  ;;  %v1702_v18 = vld [vmem:[%s2758_s1 + $0xc] sm:$0xf0]  ;;  %v1587_v24 = vor.u32 %v1802_v15, %v1586_v14  ;;  %829 = vmatpush.bf16.msra.mxu1 %v1331_v19  ;;  %v1178_v53 = vld [vmem:[%s2759_s0 + $0x8] sm:$0xf] }
  0x1e   :  { %v1314_v21 = vld [vmem:[%s2758_s1 + $0x100] sm:$0xf]  ;;  %v1734_v22 = vld [vmem:[%s2758_s1 + $0x10c] sm:$0xf0]  ;;  %v1187_v31 = vor.u32 %v1702_v18, %v1186_v17  ;;  %843 = vmatpush.bf16.msra.mxu2 %v1459_v20  ;;  %v1699_v54 = vld [vmem:[%s2759_s0 + $0x14] sm:$0xf0] }
  0x1f   :  { %v1442_v23 = vld [vmem:[%s2758_s1 + $0x200] sm:$0xf]  ;;  %v1766_v25 = vld [vmem:[%s2758_s1 + $0x20c] sm:$0xf0]  ;;  %v1315_v35 = vor.u32 %v1734_v22, %v1314_v21  ;;  %857 = vmatpush.bf16.msra.mxu3 %v1587_v24  ;;  %v1268_v56 = vld [vmem:[%s2758_s1 + $0xb0] sm:$0xf0]  ;;  %v2124_v59 = vor.u32 %v1699_v54, %v1178_v53 }
  0x20   :  { %v1570_v26 = vld [vmem:[%s2758_s1 + $0x300] sm:$0xf]  ;;  %v1798_v27 = vld [vmem:[%s2758_s1 + $0x30c] sm:$0xf0]  ;;  %v1443_v36 = vor.u32 %v1766_v25, %v1442_v23  ;;  %816 = vmatpush.bf16.msra.mxu0 %v1187_v31  ;;  %v1752_v57 = vld [vmem:[%s2758_s1 + $0x1a4] sm:$0xf]  ;;  %v1271_v9 = vor.u32 %v1720_v52, %v1268_v56 }
  0x21   :  { %v1571_v39 = vor.u32 %v1798_v27, %v1570_v26  ;;  %830 = vmatpush.bf16.msra.mxu1 %v1315_v35  ;;  %v1396_v58 = vld [vmem:[%s2758_s1 + $0x1b0] sm:$0xf0]  ;;  %v1784_v62 = vld [vmem:[%s2758_s1 + $0x2a4] sm:$0xf]  ;;  %v1697_v3 = vld [vmem:[%s2759_s0 + $0xc] sm:$0xf] }
  0x22   :  { %844 = vmatpush.bf16.msra.mxu2 %v1443_v36  ;;  %v1524_v63 = vld [vmem:[%s2758_s1 + $0x2b0] sm:$0xf0]  ;;  %v1816_v0 = vld [vmem:[%s2758_s1 + $0x3a4] sm:$0xf]  ;;  %v1180_v4 = vld [vmem:[%s2759_s0 + $0x18] sm:$0xf0]  ;;  %v1399_v12 = vor.u32 %v1752_v57, %v1396_v58 }
  0x23   :  { %858 = vmatpush.bf16.msra.mxu3 %v1571_v39  ;;  %v1652_v2 = vld [vmem:[%s2758_s1 + $0x3b0] sm:$0xf0]  ;;  %v2145_v5 = vor.u32 %v1697_v3, %v1180_v4  ;;  %v1170_v6 = vld [vmem:[%s2759_s0] sm:$0xf]  ;;  %v1698_v7 = vld [vmem:[%s2759_s0 + $0xc] sm:$0xf0]  ;;  %v1527_v13 = vor.u32 %v1784_v62, %v1524_v63 }
  0x24   :  { %865 = vmatpush.bf16.msrb.mxu0 %v1303_v40  ;;  %v1696_v8 = vld [vmem:[%s2759_s0 + $0x4] sm:$0xf]  ;;  %v2156_v10 = vor.u32 %v1698_v7, %v1170_v6  ;;  %v1172_v11 = vld [vmem:[%s2759_s0 + $0x10] sm:$0xf0]  ;;  %v1655_v18 = vor.u32 %v1816_v0, %v1652_v2 }
  0x25   :  { %879 = vmatpush.bf16.msrb.mxu1 %v1431_v43  ;;  %845 = vmatmul.bf16.vlgmr.msra.gmra.mxu2 %v2124_v59  ;;  %v1716_v14 = vld [vmem:[%s2758_s1 + $0x84] sm:$0xf]  ;;  %v1252_v15 = vld [vmem:[%s2758_s1 + $0x90] sm:$0xf0]  ;;  %v2170_v17 = vor.u32 %v1696_v8, %v1172_v11  ;;  %v1306_v11 = vld [vmem:[%s2758_s1 + $0xe8] sm:$0xf] }
  0x26   :  { %893 = vmatpush.bf16.msrb.mxu2 %v1559_v44  ;;  %v1748_v16 = vld [vmem:[%s2758_s1 + $0x184] sm:$0xf]  ;;  %v1380_v19 = vld [vmem:[%s2758_s1 + $0x190] sm:$0xf0]  ;;  %817 = vmatmul.bf16.vlgmr.msra.gmra.mxu0 %v2156_v10  ;;  %v1255_v24 = vor.u32 %v1716_v14, %v1252_v15  ;;  %v1763_v15 = vld [vmem:[%s2758_s1 + $0x1f4] sm:$0xf0] }
  0x27   :  { %907 = vmatpush.bf16.msrb.mxu3 %v1687_v48  ;;  %v1780_v20 = vld [vmem:[%s2758_s1 + $0x284] sm:$0xf]  ;;  %v1508_v21 = vld [vmem:[%s2758_s1 + $0x290] sm:$0xf0]  ;;  %831 = vmatmul.bf16.vlgmr.msra.gmra.mxu1 %v2170_v17  ;;  %v1383_v25 = vor.u32 %v1748_v16, %v1380_v19  ;;  %v1562_v16 = vld [vmem:[%s2758_s1 + $0x2e8] sm:$0xf] }
  0x28   :  { %866 = vmatpush.bf16.msrb.mxu0 %v1287_v55  ;;  %v1812_v22 = vld [vmem:[%s2758_s1 + $0x384] sm:$0xf]  ;;  %v1636_v23 = vld [vmem:[%s2758_s1 + $0x390] sm:$0xf0]  ;;  %859 = vmatmul.bf16.vlgmr.msra.gmra.mxu3 %v2145_v5  ;;  %v1511_v26 = vor.u32 %v1780_v20, %v1508_v21  ;;  %v1690_v21 = vld [vmem:[%s2758_s1 + $0x3e8] sm:$0xf] }
  0x29   :  { %880 = vmatpush.bf16.msrb.mxu1 %v1415_v60  ;;  %v1712_v27 = vld [vmem:[%s2758_s1 + $0x64] sm:$0xf]  ;;  %v1236_v28 = vld [vmem:[%s2758_s1 + $0x70] sm:$0xf0]  ;;  %v1639_v30 = vor.u32 %v1812_v22, %v1636_v23  ;;  %v1827_v22 = vld [vmem:[%s2758_s1 + $0x3f4] sm:$0xf0] }
  0x2a   :  { %894 = vmatpush.bf16.msrb.mxu2 %v1543_v61  ;;  %v1744_v29 = vld [vmem:[%s2758_s1 + $0x164] sm:$0xf]  ;;  %v1364_v31 = vld [vmem:[%s2758_s1 + $0x170] sm:$0xf0]  ;;  %v1239_v36 = vor.u32 %v1712_v27, %v1236_v28  ;;  %v1290_v27 = vld [vmem:[%s2758_s1 + $0xc8] sm:$0xf] }
  0x2b   :  { %908 = vmatpush.bf16.msrb.mxu3 %v1671_v1  ;;  %v1776_v32 = vld [vmem:[%s2758_s1 + $0x264] sm:$0xf]  ;;  %v1492_v33 = vld [vmem:[%s2758_s1 + $0x270] sm:$0xf0]  ;;  %v1367_v37 = vor.u32 %v1744_v29, %v1364_v31  ;;  %v1727_v28 = vld [vmem:[%s2758_s1 + $0xd4] sm:$0xf0] }
  0x2c   :  { %867 = vmatpush.bf16.msrb.mxu0 %v1271_v9  ;;  %v1808_v34 = vld [vmem:[%s2758_s1 + $0x364] sm:$0xf]  ;;  %v1620_v35 = vld [vmem:[%s2758_s1 + $0x370] sm:$0xf0]  ;;  %v1495_v38 = vor.u32 %v1776_v32, %v1492_v33  ;;  %v1418_v29 = vld [vmem:[%s2758_s1 + $0x1c8] sm:$0xf] }
  0x2d   :  { %881 = vmatpush.bf16.msrb.mxu1 %v1399_v12  ;;  %v1708_v39 = vld [vmem:[%s2758_s1 + $0x44] sm:$0xf]  ;;  %v1220_v40 = vld [vmem:[%s2758_s1 + $0x50] sm:$0xf0]  ;;  %v1623_v42 = vor.u32 %v1808_v34, %v1620_v35  ;;  %v1731_v12 = vld [vmem:[%s2758_s1 + $0xf4] sm:$0xf0] }
  0x2e   :  { %895 = vmatpush.bf16.msrb.mxu2 %v1527_v13  ;;  %v1740_v41 = vld [vmem:[%s2758_s1 + $0x144] sm:$0xf]  ;;  %v1348_v43 = vld [vmem:[%s2758_s1 + $0x150] sm:$0xf0]  ;;  %v1223_v48 = vor.u32 %v1708_v39, %v1220_v40  ;;  %v1434_v13 = vld [vmem:[%s2758_s1 + $0x1e8] sm:$0xf] }
  0x2f   :  { %909 = vmatpush.bf16.msrb.mxu3 %v1655_v18  ;;  %v1772_v44 = vld [vmem:[%s2758_s1 + $0x244] sm:$0xf]  ;;  %v1476_v45 = vld [vmem:[%s2758_s1 + $0x250] sm:$0xf0]  ;;  %v1351_v49 = vor.u32 %v1740_v41, %v1348_v43  ;;  %v1795_v18 = vld [vmem:[%s2758_s1 + $0x2f4] sm:$0xf0] }
  0x30   :  { %868 = vmatpush.bf16.msrb.mxu0 %v1255_v24  ;;  %v1804_v46 = vld [vmem:[%s2758_s1 + $0x344] sm:$0xf]  ;;  %v1604_v47 = vld [vmem:[%s2758_s1 + $0x350] sm:$0xf0]  ;;  %v1479_v50 = vor.u32 %v1772_v44, %v1476_v45  ;;  %v1307_v24 = vor.u32 %v1731_v12, %v1306_v11  ;;  %v1759_v31 = vld [vmem:[%s2758_s1 + $0x1d4] sm:$0xf0] }
  0x31   :  { %882 = vmatpush.bf16.msrb.mxu1 %v1383_v25  ;;  %v1704_v51 = vld [vmem:[%s2758_s1 + $0x24] sm:$0xf]  ;;  %v1204_v52 = vld [vmem:[%s2758_s1 + $0x30] sm:$0xf0]  ;;  %v1607_v54 = vor.u32 %v1804_v46, %v1604_v47  ;;  %v1435_v25 = vor.u32 %v1763_v15, %v1434_v13  ;;  %v1546_v32 = vld [vmem:[%s2758_s1 + $0x2c8] sm:$0xf] }
  0x32   :  { %896 = vmatpush.bf16.msrb.mxu2 %v1511_v26  ;;  %v1736_v53 = vld [vmem:[%s2758_s1 + $0x124] sm:$0xf]  ;;  %v1332_v55 = vld [vmem:[%s2758_s1 + $0x130] sm:$0xf0]  ;;  %v1207_v61 = vor.u32 %v1704_v51, %v1204_v52  ;;  %v1563_v26 = vor.u32 %v1795_v18, %v1562_v16  ;;  %v1791_v33 = vld [vmem:[%s2758_s1 + $0x2d4] sm:$0xf0] }
  0x33   :  { %910 = vmatpush.bf16.msrb.mxu3 %v1639_v30  ;;  %v1768_v56 = vld [vmem:[%s2758_s1 + $0x224] sm:$0xf]  ;;  %v1460_v57 = vld [vmem:[%s2758_s1 + $0x230] sm:$0xf0]  ;;  %v1335_v0 = vor.u32 %v1736_v53, %v1332_v55  ;;  %v1691_v30 = vor.u32 %v1827_v22, %v1690_v21  ;;  %v1674_v34 = vld [vmem:[%s2758_s1 + $0x3c8] sm:$0xf] }
  0x34   :  { %869 = vmatpush.bf16.msrb.mxu0 %v1239_v36  ;;  %v1800_v58 = vld [vmem:[%s2758_s1 + $0x324] sm:$0xf]  ;;  %v1588_v60 = vld [vmem:[%s2758_s1 + $0x330] sm:$0xf0]  ;;  %v1463_v1 = vor.u32 %v1768_v56, %v1460_v57  ;;  %v1823_v35 = vld [vmem:[%s2758_s1 + $0x3d4] sm:$0xf0]  ;;  %v1291_v36 = vor.u32 %v1727_v28, %v1290_v27 }
  0x35   :  { %883 = vmatpush.bf16.msrb.mxu1 %v1367_v37  ;;  %v1700_v62 = vld [vmem:[%s2758_s1 + $0x4] sm:$0xf]  ;;  %v1188_v63 = vld [vmem:[%s2758_s1 + $0x10] sm:$0xf0]  ;;  %v1591_v6 = vor.u32 %v1800_v58, %v1588_v60  ;;  %v1419_v37 = vor.u32 %v1759_v31, %v1418_v29  ;;  %v1274_v39 = vld [vmem:[%s2758_s1 + $0xa8] sm:$0xf] }
  0x36   :  { %897 = vmatpush.bf16.msrb.mxu2 %v1495_v38  ;;  %v1732_v2 = vld [vmem:[%s2758_s1 + $0x104] sm:$0xf]  ;;  %v1316_v3 = vld [vmem:[%s2758_s1 + $0x110] sm:$0xf0]  ;;  %v1191_v14 = vor.u32 %v1700_v62, %v1188_v63  ;;  %v1547_v38 = vor.u32 %v1791_v33, %v1546_v32  ;;  %v1723_v40 = vld [vmem:[%s2758_s1 + $0xb4] sm:$0xf0] }
  0x37   :  { %911 = vmatpush.bf16.msrb.mxu3 %v1623_v42  ;;  %v1764_v4 = vld [vmem:[%s2758_s1 + $0x204] sm:$0xf]  ;;  %v1444_v7 = vld [vmem:[%s2758_s1 + $0x210] sm:$0xf0]  ;;  %v1319_v19 = vor.u32 %v1732_v2, %v1316_v3  ;;  %v1402_v41 = vld [vmem:[%s2758_s1 + $0x1a8] sm:$0xf]  ;;  %v1675_v42 = vor.u32 %v1823_v35, %v1674_v34 }
  0x38   :  { %870 = vmatpush.bf16.msrb.mxu0 %v1223_v48  ;;  %v1796_v8 = vld [vmem:[%s2758_s1 + $0x304] sm:$0xf]  ;;  %v1572_v9 = vld [vmem:[%s2758_s1 + $0x310] sm:$0xf0]  ;;  %v1447_v20 = vor.u32 %v1764_v4, %v1444_v7  ;;  %v1755_v43 = vld [vmem:[%s2758_s1 + $0x1b4] sm:$0xf0]  ;;  %v1275_v48 = vor.u32 %v1723_v40, %v1274_v39 }
  0x39   :  { %884 = vmatpush.bf16.msrb.mxu1 %v1351_v49  ;;  %v1575_v23 = vor.u32 %v1796_v8, %v1572_v9  ;;  %v1530_v44 = vld [vmem:[%s2758_s1 + $0x2a8] sm:$0xf]  ;;  %v1787_v45 = vld [vmem:[%s2758_s1 + $0x2b4] sm:$0xf0]  ;;  %v1403_v49 = vor.u32 %v1755_v43, %v1402_v41 }
  0x3a   :  { %898 = vmatpush.bf16.msrb.mxu2 %v1479_v50  ;;  %v1658_v46 = vld [vmem:[%s2758_s1 + $0x3a8] sm:$0xf]  ;;  %v1819_v47 = vld [vmem:[%s2758_s1 + $0x3b4] sm:$0xf0]  ;;  %v1531_v50 = vor.u32 %v1787_v45, %v1530_v44 }
  0x3b   :  { %912 = vmatpush.bf16.msrb.mxu3 %v1607_v54  ;;  %v1258_v51 = vld [vmem:[%s2758_s1 + $0x88] sm:$0xf]  ;;  %v1719_v52 = vld [vmem:[%s2758_s1 + $0x94] sm:$0xf0]  ;;  %v1659_v54 = vor.u32 %v1819_v47, %v1658_v46 }
  0x3c   :  { %871 = vmatpush.bf16.msrb.mxu0 %v1207_v61  ;;  %v1386_v53 = vld [vmem:[%s2758_s1 + $0x188] sm:$0xf]  ;;  %v1751_v55 = vld [vmem:[%s2758_s1 + $0x194] sm:$0xf0]  ;;  %v1259_v61 = vor.u32 %v1719_v52, %v1258_v51  ;;  %v1436_v52 = vld [vmem:[%s2758_s1 + $0x1f8] sm:$0xf0] }
  0x3d   :  { %885 = vmatpush.bf16.msrb.mxu1 %v1335_v0  ;;  %v1514_v56 = vld [vmem:[%s2758_s1 + $0x288] sm:$0xf]  ;;  %v1783_v57 = vld [vmem:[%s2758_s1 + $0x294] sm:$0xf0]  ;;  %v1387_v62 = vor.u32 %v1751_v55, %v1386_v53  ;;  %v1793_v53 = vld [vmem:[%s2758_s1 + $0x2ec] sm:$0xf] }
  0x3e   :  { %899 = vmatpush.bf16.msrb.mxu2 %v1463_v1  ;;  %v1642_v58 = vld [vmem:[%s2758_s1 + $0x388] sm:$0xf]  ;;  %v1815_v60 = vld [vmem:[%s2758_s1 + $0x394] sm:$0xf0]  ;;  %v1515_v63 = vor.u32 %v1783_v57, %v1514_v56  ;;  %v1825_v57 = vld [vmem:[%s2758_s1 + $0x3ec] sm:$0xf] }
  0x3f   :  { %913 = vmatpush.bf16.msrb.mxu3 %v1591_v6  ;;  %v1242_v0 = vld [vmem:[%s2758_s1 + $0x68] sm:$0xf]  ;;  %v1715_v1 = vld [vmem:[%s2758_s1 + $0x74] sm:$0xf0]  ;;  %v1643_v3 = vor.u32 %v1815_v60, %v1642_v58  ;;  %v1692_v58 = vld [vmem:[%s2758_s1 + $0x3f8] sm:$0xf0] }
  0x40   :  { %872 = vmatpush.bf16.msrb.mxu0 %v1191_v14  ;;  %v1370_v2 = vld [vmem:[%s2758_s1 + $0x168] sm:$0xf]  ;;  %v1747_v4 = vld [vmem:[%s2758_s1 + $0x174] sm:$0xf0]  ;;  %v1243_v11 = vor.u32 %v1715_v1, %v1242_v0  ;;  %v1725_v0 = vld [vmem:[%s2758_s1 + $0xcc] sm:$0xf] }
  0x41   :  { %886 = vmatpush.bf16.msrb.mxu1 %v1319_v19  ;;  %v1498_v6 = vld [vmem:[%s2758_s1 + $0x268] sm:$0xf]  ;;  %v1779_v7 = vld [vmem:[%s2758_s1 + $0x274] sm:$0xf0]  ;;  %v1371_v12 = vor.u32 %v1747_v4, %v1370_v2  ;;  %v1292_v1 = vld [vmem:[%s2758_s1 + $0xd8] sm:$0xf0] }
  0x42   :  { %900 = vmatpush.bf16.msrb.mxu2 %v1447_v20  ;;  %v1626_v8 = vld [vmem:[%s2758_s1 + $0x368] sm:$0xf]  ;;  %v1811_v9 = vld [vmem:[%s2758_s1 + $0x374] sm:$0xf0]  ;;  %v1499_v13 = vor.u32 %v1779_v7, %v1498_v6  ;;  %v1757_v2 = vld [vmem:[%s2758_s1 + $0x1cc] sm:$0xf] }
  0x43   :  { %914 = vmatpush.bf16.msrb.mxu3 %v1575_v23  ;;  %873 = vmatmul.bf16.vlgmr.msrb.gmra.mxu0 %v2156_v10  ;;  %v1226_v14 = vld [vmem:[%s2758_s1 + $0x48] sm:$0xf]  ;;  %v1711_v15 = vld [vmem:[%s2758_s1 + $0x54] sm:$0xf0]  ;;  %v1627_v18 = vor.u32 %v1811_v9, %v1626_v8  ;;  %v1420_v4 = vld [vmem:[%s2758_s1 + $0x1d8] sm:$0xf0] }
  0x44   :  { %921 = vmatpush.bf16.msra.mxu0 %v1307_v24  ;;  %887 = vmatmul.bf16.vlgmr.msrb.gmra.mxu1 %v2170_v17  ;;  %v1354_v16 = vld [vmem:[%s2758_s1 + $0x148] sm:$0xf]  ;;  %v1743_v19 = vld [vmem:[%s2758_s1 + $0x154] sm:$0xf0]  ;;  %v1227_v24 = vor.u32 %v1711_v15, %v1226_v14  ;;  %v1789_v6 = vld [vmem:[%s2758_s1 + $0x2cc] sm:$0xf] }
  0x45   :  { %935 = vmatpush.bf16.msra.mxu1 %v1435_v25  ;;  %901 = vmatmul.bf16.vlgmr.msrb.gmra.mxu2 %v2124_v59  ;;  %v1482_v20 = vld [vmem:[%s2758_s1 + $0x248] sm:$0xf]  ;;  %v1775_v21 = vld [vmem:[%s2758_s1 + $0x254] sm:$0xf0]  ;;  %v1355_v25 = vor.u32 %v1743_v19, %v1354_v16  ;;  %v1548_v7 = vld [vmem:[%s2758_s1 + $0x2d8] sm:$0xf0] }
  0x46   :  { %949 = vmatpush.bf16.msra.mxu2 %v1563_v26  ;;  %915 = vmatmul.bf16.vlgmr.msrb.gmra.mxu3 %v2145_v5  ;;  %v1610_v22 = vld [vmem:[%s2758_s1 + $0x348] sm:$0xf]  ;;  %v1807_v23 = vld [vmem:[%s2758_s1 + $0x354] sm:$0xf0]  ;;  %v1483_v26 = vor.u32 %v1775_v21, %v1482_v20  ;;  %v1821_v8 = vld [vmem:[%s2758_s1 + $0x3cc] sm:$0xf] }
  0x47   :  { %963 = vmatpush.bf16.msra.mxu3 %v1691_v30  ;;  %v1210_v27 = vld [vmem:[%s2758_s1 + $0x28] sm:$0xf]  ;;  %v1707_v28 = vld [vmem:[%s2758_s1 + $0x34] sm:$0xf0]  ;;  %v1611_v30 = vor.u32 %v1807_v23, %v1610_v22  ;;  %v1676_v9 = vld [vmem:[%s2758_s1 + $0x3d8] sm:$0xf0] }
  0x48   :  { %922 = vmatpush.bf16.msra.mxu0 %v1291_v36  ;;  %v1338_v29 = vld [vmem:[%s2758_s1 + $0x128] sm:$0xf]  ;;  %v1739_v31 = vld [vmem:[%s2758_s1 + $0x134] sm:$0xf0]  ;;  %v1211_v36 = vor.u32 %v1707_v28, %v1210_v27  ;;  %v1721_v14 = vld [vmem:[%s2758_s1 + $0xac] sm:$0xf] }
  0x49   :  { %936 = vmatpush.bf16.msra.mxu1 %v1419_v37  ;;  %v1466_v32 = vld [vmem:[%s2758_s1 + $0x228] sm:$0xf]  ;;  %v1771_v33 = vld [vmem:[%s2758_s1 + $0x234] sm:$0xf0]  ;;  %v1339_v39 = vor.u32 %v1739_v31, %v1338_v29  ;;  %v1276_v15 = vld [vmem:[%s2758_s1 + $0xb8] sm:$0xf0] }
  0x4a   :  { %950 = vmatpush.bf16.msra.mxu2 %v1547_v38  ;;  %v1594_v34 = vld [vmem:[%s2758_s1 + $0x328] sm:$0xf]  ;;  %v1803_v35 = vld [vmem:[%s2758_s1 + $0x334] sm:$0xf0]  ;;  %v1467_v40 = vor.u32 %v1771_v33, %v1466_v32  ;;  %v1753_v16 = vld [vmem:[%s2758_s1 + $0x1ac] sm:$0xf] }
  0x4b   :  { %964 = vmatpush.bf16.msra.mxu3 %v1675_v42  ;;  %v1194_v37 = vld [vmem:[%s2758_s1 + $0x8] sm:$0xf]  ;;  %v1703_v38 = vld [vmem:[%s2758_s1 + $0x14] sm:$0xf0]  ;;  %v1595_v44 = vor.u32 %v1803_v35, %v1594_v34  ;;  %v1404_v19 = vld [vmem:[%s2758_s1 + $0x1b8] sm:$0xf0] }
  0x4c   :  { %923 = vmatpush.bf16.msra.mxu0 %v1275_v48  ;;  %v1322_v41 = vld [vmem:[%s2758_s1 + $0x108] sm:$0xf]  ;;  %v1735_v42 = vld [vmem:[%s2758_s1 + $0x114] sm:$0xf0]  ;;  %v1729_v48 = vld [vmem:[%s2758_s1 + $0xec] sm:$0xf]  ;;  %v1195_v51 = vor.u32 %v1703_v38, %v1194_v37 }
  0x4d   :  { %937 = vmatpush.bf16.msra.mxu1 %v1403_v49  ;;  %v1450_v43 = vld [vmem:[%s2758_s1 + $0x208] sm:$0xf]  ;;  %v1767_v45 = vld [vmem:[%s2758_s1 + $0x214] sm:$0xf0]  ;;  %v1308_v49 = vld [vmem:[%s2758_s1 + $0xf8] sm:$0xf0]  ;;  %v1323_v55 = vor.u32 %v1735_v42, %v1322_v41 }
  0x4e   :  { %951 = vmatpush.bf16.msra.mxu2 %v1531_v50  ;;  %v1578_v46 = vld [vmem:[%s2758_s1 + $0x308] sm:$0xf]  ;;  %v1799_v47 = vld [vmem:[%s2758_s1 + $0x314] sm:$0xf0]  ;;  %v1761_v50 = vld [vmem:[%s2758_s1 + $0x1ec] sm:$0xf]  ;;  %v1451_v56 = vor.u32 %v1767_v45, %v1450_v43 }
  0x4f   :  { %965 = vmatpush.bf16.msra.mxu3 %v1659_v54  ;;  %v1564_v54 = vld [vmem:[%s2758_s1 + $0x2f8] sm:$0xf0]  ;;  %v1579_v60 = vor.u32 %v1799_v47, %v1578_v46  ;;  %v1785_v20 = vld [vmem:[%s2758_s1 + $0x2ac] sm:$0xf] }
  0x50   :  { %924 = vmatpush.bf16.msra.mxu0 %v1259_v61  ;;  %v1311_v61 = vor.u32 %v1729_v48, %v1308_v49  ;;  %v1532_v21 = vld [vmem:[%s2758_s1 + $0x2b8] sm:$0xf0]  ;;  %v1817_v22 = vld [vmem:[%s2758_s1 + $0x3ac] sm:$0xf] }
  0x51   :  { %938 = vmatpush.bf16.msra.mxu1 %v1387_v62  ;;  %v1439_v62 = vor.u32 %v1761_v50, %v1436_v52  ;;  %v1660_v23 = vld [vmem:[%s2758_s1 + $0x3b8] sm:$0xf0]  ;;  %v1717_v27 = vld [vmem:[%s2758_s1 + $0x8c] sm:$0xf] }
  0x52   :  { %952 = vmatpush.bf16.msra.mxu2 %v1515_v63  ;;  %v1567_v63 = vor.u32 %v1793_v53, %v1564_v54  ;;  %v1260_v28 = vld [vmem:[%s2758_s1 + $0x98] sm:$0xf0]  ;;  %v1749_v29 = vld [vmem:[%s2758_s1 + $0x18c] sm:$0xf] }
  0x53   :  { %966 = vmatpush.bf16.msra.mxu3 %v1643_v3  ;;  %v1695_v3 = vor.u32 %v1825_v57, %v1692_v58  ;;  %v1388_v31 = vld [vmem:[%s2758_s1 + $0x198] sm:$0xf0]  ;;  %v1781_v32 = vld [vmem:[%s2758_s1 + $0x28c] sm:$0xf] }
  0x54   :  { %925 = vmatpush.bf16.msra.mxu0 %v1243_v11  ;;  %v1295_v11 = vor.u32 %v1725_v0, %v1292_v1  ;;  %v1516_v33 = vld [vmem:[%s2758_s1 + $0x298] sm:$0xf0]  ;;  %v1813_v34 = vld [vmem:[%s2758_s1 + $0x38c] sm:$0xf]  ;;  %v1391_v37 = vor.u32 %v1749_v29, %v1388_v31 }
  0x55   :  { %939 = vmatpush.bf16.msra.mxu1 %v1371_v12  ;;  %v1423_v12 = vor.u32 %v1757_v2, %v1420_v4  ;;  %v1644_v35 = vld [vmem:[%s2758_s1 + $0x398] sm:$0xf0]  ;;  %v1519_v38 = vor.u32 %v1781_v32, %v1516_v33  ;;  %v1745_v41 = vld [vmem:[%s2758_s1 + $0x16c] sm:$0xf] }
  0x56   :  { %953 = vmatpush.bf16.msra.mxu2 %v1499_v13  ;;  %v1551_v13 = vor.u32 %v1789_v6, %v1548_v7  ;;  %v1647_v42 = vor.u32 %v1813_v34, %v1644_v35  ;;  %v1372_v43 = vld [vmem:[%s2758_s1 + $0x178] sm:$0xf0]  ;;  %v1809_v46 = vld [vmem:[%s2758_s1 + $0x36c] sm:$0xf] }
  0x57   :  { %967 = vmatpush.bf16.msra.mxu3 %v1627_v18  ;;  %v1679_v18 = vor.u32 %v1821_v8, %v1676_v9  ;;  %v1500_v45 = vld [vmem:[%s2758_s1 + $0x278] sm:$0xf0]  ;;  %v1375_v49 = vor.u32 %v1745_v41, %v1372_v43  ;;  %v1741_v53 = vld [vmem:[%s2758_s1 + $0x14c] sm:$0xf] }
  0x58   :  { %926 = vmatpush.bf16.msra.mxu0 %v1227_v24  ;;  %v1279_v24 = vor.u32 %v1721_v14, %v1276_v15  ;;  %v1628_v47 = vld [vmem:[%s2758_s1 + $0x378] sm:$0xf0]  ;;  %v1805_v58 = vld [vmem:[%s2758_s1 + $0x34c] sm:$0xf] }
  0x59   :  { %940 = vmatpush.bf16.msra.mxu1 %v1355_v25  ;;  %v1407_v25 = vor.u32 %v1753_v16, %v1404_v19  ;;  %v1228_v52 = vld [vmem:[%s2758_s1 + $0x58] sm:$0xf0]  ;;  %v1631_v54 = vor.u32 %v1809_v46, %v1628_v47  ;;  %v1705_v0 = vld [vmem:[%s2758_s1 + $0x2c] sm:$0xf] }
  0x5a   :  { %954 = vmatpush.bf16.msra.mxu2 %v1483_v26  ;;  %v1535_v26 = vor.u32 %v1785_v20, %v1532_v21  ;;  %v1484_v57 = vld [vmem:[%s2758_s1 + $0x258] sm:$0xf0]  ;;  %v1737_v2 = vld [vmem:[%s2758_s1 + $0x12c] sm:$0xf] }
  0x5b   :  { %968 = vmatpush.bf16.msra.mxu3 %v1611_v30  ;;  %v1663_v30 = vor.u32 %v1817_v22, %v1660_v23  ;;  %v1212_v1 = vld [vmem:[%s2758_s1 + $0x38] sm:$0xf0]  ;;  %v1769_v6 = vld [vmem:[%s2758_s1 + $0x22c] sm:$0xf] }
  0x5c   :  { %927 = vmatpush.bf16.msra.mxu0 %v1211_v36  ;;  %v1263_v36 = vor.u32 %v1717_v27, %v1260_v28  ;;  %v1340_v4 = vld [vmem:[%s2758_s1 + $0x138] sm:$0xf0]  ;;  %v1801_v8 = vld [vmem:[%s2758_s1 + $0x32c] sm:$0xf] }
  0x5d   :  { %941 = vmatpush.bf16.msra.mxu1 %v1339_v39  ;;  %v1713_v39 = vld [vmem:[%s2758_s1 + $0x6c] sm:$0xf]  ;;  %v1468_v7 = vld [vmem:[%s2758_s1 + $0x238] sm:$0xf0] }
  0x5e   :  { %955 = vmatpush.bf16.msra.mxu2 %v1467_v40  ;;  %v1244_v40 = vld [vmem:[%s2758_s1 + $0x78] sm:$0xf0]  ;;  %v1701_v14 = vld [vmem:[%s2758_s1 + $0xc] sm:$0xf] }
  0x5f   :  { %969 = vmatpush.bf16.msra.mxu3 %v1595_v44  ;;  %v1777_v44 = vld [vmem:[%s2758_s1 + $0x26c] sm:$0xf]  ;;  %v1247_v48 = vor.u32 %v1713_v39, %v1244_v40  ;;  %v1596_v9 = vld [vmem:[%s2758_s1 + $0x338] sm:$0xf0] }
  0x60   :  { %928 = vmatpush.bf16.msra.mxu0 %v1195_v51  ;;  %v1503_v50 = vor.u32 %v1777_v44, %v1500_v45  ;;  %v1709_v51 = vld [vmem:[%s2758_s1 + $0x4c] sm:$0xf]  ;;  %v1196_v15 = vld [vmem:[%s2758_s1 + $0x18] sm:$0xf0] }
  0x61   :  { %942 = vmatpush.bf16.msra.mxu1 %v1323_v55  ;;  %v1356_v55 = vld [vmem:[%s2758_s1 + $0x158] sm:$0xf0]  ;;  %v1733_v16 = vld [vmem:[%s2758_s1 + $0x10c] sm:$0xf] }
  0x62   :  { %956 = vmatpush.bf16.msra.mxu2 %v1451_v56  ;;  %v1773_v56 = vld [vmem:[%s2758_s1 + $0x24c] sm:$0xf]  ;;  %v1324_v19 = vld [vmem:[%s2758_s1 + $0x118] sm:$0xf0] }
  0x63   :  { %970 = vmatpush.bf16.msra.mxu3 %v1579_v60  ;;  %929 = vmatmul.bf16.vlgmr.msra.gmra.mxu0 %v2156_v10  ;;  %v1612_v60 = vld [vmem:[%s2758_s1 + $0x358] sm:$0xf0]  ;;  %v1765_v20 = vld [vmem:[%s2758_s1 + $0x20c] sm:$0xf] }
  0x64   :  { %977 = vmatpush.bf16.msrb.mxu0 %v1311_v61  ;;  %943 = vmatmul.bf16.vlgmr.msra.gmra.mxu1 %v2170_v17  ;;  %v1231_v61 = vor.u32 %v1709_v51, %v1228_v52  ;;  %v1452_v21 = vld [vmem:[%s2758_s1 + $0x218] sm:$0xf0]  ;;  %v1797_v22 = vld [vmem:[%s2758_s1 + $0x30c] sm:$0xf] }
  0x65   :  { %991 = vmatpush.bf16.msrb.mxu1 %v1439_v62  ;;  %957 = vmatmul.bf16.vlgmr.msra.gmra.mxu2 %v2124_v59  ;;  %v1359_v62 = vor.u32 %v1741_v53, %v1356_v55  ;;  %v1580_v23 = vld [vmem:[%s2758_s1 + $0x318] sm:$0xf0] }
  0x66   :  { %1005 = vmatpush.bf16.msrb.mxu2 %v1567_v63  ;;  %971 = vmatmul.bf16.vlgmr.msra.gmra.mxu3 %v2145_v5  ;;  %v1487_v63 = vor.u32 %v1773_v56, %v1484_v57  ;;  %v1583_v27 = vor.u32 %v1797_v22, %v1580_v23 }
  0x67   :  { %1019 = vmatpush.bf16.msrb.mxu3 %v1695_v3  ;;  %v1615_v3 = vor.u32 %v1805_v58, %v1612_v60 }
  0x68   :  { %978 = vmatpush.bf16.msrb.mxu0 %v1295_v11  ;;  %v1215_v11 = vor.u32 %v1705_v0, %v1212_v1 }
  0x69   :  { %992 = vmatpush.bf16.msrb.mxu1 %v1423_v12  ;;  %v1343_v12 = vor.u32 %v1737_v2, %v1340_v4 }
  0x6a   :  { %1006 = vmatpush.bf16.msrb.mxu2 %v1551_v13  ;;  %v1471_v13 = vor.u32 %v1769_v6, %v1468_v7 }
  0x6b   :  { %1020 = vmatpush.bf16.msrb.mxu3 %v1679_v18  ;;  %v1599_v18 = vor.u32 %v1801_v8, %v1596_v9 }
  0x6c   :  { %979 = vmatpush.bf16.msrb.mxu0 %v1279_v24  ;;  %v1199_v24 = vor.u32 %v1701_v14, %v1196_v15 }
  0x6d   :  { %993 = vmatpush.bf16.msrb.mxu1 %v1407_v25  ;;  %v1327_v25 = vor.u32 %v1733_v16, %v1324_v19 }
  0x6e   :  { %1007 = vmatpush.bf16.msrb.mxu2 %v1535_v26  ;;  %v1455_v26 = vor.u32 %v1765_v20, %v1452_v21 }
  0x6f   :  { %1021 = vmatpush.bf16.msrb.mxu3 %v1663_v30 }
  0x70   :  { %980 = vmatpush.bf16.msrb.mxu0 %v1263_v36 }
  0x71   :  { %994 = vmatpush.bf16.msrb.mxu1 %v1391_v37 }
  0x72   :  { %1008 = vmatpush.bf16.msrb.mxu2 %v1519_v38 }
  0x73   :  { %1022 = vmatpush.bf16.msrb.mxu3 %v1647_v42 }
  0x74   :  { %981 = vmatpush.bf16.msrb.mxu0 %v1247_v48 }
  0x75   :  { %995 = vmatpush.bf16.msrb.mxu1 %v1375_v49 }
  0x76   :  { %1009 = vmatpush.bf16.msrb.mxu2 %v1503_v50 }
  0x77   :  { %1023 = vmatpush.bf16.msrb.mxu3 %v1631_v54 }
  0x78   :  { %982 = vmatpush.bf16.msrb.mxu0 %v1231_v61 }
  0x79   :  { %996 = vmatpush.bf16.msrb.mxu1 %v1359_v62 }
  0x7a   :  { %1010 = vmatpush.bf16.msrb.mxu2 %v1487_v63 }
  0x7b   :  { %1024 = vmatpush.bf16.msrb.mxu3 %v1615_v3 }
  0x7c   :  { %983 = vmatpush.bf16.msrb.mxu0 %v1215_v11 }
  0x7d   :  { %997 = vmatpush.bf16.msrb.mxu1 %v1343_v12 }
  0x7e   :  { %1011 = vmatpush.bf16.msrb.mxu2 %v1471_v13 }
  0x7f   :  { %1025 = vmatpush.bf16.msrb.mxu3 %v1599_v18 }
  0x80   :  { %984 = vmatpush.bf16.msrb.mxu0 %v1199_v24 }
  0x81   :  { %998 = vmatpush.bf16.msrb.mxu1 %v1327_v25 }
  0x82   :  { %1012 = vmatpush.bf16.msrb.mxu2 %v1455_v26  ;;  %v1839_v26 = vmov 512.0  }
  0x83   :  { %1026 = vmatpush.bf16.msrb.mxu3 %v1583_v27  ;;  %985 = vmatmul.bf16.vlgmr.msrb.gmra.mxu0 %v2156_v10  ;;  %1833 = vrcp.f32 %v1839_v26 }
  0x84   :  { %999 = vmatmul.bf16.vlgmr.msrb.gmra.mxu1 %v2170_v17 }
  0x85   :  { %1013 = vmatmul.bf16.vlgmr.msrb.gmra.mxu2 %v2124_v59 }
  0x86   :  { %1027 = vmatmul.bf16.vlgmr.msrb.gmra.mxu3 %v2145_v5 }
  0x89   :  { %v1834_v27 = vpop.eup %1833 }
  0x8a   :  { %vm1048_vm0 = vweird.f32 %v1834_v27 }
  0xa3   :  { %v818_v28 = vpop.f32.mrf.mxu0 }
  0xa4   :  { %v832_v29 = vpop.f32.mrf.mxu1 }
  0xa5   :  { %v833_v47 = vadd.f32 %v832_v29, %v818_v28  ;;  %v1044_v28 = vmul.f32 512.0, %v1834_v27 }
  0xa7   :  { %v1045_v29 = vsub.f32 1.0, %v1044_v28 }
  0xa8   :  { %v846_v30 = vpop.f32.mrf.mxu2 }
  0xa9   :  { %v847_v54 = vadd.f32 %v846_v30, %v833_v47  ;;  %v1046_v30 = vmul.f32 %v1834_v27, %v1045_v29 }
  0xab   :  { %v860_v31 = vpop.f32.mrf.mxu3  ;;  %v820_v32 = vpop.f32.mrf.mxu0 }
  0xac   :  { %v834_v33 = vpop.f32.mrf.mxu1  ;;  %v2684_v60 = vadd.f32 %v860_v31, %v847_v54  ;;  %v1047_v31 = vadd.f32 %v1834_v27, %v1046_v30 }
  0xad   :  { %v835_v61 = vadd.f32 %v834_v33, %v820_v32 }
  0xae   :  { %v1049_v32 = vsel %vm1048_vm0, %v1834_v27, %v1047_v31  ;;  %v1081_v27 = vld [vmem:[%s2760_s2 + $0x8] sm:$0xff] }
  0xaf   :  { %v1107_v31 = vld [vmem:[%s2761_s3 + $0x8] sm:$0xff] }
  0xb0   :  { %v848_v34 = vpop.f32.mrf.mxu2 }
  0xb1   :  { %v849_v6 = vadd.f32 %v848_v34, %v835_v61 }
  0xb3   :  { %v862_v35 = vpop.f32.mrf.mxu3 }
  0xb4   :  { %v2696_v15 = vadd.f32 %v862_v35, %v849_v6 }
  0xc0   :  { %v874_v36 = vpop.f32.mrf.mxu0 }
  0xc1   :  { %v888_v37 = vpop.f32.mrf.mxu1 }
  0xc2   :  { %v889_v46 = vadd.f32 %v888_v37, %v874_v36 }
  0xc8   :  { %v902_v38 = vpop.f32.mrf.mxu2  ;;  %v876_v40 = vpop.f32.mrf.mxu0 }
  0xc9   :  { %v916_v39 = vpop.f32.mrf.mxu3  ;;  %v890_v10 = vpop.f32.mrf.mxu1  ;;  %v903_v50 = vadd.f32 %v902_v38, %v889_v46 }
  0xca   :  { %v891_v57 = vadd.f32 %v890_v10, %v876_v40 }
  0xcb   :  { %v2682_v56 = vadd.f32 %v916_v39, %v903_v50 }
  0xcd   :  { %v1033_v4 = vadd.f32 %v2682_v56, %v2684_v60 }
  0xd0   :  { %v904_v41 = vpop.f32.mrf.mxu2 }
  0xd1   :  { %v918_v17 = vpop.f32.mrf.mxu3  ;;  %v905_v1 = vadd.f32 %v904_v41, %v891_v57 }
  0xd3   :  { %v2693_v13 = vadd.f32 %v918_v17, %v905_v1 }
  0xd5   :  { %v1038_v20 = vadd.f32 %v2693_v13, %v2696_v15 }
  0xe0   :  { %v930_v42 = vpop.f32.mrf.mxu0 }
  0xe1   :  { %v944_v59 = vpop.f32.mrf.mxu1 }
  0xe2   :  { %v945_v48 = vadd.f32 %v944_v59, %v930_v42 }
  0xe8   :  { %v958_v43 = vpop.f32.mrf.mxu2  ;;  %v932_v44 = vpop.f32.mrf.mxu0 }
  0xe9   :  { %v972_v5 = vpop.f32.mrf.mxu3  ;;  %v946_v45 = vpop.f32.mrf.mxu1  ;;  %v959_v55 = vadd.f32 %v958_v43, %v945_v48 }
  0xea   :  { %v947_v63 = vadd.f32 %v946_v45, %v932_v44 }
  0xeb   :  { %v2686_v62 = vadd.f32 %v972_v5, %v959_v55  ;;  %v1840_v55 = vmov 0  }
  0xec   :  { %1830 = vset.pattern.permute.xlu2 %v1840_v55  ;;  %1831 = vset.pattern.permute.xlu0 %v1840_v55 }
  0xed   :  { %v1034_v9 = vadd.f32 %v1033_v4, %v2686_v62  ;;  %1832 = vset.pattern.permute.xlu1 %v1840_v55 }
  0xf0   :  { %v960_v49 = vpop.f32.mrf.mxu2 }
  0xf1   :  { %v974_v51 = vpop.f32.mrf.mxu3  ;;  %v961_v7 = vadd.f32 %v960_v49, %v947_v63 }
  0xf3   :  { %v2698_v16 = vadd.f32 %v974_v51, %v961_v7 }
  0xf5   :  { %v1039_v24 = vadd.f32 %v1038_v20, %v2698_v16 }
 0x100   :  { %v986_v52 = vpop.f32.mrf.mxu0 }
 0x101   :  { %v1000_v53 = vpop.f32.mrf.mxu1 }
 0x102   :  { %v1001_v58 = vadd.f32 %v1000_v53, %v986_v52 }
 0x108   :  { %v1014_v0 = vpop.f32.mrf.mxu2  ;;  %v988_v11 = vpop.f32.mrf.mxu0 }
 0x109   :  { %v1015_v2 = vadd.f32 %v1014_v0, %v1001_v58  ;;  %v1028_v3 = vpop.f32.mrf.mxu3  ;;  %v1002_v12 = vpop.f32.mrf.mxu1 }
 0x10a   :  { %v1003_v18 = vadd.f32 %v1002_v12, %v988_v11  ;;  %v1080_v12 = vld [vmem:[%s2760_s2] sm:$0xff] }
 0x10b   :  { %v2690_v8 = vadd.f32 %v1028_v3, %v1015_v2 }
 0x10d   :  { %v1035_v14 = vadd.f32 %v1034_v9, %v2690_v8 }
 0x10f   :  { %1036 = vadd.xlane.f32.xlu0 %v1035_v14 }
 0x110   :  { %v1016_v19 = vpop.f32.mrf.mxu2 }
 0x111   :  { %v1017_v21 = vadd.f32 %v1016_v19, %v1003_v18  ;;  %v1030_v22 = vpop.f32.mrf.mxu3 }
 0x113   :  { %v2702_v23 = vadd.f32 %v1030_v22, %v1017_v21  ;;  %v1106_v22 = vld [vmem:[%s2761_s3] sm:$0xff] }
 0x115   :  { %v1040_v25 = vadd.f32 %v1039_v24, %v2702_v23 }
 0x117   :  { %1041 = vadd.xlane.f32.xlu0 %v1040_v25 }
 0x182   :  { %v1037_v33 = vpop.xlane.xlu0 %1036 }
 0x183   :  { %v1050_v34 = vmul.f32 %v1049_v32, %v1037_v33 }
 0x185   :  { %v1052_v35 = vsub.f32 %v2684_v60, %v1050_v34  ;;  %v1053_v36 = vsub.f32 %v2682_v56, %v1050_v34  ;;  %v1054_v37 = vsub.f32 %v2686_v62, %v1050_v34  ;;  %v1055_v38 = vsub.f32 %v2690_v8, %v1050_v34 }
 0x187   :  { %v1060_v39 = vmul.f32 %v1052_v35, %v1052_v35  ;;  %v1061_v40 = vmul.f32 %v1053_v36, %v1053_v36  ;;  %v1062_v10 = vmul.f32 %v1054_v37, %v1054_v37  ;;  %v1063_v59 = vmul.f32 %v1055_v38, %v1055_v38 }
 0x189   :  { %v1068_v41 = vadd.f32 %v1061_v40, %v1060_v39 }
 0x18a   :  { %v1042_v17 = vpop.xlane.xlu0 %1041 }
 0x18b   :  { %v1051_v42 = vmul.f32 %v1049_v32, %v1042_v17  ;;  %v1069_v43 = vadd.f32 %v1068_v41, %v1062_v10 }
 0x18d   :  { %v1070_v5 = vadd.f32 %v1069_v43, %v1063_v59  ;;  %v1056_v44 = vsub.f32 %v2696_v15, %v1051_v42  ;;  %v1057_v45 = vsub.f32 %v2693_v13, %v1051_v42  ;;  %v1058_v46 = vsub.f32 %v2698_v16, %v1051_v42 }
 0x18e   :  { %v1059_v47 = vsub.f32 %v2702_v23, %v1051_v42 }
 0x18f   :  { %1071 = vadd.xlane.f32.xlu1 %v1070_v5  ;;  %v1064_v48 = vmul.f32 %v1056_v44, %v1056_v44  ;;  %v1065_v49 = vmul.f32 %v1057_v45, %v1057_v45  ;;  %v1066_v50 = vmul.f32 %v1058_v46, %v1058_v46 }
 0x190   :  { %v1067_v52 = vmul.f32 %v1059_v47, %v1059_v47 }
 0x191   :  { %v1073_v51 = vadd.f32 %v1065_v49, %v1064_v48 }
 0x193   :  { %v1074_v53 = vadd.f32 %v1073_v51, %v1066_v50 }
 0x195   :  { %v1075_v54 = vadd.f32 %v1074_v53, %v1067_v52 }
 0x197   :  { %1076 = vadd.xlane.f32.xlu1 %v1075_v54 }
 0x202   :  { %v1072_v57 = vpop.xlane.xlu1 %1071 }
 0x203   :  { %v1078_v58 = vmul.f32 %v1072_v57, %v1049_v32 }
 0x205   :  { %v1082_v61 = vadd.f32 1e-05, %v1078_v58 }
 0x207   :  { %1835 = vrsqrt.f32 %v1082_v61  ;;  %vm1090_vm2 = vweird.f32 %v1082_v61 }
 0x20a   :  { %v1077_v63 = vpop.xlane.xlu1 %1076 }
 0x20b   :  { %v1079_v0 = vmul.f32 %v1077_v63, %v1049_v32 }
 0x20d   :  { %v1836_v1 = vpop.eup %1835  ;;  %v1083_v2 = vadd.f32 1e-05, %v1079_v0 }
 0x20e   :  { %v1085_v3 = vmul.f32 %v1836_v1, %v1082_v61  ;;  %vm1091_vm1 = vweird.f32 %v1836_v1 }
 0x20f   :  { %1837 = vrsqrt.f32 %v1083_v2  ;;  %vm1092_vm3 = vmor %vm1090_vm2, %vm1091_vm1  ;;  %vm1100_vm5 = vweird.f32 %v1083_v2 }
 0x210   :  { %v1086_v4 = vmul.f32 %v1836_v1, %v1085_v3 }
 0x212   :  { %v1087_v6 = vmul.f32 0.5, %v1086_v4 }
 0x214   :  { %v1088_v7 = vsub.f32 1.5, %v1087_v6 }
 0x215   :  { %v1838_v9 = vpop.eup %1837 }
 0x216   :  { %v1095_v11 = vmul.f32 %v1838_v9, %v1083_v2  ;;  %v1089_v14 = vmul.f32 %v1836_v1, %v1088_v7  ;;  %vm1101_vm4 = vweird.f32 %v1838_v9 }
 0x217   :  { %vm1102_vm6 = vmor %vm1100_vm5, %vm1101_vm4 }
 0x218   :  { %v1096_v18 = vmul.f32 %v1838_v9, %v1095_v11  ;;  %v1093_v19 = vsel %vm1092_vm3, %v1836_v1, %v1089_v14 }
 0x219   :  { %v1104_v20 = vmul.f32 %v1093_v19, %v1080_v12 }
 0x21a   :  { %v1097_v21 = vmul.f32 0.5, %v1096_v18 }
 0x21b   :  { %1114 = vperm.xlu2 %1830, %v1104_v20   ;;  %v1108_v24 = vmul.f32 %v1104_v20, %v1050_v34 }
 0x21c   :  { %v1098_v25 = vsub.f32 1.5, %v1097_v21 }
 0x21d   :  { %v1110_v26 = vsub.f32 %v1106_v22, %v1108_v24 }
 0x21e   :  { %v1099_v28 = vmul.f32 %v1838_v9, %v1098_v25 }
 0x21f   :  { %1132 = vperm.xlu0 %1831, %v1110_v26  }
 0x220   :  { %v1103_v29 = vsel %vm1102_vm6, %v1838_v9, %v1099_v28 }
 0x221   :  { %v1105_v30 = vmul.f32 %v1103_v29, %v1081_v27 }
 0x223   :  { %1119 = vperm.xlu2 %1830, %v1105_v30   ;;  %v1109_v32 = vmul.f32 %v1105_v30, %v1051_v42 }
 0x225   :  { %v1111_v33 = vsub.f32 %v1107_v31, %v1109_v32 }
 0x227   :  { %1137 = vperm.xlu1 %1832, %v1111_v33  }
 0x275   :  { %v1115_v34 = vpop.permute.xlu2 %1114 }
 0x276   :  { %v1122_v35 = vmul.f32 %v1115_v34, %v2684_v60  ;;  %v1123_v36 = vmul.f32 %v1115_v34, %v2682_v56  ;;  %v1124_v37 = vmul.f32 %v1115_v34, %v2686_v62  ;;  %v1125_v38 = vmul.f32 %v1115_v34, %v2690_v8 }
 0x27d   :  { %v1120_v42 = vpop.permute.xlu2 %1119 }
 0x27e   :  { %v1126_v56 = vmul.f32 %v1120_v42, %v2696_v15  ;;  %v1127_v60 = vmul.f32 %v1120_v42, %v2693_v13  ;;  %v1128_v62 = vmul.f32 %v1120_v42, %v2698_v16  ;;  %v1129_v8 = vmul.f32 %v1120_v42, %v2702_v23 }
 0x291   :  { %v1133_v39 = vpop.permute.xlu0 %1132 }
 0x292   :  { %v1140_v40 = vadd.f32 %v1133_v39, %v1122_v35  ;;  %v1141_v10 = vadd.f32 %v1133_v39, %v1123_v36  ;;  %v1142_v41 = vadd.f32 %v1133_v39, %v1124_v37  ;;  %v1143_v17 = vadd.f32 %v1133_v39, %v1125_v38 }
 0x294   :  { %v1148_v59 = vmax.f32 %v1140_v40, 0.0  ;;  %v1149_v43 = vmax.f32 %v1141_v10, 0.0  ;;  %v1150_v5 = vmax.f32 %v1142_v41, 0.0  ;;  %v1151_v44 = vmax.f32 %v1143_v17, 0.0 }
 0x296   :  { %1156 = vst [vmem:[%s2762_s4] sm:$0xff] %v1148_v59 }
 0x297   :  { %1157 = vst [vmem:[%s2762_s4 + $0x8] sm:$0xff] %v1149_v43 }
 0x298   :  { %1158 = vst [vmem:[%s2762_s4 + $0x10] sm:$0xff] %v1150_v5 }
 0x299   :  { %1159 = vst [vmem:[%s2762_s4 + $0x18] sm:$0xff] %v1151_v44  ;;  %v1138_v45 = vpop.permute.xlu1 %1137 }
 0x29a   :  { %v1144_v46 = vadd.f32 %v1138_v45, %v1126_v56  ;;  %v1145_v47 = vadd.f32 %v1138_v45, %v1127_v60  ;;  %v1146_v48 = vadd.f32 %v1138_v45, %v1128_v62  ;;  %v1147_v49 = vadd.f32 %v1138_v45, %v1129_v8 }
 0x29c   :  { %v1152_v15 = vmax.f32 %v1144_v46, 0.0  ;;  %v1153_v50 = vmax.f32 %v1145_v47, 0.0  ;;  %v1154_v13 = vmax.f32 %v1146_v48, 0.0  ;;  %v1155_v51 = vmax.f32 %v1147_v49, 0.0 }
 0x29e   :  { %1160 = vst [vmem:[%s2762_s4 + $0x20] sm:$0xff] %v1152_v15 }
 0x29f   :  { %1161 = vst [vmem:[%s2762_s4 + $0x28] sm:$0xff] %v1153_v50 }
 0x2a0   :  { %1162 = vst [vmem:[%s2762_s4 + $0x30] sm:$0xff] %v1154_v13 }
 0x2a1   :  { %1163 = vst [vmem:[%s2762_s4 + $0x38] sm:$0xff] %v1155_v51 }

// kernel: generator_forward.8
= control target key start
LH: loop header
LB: loop body
LE: loop exit
PB: predicated region body
PF: predicated region fallthrough
CT: control target
= control target key end

     0   :  { %s5189_s1 = inlined_call_operand.vmem [shape: bf16[256,2048], index: 1, kind: input, shape index: {}]   ;;  %s5190_s0 = inlined_call_operand.vmem [shape: bf16[8,256], index: 0, kind: input, shape index: {}]   ;;  %s5191_s2 = inlined_call_operand.vmem [shape: f32[8,1], index: 2, kind: input, shape index: {}]   ;;  %s5192_s3 = inlined_call_operand.vmem [shape: f32[8,1], index: 3, kind: input, shape index: {}]   ;;  %s5193_s4 = inlined_call_operand.vmem [shape: f32[8,2048], index: 4, kind: output, shape index: {}]  }
   0x1   :  { %v2596_v0 = vld [vmem:[%s5189_s1 + $0x380] sm:$0xf]  ;;  %v3282_v5 = vld [vmem:[%s5189_s1 + $0x384] sm:$0xf] }
   0x2   :  { %v3290_v1 = vld [vmem:[%s5189_s1 + $0x3bc] sm:$0xf0]  ;;  %v2598_v6 = vld [vmem:[%s5189_s1 + $0x3c0] sm:$0xf0] }
   0x3   :  { %v3108_v2 = vld [vmem:[%s5189_s1 + $0x780] sm:$0xf]  ;;  %v2597_v3 = vor.u32 %v3290_v1, %v2596_v0  ;;  %v2601_v8 = vor.u32 %v3282_v5, %v2598_v6  ;;  %v3410_v9 = vld [vmem:[%s5189_s1 + $0x784] sm:$0xf] }
   0x4   :  { %v3418_v4 = vld [vmem:[%s5189_s1 + $0x7bc] sm:$0xf0]  ;;  %v3110_v10 = vld [vmem:[%s5189_s1 + $0x7c0] sm:$0xf0] }
   0x5   :  { %v3109_v7 = vor.u32 %v3418_v4, %v3108_v2  ;;  %v2532_v11 = vld [vmem:[%s5189_s1 + $0x300] sm:$0xf]  ;;  %1561 = vmatpush.bf16.msra.mxu0 %v2597_v3  ;;  %v3113_v12 = vor.u32 %v3410_v9, %v3110_v10  ;;  %1587 = vmatpush.bf16.msra.mxu2 %v2601_v8  ;;  %v3266_v18 = vld [vmem:[%s5189_s1 + $0x304] sm:$0xf] }
   0x6   :  { %v3274_v13 = vld [vmem:[%s5189_s1 + $0x33c] sm:$0xf0]  ;;  %v2534_v19 = vld [vmem:[%s5189_s1 + $0x340] sm:$0xf0] }
   0x7   :  { %v3044_v14 = vld [vmem:[%s5189_s1 + $0x700] sm:$0xf]  ;;  %1574 = vmatpush.bf16.msra.mxu1 %v3109_v7  ;;  %v2533_v16 = vor.u32 %v3274_v13, %v2532_v11  ;;  %v3394_v20 = vld [vmem:[%s5189_s1 + $0x704] sm:$0xf]  ;;  %1600 = vmatpush.bf16.msra.mxu3 %v3113_v12  ;;  %v2537_v21 = vor.u32 %v3266_v18, %v2534_v19 }
   0x8   :  { %v3402_v15 = vld [vmem:[%s5189_s1 + $0x73c] sm:$0xf0]  ;;  %v3046_v22 = vld [vmem:[%s5189_s1 + $0x740] sm:$0xf0] }
   0x9   :  { %v3045_v17 = vor.u32 %v3402_v15, %v3044_v14  ;;  %v2468_v23 = vld [vmem:[%s5189_s1 + $0x280] sm:$0xf]  ;;  %v3049_v25 = vor.u32 %v3394_v20, %v3046_v22  ;;  %v3250_v28 = vld [vmem:[%s5189_s1 + $0x284] sm:$0xf]  ;;  %1562 = vmatpush.bf16.msra.mxu0 %v2533_v16  ;;  %1588 = vmatpush.bf16.msra.mxu2 %v2537_v21 }
   0xa   :  { %v3258_v24 = vld [vmem:[%s5189_s1 + $0x2bc] sm:$0xf0]  ;;  %v2470_v30 = vld [vmem:[%s5189_s1 + $0x2c0] sm:$0xf0] }
   0xb   :  { %v2980_v26 = vld [vmem:[%s5189_s1 + $0x680] sm:$0xf]  ;;  %v2469_v29 = vor.u32 %v3258_v24, %v2468_v23  ;;  %v3378_v31 = vld [vmem:[%s5189_s1 + $0x684] sm:$0xf]  ;;  %1575 = vmatpush.bf16.msra.mxu1 %v3045_v17  ;;  %v2473_v34 = vor.u32 %v3250_v28, %v2470_v30  ;;  %1601 = vmatpush.bf16.msra.mxu3 %v3049_v25  ;;  %v2604_v28 = vld [vmem:[%s5189_s1 + $0x388] sm:$0xf] }
   0xc   :  { %v3386_v27 = vld [vmem:[%s5189_s1 + $0x6bc] sm:$0xf0]  ;;  %v2982_v32 = vld [vmem:[%s5189_s1 + $0x6c0] sm:$0xf0]  ;;  %v3116_v30 = vld [vmem:[%s5189_s1 + $0x788] sm:$0xf] }
   0xd   :  { %v2981_v33 = vor.u32 %v3386_v27, %v2980_v26  ;;  %v2404_v35 = vld [vmem:[%s5189_s1 + $0x200] sm:$0xf]  ;;  %v2985_v38 = vor.u32 %v3378_v31, %v2982_v32  ;;  %v3234_v40 = vld [vmem:[%s5189_s1 + $0x204] sm:$0xf]  ;;  %1563 = vmatpush.bf16.msra.mxu0 %v2469_v29  ;;  %1589 = vmatpush.bf16.msra.mxu2 %v2473_v34  ;;  %v3291_v29 = vld [vmem:[%s5189_s1 + $0x3c4] sm:$0xf0] }
   0xe   :  { %v3242_v36 = vld [vmem:[%s5189_s1 + $0x23c] sm:$0xf0]  ;;  %v2406_v41 = vld [vmem:[%s5189_s1 + $0x240] sm:$0xf0]  ;;  %v3419_v32 = vld [vmem:[%s5189_s1 + $0x7c4] sm:$0xf0] }
   0xf   :  { %v2916_v37 = vld [vmem:[%s5189_s1 + $0x600] sm:$0xf]  ;;  %v3362_v42 = vld [vmem:[%s5189_s1 + $0x604] sm:$0xf]  ;;  %v2405_v44 = vor.u32 %v3242_v36, %v2404_v35  ;;  %1576 = vmatpush.bf16.msra.mxu1 %v2981_v33  ;;  %v2409_v46 = vor.u32 %v3234_v40, %v2406_v41  ;;  %1602 = vmatpush.bf16.msra.mxu3 %v2985_v38  ;;  %v3283_v33 = vld [vmem:[%s5189_s1 + $0x38c] sm:$0xf]  ;;  %v2605_v40 = vor.u32 %v3291_v29, %v2604_v28 }
  0x10   :  { %v3370_v39 = vld [vmem:[%s5189_s1 + $0x63c] sm:$0xf0]  ;;  %v2918_v43 = vld [vmem:[%s5189_s1 + $0x640] sm:$0xf0]  ;;  %v2606_v34 = vld [vmem:[%s5189_s1 + $0x3c8] sm:$0xf0]  ;;  %v3117_v41 = vor.u32 %v3419_v32, %v3116_v30 }
  0x11   :  { %v2917_v45 = vor.u32 %v3370_v39, %v2916_v37  ;;  %v2340_v47 = vld [vmem:[%s5189_s1 + $0x180] sm:$0xf]  ;;  %v2921_v50 = vor.u32 %v3362_v42, %v2918_v43  ;;  %v3218_v52 = vld [vmem:[%s5189_s1 + $0x184] sm:$0xf]  ;;  %1564 = vmatpush.bf16.msra.mxu0 %v2405_v44  ;;  %1590 = vmatpush.bf16.msra.mxu2 %v2409_v46  ;;  %v3411_v37 = vld [vmem:[%s5189_s1 + $0x78c] sm:$0xf]  ;;  %v2609_v42 = vor.u32 %v3283_v33, %v2606_v34 }
  0x12   :  { %v3226_v48 = vld [vmem:[%s5189_s1 + $0x1bc] sm:$0xf0]  ;;  %v2342_v53 = vld [vmem:[%s5189_s1 + $0x1c0] sm:$0xf0]  ;;  %v3118_v38 = vld [vmem:[%s5189_s1 + $0x7c8] sm:$0xf0] }
  0x13   :  { %v2852_v49 = vld [vmem:[%s5189_s1 + $0x580] sm:$0xf]  ;;  %v3346_v54 = vld [vmem:[%s5189_s1 + $0x584] sm:$0xf]  ;;  %v2341_v56 = vor.u32 %v3226_v48, %v2340_v47  ;;  %1577 = vmatpush.bf16.msra.mxu1 %v2917_v45  ;;  %v2345_v58 = vor.u32 %v3218_v52, %v2342_v53  ;;  %1603 = vmatpush.bf16.msra.mxu3 %v2921_v50  ;;  %v2540_v43 = vld [vmem:[%s5189_s1 + $0x308] sm:$0xf]  ;;  %v3121_v46 = vor.u32 %v3411_v37, %v3118_v38 }
  0x14   :  { %v3354_v51 = vld [vmem:[%s5189_s1 + $0x5bc] sm:$0xf0]  ;;  %v2854_v55 = vld [vmem:[%s5189_s1 + $0x5c0] sm:$0xf0]  ;;  %v3275_v44 = vld [vmem:[%s5189_s1 + $0x344] sm:$0xf0] }
  0x15   :  { %v2853_v57 = vor.u32 %v3354_v51, %v2852_v49  ;;  %v2276_v59 = vld [vmem:[%s5189_s1 + $0x100] sm:$0xf]  ;;  %v2857_v62 = vor.u32 %v3346_v54, %v2854_v55  ;;  %v3202_v0 = vld [vmem:[%s5189_s1 + $0x104] sm:$0xf]  ;;  %1565 = vmatpush.bf16.msra.mxu0 %v2341_v56  ;;  %1591 = vmatpush.bf16.msra.mxu2 %v2345_v58  ;;  %v3052_v45 = vld [vmem:[%s5189_s1 + $0x708] sm:$0xf]  ;;  %v2541_v53 = vor.u32 %v3275_v44, %v2540_v43 }
  0x16   :  { %v3210_v60 = vld [vmem:[%s5189_s1 + $0x13c] sm:$0xf0]  ;;  %v2278_v1 = vld [vmem:[%s5189_s1 + $0x140] sm:$0xf0]  ;;  %v3403_v47 = vld [vmem:[%s5189_s1 + $0x744] sm:$0xf0] }
  0x17   :  { %v2788_v61 = vld [vmem:[%s5189_s1 + $0x500] sm:$0xf]  ;;  %v3330_v2 = vld [vmem:[%s5189_s1 + $0x504] sm:$0xf]  ;;  %v2277_v4 = vor.u32 %v3210_v60, %v2276_v59  ;;  %1578 = vmatpush.bf16.msra.mxu1 %v2853_v57  ;;  %v2281_v6 = vor.u32 %v3202_v0, %v2278_v1  ;;  %1604 = vmatpush.bf16.msra.mxu3 %v2857_v62  ;;  %v3267_v48 = vld [vmem:[%s5189_s1 + $0x30c] sm:$0xf]  ;;  %v3053_v56 = vor.u32 %v3403_v47, %v3052_v45 }
  0x18   :  { %v3338_v63 = vld [vmem:[%s5189_s1 + $0x53c] sm:$0xf0]  ;;  %v2790_v3 = vld [vmem:[%s5189_s1 + $0x540] sm:$0xf0]  ;;  %v2542_v49 = vld [vmem:[%s5189_s1 + $0x348] sm:$0xf0] }
  0x19   :  { %v2789_v5 = vor.u32 %v3338_v63, %v2788_v61  ;;  %v2212_v7 = vld [vmem:[%s5189_s1 + $0x80] sm:$0xf]  ;;  %v2793_v10 = vor.u32 %v3330_v2, %v2790_v3  ;;  %v3186_v12 = vld [vmem:[%s5189_s1 + $0x84] sm:$0xf]  ;;  %1566 = vmatpush.bf16.msra.mxu0 %v2277_v4  ;;  %1592 = vmatpush.bf16.msra.mxu2 %v2281_v6  ;;  %v3395_v50 = vld [vmem:[%s5189_s1 + $0x70c] sm:$0xf]  ;;  %v2545_v57 = vor.u32 %v3267_v48, %v2542_v49 }
  0x1a   :  { %v3194_v8 = vld [vmem:[%s5189_s1 + $0xbc] sm:$0xf0]  ;;  %v2214_v13 = vld [vmem:[%s5189_s1 + $0xc0] sm:$0xf0]  ;;  %v3054_v51 = vld [vmem:[%s5189_s1 + $0x748] sm:$0xf0] }
  0x1b   :  { %v2724_v9 = vld [vmem:[%s5189_s1 + $0x480] sm:$0xf]  ;;  %v3314_v14 = vld [vmem:[%s5189_s1 + $0x484] sm:$0xf]  ;;  %v2213_v16 = vor.u32 %v3194_v8, %v2212_v7  ;;  %1579 = vmatpush.bf16.msra.mxu1 %v2789_v5  ;;  %v2217_v20 = vor.u32 %v3186_v12, %v2214_v13  ;;  %1605 = vmatpush.bf16.msra.mxu3 %v2793_v10  ;;  %v2476_v58 = vld [vmem:[%s5189_s1 + $0x288] sm:$0xf]  ;;  %v3057_v61 = vor.u32 %v3395_v50, %v3054_v51 }
  0x1c   :  { %v3322_v11 = vld [vmem:[%s5189_s1 + $0x4bc] sm:$0xf0]  ;;  %v2726_v15 = vld [vmem:[%s5189_s1 + $0x4c0] sm:$0xf0]  ;;  %v3259_v59 = vld [vmem:[%s5189_s1 + $0x2c4] sm:$0xf0] }
  0x1d   :  { %v2148_v17 = vld [vmem:[%s5189_s1] sm:$0xf]  ;;  %v2725_v19 = vor.u32 %v3322_v11, %v2724_v9  ;;  %v3170_v23 = vld [vmem:[%s5189_s1 + $0x4] sm:$0xf]  ;;  %v2729_v24 = vor.u32 %v3314_v14, %v2726_v15  ;;  %1567 = vmatpush.bf16.msra.mxu0 %v2213_v16  ;;  %1593 = vmatpush.bf16.msra.mxu2 %v2217_v20  ;;  %v2988_v60 = vld [vmem:[%s5189_s1 + $0x688] sm:$0xf]  ;;  %v2477_v5 = vor.u32 %v3259_v59, %v2476_v58 }
  0x1e   :  { %v3178_v18 = vld [vmem:[%s5189_s1 + $0x3c] sm:$0xf0]  ;;  %v2150_v25 = vld [vmem:[%s5189_s1 + $0x40] sm:$0xf0]  ;;  %v3387_v62 = vld [vmem:[%s5189_s1 + $0x6c4] sm:$0xf0] }
  0x1f   :  { %v2660_v21 = vld [vmem:[%s5189_s1 + $0x400] sm:$0xf]  ;;  %v3298_v26 = vld [vmem:[%s5189_s1 + $0x404] sm:$0xf]  ;;  %v2149_v31 = vor.u32 %v3178_v18, %v2148_v17  ;;  %1580 = vmatpush.bf16.msra.mxu1 %v2725_v19  ;;  %v2153_v36 = vor.u32 %v3170_v23, %v2150_v25  ;;  %1606 = vmatpush.bf16.msra.mxu3 %v2729_v24  ;;  %v3251_v63 = vld [vmem:[%s5189_s1 + $0x28c] sm:$0xf]  ;;  %v2989_v6 = vor.u32 %v3387_v62, %v2988_v60 }
  0x20   :  { %v3306_v22 = vld [vmem:[%s5189_s1 + $0x43c] sm:$0xf0]  ;;  %v2662_v27 = vld [vmem:[%s5189_s1 + $0x440] sm:$0xf0]  ;;  %v2478_v0 = vld [vmem:[%s5189_s1 + $0x2c8] sm:$0xf0] }
  0x21   :  { %v2661_v35 = vor.u32 %v3306_v22, %v2660_v21  ;;  %v2665_v39 = vor.u32 %v3298_v26, %v2662_v27  ;;  %1568 = vmatpush.bf16.msra.mxu0 %v2149_v31  ;;  %1594 = vmatpush.bf16.msra.mxu2 %v2153_v36  ;;  %v17_v52 = vld [vmem:[%s5190_s0] sm:$0xff]  ;;  %v3379_v2 = vld [vmem:[%s5189_s1 + $0x68c] sm:$0xf]  ;;  %v2481_v7 = vor.u32 %v3251_v63, %v2478_v0  ;;  %v2412_v8 = vld [vmem:[%s5189_s1 + $0x208] sm:$0xf] }
  0x22   :  { %v275_v54 = vunpack.c.l.b16 %v17_v52  ;;  %v276_v55 = vunpack.c.h.b16 %v17_v52  ;;  %v2990_v3 = vld [vmem:[%s5189_s1 + $0x6c8] sm:$0xf0]  ;;  %v3243_v9 = vld [vmem:[%s5189_s1 + $0x244] sm:$0xf0] }
  0x23   :  { %1581 = vmatpush.bf16.msra.mxu1 %v2661_v35  ;;  %1607 = vmatpush.bf16.msra.mxu3 %v2665_v39  ;;  %v2924_v10 = vld [vmem:[%s5189_s1 + $0x608] sm:$0xf]  ;;  %v2993_v11 = vor.u32 %v3379_v2, %v2990_v3  ;;  %v3235_v13 = vld [vmem:[%s5189_s1 + $0x20c] sm:$0xf]  ;;  %v2413_v17 = vor.u32 %v3243_v9, %v2412_v8  ;;  %v2612_v2 = vld [vmem:[%s5189_s1 + $0x390] sm:$0xf] }
  0x24   :  { %v3722_v1 = vpack.c.b16 %v275_v54, %v275_v54  ;;  %v3730_v4 = vpack.c.b16 %v276_v55, %v276_v55  ;;  %v3371_v12 = vld [vmem:[%s5189_s1 + $0x644] sm:$0xf0]  ;;  %v2414_v14 = vld [vmem:[%s5189_s1 + $0x248] sm:$0xf0]  ;;  %v3292_v3 = vld [vmem:[%s5189_s1 + $0x3cc] sm:$0xf0] }
  0x25   :  { %1613 = vmatpush.bf16.msrb.mxu0 %v2605_v40  ;;  %1639 = vmatpush.bf16.msrb.mxu2 %v2609_v42  ;;  %v3363_v15 = vld [vmem:[%s5189_s1 + $0x60c] sm:$0xf]  ;;  %v2925_v18 = vor.u32 %v3371_v12, %v2924_v10  ;;  %v2417_v19 = vor.u32 %v3235_v13, %v2414_v14  ;;  %v2348_v20 = vld [vmem:[%s5189_s1 + $0x188] sm:$0xf]  ;;  %v3284_v8 = vld [vmem:[%s5189_s1 + $0x394] sm:$0xf] }
  0x26   :  { %1595 = vmatmul.bf16.vlgmr.msra.gmra.mxu2 %v3722_v1  ;;  %1569 = vmatmul.bf16.vlgmr.msra.gmra.mxu0 %v3722_v1  ;;  %v2926_v16 = vld [vmem:[%s5189_s1 + $0x648] sm:$0xf0]  ;;  %v3227_v21 = vld [vmem:[%s5189_s1 + $0x1c4] sm:$0xf0]  ;;  %v2614_v9 = vld [vmem:[%s5189_s1 + $0x3d0] sm:$0xf0] }
  0x27   :  { %1626 = vmatpush.bf16.msrb.mxu1 %v3117_v41  ;;  %1652 = vmatpush.bf16.msrb.mxu3 %v3121_v46  ;;  %v2860_v22 = vld [vmem:[%s5189_s1 + $0x588] sm:$0xf]  ;;  %v2929_v23 = vor.u32 %v3363_v15, %v2926_v16  ;;  %v3219_v25 = vld [vmem:[%s5189_s1 + $0x18c] sm:$0xf]  ;;  %v2349_v29 = vor.u32 %v3227_v21, %v2348_v20  ;;  %v3412_v12 = vld [vmem:[%s5189_s1 + $0x794] sm:$0xf]  ;;  %v2613_v15 = vor.u32 %v3292_v3, %v2612_v2 }
  0x28   :  { %1608 = vmatmul.bf16.vlgmr.msra.gmra.mxu3 %v3730_v4  ;;  %1582 = vmatmul.bf16.vlgmr.msra.gmra.mxu1 %v3730_v4  ;;  %v3355_v24 = vld [vmem:[%s5189_s1 + $0x5c4] sm:$0xf0]  ;;  %v2350_v26 = vld [vmem:[%s5189_s1 + $0x1c8] sm:$0xf0]  ;;  %v3126_v13 = vld [vmem:[%s5189_s1 + $0x7d0] sm:$0xf0] }
  0x29   :  { %1614 = vmatpush.bf16.msrb.mxu0 %v2541_v53  ;;  %1640 = vmatpush.bf16.msrb.mxu2 %v2545_v57  ;;  %v3347_v27 = vld [vmem:[%s5189_s1 + $0x58c] sm:$0xf]  ;;  %v2861_v30 = vor.u32 %v3355_v24, %v2860_v22  ;;  %v2353_v31 = vor.u32 %v3219_v25, %v2350_v26  ;;  %v2284_v32 = vld [vmem:[%s5189_s1 + $0x108] sm:$0xf]  ;;  %v3060_v20 = vld [vmem:[%s5189_s1 + $0x710] sm:$0xf]  ;;  %v3129_v21 = vor.u32 %v3412_v12, %v3126_v13 }
  0x2a   :  { %v2862_v28 = vld [vmem:[%s5189_s1 + $0x5c8] sm:$0xf0]  ;;  %v3211_v33 = vld [vmem:[%s5189_s1 + $0x144] sm:$0xf0]  ;;  %v3404_v22 = vld [vmem:[%s5189_s1 + $0x74c] sm:$0xf0] }
  0x2b   :  { %1627 = vmatpush.bf16.msrb.mxu1 %v3053_v56  ;;  %1653 = vmatpush.bf16.msrb.mxu3 %v3057_v61  ;;  %v2796_v34 = vld [vmem:[%s5189_s1 + $0x508] sm:$0xf]  ;;  %v2865_v35 = vor.u32 %v3347_v27, %v2862_v28  ;;  %v3203_v37 = vld [vmem:[%s5189_s1 + $0x10c] sm:$0xf]  ;;  %v2285_v41 = vor.u32 %v3211_v33, %v2284_v32  ;;  %v2550_v24 = vld [vmem:[%s5189_s1 + $0x350] sm:$0xf0]  ;;  %v3061_v28 = vor.u32 %v3404_v22, %v3060_v20 }
  0x2c   :  { %v3339_v36 = vld [vmem:[%s5189_s1 + $0x544] sm:$0xf0]  ;;  %v2286_v38 = vld [vmem:[%s5189_s1 + $0x148] sm:$0xf0]  ;;  %v3396_v25 = vld [vmem:[%s5189_s1 + $0x714] sm:$0xf] }
  0x2d   :  { %1615 = vmatpush.bf16.msrb.mxu0 %v2477_v5  ;;  %1641 = vmatpush.bf16.msrb.mxu2 %v2481_v7  ;;  %v3331_v39 = vld [vmem:[%s5189_s1 + $0x50c] sm:$0xf]  ;;  %v2797_v42 = vor.u32 %v3339_v36, %v2796_v34  ;;  %v2289_v43 = vor.u32 %v3203_v37, %v2286_v38  ;;  %v2220_v44 = vld [vmem:[%s5189_s1 + $0x88] sm:$0xf]  ;;  %v3124_v5 = vld [vmem:[%s5189_s1 + $0x790] sm:$0xf] }
  0x2e   :  { %v2798_v40 = vld [vmem:[%s5189_s1 + $0x548] sm:$0xf0]  ;;  %v3195_v45 = vld [vmem:[%s5189_s1 + $0xc4] sm:$0xf0]  ;;  %v3420_v7 = vld [vmem:[%s5189_s1 + $0x7cc] sm:$0xf0] }
  0x2f   :  { %1628 = vmatpush.bf16.msrb.mxu1 %v2989_v6  ;;  %1654 = vmatpush.bf16.msrb.mxu3 %v2993_v11  ;;  %v2732_v46 = vld [vmem:[%s5189_s1 + $0x488] sm:$0xf]  ;;  %v2801_v47 = vor.u32 %v3331_v39, %v2798_v40  ;;  %v3187_v49 = vld [vmem:[%s5189_s1 + $0x8c] sm:$0xf]  ;;  %v2221_v53 = vor.u32 %v3195_v45, %v2220_v44  ;;  %v3125_v16 = vor.u32 %v3420_v7, %v3124_v5  ;;  %v3062_v26 = vld [vmem:[%s5189_s1 + $0x750] sm:$0xf0] }
  0x30   :  { %v3323_v48 = vld [vmem:[%s5189_s1 + $0x4c4] sm:$0xf0]  ;;  %v2222_v50 = vld [vmem:[%s5189_s1 + $0xc8] sm:$0xf0]  ;;  %v2996_v32 = vld [vmem:[%s5189_s1 + $0x690] sm:$0xf]  ;;  %v3065_v33 = vor.u32 %v3396_v25, %v3062_v26 }
  0x31   :  { %1616 = vmatpush.bf16.msrb.mxu0 %v2413_v17  ;;  %1642 = vmatpush.bf16.msrb.mxu2 %v2417_v19  ;;  %v3315_v51 = vld [vmem:[%s5189_s1 + $0x48c] sm:$0xf]  ;;  %v2156_v54 = vld [vmem:[%s5189_s1 + $0x8] sm:$0xf]  ;;  %v2733_v56 = vor.u32 %v3323_v48, %v2732_v46  ;;  %v2225_v57 = vor.u32 %v3187_v49, %v2222_v50  ;;  %v2617_v17 = vor.u32 %v3284_v8, %v2614_v9  ;;  %v3276_v19 = vld [vmem:[%s5189_s1 + $0x34c] sm:$0xf0] }
  0x32   :  { %v2734_v52 = vld [vmem:[%s5189_s1 + $0x4c8] sm:$0xf0]  ;;  %v3179_v55 = vld [vmem:[%s5189_s1 + $0x44] sm:$0xf0]  ;;  %v3388_v34 = vld [vmem:[%s5189_s1 + $0x6cc] sm:$0xf0] }
  0x33   :  { %1629 = vmatpush.bf16.msrb.mxu1 %v2925_v18  ;;  %1655 = vmatpush.bf16.msrb.mxu3 %v2929_v23  ;;  %v2668_v58 = vld [vmem:[%s5189_s1 + $0x408] sm:$0xf]  ;;  %v3171_v60 = vld [vmem:[%s5189_s1 + $0xc] sm:$0xf]  ;;  %v2737_v61 = vor.u32 %v3315_v51, %v2734_v52  ;;  %v2157_v6 = vor.u32 %v3179_v55, %v2156_v54  ;;  %v2548_v18 = vld [vmem:[%s5189_s1 + $0x310] sm:$0xf]  ;;  %v2997_v40 = vor.u32 %v3388_v34, %v2996_v32 }
  0x34   :  { %v3307_v59 = vld [vmem:[%s5189_s1 + $0x444] sm:$0xf0]  ;;  %v2158_v62 = vld [vmem:[%s5189_s1 + $0x48] sm:$0xf0]  ;;  %v3268_v23 = vld [vmem:[%s5189_s1 + $0x314] sm:$0xf]  ;;  %v2549_v27 = vor.u32 %v3276_v19, %v2548_v18 }
  0x35   :  { %1617 = vmatpush.bf16.msrb.mxu0 %v2349_v29  ;;  %1643 = vmatpush.bf16.msrb.mxu2 %v2353_v31  ;;  %v3299_v63 = vld [vmem:[%s5189_s1 + $0x40c] sm:$0xf]  ;;  %v2669_v10 = vor.u32 %v3307_v59, %v2668_v58  ;;  %v2161_v11 = vor.u32 %v3171_v60, %v2158_v62  ;;  %v2553_v29 = vor.u32 %v3268_v23, %v2550_v24  ;;  %v3260_v31 = vld [vmem:[%s5189_s1 + $0x2cc] sm:$0xf0]  ;;  %v2486_v36 = vld [vmem:[%s5189_s1 + $0x2d0] sm:$0xf0] }
  0x36   :  { %v2670_v0 = vld [vmem:[%s5189_s1 + $0x448] sm:$0xf0]  ;;  %v3380_v37 = vld [vmem:[%s5189_s1 + $0x694] sm:$0xf]  ;;  %v2932_v44 = vld [vmem:[%s5189_s1 + $0x610] sm:$0xf] }
  0x37   :  { %1630 = vmatpush.bf16.msrb.mxu1 %v2861_v30  ;;  %1656 = vmatpush.bf16.msrb.mxu3 %v2865_v35  ;;  %v2673_v14 = vor.u32 %v3299_v63, %v2670_v0  ;;  %v2484_v30 = vld [vmem:[%s5189_s1 + $0x290] sm:$0xf]  ;;  %v3252_v35 = vld [vmem:[%s5189_s1 + $0x294] sm:$0xf] }
  0x38   :  { %v2998_v38 = vld [vmem:[%s5189_s1 + $0x6d0] sm:$0xf0]  ;;  %v2485_v39 = vor.u32 %v3260_v31, %v2484_v30  ;;  %v3372_v46 = vld [vmem:[%s5189_s1 + $0x64c] sm:$0xf0] }
  0x39   :  { %1618 = vmatpush.bf16.msrb.mxu0 %v2285_v41  ;;  %1644 = vmatpush.bf16.msrb.mxu2 %v2289_v43  ;;  %v2489_v41 = vor.u32 %v3252_v35, %v2486_v36  ;;  %v3244_v43 = vld [vmem:[%s5189_s1 + $0x24c] sm:$0xf0]  ;;  %v3001_v45 = vor.u32 %v3380_v37, %v2998_v38  ;;  %v2422_v48 = vld [vmem:[%s5189_s1 + $0x250] sm:$0xf0]  ;;  %v2933_v52 = vor.u32 %v3372_v46, %v2932_v44  ;;  %v2620_v37 = vld [vmem:[%s5189_s1 + $0x398] sm:$0xf] }
  0x3a   :  { %v3364_v49 = vld [vmem:[%s5189_s1 + $0x614] sm:$0xf]  ;;  %v2356_v54 = vld [vmem:[%s5189_s1 + $0x190] sm:$0xf]  ;;  %v3293_v38 = vld [vmem:[%s5189_s1 + $0x3d4] sm:$0xf0] }
  0x3b   :  { %1631 = vmatpush.bf16.msrb.mxu1 %v2797_v42  ;;  %1657 = vmatpush.bf16.msrb.mxu3 %v2801_v47  ;;  %v2420_v42 = vld [vmem:[%s5189_s1 + $0x210] sm:$0xf]  ;;  %v3236_v47 = vld [vmem:[%s5189_s1 + $0x214] sm:$0xf]  ;;  %v3413_v46 = vld [vmem:[%s5189_s1 + $0x79c] sm:$0xf] }
  0x3c   :  { %v2934_v50 = vld [vmem:[%s5189_s1 + $0x650] sm:$0xf0]  ;;  %v2421_v51 = vor.u32 %v3244_v43, %v2420_v42  ;;  %v3228_v55 = vld [vmem:[%s5189_s1 + $0x1cc] sm:$0xf0]  ;;  %v3285_v42 = vld [vmem:[%s5189_s1 + $0x39c] sm:$0xf] }
  0x3d   :  { %1619 = vmatpush.bf16.msrb.mxu0 %v2221_v53  ;;  %1645 = vmatpush.bf16.msrb.mxu2 %v2225_v57  ;;  %v2425_v53 = vor.u32 %v3236_v47, %v2422_v48  ;;  %v2937_v57 = vor.u32 %v3364_v49, %v2934_v50  ;;  %v3356_v58 = vld [vmem:[%s5189_s1 + $0x5cc] sm:$0xf0]  ;;  %v3220_v59 = vld [vmem:[%s5189_s1 + $0x194] sm:$0xf]  ;;  %v2357_v63 = vor.u32 %v3228_v55, %v2356_v54  ;;  %v2622_v43 = vld [vmem:[%s5189_s1 + $0x3d8] sm:$0xf0] }
  0x3e   :  { %v2358_v60 = vld [vmem:[%s5189_s1 + $0x1d0] sm:$0xf0]  ;;  %v2292_v3 = vld [vmem:[%s5189_s1 + $0x110] sm:$0xf]  ;;  %v3134_v47 = vld [vmem:[%s5189_s1 + $0x7d8] sm:$0xf0]  ;;  %v2621_v49 = vor.u32 %v3293_v38, %v2620_v37 }
  0x3f   :  { %1632 = vmatpush.bf16.msrb.mxu1 %v2733_v56  ;;  %1658 = vmatpush.bf16.msrb.mxu3 %v2737_v61  ;;  %v2868_v56 = vld [vmem:[%s5189_s1 + $0x590] sm:$0xf]  ;;  %v3348_v61 = vld [vmem:[%s5189_s1 + $0x594] sm:$0xf]  ;;  %v2361_v2 = vor.u32 %v3220_v59, %v2358_v60  ;;  %v3068_v54 = vld [vmem:[%s5189_s1 + $0x718] sm:$0xf]  ;;  %v3137_v55 = vor.u32 %v3413_v46, %v3134_v47 }
  0x40   :  { %v2870_v62 = vld [vmem:[%s5189_s1 + $0x5d0] sm:$0xf0]  ;;  %v2869_v0 = vor.u32 %v3356_v58, %v2868_v56  ;;  %v3212_v5 = vld [vmem:[%s5189_s1 + $0x14c] sm:$0xf0]  ;;  %v3405_v56 = vld [vmem:[%s5189_s1 + $0x754] sm:$0xf0] }
  0x41   :  { %1620 = vmatpush.bf16.msrb.mxu0 %v2157_v6  ;;  %1646 = vmatpush.bf16.msrb.mxu2 %v2161_v11  ;;  %v2804_v6 = vld [vmem:[%s5189_s1 + $0x510] sm:$0xf]  ;;  %v2873_v7 = vor.u32 %v3348_v61, %v2870_v62  ;;  %v3204_v9 = vld [vmem:[%s5189_s1 + $0x114] sm:$0xf]  ;;  %v2293_v13 = vor.u32 %v3212_v5, %v2292_v3  ;;  %v2558_v58 = vld [vmem:[%s5189_s1 + $0x358] sm:$0xf0]  ;;  %v3069_v62 = vor.u32 %v3405_v56, %v3068_v54 }
  0x42   :  { %v3340_v8 = vld [vmem:[%s5189_s1 + $0x54c] sm:$0xf0]  ;;  %v3332_v11 = vld [vmem:[%s5189_s1 + $0x514] sm:$0xf]  ;;  %v3397_v59 = vld [vmem:[%s5189_s1 + $0x71c] sm:$0xf] }
  0x43   :  { %1633 = vmatpush.bf16.msrb.mxu1 %v2669_v10  ;;  %1659 = vmatpush.bf16.msrb.mxu3 %v2673_v14  ;;  %v2294_v10 = vld [vmem:[%s5189_s1 + $0x150] sm:$0xf0]  ;;  %v2805_v14 = vor.u32 %v3340_v8, %v2804_v6  ;;  %v2740_v18 = vld [vmem:[%s5189_s1 + $0x490] sm:$0xf]  ;;  %v3070_v60 = vld [vmem:[%s5189_s1 + $0x758] sm:$0xf0] }
  0x44   :  { %1647 = vmatmul.bf16.vlgmr.msrb.gmra.mxu2 %v3722_v1  ;;  %1621 = vmatmul.bf16.vlgmr.msrb.gmra.mxu0 %v3722_v1  ;;  %v2806_v12 = vld [vmem:[%s5189_s1 + $0x550] sm:$0xf0]  ;;  %v3324_v20 = vld [vmem:[%s5189_s1 + $0x4cc] sm:$0xf0]  ;;  %v3004_v3 = vld [vmem:[%s5189_s1 + $0x698] sm:$0xf]  ;;  %v3073_v5 = vor.u32 %v3397_v59, %v3070_v60 }
  0x45   :  { %1665 = vmatpush.bf16.msra.mxu0 %v2613_v15  ;;  %1691 = vmatpush.bf16.msra.mxu2 %v2617_v17  ;;  %v2297_v15 = vor.u32 %v3204_v9, %v2294_v10  ;;  %v3196_v17 = vld [vmem:[%s5189_s1 + $0xcc] sm:$0xf0]  ;;  %v2809_v19 = vor.u32 %v3332_v11, %v2806_v12  ;;  %v2230_v22 = vld [vmem:[%s5189_s1 + $0xd0] sm:$0xf0]  ;;  %v3389_v6 = vld [vmem:[%s5189_s1 + $0x6d4] sm:$0xf0] }
  0x46   :  { %1660 = vmatmul.bf16.vlgmr.msrb.gmra.mxu3 %v3730_v4  ;;  %1634 = vmatmul.bf16.vlgmr.msrb.gmra.mxu1 %v3730_v4  ;;  %v3316_v23 = vld [vmem:[%s5189_s1 + $0x494] sm:$0xf]  ;;  %v2164_v26 = vld [vmem:[%s5189_s1 + $0x10] sm:$0xf]  ;;  %v2494_v8 = vld [vmem:[%s5189_s1 + $0x2d8] sm:$0xf0]  ;;  %v3005_v12 = vor.u32 %v3389_v6, %v3004_v3 }
  0x47   :  { %1678 = vmatpush.bf16.msra.mxu1 %v3125_v16  ;;  %1704 = vmatpush.bf16.msra.mxu3 %v3129_v21  ;;  %v2228_v16 = vld [vmem:[%s5189_s1 + $0x90] sm:$0xf]  ;;  %v3188_v21 = vld [vmem:[%s5189_s1 + $0x94] sm:$0xf]  ;;  %v3381_v9 = vld [vmem:[%s5189_s1 + $0x69c] sm:$0xf] }
  0x48   :  { %v2742_v24 = vld [vmem:[%s5189_s1 + $0x4d0] sm:$0xf0]  ;;  %v2229_v25 = vor.u32 %v3196_v17, %v2228_v16  ;;  %v2676_v30 = vld [vmem:[%s5189_s1 + $0x410] sm:$0xf]  ;;  %v3006_v10 = vld [vmem:[%s5189_s1 + $0x6d8] sm:$0xf0] }
  0x49   :  { %1666 = vmatpush.bf16.msra.mxu0 %v2549_v27  ;;  %1692 = vmatpush.bf16.msra.mxu2 %v2553_v29  ;;  %v3180_v27 = vld [vmem:[%s5189_s1 + $0x4c] sm:$0xf0]  ;;  %v2233_v29 = vor.u32 %v3188_v21, %v2230_v22  ;;  %v3172_v32 = vld [vmem:[%s5189_s1 + $0x14] sm:$0xf]  ;;  %v2940_v16 = vld [vmem:[%s5189_s1 + $0x618] sm:$0xf]  ;;  %v3009_v17 = vor.u32 %v3381_v9, %v3006_v10 }
  0x4a   :  { %v3308_v31 = vld [vmem:[%s5189_s1 + $0x44c] sm:$0xf0]  ;;  %v2166_v34 = vld [vmem:[%s5189_s1 + $0x50] sm:$0xf0]  ;;  %v3365_v21 = vld [vmem:[%s5189_s1 + $0x61c] sm:$0xf] }
  0x4b   :  { %1679 = vmatpush.bf16.msra.mxu1 %v3061_v28  ;;  %1705 = vmatpush.bf16.msra.mxu3 %v3065_v33  ;;  %v2741_v28 = vor.u32 %v3324_v20, %v2740_v18  ;;  %v2745_v33 = vor.u32 %v3316_v23, %v2742_v24  ;;  %v3300_v35 = vld [vmem:[%s5189_s1 + $0x414] sm:$0xf]  ;;  %v2677_v44 = vor.u32 %v3308_v31, %v2676_v30  ;;  %v3373_v18 = vld [vmem:[%s5189_s1 + $0x654] sm:$0xf0]  ;;  %v2430_v20 = vld [vmem:[%s5189_s1 + $0x258] sm:$0xf0] }
  0x4c   :  { %v2678_v36 = vld [vmem:[%s5189_s1 + $0x450] sm:$0xf0]  ;;  %v2942_v22 = vld [vmem:[%s5189_s1 + $0x658] sm:$0xf0]  ;;  %v2941_v24 = vor.u32 %v3373_v18, %v2940_v16  ;;  %v3357_v30 = vld [vmem:[%s5189_s1 + $0x5d4] sm:$0xf0] }
  0x4d   :  { %1667 = vmatpush.bf16.msra.mxu0 %v2485_v39  ;;  %1693 = vmatpush.bf16.msra.mxu2 %v2489_v41  ;;  %v3132_v39 = vld [vmem:[%s5189_s1 + $0x798] sm:$0xf]  ;;  %v2681_v48 = vor.u32 %v3300_v35, %v2678_v36  ;;  %v3221_v31 = vld [vmem:[%s5189_s1 + $0x19c] sm:$0xf]  ;;  %v2628_v9 = vld [vmem:[%s5189_s1 + $0x3a0] sm:$0xf] }
  0x4e   :  { %v3421_v41 = vld [vmem:[%s5189_s1 + $0x7d4] sm:$0xf0]  ;;  %v2814_v46 = vld [vmem:[%s5189_s1 + $0x558] sm:$0xf0]  ;;  %v3294_v10 = vld [vmem:[%s5189_s1 + $0x3dc] sm:$0xf0] }
  0x4f   :  { %1680 = vmatpush.bf16.msra.mxu1 %v2997_v40  ;;  %1706 = vmatpush.bf16.msra.mxu3 %v3001_v45  ;;  %v2165_v40 = vor.u32 %v3180_v27, %v2164_v26  ;;  %v2169_v45 = vor.u32 %v3172_v32, %v2166_v34  ;;  %v3133_v50 = vor.u32 %v3421_v41, %v3132_v39  ;;  %v2364_v26 = vld [vmem:[%s5189_s1 + $0x198] sm:$0xf]  ;;  %v2366_v32 = vld [vmem:[%s5189_s1 + $0x1d8] sm:$0xf0]  ;;  %v3414_v18 = vld [vmem:[%s5189_s1 + $0x7a4] sm:$0xf] }
  0x50   :  { %v3229_v27 = vld [vmem:[%s5189_s1 + $0x1d4] sm:$0xf0]  ;;  %v2878_v34 = vld [vmem:[%s5189_s1 + $0x5d8] sm:$0xf0]  ;;  %v2369_v37 = vor.u32 %v3221_v31, %v2366_v32  ;;  %v3398_v31 = vld [vmem:[%s5189_s1 + $0x724] sm:$0xf] }
  0x51   :  { %1668 = vmatpush.bf16.msra.mxu0 %v2421_v51  ;;  %1694 = vmatpush.bf16.msra.mxu2 %v2425_v53  ;;  %v2625_v51 = vor.u32 %v3285_v42, %v2622_v43  ;;  %v3277_v53 = vld [vmem:[%s5189_s1 + $0x354] sm:$0xf0]  ;;  %v2365_v35 = vor.u32 %v3229_v27, %v2364_v26  ;;  %v3205_v43 = vld [vmem:[%s5189_s1 + $0x11c] sm:$0xf]  ;;  %v3076_v26 = vld [vmem:[%s5189_s1 + $0x720] sm:$0xf] }
  0x52   :  { %v2300_v38 = vld [vmem:[%s5189_s1 + $0x118] sm:$0xf]  ;;  %v2238_v56 = vld [vmem:[%s5189_s1 + $0xd8] sm:$0xf0]  ;;  %v3078_v32 = vld [vmem:[%s5189_s1 + $0x760] sm:$0xf0] }
  0x53   :  { %1681 = vmatpush.bf16.msra.mxu1 %v2933_v52  ;;  %1707 = vmatpush.bf16.msra.mxu3 %v2937_v57  ;;  %v2556_v52 = vld [vmem:[%s5189_s1 + $0x318] sm:$0xf]  ;;  %v3269_v57 = vld [vmem:[%s5189_s1 + $0x31c] sm:$0xf] }
  0x54   :  { %v2557_v61 = vor.u32 %v3277_v53, %v2556_v52  ;;  %v3213_v39 = vld [vmem:[%s5189_s1 + $0x154] sm:$0xf0]  ;;  %v3173_v3 = vld [vmem:[%s5189_s1 + $0x1c] sm:$0xf] }
  0x55   :  { %1669 = vmatpush.bf16.msra.mxu0 %v2357_v63  ;;  %1695 = vmatpush.bf16.msra.mxu2 %v2361_v2  ;;  %v2561_v63 = vor.u32 %v3269_v57, %v2558_v58  ;;  %v3261_v2 = vld [vmem:[%s5189_s1 + $0x2d4] sm:$0xf0]  ;;  %v2301_v47 = vor.u32 %v3213_v39, %v2300_v38  ;;  %v3317_v57 = vld [vmem:[%s5189_s1 + $0x49c] sm:$0xf]  ;;  %v3012_v38 = vld [vmem:[%s5189_s1 + $0x6a0] sm:$0xf]  ;;  %v3081_v39 = vor.u32 %v3398_v31, %v3078_v32 }
  0x56   :  { %v3341_v42 = vld [vmem:[%s5189_s1 + $0x554] sm:$0xf0]  ;;  %v2750_v58 = vld [vmem:[%s5189_s1 + $0x4d8] sm:$0xf0]  ;;  %v2180_v32 = vld [vmem:[%s5189_s1 + $0x20] sm:$0xf] }
  0x57   :  { %1682 = vmatpush.bf16.msra.mxu1 %v2869_v0  ;;  %1708 = vmatpush.bf16.msra.mxu3 %v2873_v7  ;;  %v2492_v0 = vld [vmem:[%s5189_s1 + $0x298] sm:$0xf]  ;;  %v3253_v7 = vld [vmem:[%s5189_s1 + $0x29c] sm:$0xf] }
  0x58   :  { %v2493_v11 = vor.u32 %v3261_v2, %v2492_v0  ;;  %v2748_v52 = vld [vmem:[%s5189_s1 + $0x498] sm:$0xf]  ;;  %v2174_v6 = vld [vmem:[%s5189_s1 + $0x58] sm:$0xf0] }
  0x59   :  { %1670 = vmatpush.bf16.msra.mxu0 %v2293_v13  ;;  %1696 = vmatpush.bf16.msra.mxu2 %v2297_v15  ;;  %v2497_v13 = vor.u32 %v3253_v7, %v2494_v8  ;;  %v3245_v15 = vld [vmem:[%s5189_s1 + $0x254] sm:$0xf0]  ;;  %v3301_v7 = vld [vmem:[%s5189_s1 + $0x41c] sm:$0xf] }
  0x5a   :  { %v3325_v54 = vld [vmem:[%s5189_s1 + $0x4d4] sm:$0xf0]  ;;  %v2686_v8 = vld [vmem:[%s5189_s1 + $0x458] sm:$0xf0] }
  0x5b   :  { %1683 = vmatpush.bf16.msra.mxu1 %v2805_v14  ;;  %1709 = vmatpush.bf16.msra.mxu3 %v2809_v19  ;;  %v2428_v14 = vld [vmem:[%s5189_s1 + $0x218] sm:$0xf]  ;;  %v3237_v19 = vld [vmem:[%s5189_s1 + $0x21c] sm:$0xf] }
  0x5c   :  { %v2429_v23 = vor.u32 %v3245_v15, %v2428_v14  ;;  %v2172_v60 = vld [vmem:[%s5189_s1 + $0x18] sm:$0xf]  ;;  %v3286_v14 = vld [vmem:[%s5189_s1 + $0x3a4] sm:$0xf] }
  0x5d   :  { %1671 = vmatpush.bf16.msra.mxu0 %v2229_v25  ;;  %1697 = vmatpush.bf16.msra.mxu2 %v2233_v29  ;;  %v2433_v25 = vor.u32 %v3237_v19, %v2430_v20  ;;  %v2945_v29 = vor.u32 %v3365_v21, %v2942_v22  ;;  %v2684_v0 = vld [vmem:[%s5189_s1 + $0x418] sm:$0xf]  ;;  %v2630_v15 = vld [vmem:[%s5189_s1 + $0x3e0] sm:$0xf0]  ;;  %v2689_v20 = vor.u32 %v3301_v7, %v2686_v8 }
  0x5e   :  { %v3309_v2 = vld [vmem:[%s5189_s1 + $0x454] sm:$0xf0]  ;;  %v3142_v19 = vld [vmem:[%s5189_s1 + $0x7e0] sm:$0xf0]  ;;  %v2629_v21 = vor.u32 %v3294_v10, %v2628_v9  ;;  %v2308_v10 = vld [vmem:[%s5189_s1 + $0x120] sm:$0xf] }
  0x5f   :  { %1684 = vmatpush.bf16.msra.mxu1 %v2741_v28  ;;  %1710 = vmatpush.bf16.msra.mxu3 %v2745_v33  ;;  %v2876_v28 = vld [vmem:[%s5189_s1 + $0x598] sm:$0xf]  ;;  %v3349_v33 = vld [vmem:[%s5189_s1 + $0x59c] sm:$0xf]  ;;  %v2685_v16 = vor.u32 %v3309_v2, %v2684_v0  ;;  %v3145_v27 = vor.u32 %v3414_v18, %v3142_v19  ;;  %v3358_v0 = vld [vmem:[%s5189_s1 + $0x5dc] sm:$0xf0] }
  0x60   :  { %v2877_v36 = vor.u32 %v3357_v30, %v2876_v28  ;;  %v2881_v41 = vor.u32 %v3349_v33, %v2878_v34  ;;  %v3406_v28 = vld [vmem:[%s5189_s1 + $0x75c] sm:$0xf0]  ;;  %v2566_v30 = vld [vmem:[%s5189_s1 + $0x360] sm:$0xf0] }
  0x61   :  { %1672 = vmatpush.bf16.msra.mxu0 %v2165_v40  ;;  %1698 = vmatpush.bf16.msra.mxu2 %v2169_v45  ;;  %v2812_v40 = vld [vmem:[%s5189_s1 + $0x518] sm:$0xf]  ;;  %v3333_v45 = vld [vmem:[%s5189_s1 + $0x51c] sm:$0xf]  ;;  %v3077_v34 = vor.u32 %v3406_v28, %v3076_v26  ;;  %v3222_v2 = vld [vmem:[%s5189_s1 + $0x1a4] sm:$0xf] }
  0x62   :  { %v2817_v53 = vor.u32 %v3333_v45, %v2814_v46  ;;  %v2822_v18 = vld [vmem:[%s5189_s1 + $0x560] sm:$0xf0]  ;;  %v3326_v26 = vld [vmem:[%s5189_s1 + $0x4dc] sm:$0xf0] }
  0x63   :  { %1685 = vmatpush.bf16.msra.mxu1 %v2677_v44  ;;  %1711 = vmatpush.bf16.msra.mxu3 %v2681_v48  ;;  %v2302_v44 = vld [vmem:[%s5189_s1 + $0x158] sm:$0xf0]  ;;  %v2813_v48 = vor.u32 %v3341_v42, %v2812_v40  ;;  %v3390_v40 = vld [vmem:[%s5189_s1 + $0x6dc] sm:$0xf0]  ;;  %v2502_v42 = vld [vmem:[%s5189_s1 + $0x2e0] sm:$0xf0] }
  0x64   :  { %1673 = vmatmul.bf16.vlgmr.msra.gmra.mxu0 %v3722_v1  ;;  %1699 = vmatmul.bf16.vlgmr.msra.gmra.mxu2 %v3722_v1  ;;  %v3013_v46 = vor.u32 %v3390_v40, %v3012_v38  ;;  %v2246_v28 = vld [vmem:[%s5189_s1 + $0xe0] sm:$0xf0] }
  0x65   :  { %1717 = vmatpush.bf16.msrb.mxu0 %v2621_v49  ;;  %1743 = vmatpush.bf16.msrb.mxu2 %v2625_v51  ;;  %v2305_v49 = vor.u32 %v3205_v43, %v2302_v44  ;;  %v3197_v51 = vld [vmem:[%s5189_s1 + $0xd4] sm:$0xf0]  ;;  %v3382_v43 = vld [vmem:[%s5189_s1 + $0x6a4] sm:$0xf] }
  0x66   :  { %1686 = vmatmul.bf16.vlgmr.msra.gmra.mxu1 %v3730_v4  ;;  %1712 = vmatmul.bf16.vlgmr.msra.gmra.mxu3 %v3730_v4  ;;  %v3014_v44 = vld [vmem:[%s5189_s1 + $0x6e0] sm:$0xf0] }
  0x67   :  { %1730 = vmatpush.bf16.msrb.mxu1 %v3133_v50  ;;  %1756 = vmatpush.bf16.msrb.mxu3 %v3137_v55  ;;  %v2236_v50 = vld [vmem:[%s5189_s1 + $0x98] sm:$0xf]  ;;  %v3189_v55 = vld [vmem:[%s5189_s1 + $0x9c] sm:$0xf]  ;;  %v3174_v38 = vld [vmem:[%s5189_s1 + $0x24] sm:$0xf] }
  0x68   :  { %v2237_v59 = vor.u32 %v3197_v51, %v2236_v50  ;;  %v2948_v50 = vld [vmem:[%s5189_s1 + $0x620] sm:$0xf]  ;;  %v3017_v51 = vor.u32 %v3382_v43, %v3014_v44  ;;  %v2182_v40 = vld [vmem:[%s5189_s1 + $0x60] sm:$0xf0]  ;;  %v2636_v43 = vld [vmem:[%s5189_s1 + $0x3a8] sm:$0xf] }
  0x69   :  { %1718 = vmatpush.bf16.msrb.mxu0 %v2557_v61  ;;  %1744 = vmatpush.bf16.msrb.mxu2 %v2561_v63  ;;  %v3181_v61 = vld [vmem:[%s5189_s1 + $0x54] sm:$0xf0]  ;;  %v2241_v63 = vor.u32 %v3189_v55, %v2238_v56  ;;  %v3366_v55 = vld [vmem:[%s5189_s1 + $0x624] sm:$0xf]  ;;  %v3295_v44 = vld [vmem:[%s5189_s1 + $0x3e4] sm:$0xf0] }
  0x6a   :  { %v2950_v56 = vld [vmem:[%s5189_s1 + $0x660] sm:$0xf0] }
  0x6b   :  { %1731 = vmatpush.bf16.msrb.mxu1 %v3069_v62  ;;  %1757 = vmatpush.bf16.msrb.mxu3 %v3073_v5  ;;  %v2749_v62 = vor.u32 %v3325_v54, %v2748_v52  ;;  %v2753_v5 = vor.u32 %v3317_v57, %v2750_v58  ;;  %v3374_v52 = vld [vmem:[%s5189_s1 + $0x65c] sm:$0xf0]  ;;  %v2438_v54 = vld [vmem:[%s5189_s1 + $0x260] sm:$0xf0] }
  0x6c   :  { %v2949_v58 = vor.u32 %v3374_v52, %v2948_v50  ;;  %v3415_v52 = vld [vmem:[%s5189_s1 + $0x7ac] sm:$0xf] }
  0x6d   :  { %1719 = vmatpush.bf16.msrb.mxu0 %v2493_v11  ;;  %1745 = vmatpush.bf16.msrb.mxu2 %v2497_v13  ;;  %v3140_v11 = vld [vmem:[%s5189_s1 + $0x7a0] sm:$0xf] }
  0x6e   :  { %v3422_v13 = vld [vmem:[%s5189_s1 + $0x7dc] sm:$0xf0] }
  0x6f   :  { %1732 = vmatpush.bf16.msrb.mxu1 %v3005_v12  ;;  %1758 = vmatpush.bf16.msrb.mxu3 %v3009_v17  ;;  %v2173_v12 = vor.u32 %v3181_v61, %v2172_v60  ;;  %v2177_v17 = vor.u32 %v3173_v3, %v2174_v6  ;;  %v3141_v22 = vor.u32 %v3422_v13, %v3140_v11  ;;  %v2372_v60 = vld [vmem:[%s5189_s1 + $0x1a0] sm:$0xf]  ;;  %v2374_v3 = vld [vmem:[%s5189_s1 + $0x1e0] sm:$0xf0] }
  0x70   :  { %v3230_v61 = vld [vmem:[%s5189_s1 + $0x1dc] sm:$0xf0]  ;;  %v2886_v6 = vld [vmem:[%s5189_s1 + $0x5e0] sm:$0xf0]  ;;  %v2377_v9 = vor.u32 %v3222_v2, %v2374_v3  ;;  %v3399_v2 = vld [vmem:[%s5189_s1 + $0x72c] sm:$0xf] }
  0x71   :  { %1720 = vmatpush.bf16.msrb.mxu0 %v2429_v23  ;;  %1746 = vmatpush.bf16.msrb.mxu2 %v2433_v25  ;;  %v2633_v23 = vor.u32 %v3286_v14, %v2630_v15  ;;  %v3278_v25 = vld [vmem:[%s5189_s1 + $0x35c] sm:$0xf0]  ;;  %v2373_v7 = vor.u32 %v3230_v61, %v2372_v60  ;;  %v3206_v15 = vld [vmem:[%s5189_s1 + $0x124] sm:$0xf]  ;;  %v3084_v60 = vld [vmem:[%s5189_s1 + $0x728] sm:$0xf] }
  0x72   :  { %v3214_v11 = vld [vmem:[%s5189_s1 + $0x15c] sm:$0xf0]  ;;  %v3086_v3 = vld [vmem:[%s5189_s1 + $0x768] sm:$0xf0] }
  0x73   :  { %1733 = vmatpush.bf16.msrb.mxu1 %v2941_v24  ;;  %1759 = vmatpush.bf16.msrb.mxu3 %v2945_v29  ;;  %v2564_v24 = vld [vmem:[%s5189_s1 + $0x320] sm:$0xf]  ;;  %v3270_v29 = vld [vmem:[%s5189_s1 + $0x324] sm:$0xf]  ;;  %v2309_v19 = vor.u32 %v3214_v11, %v2308_v10  ;;  %v3020_v10 = vld [vmem:[%s5189_s1 + $0x6a8] sm:$0xf]  ;;  %v3089_v11 = vor.u32 %v3399_v2, %v3086_v3 }
  0x74   :  { %v2565_v33 = vor.u32 %v3278_v25, %v2564_v24  ;;  %v3342_v14 = vld [vmem:[%s5189_s1 + $0x55c] sm:$0xf0]  ;;  %v3191_v2 = vld [vmem:[%s5189_s1 + $0xac] sm:$0xf] }
  0x75   :  { %1721 = vmatpush.bf16.msrb.mxu0 %v2365_v35  ;;  %1747 = vmatpush.bf16.msrb.mxu2 %v2369_v37  ;;  %v2569_v35 = vor.u32 %v3270_v29, %v2566_v30  ;;  %v3262_v37 = vld [vmem:[%s5189_s1 + $0x2dc] sm:$0xf0]  ;;  %v3318_v29 = vld [vmem:[%s5189_s1 + $0x4a4] sm:$0xf]  ;;  %v2254_v3 = vld [vmem:[%s5189_s1 + $0xe8] sm:$0xf0] }
  0x76   :  { %v2756_v24 = vld [vmem:[%s5189_s1 + $0x4a0] sm:$0xf]  ;;  %v2758_v30 = vld [vmem:[%s5189_s1 + $0x4e0] sm:$0xf0] }
  0x77   :  { %1734 = vmatpush.bf16.msrb.mxu1 %v2877_v36  ;;  %1760 = vmatpush.bf16.msrb.mxu3 %v2881_v41  ;;  %v2500_v36 = vld [vmem:[%s5189_s1 + $0x2a0] sm:$0xf]  ;;  %v3254_v41 = vld [vmem:[%s5189_s1 + $0x2a4] sm:$0xf] }
  0x78   :  { %v2501_v45 = vor.u32 %v3262_v37, %v2500_v36  ;;  %v2692_v36 = vld [vmem:[%s5189_s1 + $0x420] sm:$0xf] }
  0x79   :  { %1722 = vmatpush.bf16.msrb.mxu0 %v2301_v47  ;;  %1748 = vmatpush.bf16.msrb.mxu2 %v2305_v49  ;;  %v2505_v47 = vor.u32 %v3254_v41, %v2502_v42  ;;  %v3246_v49 = vld [vmem:[%s5189_s1 + $0x25c] sm:$0xf0]  ;;  %v3302_v41 = vld [vmem:[%s5189_s1 + $0x424] sm:$0xf] }
  0x7a   :  { %v3310_v37 = vld [vmem:[%s5189_s1 + $0x45c] sm:$0xf0]  ;;  %v2694_v42 = vld [vmem:[%s5189_s1 + $0x460] sm:$0xf0] }
  0x7b   :  { %1735 = vmatpush.bf16.msrb.mxu1 %v2813_v48  ;;  %1761 = vmatpush.bf16.msrb.mxu3 %v2817_v53  ;;  %v2436_v48 = vld [vmem:[%s5189_s1 + $0x220] sm:$0xf]  ;;  %v3238_v53 = vld [vmem:[%s5189_s1 + $0x224] sm:$0xf]  ;;  %v2693_v50 = vor.u32 %v3310_v37, %v2692_v36  ;;  %v3359_v36 = vld [vmem:[%s5189_s1 + $0x5e4] sm:$0xf0] }
  0x7c   :  { %v2437_v57 = vor.u32 %v3246_v49, %v2436_v48  ;;  %v3287_v48 = vld [vmem:[%s5189_s1 + $0x3ac] sm:$0xf] }
  0x7d   :  { %1723 = vmatpush.bf16.msrb.mxu0 %v2237_v59  ;;  %1749 = vmatpush.bf16.msrb.mxu2 %v2241_v63  ;;  %v2441_v59 = vor.u32 %v3238_v53, %v2438_v54  ;;  %v2953_v63 = vor.u32 %v3366_v55, %v2950_v56  ;;  %v2638_v49 = vld [vmem:[%s5189_s1 + $0x3e8] sm:$0xf0]  ;;  %v2697_v54 = vor.u32 %v3302_v41, %v2694_v42 }
  0x7e   :  { %v3150_v53 = vld [vmem:[%s5189_s1 + $0x7e8] sm:$0xf0]  ;;  %v2637_v55 = vor.u32 %v3295_v44, %v2636_v43 }
  0x7f   :  { %1736 = vmatpush.bf16.msrb.mxu1 %v2749_v62  ;;  %1762 = vmatpush.bf16.msrb.mxu3 %v2753_v5  ;;  %v2884_v62 = vld [vmem:[%s5189_s1 + $0x5a0] sm:$0xf]  ;;  %v3350_v5 = vld [vmem:[%s5189_s1 + $0x5a4] sm:$0xf]  ;;  %v3153_v61 = vor.u32 %v3415_v52, %v3150_v53  ;;  %v3223_v37 = vld [vmem:[%s5189_s1 + $0x1ac] sm:$0xf] }
  0x80   :  { %v2885_v8 = vor.u32 %v3358_v0, %v2884_v62  ;;  %v2889_v13 = vor.u32 %v3350_v5, %v2886_v6  ;;  %v3407_v62 = vld [vmem:[%s5189_s1 + $0x764] sm:$0xf0]  ;;  %v2574_v0 = vld [vmem:[%s5189_s1 + $0x368] sm:$0xf0] }
  0x81   :  { %1724 = vmatpush.bf16.msrb.mxu0 %v2173_v12  ;;  %1750 = vmatpush.bf16.msrb.mxu2 %v2177_v17  ;;  %v2820_v12 = vld [vmem:[%s5189_s1 + $0x520] sm:$0xf]  ;;  %v3334_v17 = vld [vmem:[%s5189_s1 + $0x524] sm:$0xf]  ;;  %v3085_v6 = vor.u32 %v3407_v62, %v3084_v60  ;;  %v3207_v52 = vld [vmem:[%s5189_s1 + $0x12c] sm:$0xf] }
  0x82   :  { %v2825_v25 = vor.u32 %v3334_v17, %v2822_v18  ;;  %v2318_v53 = vld [vmem:[%s5189_s1 + $0x168] sm:$0xf0]  ;;  %v2252_v60 = vld [vmem:[%s5189_s1 + $0xa8] sm:$0xf] }
  0x83   :  { %1737 = vmatpush.bf16.msrb.mxu1 %v2685_v16  ;;  %1763 = vmatpush.bf16.msrb.mxu3 %v2689_v20  ;;  %v2310_v16 = vld [vmem:[%s5189_s1 + $0x160] sm:$0xf0]  ;;  %v2821_v20 = vor.u32 %v3342_v14, %v2820_v12  ;;  %v3391_v12 = vld [vmem:[%s5189_s1 + $0x6e4] sm:$0xf0]  ;;  %v2510_v14 = vld [vmem:[%s5189_s1 + $0x2e8] sm:$0xf0] }
  0x84   :  { %1725 = vmatmul.bf16.vlgmr.msrb.gmra.mxu0 %v3722_v1  ;;  %1751 = vmatmul.bf16.vlgmr.msrb.gmra.mxu2 %v3722_v1  ;;  %v3021_v18 = vor.u32 %v3391_v12, %v3020_v10  ;;  %v2764_v62 = vld [vmem:[%s5189_s1 + $0x4a8] sm:$0xf] }
  0x85   :  { %1769 = vmatpush.bf16.msra.mxu0 %v2629_v21  ;;  %1795 = vmatpush.bf16.msra.mxu2 %v2633_v23  ;;  %v2313_v21 = vor.u32 %v3206_v15, %v2310_v16  ;;  %v3198_v23 = vld [vmem:[%s5189_s1 + $0xdc] sm:$0xf0]  ;;  %v3383_v15 = vld [vmem:[%s5189_s1 + $0x6ac] sm:$0xf]  ;;  %v3183_v12 = vld [vmem:[%s5189_s1 + $0x64] sm:$0xf0] }
  0x86   :  { %1738 = vmatmul.bf16.vlgmr.msrb.gmra.mxu1 %v3730_v4  ;;  %1764 = vmatmul.bf16.vlgmr.msrb.gmra.mxu3 %v3730_v4  ;;  %v3022_v16 = vld [vmem:[%s5189_s1 + $0x6e8] sm:$0xf0] }
  0x87   :  { %1782 = vmatpush.bf16.msra.mxu1 %v3141_v22  ;;  %1808 = vmatpush.bf16.msra.mxu3 %v3145_v27  ;;  %v2244_v22 = vld [vmem:[%s5189_s1 + $0xa0] sm:$0xf]  ;;  %v3190_v27 = vld [vmem:[%s5189_s1 + $0xa4] sm:$0xf] }
  0x88   :  { %v2245_v31 = vor.u32 %v3198_v23, %v2244_v22  ;;  %v2956_v22 = vld [vmem:[%s5189_s1 + $0x628] sm:$0xf]  ;;  %v3025_v23 = vor.u32 %v3383_v15, %v3022_v16  ;;  %v2257_v15 = vor.u32 %v3191_v2, %v2254_v3  ;;  %v2452_v2 = vld [vmem:[%s5189_s1 + $0x230] sm:$0xf] }
  0x89   :  { %1770 = vmatpush.bf16.msra.mxu0 %v2565_v33  ;;  %1796 = vmatpush.bf16.msra.mxu2 %v2569_v35  ;;  %v3182_v33 = vld [vmem:[%s5189_s1 + $0x5c] sm:$0xf0]  ;;  %v2249_v35 = vor.u32 %v3190_v27, %v2246_v28  ;;  %v3367_v27 = vld [vmem:[%s5189_s1 + $0x62c] sm:$0xf]  ;;  %v2700_v16 = vld [vmem:[%s5189_s1 + $0x428] sm:$0xf] }
  0x8a   :  { %v2958_v28 = vld [vmem:[%s5189_s1 + $0x668] sm:$0xf0]  ;;  %v3248_v3 = vld [vmem:[%s5189_s1 + $0x26c] sm:$0xf0] }
  0x8b   :  { %1783 = vmatpush.bf16.msra.mxu1 %v3077_v34  ;;  %1809 = vmatpush.bf16.msra.mxu3 %v3081_v39  ;;  %v2757_v34 = vor.u32 %v3326_v26, %v2756_v24  ;;  %v2761_v39 = vor.u32 %v3318_v29, %v2758_v30  ;;  %v3375_v24 = vld [vmem:[%s5189_s1 + $0x664] sm:$0xf0]  ;;  %v2446_v26 = vld [vmem:[%s5189_s1 + $0x268] sm:$0xf0] }
  0x8c   :  { %v2957_v30 = vor.u32 %v3375_v24, %v2956_v22  ;;  %v2702_v22 = vld [vmem:[%s5189_s1 + $0x468] sm:$0xf0]  ;;  %v3296_v24 = vld [vmem:[%s5189_s1 + $0x3ec] sm:$0xf0] }
  0x8d   :  { %1771 = vmatpush.bf16.msra.mxu0 %v2501_v45  ;;  %1797 = vmatpush.bf16.msra.mxu2 %v2505_v47  ;;  %v3148_v45 = vld [vmem:[%s5189_s1 + $0x7a8] sm:$0xf] }
  0x8e   :  { %v3423_v47 = vld [vmem:[%s5189_s1 + $0x7e4] sm:$0xf0] }
  0x8f   :  { %1784 = vmatpush.bf16.msra.mxu1 %v3013_v46  ;;  %1810 = vmatpush.bf16.msra.mxu3 %v3017_v51  ;;  %v2181_v46 = vor.u32 %v3182_v33, %v2180_v32  ;;  %v2185_v51 = vor.u32 %v3174_v38, %v2182_v40  ;;  %v3149_v56 = vor.u32 %v3423_v47, %v3148_v45  ;;  %v2380_v32 = vld [vmem:[%s5189_s1 + $0x1a8] sm:$0xf]  ;;  %v2382_v38 = vld [vmem:[%s5189_s1 + $0x1e8] sm:$0xf0] }
  0x90   :  { %v3231_v33 = vld [vmem:[%s5189_s1 + $0x1e4] sm:$0xf0]  ;;  %v2894_v40 = vld [vmem:[%s5189_s1 + $0x5e8] sm:$0xf0]  ;;  %v2385_v45 = vor.u32 %v3223_v37, %v2382_v38 }
  0x91   :  { %1772 = vmatpush.bf16.msra.mxu0 %v2437_v57  ;;  %1798 = vmatpush.bf16.msra.mxu2 %v2441_v59  ;;  %v2641_v57 = vor.u32 %v3287_v48, %v2638_v49  ;;  %v3279_v59 = vld [vmem:[%s5189_s1 + $0x364] sm:$0xf0]  ;;  %v2381_v42 = vor.u32 %v3231_v33, %v2380_v32  ;;  %v3416_v33 = vld [vmem:[%s5189_s1 + $0x7b4] sm:$0xf] }
  0x92   :  { %v3215_v47 = vld [vmem:[%s5189_s1 + $0x164] sm:$0xf0] }
  0x93   :  { %1785 = vmatpush.bf16.msra.mxu1 %v2949_v58  ;;  %1811 = vmatpush.bf16.msra.mxu3 %v2953_v63  ;;  %v2572_v58 = vld [vmem:[%s5189_s1 + $0x328] sm:$0xf]  ;;  %v3271_v63 = vld [vmem:[%s5189_s1 + $0x32c] sm:$0xf] }
  0x94   :  { %v2573_v5 = vor.u32 %v3279_v59, %v2572_v58  ;;  %v2828_v48 = vld [vmem:[%s5189_s1 + $0x528] sm:$0xf]  ;;  %v2321_v59 = vor.u32 %v3207_v52, %v2318_v53  ;;  %v2516_v53 = vld [vmem:[%s5189_s1 + $0x2b0] sm:$0xf] }
  0x95   :  { %1773 = vmatpush.bf16.msra.mxu0 %v2373_v7  ;;  %1799 = vmatpush.bf16.msra.mxu2 %v2377_v9  ;;  %v2577_v7 = vor.u32 %v3271_v63, %v2574_v0  ;;  %v3263_v9 = vld [vmem:[%s5189_s1 + $0x2e4] sm:$0xf0] }
  0x96   :  { %v3327_v0 = vld [vmem:[%s5189_s1 + $0x4e4] sm:$0xf0] }
  0x97   :  { %1786 = vmatpush.bf16.msra.mxu1 %v2885_v8  ;;  %1812 = vmatpush.bf16.msra.mxu3 %v2889_v13  ;;  %v2508_v8 = vld [vmem:[%s5189_s1 + $0x2a8] sm:$0xf]  ;;  %v3255_v13 = vld [vmem:[%s5189_s1 + $0x2ac] sm:$0xf] }
  0x98   :  { %v2509_v17 = vor.u32 %v3263_v9, %v2508_v8 }
  0x99   :  { %1774 = vmatpush.bf16.msra.mxu0 %v2309_v19  ;;  %1800 = vmatpush.bf16.msra.mxu2 %v2313_v21  ;;  %v2513_v19 = vor.u32 %v3255_v13, %v2510_v14  ;;  %v3247_v21 = vld [vmem:[%s5189_s1 + $0x264] sm:$0xf0]  ;;  %v2765_v14 = vor.u32 %v3327_v0, %v2764_v62 }
  0x9b   :  { %1787 = vmatpush.bf16.msra.mxu1 %v2821_v20  ;;  %1813 = vmatpush.bf16.msra.mxu3 %v2825_v25  ;;  %v2444_v20 = vld [vmem:[%s5189_s1 + $0x228] sm:$0xf]  ;;  %v3239_v25 = vld [vmem:[%s5189_s1 + $0x22c] sm:$0xf] }
  0x9c   :  { %v2445_v29 = vor.u32 %v3247_v21, %v2444_v20  ;;  %v2190_v20 = vld [vmem:[%s5189_s1 + $0x68] sm:$0xf0] }
  0x9d   :  { %1775 = vmatpush.bf16.msra.mxu0 %v2245_v31  ;;  %1801 = vmatpush.bf16.msra.mxu2 %v2249_v35  ;;  %v2449_v31 = vor.u32 %v3239_v25, %v2446_v26  ;;  %v2961_v35 = vor.u32 %v3367_v27, %v2958_v28  ;;  %v3303_v21 = vld [vmem:[%s5189_s1 + $0x42c] sm:$0xf]  ;;  %v3156_v25 = vld [vmem:[%s5189_s1 + $0x7b0] sm:$0xf] }
  0x9e   :  { %v3424_v28 = vld [vmem:[%s5189_s1 + $0x7ec] sm:$0xf0] }
  0x9f   :  { %1788 = vmatpush.bf16.msra.mxu1 %v2757_v34  ;;  %1814 = vmatpush.bf16.msra.mxu3 %v2761_v39  ;;  %v2892_v34 = vld [vmem:[%s5189_s1 + $0x5a8] sm:$0xf]  ;;  %v3351_v39 = vld [vmem:[%s5189_s1 + $0x5ac] sm:$0xf]  ;;  %v3157_v38 = vor.u32 %v3424_v28, %v3156_v25  ;;  %v2390_v25 = vld [vmem:[%s5189_s1 + $0x1f0] sm:$0xf0] }
  0xa0   :  { %v2893_v44 = vor.u32 %v3359_v36, %v2892_v34  ;;  %v3158_v34 = vld [vmem:[%s5189_s1 + $0x7f0] sm:$0xf0] }
  0xa1   :  { %1776 = vmatpush.bf16.msra.mxu0 %v2181_v46  ;;  %1802 = vmatpush.bf16.msra.mxu2 %v2185_v51  ;;  %v2316_v46 = vld [vmem:[%s5189_s1 + $0x128] sm:$0xf] }
  0xa2   :  { %v3343_v51 = vld [vmem:[%s5189_s1 + $0x564] sm:$0xf0] }
  0xa3   :  { %1789 = vmatpush.bf16.msra.mxu1 %v2693_v50  ;;  %1815 = vmatpush.bf16.msra.mxu3 %v2697_v54  ;;  %v1570_v41 = vpop.f32.mrf.mxu0  ;;  %v2897_v50 = vor.u32 %v3351_v39, %v2894_v40  ;;  %v3335_v54 = vld [vmem:[%s5189_s1 + $0x52c] sm:$0xf]  ;;  %v2829_v58 = vor.u32 %v3343_v51, %v2828_v48  ;;  %v2580_v40 = vld [vmem:[%s5189_s1 + $0x330] sm:$0xf]  ;;  %v3094_v48 = vld [vmem:[%s5189_s1 + $0x770] sm:$0xf0] }
  0xa4   :  { %1777 = vmatmul.bf16.vlgmr.msra.gmra.mxu0 %v3722_v1  ;;  %1803 = vmatmul.bf16.vlgmr.msra.gmra.mxu2 %v3722_v1 }
  0xa5   :  { %1821 = vmatpush.bf16.msrb.mxu0 %v2637_v55  ;;  %1847 = vmatpush.bf16.msrb.mxu2 %v2641_v57  ;;  %v1583_v43 = vpop.f32.mrf.mxu1  ;;  %v2830_v55 = vld [vmem:[%s5189_s1 + $0x568] sm:$0xf0]  ;;  %v2317_v57 = vor.u32 %v3215_v47, %v2316_v46  ;;  %v2582_v46 = vld [vmem:[%s5189_s1 + $0x370] sm:$0xf0] }
  0xa6   :  { %1790 = vmatmul.bf16.vlgmr.msra.gmra.mxu1 %v3730_v4  ;;  %1816 = vmatmul.bf16.vlgmr.msra.gmra.mxu3 %v3730_v4  ;;  %v4577_v49 = vadd.f32 %v1583_v43, %v1570_v41  ;;  %v2833_v63 = vor.u32 %v3335_v54, %v2830_v55  ;;  %v3280_v41 = vld [vmem:[%s5189_s1 + $0x36c] sm:$0xf0]  ;;  %v3161_v43 = vor.u32 %v3416_v33, %v3158_v34  ;;  %v3400_v47 = vld [vmem:[%s5189_s1 + $0x734] sm:$0xf] }
  0xa7   :  { %1834 = vmatpush.bf16.msrb.mxu1 %v3149_v56  ;;  %1860 = vmatpush.bf16.msrb.mxu3 %v3153_v61  ;;  %v3199_v61 = vld [vmem:[%s5189_s1 + $0xe4] sm:$0xf0]  ;;  %v3264_v54 = vld [vmem:[%s5189_s1 + $0x2ec] sm:$0xf0] }
  0xa8   :  { %v2253_v10 = vor.u32 %v3199_v61, %v2252_v60  ;;  %v3028_v55 = vld [vmem:[%s5189_s1 + $0x6b0] sm:$0xf]  ;;  %v3384_v60 = vld [vmem:[%s5189_s1 + $0x6b4] sm:$0xf]  ;;  %v2517_v62 = vor.u32 %v3264_v54, %v2516_v53 }
  0xa9   :  { %1822 = vmatpush.bf16.msrb.mxu0 %v2573_v5  ;;  %1848 = vmatpush.bf16.msrb.mxu2 %v2577_v7  ;;  %v1596_v56 = vpop.f32.mrf.mxu2  ;;  %v2766_v7 = vld [vmem:[%s5189_s1 + $0x4e8] sm:$0xf0]  ;;  %v3030_v61 = vld [vmem:[%s5189_s1 + $0x6f0] sm:$0xf0]  ;;  %v3216_v33 = vld [vmem:[%s5189_s1 + $0x16c] sm:$0xf0] }
  0xaa   :  { %v2836_v34 = vld [vmem:[%s5189_s1 + $0x530] sm:$0xf]  ;;  %v3192_v54 = vld [vmem:[%s5189_s1 + $0xb4] sm:$0xf] }
  0xab   :  { %1835 = vmatpush.bf16.msrb.mxu1 %v3085_v6  ;;  %1861 = vmatpush.bf16.msrb.mxu3 %v3089_v11  ;;  %v1609_v5 = vpop.f32.mrf.mxu3  ;;  %v3319_v6 = vld [vmem:[%s5189_s1 + $0x4ac] sm:$0xf]  ;;  %v1572_v9 = vpop.f32.mrf.mxu0  ;;  %v2188_v11 = vld [vmem:[%s5189_s1 + $0x28] sm:$0xf]  ;;  %v3328_v53 = vld [vmem:[%s5189_s1 + $0x4ec] sm:$0xf0] }
  0xac   :  { %v4618_v8 = vadd.f32 %v1609_v5, %v1596_v56  ;;  %v2189_v27 = vor.u32 %v3183_v12, %v2188_v11  ;;  %v3097_v56 = vor.u32 %v3400_v47, %v3094_v48  ;;  %v2964_v5 = vld [vmem:[%s5189_s1 + $0x630] sm:$0xf]  ;;  %v3240_v9 = vld [vmem:[%s5189_s1 + $0x234] sm:$0xf] }
  0xad   :  { %1823 = vmatpush.bf16.msrb.mxu0 %v2509_v17  ;;  %1849 = vmatpush.bf16.msrb.mxu2 %v2513_v19  ;;  %v1585_v13 = vpop.f32.mrf.mxu1  ;;  %v3311_v17 = vld [vmem:[%s5189_s1 + $0x464] sm:$0xf0]  ;;  %v2769_v19 = vor.u32 %v3319_v6, %v2766_v7  ;;  %v3033_v6 = vor.u32 %v3384_v60, %v3030_v61  ;;  %v3376_v7 = vld [vmem:[%s5189_s1 + $0x66c] sm:$0xf0]  ;;  %v3368_v11 = vld [vmem:[%s5189_s1 + $0x634] sm:$0xf] }
  0xae   :  { %v2966_v12 = vld [vmem:[%s5189_s1 + $0x670] sm:$0xf0]  ;;  %v2453_v13 = vor.u32 %v3248_v3, %v2452_v2  ;;  %v2260_v47 = vld [vmem:[%s5189_s1 + $0xb0] sm:$0xf] }
  0xaf   :  { %1836 = vmatpush.bf16.msrb.mxu1 %v3021_v18  ;;  %1862 = vmatpush.bf16.msrb.mxu3 %v3025_v23  ;;  %v3175_v18 = vld [vmem:[%s5189_s1 + $0x2c] sm:$0xf]  ;;  %v2644_v23 = vld [vmem:[%s5189_s1 + $0x3b0] sm:$0xf]  ;;  %v3176_v2 = vld [vmem:[%s5189_s1 + $0x34] sm:$0xf] }
  0xb0   :  { %v2193_v32 = vor.u32 %v3175_v18, %v2190_v20  ;;  %v2645_v36 = vor.u32 %v3296_v24, %v2644_v23  ;;  %v2388_v18 = vld [vmem:[%s5189_s1 + $0x1b0] sm:$0xf]  ;;  %v3224_v24 = vld [vmem:[%s5189_s1 + $0x1b4] sm:$0xf] }
  0xb1   :  { %1824 = vmatpush.bf16.msrb.mxu0 %v2445_v29  ;;  %1850 = vmatpush.bf16.msrb.mxu2 %v2449_v31  ;;  %v1598_v26 = vpop.f32.mrf.mxu2  ;;  %v3288_v29 = vld [vmem:[%s5189_s1 + $0x3b4] sm:$0xf]  ;;  %v2701_v31 = vor.u32 %v3311_v17, %v2700_v16  ;;  %v2900_v20 = vld [vmem:[%s5189_s1 + $0x5b0] sm:$0xf] }
  0xb2   :  { %v3360_v23 = vld [vmem:[%s5189_s1 + $0x5ec] sm:$0xf0]  ;;  %v3352_v26 = vld [vmem:[%s5189_s1 + $0x5b4] sm:$0xf] }
  0xb3   :  { %1837 = vmatpush.bf16.msrb.mxu1 %v2957_v30  ;;  %1863 = vmatpush.bf16.msrb.mxu3 %v2961_v35  ;;  %v2646_v30 = vld [vmem:[%s5189_s1 + $0x3f0] sm:$0xf0]  ;;  %v2705_v35 = vor.u32 %v3303_v21, %v2702_v22  ;;  %v1611_v37 = vpop.f32.mrf.mxu3  ;;  %v2969_v21 = vor.u32 %v3368_v11, %v2966_v12  ;;  %v3200_v48 = vld [vmem:[%s5189_s1 + $0xec] sm:$0xf0]  ;;  %v2652_v11 = vld [vmem:[%s5189_s1 + $0x3b8] sm:$0xf] }
  0xb4   :  { %v2649_v39 = vor.u32 %v3288_v29, %v2646_v30  ;;  %v2901_v29 = vor.u32 %v3360_v23, %v2900_v20  ;;  %v2393_v30 = vor.u32 %v3224_v24, %v2390_v25  ;;  %v3344_v37 = vld [vmem:[%s5189_s1 + $0x56c] sm:$0xf0]  ;;  %v3297_v12 = vld [vmem:[%s5189_s1 + $0x3f4] sm:$0xf0]  ;;  %v3417_v20 = vld [vmem:[%s5189_s1 + $0x7bc] sm:$0xf] }
  0xb5   :  { %1825 = vmatpush.bf16.msrb.mxu0 %v2381_v42  ;;  %1851 = vmatpush.bf16.msrb.mxu2 %v2385_v45  ;;  %v3092_v42 = vld [vmem:[%s5189_s1 + $0x730] sm:$0xf]  ;;  %v3272_v45 = vld [vmem:[%s5189_s1 + $0x334] sm:$0xf]  ;;  %v2653_v24 = vor.u32 %v3297_v12, %v2652_v11  ;;  %v3361_v11 = vld [vmem:[%s5189_s1 + $0x5f4] sm:$0xf0] }
  0xb6   :  { %v2585_v52 = vor.u32 %v3272_v45, %v2582_v46  ;;  %v2837_v45 = vor.u32 %v3344_v37, %v2836_v34  ;;  %v3184_v60 = vld [vmem:[%s5189_s1 + $0x6c] sm:$0xf0]  ;;  %v3401_v34 = vld [vmem:[%s5189_s1 + $0x73c] sm:$0xf] }
  0xb7   :  { %1838 = vmatpush.bf16.msrb.mxu1 %v2893_v44  ;;  %1864 = vmatpush.bf16.msrb.mxu3 %v2897_v50  ;;  %v3408_v44 = vld [vmem:[%s5189_s1 + $0x76c] sm:$0xf0]  ;;  %v2581_v50 = vor.u32 %v3280_v41, %v2580_v40  ;;  %v3336_v41 = vld [vmem:[%s5189_s1 + $0x534] sm:$0xf]  ;;  %v3225_v12 = vld [vmem:[%s5189_s1 + $0x1bc] sm:$0xf] }
  0xb8   :  { %v3093_v51 = vor.u32 %v3408_v44, %v3092_v42  ;;  %v2838_v42 = vld [vmem:[%s5189_s1 + $0x570] sm:$0xf0] }
  0xb9   :  { %1826 = vmatpush.bf16.msrb.mxu0 %v2317_v57  ;;  %1852 = vmatpush.bf16.msrb.mxu2 %v2321_v59  ;;  %v3392_v57 = vld [vmem:[%s5189_s1 + $0x6ec] sm:$0xf0]  ;;  %v2518_v59 = vld [vmem:[%s5189_s1 + $0x2f0] sm:$0xf0] }
  0xbb   :  { %1839 = vmatpush.bf16.msrb.mxu1 %v2829_v58  ;;  %1865 = vmatpush.bf16.msrb.mxu3 %v2833_v63  ;;  %v3256_v58 = vld [vmem:[%s5189_s1 + $0x2b4] sm:$0xf]  ;;  %v3029_v63 = vor.u32 %v3392_v57, %v3028_v55 }
  0xbc   :  { %v2521_v0 = vor.u32 %v3256_v58, %v2518_v59  ;;  %v2262_v55 = vld [vmem:[%s5189_s1 + $0xf0] sm:$0xf0]  ;;  %v2261_v58 = vor.u32 %v3200_v48, %v2260_v47  ;;  %v2196_v59 = vld [vmem:[%s5189_s1 + $0x30] sm:$0xf]  ;;  %v3385_v47 = vld [vmem:[%s5189_s1 + $0x6bc] sm:$0xf] }
  0xbd   :  { %1827 = vmatpush.bf16.msrb.mxu0 %v2253_v10  ;;  %1853 = vmatpush.bf16.msrb.mxu2 %v2257_v15  ;;  %v2454_v10 = vld [vmem:[%s5189_s1 + $0x270] sm:$0xf0]  ;;  %v2965_v15 = vor.u32 %v3376_v7, %v2964_v5  ;;  %v3038_v48 = vld [vmem:[%s5189_s1 + $0x6f8] sm:$0xf0] }
  0xbe   :  { %v2457_v16 = vor.u32 %v3240_v9, %v2454_v10  ;;  %v2774_v57 = vld [vmem:[%s5189_s1 + $0x4f0] sm:$0xf0] }
  0xbf   :  { %1840 = vmatpush.bf16.msrb.mxu1 %v2765_v14  ;;  %1866 = vmatpush.bf16.msrb.mxu3 %v2769_v19  ;;  %v3232_v19 = vld [vmem:[%s5189_s1 + $0x1ec] sm:$0xf0]  ;;  %v3304_v7 = vld [vmem:[%s5189_s1 + $0x434] sm:$0xf] }
  0xc0   :  { %v2389_v28 = vor.u32 %v3232_v19, %v2388_v18  ;;  %v2710_v9 = vld [vmem:[%s5189_s1 + $0x470] sm:$0xf0] }
  0xc1   :  { %1828 = vmatpush.bf16.msrb.mxu0 %v2189_v27  ;;  %1854 = vmatpush.bf16.msrb.mxu2 %v2193_v32  ;;  %v1622_v14 = vpop.f32.mrf.mxu0  ;;  %v2902_v27 = vld [vmem:[%s5189_s1 + $0x5f0] sm:$0xf0]  ;;  %v2324_v32 = vld [vmem:[%s5189_s1 + $0x130] sm:$0xf]  ;;  %v2713_v23 = vor.u32 %v3304_v7, %v2710_v9  ;;  %v3233_v7 = vld [vmem:[%s5189_s1 + $0x1f4] sm:$0xf0] }
  0xc2   :  { %v2908_v9 = vld [vmem:[%s5189_s1 + $0x5b8] sm:$0xf] }
  0xc3   :  { %1841 = vmatpush.bf16.msrb.mxu1 %v2701_v31  ;;  %1867 = vmatpush.bf16.msrb.mxu3 %v2705_v35  ;;  %v1635_v17 = vpop.f32.mrf.mxu1  ;;  %v2905_v35 = vor.u32 %v3352_v26, %v2902_v27  ;;  %v2588_v27 = vld [vmem:[%s5189_s1 + $0x338] sm:$0xf] }
  0xc4   :  { %1829 = vmatmul.bf16.vlgmr.msrb.gmra.mxu0 %v3722_v1  ;;  %1855 = vmatmul.bf16.vlgmr.msrb.gmra.mxu2 %v3722_v1  ;;  %v4753_v22 = vadd.f32 %v1635_v17, %v1622_v14  ;;  %v2197_v14 = vor.u32 %v3184_v60, %v2196_v59  ;;  %v2654_v17 = vld [vmem:[%s5189_s1 + $0x3f8] sm:$0xf0] }
  0xc5   :  { %1873 = vmatpush.bf16.msra.mxu0 %v2645_v36  ;;  %1899 = vmatpush.bf16.msra.mxu2 %v2649_v39  ;;  %v2326_v39 = vld [vmem:[%s5189_s1 + $0x170] sm:$0xf0]  ;;  %v2462_v59 = vld [vmem:[%s5189_s1 + $0x278] sm:$0xf0] }
  0xc6   :  { %1842 = vmatmul.bf16.vlgmr.msrb.gmra.mxu1 %v3730_v4  ;;  %1868 = vmatmul.bf16.vlgmr.msrb.gmra.mxu3 %v3730_v4 }
  0xc7   :  { %1886 = vmatpush.bf16.msra.mxu1 %v3157_v38  ;;  %1912 = vmatpush.bf16.msra.mxu3 %v3161_v43  ;;  %v1648_v31 = vpop.f32.mrf.mxu2  ;;  %v3208_v38 = vld [vmem:[%s5189_s1 + $0x134] sm:$0xf]  ;;  %v2325_v43 = vor.u32 %v3216_v33, %v2324_v32  ;;  %v3273_v32 = vld [vmem:[%s5189_s1 + $0x33c] sm:$0xf] }
  0xc8   :  { %v2329_v46 = vor.u32 %v3208_v38, %v2326_v39  ;;  %v2590_v33 = vld [vmem:[%s5189_s1 + $0x378] sm:$0xf0]  ;;  %v2524_v39 = vld [vmem:[%s5189_s1 + $0x2b8] sm:$0xf] }
  0xc9   :  { %1874 = vmatpush.bf16.msra.mxu0 %v2581_v50  ;;  %1900 = vmatpush.bf16.msra.mxu2 %v2585_v52  ;;  %v1661_v36 = vpop.f32.mrf.mxu3  ;;  %v1624_v44 = vpop.f32.mrf.mxu0  ;;  %v2772_v50 = vld [vmem:[%s5189_s1 + $0x4b0] sm:$0xf]  ;;  %v2841_v52 = vor.u32 %v3336_v41, %v2838_v42  ;;  %v2593_v38 = vor.u32 %v3273_v32, %v2590_v33  ;;  %v3265_v41 = vld [vmem:[%s5189_s1 + $0x2f4] sm:$0xf0] }
  0xca   :  { %v4788_v40 = vadd.f32 %v1661_v36, %v1648_v31  ;;  %v2773_v61 = vor.u32 %v3328_v53, %v2772_v50  ;;  %v3409_v31 = vld [vmem:[%s5189_s1 + $0x774] sm:$0xf0]  ;;  %v2525_v50 = vor.u32 %v3265_v41, %v2524_v39 }
  0xcb   :  { %1887 = vmatpush.bf16.msra.mxu1 %v3093_v51  ;;  %1913 = vmatpush.bf16.msra.mxu3 %v3097_v56  ;;  %v1637_v51 = vpop.f32.mrf.mxu1  ;;  %v3320_v56 = vld [vmem:[%s5189_s1 + $0x4b4] sm:$0xf]  ;;  %v3036_v42 = vld [vmem:[%s5189_s1 + $0x6b8] sm:$0xf] }
  0xcc   :  { %v2777_v5 = vor.u32 %v3320_v56, %v2774_v57  ;;  %v3393_v44 = vld [vmem:[%s5189_s1 + $0x6f4] sm:$0xf0]  ;;  %v3041_v56 = vor.u32 %v3385_v47, %v3038_v48 }
  0xcd   :  { %1875 = vmatpush.bf16.msra.mxu0 %v2517_v62  ;;  %1901 = vmatpush.bf16.msra.mxu2 %v2521_v0  ;;  %v2265_v62 = vor.u32 %v3192_v54, %v2262_v55  ;;  %v3312_v0 = vld [vmem:[%s5189_s1 + $0x46c] sm:$0xf0]  ;;  %v3037_v51 = vor.u32 %v3393_v44, %v3036_v42  ;;  %v2460_v53 = vld [vmem:[%s5189_s1 + $0x238] sm:$0xf]  ;;  %v2270_v44 = vld [vmem:[%s5189_s1 + $0xf8] sm:$0xf0] }
  0xce   :  { %v3249_v54 = vld [vmem:[%s5189_s1 + $0x274] sm:$0xf0] }
  0xcf   :  { %1888 = vmatpush.bf16.msra.mxu1 %v3029_v63  ;;  %1914 = vmatpush.bf16.msra.mxu3 %v3033_v6  ;;  %v2708_v63 = vld [vmem:[%s5189_s1 + $0x430] sm:$0xf]  ;;  %v1650_v3 = vpop.f32.mrf.mxu2  ;;  %v2198_v6 = vld [vmem:[%s5189_s1 + $0x70] sm:$0xf0]  ;;  %v2972_v55 = vld [vmem:[%s5189_s1 + $0x638] sm:$0xf] }
  0xd0   :  { %v2709_v18 = vor.u32 %v3312_v0, %v2708_v63  ;;  %v2201_v19 = vor.u32 %v3176_v2, %v2198_v6  ;;  %v3377_v57 = vld [vmem:[%s5189_s1 + $0x674] sm:$0xf0]  ;;  %v2461_v0 = vor.u32 %v3249_v54, %v2460_v53 }
  0xd1   :  { %1876 = vmatpush.bf16.msra.mxu0 %v2453_v13  ;;  %1902 = vmatpush.bf16.msra.mxu2 %v2457_v16  ;;  %v1663_v10 = vpop.f32.mrf.mxu3  ;;  %v3164_v13 = vld [vmem:[%s5189_s1 + $0x7b8] sm:$0xf]  ;;  %v3289_v16 = vld [vmem:[%s5189_s1 + $0x3bc] sm:$0xf]  ;;  %v2973_v3 = vor.u32 %v3377_v57, %v2972_v55 }
  0xd2   :  { %v2657_v26 = vor.u32 %v3289_v16, %v2654_v17  ;;  %v2396_v6 = vld [vmem:[%s5189_s1 + $0x1b8] sm:$0xf]  ;;  %v2909_v17 = vor.u32 %v3361_v11, %v2908_v9  ;;  %v2206_v57 = vld [vmem:[%s5189_s1 + $0x78] sm:$0xf0] }
  0xd3   :  { %1889 = vmatpush.bf16.msra.mxu1 %v2965_v15  ;;  %1915 = vmatpush.bf16.msra.mxu3 %v2969_v21  ;;  %v3425_v15 = vld [vmem:[%s5189_s1 + $0x7f4] sm:$0xf0]  ;;  %v3166_v21 = vld [vmem:[%s5189_s1 + $0x7f8] sm:$0xf0]  ;;  %v2397_v16 = vor.u32 %v3233_v7, %v2396_v6 }
  0xd4   :  { %v3165_v25 = vor.u32 %v3425_v15, %v3164_v13  ;;  %v2398_v13 = vld [vmem:[%s5189_s1 + $0x1f8] sm:$0xf0]  ;;  %v2780_v39 = vld [vmem:[%s5189_s1 + $0x4b8] sm:$0xf] }
  0xd5   :  { %1877 = vmatpush.bf16.msra.mxu0 %v2389_v28  ;;  %1903 = vmatpush.bf16.msra.mxu2 %v2393_v30  ;;  %v3281_v28 = vld [vmem:[%s5189_s1 + $0x374] sm:$0xf0]  ;;  %v3169_v30 = vor.u32 %v3417_v20, %v3166_v21  ;;  %v2910_v15 = vld [vmem:[%s5189_s1 + $0x5f8] sm:$0xf0] }
  0xd6   :  { %v2589_v36 = vor.u32 %v3281_v28, %v2588_v27  ;;  %v3217_v20 = vld [vmem:[%s5189_s1 + $0x174] sm:$0xf0]  ;;  %v2334_v27 = vld [vmem:[%s5189_s1 + $0x178] sm:$0xf0] }
  0xd7   :  { %1890 = vmatpush.bf16.msra.mxu1 %v2901_v29  ;;  %1916 = vmatpush.bf16.msra.mxu3 %v2905_v35  ;;  %v3100_v29 = vld [vmem:[%s5189_s1 + $0x738] sm:$0xf]  ;;  %v3102_v35 = vld [vmem:[%s5189_s1 + $0x778] sm:$0xf0] }
  0xd8   :  { %v3101_v37 = vor.u32 %v3409_v31, %v3100_v29  ;;  %v2844_v21 = vld [vmem:[%s5189_s1 + $0x538] sm:$0xf]  ;;  %v3337_v29 = vld [vmem:[%s5189_s1 + $0x53c] sm:$0xf] }
  0xd9   :  { %1878 = vmatpush.bf16.msra.mxu0 %v2325_v43  ;;  %1904 = vmatpush.bf16.msra.mxu2 %v2329_v46  ;;  %v3105_v43 = vor.u32 %v3401_v34, %v3102_v35  ;;  %v2526_v46 = vld [vmem:[%s5189_s1 + $0x2f8] sm:$0xf0]  ;;  %v3329_v42 = vld [vmem:[%s5189_s1 + $0x4f4] sm:$0xf0] }
  0xda   :  { %v2781_v48 = vor.u32 %v3329_v42, %v2780_v39  ;;  %v2716_v53 = vld [vmem:[%s5189_s1 + $0x438] sm:$0xf] }
  0xdb   :  { %1891 = vmatpush.bf16.msra.mxu1 %v2837_v45  ;;  %1917 = vmatpush.bf16.msra.mxu3 %v2841_v52  ;;  %v3257_v45 = vld [vmem:[%s5189_s1 + $0x2bc] sm:$0xf]  ;;  %v3313_v55 = vld [vmem:[%s5189_s1 + $0x474] sm:$0xf0] }
  0xdc   :  { %v2529_v52 = vor.u32 %v3257_v45, %v2526_v46  ;;  %v3321_v45 = vld [vmem:[%s5189_s1 + $0x4bc] sm:$0xf] }
  0xdd   :  { %1879 = vmatpush.bf16.msra.mxu0 %v2261_v58  ;;  %1905 = vmatpush.bf16.msra.mxu2 %v2265_v62  ;;  %v3241_v58 = vld [vmem:[%s5189_s1 + $0x23c] sm:$0xf] }
  0xde   :  { %v2974_v62 = vld [vmem:[%s5189_s1 + $0x678] sm:$0xf0] }
  0xdf   :  { %1892 = vmatpush.bf16.msra.mxu1 %v2773_v61  ;;  %1918 = vmatpush.bf16.msra.mxu3 %v2777_v5  ;;  %v3369_v61 = vld [vmem:[%s5189_s1 + $0x63c] sm:$0xf]  ;;  %v2465_v5 = vor.u32 %v3241_v58, %v2462_v59 }
  0xe0   :  { %v2977_v10 = vor.u32 %v3369_v61, %v2974_v62  ;;  %v2782_v46 = vld [vmem:[%s5189_s1 + $0x4f8] sm:$0xf0] }
  0xe1   :  { %1880 = vmatpush.bf16.msra.mxu0 %v2197_v14  ;;  %1906 = vmatpush.bf16.msra.mxu2 %v2201_v19  ;;  %v1674_v60 = vpop.f32.mrf.mxu0  ;;  %v3353_v14 = vld [vmem:[%s5189_s1 + $0x5bc] sm:$0xf]  ;;  %v2332_v19 = vld [vmem:[%s5189_s1 + $0x138] sm:$0xf]  ;;  %v2785_v54 = vor.u32 %v3321_v45, %v2782_v46 }
  0xe2   :  { %v2333_v33 = vor.u32 %v3217_v20, %v2332_v19  ;;  %v3305_v59 = vld [vmem:[%s5189_s1 + $0x43c] sm:$0xf] }
  0xe3   :  { %1893 = vmatpush.bf16.msra.mxu1 %v2709_v18  ;;  %1919 = vmatpush.bf16.msra.mxu3 %v2713_v23  ;;  %v1687_v63 = vpop.f32.mrf.mxu1  ;;  %v2401_v18 = vor.u32 %v3225_v12, %v2398_v13  ;;  %v2913_v23 = vor.u32 %v3353_v14, %v2910_v15 }
  0xe4   :  { %1881 = vmatmul.bf16.vlgmr.msra.gmra.mxu0 %v3722_v1  ;;  %1907 = vmatmul.bf16.vlgmr.msra.gmra.mxu2 %v3722_v1  ;;  %v4944_v2 = vadd.f32 %v1687_v63, %v1674_v60  ;;  %v2718_v60 = vld [vmem:[%s5189_s1 + $0x478] sm:$0xf0]  ;;  %v2717_v63 = vor.u32 %v3313_v55, %v2716_v53 }
  0xe5   :  { %1925 = vmatpush.bf16.msrb.mxu0 %v2653_v24  ;;  %1951 = vmatpush.bf16.msrb.mxu2 %v2657_v26  ;;  %v3209_v26 = vld [vmem:[%s5189_s1 + $0x13c] sm:$0xf] }
  0xe6   :  { %1894 = vmatmul.bf16.vlgmr.msra.gmra.mxu1 %v3730_v4  ;;  %1920 = vmatmul.bf16.vlgmr.msra.gmra.mxu3 %v3730_v4 }
  0xe7   :  { %1938 = vmatpush.bf16.msrb.mxu1 %v3165_v25  ;;  %1964 = vmatpush.bf16.msrb.mxu3 %v3169_v30  ;;  %v1700_v24 = vpop.f32.mrf.mxu2  ;;  %v3345_v25 = vld [vmem:[%s5189_s1 + $0x574] sm:$0xf0]  ;;  %v2846_v30 = vld [vmem:[%s5189_s1 + $0x578] sm:$0xf0] }
  0xe8   :  { %v2845_v35 = vor.u32 %v3345_v25, %v2844_v21  ;;  %v2849_v41 = vor.u32 %v3337_v29, %v2846_v30 }
  0xe9   :  { %1926 = vmatpush.bf16.msrb.mxu0 %v2589_v36  ;;  %1952 = vmatpush.bf16.msrb.mxu2 %v2593_v38  ;;  %v1713_v28 = vpop.f32.mrf.mxu3  ;;  %v1676_v31 = vpop.f32.mrf.mxu0  ;;  %v2337_v36 = vor.u32 %v3209_v26, %v2334_v27  ;;  %v3201_v38 = vld [vmem:[%s5189_s1 + $0xf4] sm:$0xf0] }
  0xea   :  { %v4994_v32 = vadd.f32 %v1713_v28, %v1700_v24 }
  0xeb   :  { %1939 = vmatpush.bf16.msrb.mxu1 %v3101_v37  ;;  %1965 = vmatpush.bf16.msrb.mxu3 %v3105_v43  ;;  %v1689_v34 = vpop.f32.mrf.mxu1  ;;  %v2268_v37 = vld [vmem:[%s5189_s1 + $0xb8] sm:$0xf]  ;;  %v3193_v43 = vld [vmem:[%s5189_s1 + $0xbc] sm:$0xf] }
  0xec   :  { %v2269_v47 = vor.u32 %v3201_v38, %v2268_v37  ;;  %v1977_v37 = vadd.f32 %v4618_v8, %v4577_v49 }
  0xed   :  { %1927 = vmatpush.bf16.msrb.mxu0 %v2525_v50  ;;  %1953 = vmatpush.bf16.msrb.mxu2 %v2529_v52  ;;  %v2273_v50 = vor.u32 %v3193_v43, %v2270_v44  ;;  %v3185_v52 = vld [vmem:[%s5189_s1 + $0x74] sm:$0xf0] }
  0xee   :  { %v1978_v42 = vadd.f32 %v1977_v37, %v4753_v22 }
  0xef   :  { %1940 = vmatpush.bf16.msrb.mxu1 %v3037_v51  ;;  %1966 = vmatpush.bf16.msrb.mxu3 %v3041_v56  ;;  %v2204_v51 = vld [vmem:[%s5189_s1 + $0x38] sm:$0xf]  ;;  %v3177_v56 = vld [vmem:[%s5189_s1 + $0x3c] sm:$0xf]  ;;  %v1702_v58 = vpop.f32.mrf.mxu2 }
  0xf0   :  { %v2205_v62 = vor.u32 %v3185_v52, %v2204_v51  ;;  %v1979_v44 = vadd.f32 %v1978_v42, %v4788_v40 }
  0xf1   :  { %1928 = vmatpush.bf16.msrb.mxu0 %v2461_v0  ;;  %1954 = vmatpush.bf16.msrb.mxu2 %v2465_v5  ;;  %v1715_v61 = vpop.f32.mrf.mxu3  ;;  %v2209_v0 = vor.u32 %v3177_v56, %v2206_v57 }
  0xf2   :  { %v1980_v46 = vadd.f32 %v1979_v44, %v4944_v2 }
  0xf3   :  { %1941 = vmatpush.bf16.msrb.mxu1 %v2973_v3  ;;  %1967 = vmatpush.bf16.msrb.mxu3 %v2977_v10  ;;  %v2721_v3 = vor.u32 %v3305_v59, %v2718_v60 }
  0xf5   :  { %1929 = vmatpush.bf16.msrb.mxu0 %v2397_v16  ;;  %1955 = vmatpush.bf16.msrb.mxu2 %v2401_v18 }
  0xf7   :  { %1942 = vmatpush.bf16.msrb.mxu1 %v2909_v17  ;;  %1968 = vmatpush.bf16.msrb.mxu3 %v2913_v23 }
  0xf9   :  { %1930 = vmatpush.bf16.msrb.mxu0 %v2333_v33  ;;  %1956 = vmatpush.bf16.msrb.mxu2 %v2337_v36 }
  0xfb   :  { %1943 = vmatpush.bf16.msrb.mxu1 %v2845_v35  ;;  %1969 = vmatpush.bf16.msrb.mxu3 %v2849_v41 }
  0xfd   :  { %1931 = vmatpush.bf16.msrb.mxu0 %v2269_v47  ;;  %1957 = vmatpush.bf16.msrb.mxu2 %v2273_v50  ;;  %v1981_v47 = vadd.f32 %v1980_v46, %v4994_v32 }
  0xff   :  { %1944 = vmatpush.bf16.msrb.mxu1 %v2781_v48  ;;  %1970 = vmatpush.bf16.msrb.mxu3 %v2785_v54 }
 0x101   :  { %1932 = vmatpush.bf16.msrb.mxu0 %v2205_v62  ;;  %1958 = vmatpush.bf16.msrb.mxu2 %v2209_v0  ;;  %v1726_v5 = vpop.f32.mrf.mxu0 }
 0x103   :  { %1945 = vmatpush.bf16.msrb.mxu1 %v2717_v63  ;;  %1971 = vmatpush.bf16.msrb.mxu3 %v2721_v3  ;;  %v1739_v6 = vpop.f32.mrf.mxu1 }
 0x104   :  { %1933 = vmatmul.bf16.vlgmr.msrb.gmra.mxu0 %v3722_v1  ;;  %1959 = vmatmul.bf16.vlgmr.msrb.gmra.mxu2 %v3722_v1  ;;  %v5048_v7 = vadd.f32 %v1739_v6, %v1726_v5 }
 0x106   :  { %1946 = vmatmul.bf16.vlgmr.msrb.gmra.mxu1 %v3730_v4  ;;  %1972 = vmatmul.bf16.vlgmr.msrb.gmra.mxu3 %v3730_v4  ;;  %v1982_v48 = vadd.f32 %v1981_v47, %v5048_v7 }
 0x107   :  { %v1752_v9 = vpop.f32.mrf.mxu2 }
 0x109   :  { %v1765_v10 = vpop.f32.mrf.mxu3  ;;  %v1728_v11 = vpop.f32.mrf.mxu0 }
 0x10a   :  { %v5050_v12 = vadd.f32 %v1765_v10, %v1752_v9 }
 0x10b   :  { %v1741_v13 = vpop.f32.mrf.mxu1 }
 0x10c   :  { %v1983_v50 = vadd.f32 %v1982_v48, %v5050_v12 }
 0x10f   :  { %v1754_v14 = vpop.f32.mrf.mxu2 }
 0x111   :  { %v1767_v15 = vpop.f32.mrf.mxu3 }
 0x112   :  { %v3434_v15 = vmov 2048.0  }
 0x113   :  { %3430 = vrcp.f32 %v3434_v15 }
 0x121   :  { %v1778_v16 = vpop.f32.mrf.mxu0 }
 0x123   :  { %v1791_v17 = vpop.f32.mrf.mxu1 }
 0x124   :  { %v5052_v18 = vadd.f32 %v1791_v17, %v1778_v16  ;;  %v3431_v16 = vpop.eup %3430 }
 0x125   :  { %v1995_v17 = vmul.f32 2048.0, %v3431_v16  ;;  %vm1999_vm0 = vweird.f32 %v3431_v16 }
 0x126   :  { %v1984_v51 = vadd.f32 %v1983_v50, %v5052_v18 }
 0x127   :  { %v1804_v19 = vpop.f32.mrf.mxu2 }
 0x129   :  { %v1817_v1 = vpop.f32.mrf.mxu3  ;;  %v1780_v20 = vpop.f32.mrf.mxu0 }
 0x12a   :  { %v5054_v4 = vadd.f32 %v1817_v1, %v1804_v19  ;;  %v1996_v19 = vsub.f32 1.0, %v1995_v17 }
 0x12b   :  { %v1793_v21 = vpop.f32.mrf.mxu1 }
 0x12c   :  { %v1985_v53 = vadd.f32 %v1984_v51, %v5054_v4  ;;  %v1997_v1 = vmul.f32 %v3431_v16, %v1996_v19 }
 0x12e   :  { %v1998_v20 = vadd.f32 %v3431_v16, %v1997_v1 }
 0x12f   :  { %v1806_v23 = vpop.f32.mrf.mxu2 }
 0x130   :  { %v2000_v21 = vsel %vm1999_vm0, %v3431_v16, %v1998_v20 }
 0x131   :  { %v1819_v24 = vpop.f32.mrf.mxu3 }
 0x141   :  { %v1830_v25 = vpop.f32.mrf.mxu0 }
 0x143   :  { %v1843_v26 = vpop.f32.mrf.mxu1 }
 0x144   :  { %v5065_v52 = vadd.f32 %v1843_v26, %v1830_v25 }
 0x146   :  { %v1986_v56 = vadd.f32 %v1985_v53, %v5065_v52 }
 0x147   :  { %v1856_v27 = vpop.f32.mrf.mxu2 }
 0x149   :  { %v1869_v28 = vpop.f32.mrf.mxu3  ;;  %v1832_v29 = vpop.f32.mrf.mxu0 }
 0x14a   :  { %v5068_v54 = vadd.f32 %v1869_v28, %v1856_v27 }
 0x14b   :  { %v1845_v30 = vpop.f32.mrf.mxu1 }
 0x14c   :  { %v1987_v59 = vadd.f32 %v1986_v56, %v5068_v54 }
 0x14f   :  { %v1858_v31 = vpop.f32.mrf.mxu2 }
 0x151   :  { %v1871_v33 = vpop.f32.mrf.mxu3 }
 0x161   :  { %v1882_v34 = vpop.f32.mrf.mxu0 }
 0x163   :  { %v1895_v35 = vpop.f32.mrf.mxu1 }
 0x164   :  { %v5071_v57 = vadd.f32 %v1895_v35, %v1882_v34 }
 0x166   :  { %v1988_v61 = vadd.f32 %v1987_v59, %v5071_v57 }
 0x167   :  { %v1908_v36 = vpop.f32.mrf.mxu2 }
 0x169   :  { %v1921_v38 = vpop.f32.mrf.mxu3  ;;  %v1884_v39 = vpop.f32.mrf.mxu0 }
 0x16a   :  { %v5074_v60 = vadd.f32 %v1921_v38, %v1908_v36 }
 0x16b   :  { %v1897_v41 = vpop.f32.mrf.mxu1 }
 0x16c   :  { %v1989_v0 = vadd.f32 %v1988_v61, %v5074_v60 }
 0x16f   :  { %v1910_v43 = vpop.f32.mrf.mxu2 }
 0x171   :  { %v1923_v45 = vpop.f32.mrf.mxu3 }
 0x181   :  { %v1934_v55 = vpop.f32.mrf.mxu0 }
 0x183   :  { %v1947_v58 = vpop.f32.mrf.mxu1 }
 0x184   :  { %v5077_v62 = vadd.f32 %v1947_v58, %v1934_v55 }
 0x186   :  { %v1990_v10 = vadd.f32 %v1989_v0, %v5077_v62 }
 0x187   :  { %v1960_v63 = vpop.f32.mrf.mxu2 }
 0x189   :  { %v1973_v3 = vpop.f32.mrf.mxu3  ;;  %v1936_v5 = vpop.f32.mrf.mxu0 }
 0x18a   :  { %v5080_v6 = vadd.f32 %v1973_v3, %v1960_v63 }
 0x18b   :  { %v1949_v9 = vpop.f32.mrf.mxu1 }
 0x18c   :  { %v1991_v11 = vadd.f32 %v1990_v10, %v5080_v6 }
 0x18e   :  { %1992 = vadd.xlane.f32.xlu0 %v1991_v11 }
 0x18f   :  { %v1962_v13 = vpop.f32.mrf.mxu2 }
 0x191   :  { %v1975_v14 = vpop.f32.mrf.mxu3 }
 0x201   :  { %v1993_v23 = vpop.xlane.xlu0 %1992 }
 0x202   :  { %v5084_v24 = vmul.f32 %v2000_v21, %v1993_v23 }
 0x204   :  { %v2002_v25 = vsub.f32 %v4577_v49, %v5084_v24  ;;  %v2003_v26 = vsub.f32 %v4618_v8, %v5084_v24  ;;  %v2004_v27 = vsub.f32 %v4753_v22, %v5084_v24  ;;  %v2005_v30 = vsub.f32 %v4788_v40, %v5084_v24 }
 0x205   :  { %v2006_v31 = vsub.f32 %v4944_v2, %v5084_v24  ;;  %v2007_v35 = vsub.f32 %v4994_v32, %v5084_v24  ;;  %v2008_v38 = vsub.f32 %v5048_v7, %v5084_v24  ;;  %v2009_v42 = vsub.f32 %v5050_v12, %v5084_v24 }
 0x206   :  { %v2018_v28 = vmul.f32 %v2002_v25, %v2002_v25  ;;  %v2019_v29 = vmul.f32 %v2003_v26, %v2003_v26  ;;  %v2020_v33 = vmul.f32 %v2004_v27, %v2004_v27  ;;  %v2021_v36 = vmul.f32 %v2005_v30, %v2005_v30 }
 0x207   :  { %v2022_v39 = vmul.f32 %v2006_v31, %v2006_v31  ;;  %v2023_v43 = vmul.f32 %v2007_v35, %v2007_v35  ;;  %v2010_v45 = vsub.f32 %v5052_v18, %v5084_v24  ;;  %v2024_v46 = vmul.f32 %v2008_v38, %v2008_v38 }
 0x208   :  { %v2034_v34 = vadd.f32 %v2019_v29, %v2018_v28  ;;  %v2011_v48 = vsub.f32 %v5054_v4, %v5084_v24  ;;  %v2025_v50 = vmul.f32 %v2009_v42, %v2009_v42  ;;  %v2012_v53 = vsub.f32 %v5065_v52, %v5084_v24 }
 0x209   :  { %v2026_v55 = vmul.f32 %v2010_v45, %v2010_v45  ;;  %v2013_v58 = vsub.f32 %v5068_v54, %v5084_v24  ;;  %v2014_v63 = vsub.f32 %v5071_v57, %v5084_v24  ;;  %v2015_v5 = vsub.f32 %v5074_v60, %v5084_v24 }
 0x20a   :  { %v2035_v37 = vadd.f32 %v2034_v34, %v2020_v33  ;;  %v2027_v59 = vmul.f32 %v2011_v48, %v2011_v48  ;;  %v2028_v0 = vmul.f32 %v2012_v53, %v2012_v53  ;;  %v2016_v11 = vsub.f32 %v5077_v62, %v5084_v24 }
 0x20b   :  { %v2029_v9 = vmul.f32 %v2013_v58, %v2013_v58  ;;  %v2030_v13 = vmul.f32 %v2014_v63, %v2014_v63  ;;  %v2017_v15 = vsub.f32 %v5080_v6, %v5084_v24  ;;  %v2031_v16 = vmul.f32 %v2015_v5, %v2015_v5 }
 0x20c   :  { %v2036_v41 = vadd.f32 %v2035_v37, %v2021_v36  ;;  %v2032_v19 = vmul.f32 %v2016_v11, %v2016_v11  ;;  %v3435_v26 = vmov 0   ;;  %v2052_v36 = vld [vmem:[%s5191_s2] sm:$0xff] }
 0x20d   :  { %v2033_v20 = vmul.f32 %v2017_v15, %v2017_v15  ;;  %3428 = vset.pattern.permute.xlu1 %v3435_v26  ;;  %3429 = vset.pattern.permute.xlu0 %v3435_v26 }
 0x20e   :  { %v2037_v44 = vadd.f32 %v2036_v41, %v2022_v39  ;;  %v2065_v41 = vld [vmem:[%s5192_s3] sm:$0xff] }
 0x210   :  { %v2038_v47 = vadd.f32 %v2037_v44, %v2023_v43 }
 0x212   :  { %v2039_v51 = vadd.f32 %v2038_v47, %v2024_v46 }
 0x214   :  { %v2040_v56 = vadd.f32 %v2039_v51, %v2025_v50 }
 0x216   :  { %v2041_v61 = vadd.f32 %v2040_v56, %v2026_v55 }
 0x218   :  { %v2042_v3 = vadd.f32 %v2041_v61, %v2027_v59 }
 0x21a   :  { %v2043_v10 = vadd.f32 %v2042_v3, %v2028_v0 }
 0x21c   :  { %v2044_v14 = vadd.f32 %v2043_v10, %v2029_v9 }
 0x21e   :  { %v2045_v17 = vadd.f32 %v2044_v14, %v2030_v13 }
 0x220   :  { %v2046_v1 = vadd.f32 %v2045_v17, %v2031_v16 }
 0x222   :  { %v2047_v23 = vadd.f32 %v2046_v1, %v2032_v19 }
 0x224   :  { %v2048_v25 = vadd.f32 %v2047_v23, %v2033_v20 }
 0x226   :  { %2049 = vadd.xlane.f32.xlu0 %v2048_v25 }
 0x299   :  { %v2050_v27 = vpop.xlane.xlu0 %2049 }
 0x29a   :  { %v2051_v28 = vmul.f32 %v2050_v27, %v2000_v21 }
 0x29c   :  { %v2053_v29 = vadd.f32 1e-05, %v2051_v28 }
 0x29e   :  { %3432 = vrsqrt.f32 %v2053_v29  ;;  %vm2060_vm2 = vweird.f32 %v2053_v29 }
 0x2a4   :  { %v3433_v30 = vpop.eup %3432 }
 0x2a5   :  { %v2055_v31 = vmul.f32 %v3433_v30, %v2053_v29  ;;  %vm2061_vm1 = vweird.f32 %v3433_v30 }
 0x2a6   :  { %vm2062_vm3 = vmor %vm2060_vm2, %vm2061_vm1 }
 0x2a7   :  { %v2056_v33 = vmul.f32 %v3433_v30, %v2055_v31 }
 0x2a9   :  { %v2057_v34 = vmul.f32 0.5, %v2056_v33 }
 0x2ab   :  { %v2058_v35 = vsub.f32 1.5, %v2057_v34 }
 0x2ad   :  { %v2059_v37 = vmul.f32 %v3433_v30, %v2058_v35 }
 0x2af   :  { %v2063_v38 = vsel %vm2062_vm3, %v3433_v30, %v2059_v37 }
 0x2b0   :  { %v2064_v39 = vmul.f32 %v2063_v38, %v2052_v36 }
 0x2b2   :  { %2070 = vperm.xlu1 %3428, %v2064_v39   ;;  %v2066_v21 = vmul.f32 %v2064_v39, %v5084_v24 }
 0x2b4   :  { %v2067_v42 = vsub.f32 %v2065_v41, %v2066_v21 }
 0x2ba   :  { %2091 = vperm.xlu1 %3428, %v2067_v42  }
 0x324   :  { %v2071_v43 = vpop.permute.xlu1 %2070 }
 0x325   :  { %v2073_v44 = vmul.f32 %v2071_v43, %v4577_v49  ;;  %v2074_v45 = vmul.f32 %v2071_v43, %v4618_v8  ;;  %v2075_v46 = vmul.f32 %v2071_v43, %v4753_v22  ;;  %v2076_v47 = vmul.f32 %v2071_v43, %v4788_v40 }
 0x326   :  { %v2077_v50 = vmul.f32 %v2071_v43, %v4944_v2  ;;  %v2078_v55 = vmul.f32 %v2071_v43, %v4994_v32  ;;  %v2079_v58 = vmul.f32 %v2071_v43, %v5048_v7  ;;  %v2080_v49 = vmul.f32 %v2071_v43, %v5050_v12 }
 0x327   :  { %v2081_v8 = vmul.f32 %v2071_v43, %v5052_v18  ;;  %v2082_v2 = vmul.f32 %v2071_v43, %v5054_v4  ;;  %v2083_v9 = vmul.f32 %v2071_v43, %v5065_v52  ;;  %v2084_v7 = vmul.f32 %v2071_v43, %v5068_v54 }
 0x328   :  { %v2085_v4 = vmul.f32 %v2071_v43, %v5071_v57  ;;  %v2086_v52 = vmul.f32 %v2071_v43, %v5074_v60  ;;  %v2087_v54 = vmul.f32 %v2071_v43, %v5077_v62  ;;  %v2088_v57 = vmul.f32 %v2071_v43, %v5080_v6 }
 0x32c   :  { %v2092_v48 = vpop.permute.xlu1 %2091 }
 0x32d   :  { %v2094_v51 = vadd.f32 %v2092_v48, %v2073_v44  ;;  %v2095_v24 = vadd.f32 %v2092_v48, %v2074_v45  ;;  %v2096_v53 = vadd.f32 %v2092_v48, %v2075_v46  ;;  %v2097_v56 = vadd.f32 %v2092_v48, %v2076_v47 }
 0x32e   :  { %v2098_v59 = vadd.f32 %v2092_v48, %v2077_v50  ;;  %v2099_v61 = vadd.f32 %v2092_v48, %v2078_v55  ;;  %v2100_v22 = vadd.f32 %v2092_v48, %v2079_v58  ;;  %v2101_v3 = vadd.f32 %v2092_v48, %v2080_v49 }
 0x32f   :  { %v2110_v63 = vmax.f32 %v2094_v51, 0.0  ;;  %v2111_v40 = vmax.f32 %v2095_v24, 0.0  ;;  %v2112_v0 = vmax.f32 %v2096_v53, 0.0  ;;  %v2113_v5 = vmax.f32 %v2097_v56, 0.0 }
 0x330   :  { %v2102_v32 = vadd.f32 %v2092_v48, %v2081_v8  ;;  %v2114_v10 = vmax.f32 %v2098_v59, 0.0  ;;  %v2103_v12 = vadd.f32 %v2092_v48, %v2082_v2  ;;  %v2115_v18 = vmax.f32 %v2099_v61, 0.0 }
 0x331   :  { %2126 = vst [vmem:[%s5193_s4] sm:$0xff] %v2110_v63  ;;  %v2104_v11 = vadd.f32 %v2092_v48, %v2083_v9  ;;  %v2116_v13 = vmax.f32 %v2100_v22, 0.0  ;;  %v2105_v14 = vadd.f32 %v2092_v48, %v2084_v7  ;;  %v2117_v15 = vmax.f32 %v2101_v3, 0.0 }
 0x332   :  { %2127 = vst [vmem:[%s5193_s4 + $0x8] sm:$0xff] %v2111_v40  ;;  %v2106_v16 = vadd.f32 %v2092_v48, %v2085_v4  ;;  %v2118_v17 = vmax.f32 %v2102_v32, 0.0  ;;  %v2107_v19 = vadd.f32 %v2092_v48, %v2086_v52  ;;  %v2119_v1 = vmax.f32 %v2103_v12, 0.0 }
 0x333   :  { %2128 = vst [vmem:[%s5193_s4 + $0x10] sm:$0xff] %v2112_v0  ;;  %v2108_v60 = vadd.f32 %v2092_v48, %v2087_v54  ;;  %v2120_v20 = vmax.f32 %v2104_v11, 0.0  ;;  %v2109_v62 = vadd.f32 %v2092_v48, %v2088_v57  ;;  %v2121_v23 = vmax.f32 %v2105_v14, 0.0 }
 0x334   :  { %2129 = vst [vmem:[%s5193_s4 + $0x18] sm:$0xff] %v2113_v5  ;;  %v2122_v25 = vmax.f32 %v2106_v16, 0.0  ;;  %v2123_v6 = vmax.f32 %v2107_v19, 0.0 }
 0x335   :  { %2130 = vst [vmem:[%s5193_s4 + $0x20] sm:$0xff] %v2114_v10  ;;  %v2124_v26 = vmax.f32 %v2108_v60, 0.0  ;;  %v2125_v27 = vmax.f32 %v2109_v62, 0.0 }
 0x336   :  { %2131 = vst [vmem:[%s5193_s4 + $0x28] sm:$0xff] %v2115_v18 }
 0x337   :  { %2132 = vst [vmem:[%s5193_s4 + $0x30] sm:$0xff] %v2116_v13 }
 0x338   :  { %2133 = vst [vmem:[%s5193_s4 + $0x38] sm:$0xff] %v2117_v15 }
 0x339   :  { %2134 = vst [vmem:[%s5193_s4 + $0x40] sm:$0xff] %v2118_v17 }
 0x33a   :  { %2135 = vst [vmem:[%s5193_s4 + $0x48] sm:$0xff] %v2119_v1 }
 0x33b   :  { %2136 = vst [vmem:[%s5193_s4 + $0x50] sm:$0xff] %v2120_v20 }
 0x33c   :  { %2137 = vst [vmem:[%s5193_s4 + $0x58] sm:$0xff] %v2121_v23 }
 0x33d   :  { %2138 = vst [vmem:[%s5193_s4 + $0x60] sm:$0xff] %v2122_v25 }
 0x33e   :  { %2139 = vst [vmem:[%s5193_s4 + $0x68] sm:$0xff] %v2123_v6 }
 0x33f   :  { %2140 = vst [vmem:[%s5193_s4 + $0x70] sm:$0xff] %v2124_v26 }
 0x340   :  { %2141 = vst [vmem:[%s5193_s4 + $0x78] sm:$0xff] %v2125_v27 }

// kernel: generator_forward.9
= control target key start
LH: loop header
LB: loop body
LE: loop exit
PB: predicated region body
PF: predicated region fallthrough
CT: control target
= control target key end

     0   :  { %s4242_s9 = smov 0   ;;  %s4244_s10 = smov 0   ;;  %s5411_s0 = inlined_call_operand.vmem [shape: bf16[3,128], index: 0, kind: input, shape index: {}]   ;;  %s5412_s1 = inlined_call_operand.vmem [shape: bf16[128,8192], index: 1, kind: input, shape index: {}]   ;;  %s5413_s2 = inlined_call_operand.vmem [shape: f32[3,8192], index: 2, kind: output, shape index: {}]  }
   0x1   :  { %s4246_s11 = smov 0  }
   0x2 LB: > { %s2820_s12 = sadd.s32 4294967295, %s4225_s11   ;;  %s4259_s13 = sadd.s32 1, %s4225_s11   ;;  %s4225_s11 = sphi %s4246_s11, %s5416_s11   ;;  %s4221_s10 = sphi %s4244_s10, %s5415_s10   ;;  %s4217_s9 = sphi %s4242_s9, %s5414_s9  }
   0x3   : > { %s37_s14 = ssub.s32 %s4225_s11, %s4259_s13  ;;  %s40_s15 = sadd.s32 1, %s4221_s10 }
   0x4   : > { %p38_p0 = scmp.eq.s32.totalorder %s37_s14, 0  ;;  %p47_p1 = scmp.ne.s32.totalorder %s4221_s10, %s4217_s9 }
   0x5   : > { %p48_p2 = scmp.eq.s32.totalorder %s4225_s11, 0  ;;  %p2823_p4 = scmp.ge.s32.totalorder %s4225_s11, 2 }
   0x6   : > { %s4268_s16 = scalar_select %p38_p0, %s4221_s10, %s40_s15  }
   0x7   : > { %p49_p3 = por %p48_p2, %p47_p1  ;;  %102 = sbr.rel (%p2823_p4) target bundleno = 272 (0x110), region = 20 }
   0xc   : > { %105 = sbr.rel (!%p49_p3) target bundleno = 272 (0x110), region = 24  ;;  %s107_s17 = sand.u32 (%p49_p3), 1, %s4221_s10  }
   0xd   : > { %s3857_s18 = sshll.u32 (%p49_p3), %s4225_s11, 7  ;;  %s2824_s19 = sshll.u32 (%p49_p3), %s107_s17, 11 }
   0xe   : > { %s4276_s22 = scalar_lea.vmem (%p49_p3), %s5412_s1, %s3857_s18  ;;  %s4281_s23 = scalar_lea.vmem (%p49_p3), [#allocation2], %s2824_s19 }
   0xf   : > { %v125_v0 = vld [vmem:[%s4276_s22] sm:$0xff] (%p49_p3)  ;;  %v127_v1 = vld [vmem:[%s4276_s22 + $0x8] sm:$0xff] (%p49_p3)  ;;  %v129_v2 = vld [vmem:[%s4276_s22 + $0x10] sm:$0xff] (%p49_p3) }
  0x10   : > { %126 = vst [vmem:[%s4281_s23] sm:$0xff] (%p49_p3), %v125_v0  ;;  %v131_v3 = vld [vmem:[%s4276_s22 + $0x18] sm:$0xff] (%p49_p3)  ;;  %v133_v4 = vld [vmem:[%s4276_s22 + $0x20] sm:$0xff] (%p49_p3)  ;;  %v135_v5 = vld [vmem:[%s4276_s22 + $0x28] sm:$0xff] (%p49_p3) }
  0x11   : > { %128 = vst [vmem:[%s4281_s23 + $0x8] sm:$0xff] %v127_v1  ;;  %v137_v6 = vld [vmem:[%s4276_s22 + $0x30] sm:$0xff]  ;;  %v139_v7 = vld [vmem:[%s4276_s22 + $0x38] sm:$0xff]  ;;  %v141_v8 = vld [vmem:[%s4276_s22 + $0x40] sm:$0xff] }
  0x12   : > { %130 = vst [vmem:[%s4281_s23 + $0x10] sm:$0xff] %v129_v2  ;;  %v143_v9 = vld [vmem:[%s4276_s22 + $0x48] sm:$0xff]  ;;  %v145_v10 = vld [vmem:[%s4276_s22 + $0x50] sm:$0xff]  ;;  %v147_v11 = vld [vmem:[%s4276_s22 + $0x58] sm:$0xff] }
  0x13   : > { %132 = vst [vmem:[%s4281_s23 + $0x18] sm:$0xff] %v131_v3  ;;  %v149_v12 = vld [vmem:[%s4276_s22 + $0x60] sm:$0xff]  ;;  %v151_v13 = vld [vmem:[%s4276_s22 + $0x68] sm:$0xff]  ;;  %v153_v14 = vld [vmem:[%s4276_s22 + $0x70] sm:$0xff] }
  0x14   : > { %134 = vst [vmem:[%s4281_s23 + $0x20] sm:$0xff] %v133_v4  ;;  %v155_v15 = vld [vmem:[%s4276_s22 + $0x78] sm:$0xff]  ;;  %v157_v16 = vld [vmem:[%s4276_s22 + $0x100] sm:$0xff]  ;;  %v159_v17 = vld [vmem:[%s4276_s22 + $0x108] sm:$0xff] }
  0x15   : > { %136 = vst [vmem:[%s4281_s23 + $0x28] sm:$0xff] %v135_v5  ;;  %v161_v18 = vld [vmem:[%s4276_s22 + $0x110] sm:$0xff]  ;;  %v163_v19 = vld [vmem:[%s4276_s22 + $0x118] sm:$0xff]  ;;  %v165_v20 = vld [vmem:[%s4276_s22 + $0x120] sm:$0xff] }
  0x16   : > { %138 = vst [vmem:[%s4281_s23 + $0x30] sm:$0xff] %v137_v6  ;;  %v167_v21 = vld [vmem:[%s4276_s22 + $0x128] sm:$0xff]  ;;  %v169_v22 = vld [vmem:[%s4276_s22 + $0x130] sm:$0xff]  ;;  %v171_v23 = vld [vmem:[%s4276_s22 + $0x138] sm:$0xff] }
  0x17   : > { %140 = vst [vmem:[%s4281_s23 + $0x38] sm:$0xff] %v139_v7  ;;  %v173_v24 = vld [vmem:[%s4276_s22 + $0x140] sm:$0xff]  ;;  %v175_v25 = vld [vmem:[%s4276_s22 + $0x148] sm:$0xff]  ;;  %v177_v26 = vld [vmem:[%s4276_s22 + $0x150] sm:$0xff] }
  0x18   : > { %142 = vst [vmem:[%s4281_s23 + $0x40] sm:$0xff] %v141_v8  ;;  %v179_v27 = vld [vmem:[%s4276_s22 + $0x158] sm:$0xff]  ;;  %v181_v28 = vld [vmem:[%s4276_s22 + $0x160] sm:$0xff]  ;;  %v183_v29 = vld [vmem:[%s4276_s22 + $0x168] sm:$0xff] }
  0x19   : > { %144 = vst [vmem:[%s4281_s23 + $0x48] sm:$0xff] %v143_v9  ;;  %v185_v30 = vld [vmem:[%s4276_s22 + $0x170] sm:$0xff]  ;;  %v187_v31 = vld [vmem:[%s4276_s22 + $0x178] sm:$0xff]  ;;  %v189_v32 = vld [vmem:[%s4276_s22 + $0x200] sm:$0xff] }
  0x1a   : > { %146 = vst [vmem:[%s4281_s23 + $0x50] sm:$0xff] %v145_v10  ;;  %v191_v33 = vld [vmem:[%s4276_s22 + $0x208] sm:$0xff]  ;;  %v193_v34 = vld [vmem:[%s4276_s22 + $0x210] sm:$0xff]  ;;  %v195_v35 = vld [vmem:[%s4276_s22 + $0x218] sm:$0xff] }
  0x1b   : > { %148 = vst [vmem:[%s4281_s23 + $0x58] sm:$0xff] %v147_v11  ;;  %v197_v36 = vld [vmem:[%s4276_s22 + $0x220] sm:$0xff]  ;;  %v199_v37 = vld [vmem:[%s4276_s22 + $0x228] sm:$0xff]  ;;  %v201_v38 = vld [vmem:[%s4276_s22 + $0x230] sm:$0xff] }
  0x1c   : > { %150 = vst [vmem:[%s4281_s23 + $0x60] sm:$0xff] %v149_v12  ;;  %v203_v39 = vld [vmem:[%s4276_s22 + $0x238] sm:$0xff]  ;;  %v205_v40 = vld [vmem:[%s4276_s22 + $0x240] sm:$0xff]  ;;  %v207_v41 = vld [vmem:[%s4276_s22 + $0x248] sm:$0xff] }
  0x1d   : > { %152 = vst [vmem:[%s4281_s23 + $0x68] sm:$0xff] %v151_v13  ;;  %v209_v42 = vld [vmem:[%s4276_s22 + $0x250] sm:$0xff]  ;;  %v211_v43 = vld [vmem:[%s4276_s22 + $0x258] sm:$0xff]  ;;  %v213_v44 = vld [vmem:[%s4276_s22 + $0x260] sm:$0xff] }
  0x1e   : > { %154 = vst [vmem:[%s4281_s23 + $0x70] sm:$0xff] %v153_v14  ;;  %v215_v45 = vld [vmem:[%s4276_s22 + $0x268] sm:$0xff]  ;;  %v217_v46 = vld [vmem:[%s4276_s22 + $0x270] sm:$0xff]  ;;  %v219_v47 = vld [vmem:[%s4276_s22 + $0x278] sm:$0xff] }
  0x1f   : > { %156 = vst [vmem:[%s4281_s23 + $0x78] sm:$0xff] %v155_v15  ;;  %v221_v48 = vld [vmem:[%s4276_s22 + $0x300] sm:$0xff]  ;;  %v223_v49 = vld [vmem:[%s4276_s22 + $0x308] sm:$0xff]  ;;  %v225_v50 = vld [vmem:[%s4276_s22 + $0x310] sm:$0xff] }
  0x20   : > { %158 = vst [vmem:[%s4281_s23 + $0x80] sm:$0xff] %v157_v16  ;;  %v227_v51 = vld [vmem:[%s4276_s22 + $0x318] sm:$0xff]  ;;  %v229_v52 = vld [vmem:[%s4276_s22 + $0x320] sm:$0xff]  ;;  %v231_v53 = vld [vmem:[%s4276_s22 + $0x328] sm:$0xff] }
  0x21   : > { %160 = vst [vmem:[%s4281_s23 + $0x88] sm:$0xff] %v159_v17  ;;  %v233_v54 = vld [vmem:[%s4276_s22 + $0x330] sm:$0xff]  ;;  %v235_v55 = vld [vmem:[%s4276_s22 + $0x338] sm:$0xff]  ;;  %v237_v56 = vld [vmem:[%s4276_s22 + $0x340] sm:$0xff] }
  0x22   : > { %162 = vst [vmem:[%s4281_s23 + $0x90] sm:$0xff] %v161_v18  ;;  %v239_v57 = vld [vmem:[%s4276_s22 + $0x348] sm:$0xff]  ;;  %v241_v58 = vld [vmem:[%s4276_s22 + $0x350] sm:$0xff]  ;;  %v243_v59 = vld [vmem:[%s4276_s22 + $0x358] sm:$0xff] }
  0x23   : > { %164 = vst [vmem:[%s4281_s23 + $0x98] sm:$0xff] %v163_v19  ;;  %v245_v60 = vld [vmem:[%s4276_s22 + $0x360] sm:$0xff]  ;;  %v247_v61 = vld [vmem:[%s4276_s22 + $0x368] sm:$0xff]  ;;  %v249_v62 = vld [vmem:[%s4276_s22 + $0x370] sm:$0xff] }
  0x24   : > { %166 = vst [vmem:[%s4281_s23 + $0xa0] sm:$0xff] %v165_v20  ;;  %v251_v63 = vld [vmem:[%s4276_s22 + $0x378] sm:$0xff]  ;;  %v253_v0 = vld [vmem:[%s4276_s22 + $0x400] sm:$0xff]  ;;  %v255_v1 = vld [vmem:[%s4276_s22 + $0x408] sm:$0xff] }
  0x25   : > { %168 = vst [vmem:[%s4281_s23 + $0xa8] sm:$0xff] %v167_v21  ;;  %v257_v2 = vld [vmem:[%s4276_s22 + $0x410] sm:$0xff]  ;;  %v259_v3 = vld [vmem:[%s4276_s22 + $0x418] sm:$0xff]  ;;  %v261_v4 = vld [vmem:[%s4276_s22 + $0x420] sm:$0xff] }
  0x26   : > { %170 = vst [vmem:[%s4281_s23 + $0xb0] sm:$0xff] %v169_v22  ;;  %v263_v5 = vld [vmem:[%s4276_s22 + $0x428] sm:$0xff]  ;;  %v265_v6 = vld [vmem:[%s4276_s22 + $0x430] sm:$0xff]  ;;  %v267_v7 = vld [vmem:[%s4276_s22 + $0x438] sm:$0xff] }
  0x27   : > { %172 = vst [vmem:[%s4281_s23 + $0xb8] sm:$0xff] %v171_v23  ;;  %v269_v8 = vld [vmem:[%s4276_s22 + $0x440] sm:$0xff]  ;;  %v271_v9 = vld [vmem:[%s4276_s22 + $0x448] sm:$0xff]  ;;  %v273_v10 = vld [vmem:[%s4276_s22 + $0x450] sm:$0xff] }
  0x28   : > { %174 = vst [vmem:[%s4281_s23 + $0xc0] sm:$0xff] %v173_v24  ;;  %v275_v11 = vld [vmem:[%s4276_s22 + $0x458] sm:$0xff]  ;;  %v277_v12 = vld [vmem:[%s4276_s22 + $0x460] sm:$0xff]  ;;  %v279_v13 = vld [vmem:[%s4276_s22 + $0x468] sm:$0xff] }
  0x29   : > { %176 = vst [vmem:[%s4281_s23 + $0xc8] sm:$0xff] %v175_v25  ;;  %v281_v14 = vld [vmem:[%s4276_s22 + $0x470] sm:$0xff]  ;;  %v283_v15 = vld [vmem:[%s4276_s22 + $0x478] sm:$0xff]  ;;  %v285_v16 = vld [vmem:[%s4276_s22 + $0x500] sm:$0xff] }
  0x2a   : > { %178 = vst [vmem:[%s4281_s23 + $0xd0] sm:$0xff] %v177_v26  ;;  %v287_v17 = vld [vmem:[%s4276_s22 + $0x508] sm:$0xff]  ;;  %v289_v18 = vld [vmem:[%s4276_s22 + $0x510] sm:$0xff]  ;;  %v291_v19 = vld [vmem:[%s4276_s22 + $0x518] sm:$0xff] }
  0x2b   : > { %180 = vst [vmem:[%s4281_s23 + $0xd8] sm:$0xff] %v179_v27  ;;  %v293_v20 = vld [vmem:[%s4276_s22 + $0x520] sm:$0xff]  ;;  %v295_v21 = vld [vmem:[%s4276_s22 + $0x528] sm:$0xff]  ;;  %v297_v22 = vld [vmem:[%s4276_s22 + $0x530] sm:$0xff] }
  0x2c   : > { %182 = vst [vmem:[%s4281_s23 + $0xe0] sm:$0xff] %v181_v28  ;;  %v299_v23 = vld [vmem:[%s4276_s22 + $0x538] sm:$0xff]  ;;  %v301_v24 = vld [vmem:[%s4276_s22 + $0x540] sm:$0xff]  ;;  %v303_v25 = vld [vmem:[%s4276_s22 + $0x548] sm:$0xff] }
  0x2d   : > { %184 = vst [vmem:[%s4281_s23 + $0xe8] sm:$0xff] %v183_v29  ;;  %v305_v26 = vld [vmem:[%s4276_s22 + $0x550] sm:$0xff]  ;;  %v307_v27 = vld [vmem:[%s4276_s22 + $0x558] sm:$0xff]  ;;  %v309_v28 = vld [vmem:[%s4276_s22 + $0x560] sm:$0xff] }
  0x2e   : > { %186 = vst [vmem:[%s4281_s23 + $0xf0] sm:$0xff] %v185_v30  ;;  %v311_v29 = vld [vmem:[%s4276_s22 + $0x568] sm:$0xff]  ;;  %v313_v30 = vld [vmem:[%s4276_s22 + $0x570] sm:$0xff] }
  0x2f   : > { %188 = vst [vmem:[%s4281_s23 + $0xf8] sm:$0xff] %v187_v31  ;;  %v315_v31 = vld [vmem:[%s4276_s22 + $0x578] sm:$0xff] }
  0x30   : > { %190 = vst [vmem:[%s4281_s23 + $0x100] sm:$0xff] %v189_v32  ;;  %v317_v32 = vld [vmem:[%s4276_s22 + $0x600] sm:$0xff] }
  0x31   : > { %192 = vst [vmem:[%s4281_s23 + $0x108] sm:$0xff] %v191_v33  ;;  %v319_v33 = vld [vmem:[%s4276_s22 + $0x608] sm:$0xff] }
  0x32   : > { %194 = vst [vmem:[%s4281_s23 + $0x110] sm:$0xff] %v193_v34  ;;  %v321_v34 = vld [vmem:[%s4276_s22 + $0x610] sm:$0xff] }
  0x33   : > { %196 = vst [vmem:[%s4281_s23 + $0x118] sm:$0xff] %v195_v35  ;;  %v323_v35 = vld [vmem:[%s4276_s22 + $0x618] sm:$0xff] }
  0x34   : > { %198 = vst [vmem:[%s4281_s23 + $0x120] sm:$0xff] %v197_v36  ;;  %v325_v36 = vld [vmem:[%s4276_s22 + $0x620] sm:$0xff] }
  0x35   : > { %200 = vst [vmem:[%s4281_s23 + $0x128] sm:$0xff] %v199_v37  ;;  %v327_v37 = vld [vmem:[%s4276_s22 + $0x628] sm:$0xff] }
  0x36   : > { %202 = vst [vmem:[%s4281_s23 + $0x130] sm:$0xff] %v201_v38  ;;  %v329_v38 = vld [vmem:[%s4276_s22 + $0x630] sm:$0xff] }
  0x37   : > { %204 = vst [vmem:[%s4281_s23 + $0x138] sm:$0xff] %v203_v39  ;;  %v331_v39 = vld [vmem:[%s4276_s22 + $0x638] sm:$0xff] }
  0x38   : > { %206 = vst [vmem:[%s4281_s23 + $0x140] sm:$0xff] %v205_v40  ;;  %v333_v40 = vld [vmem:[%s4276_s22 + $0x640] sm:$0xff] }
  0x39   : > { %208 = vst [vmem:[%s4281_s23 + $0x148] sm:$0xff] %v207_v41  ;;  %v335_v41 = vld [vmem:[%s4276_s22 + $0x648] sm:$0xff] }
  0x3a   : > { %210 = vst [vmem:[%s4281_s23 + $0x150] sm:$0xff] %v209_v42  ;;  %v337_v42 = vld [vmem:[%s4276_s22 + $0x650] sm:$0xff] }
  0x3b   : > { %212 = vst [vmem:[%s4281_s23 + $0x158] sm:$0xff] %v211_v43  ;;  %v339_v43 = vld [vmem:[%s4276_s22 + $0x658] sm:$0xff] }
  0x3c   : > { %214 = vst [vmem:[%s4281_s23 + $0x160] sm:$0xff] %v213_v44  ;;  %v341_v44 = vld [vmem:[%s4276_s22 + $0x660] sm:$0xff] }
  0x3d   : > { %216 = vst [vmem:[%s4281_s23 + $0x168] sm:$0xff] %v215_v45  ;;  %v343_v45 = vld [vmem:[%s4276_s22 + $0x668] sm:$0xff] }
  0x3e   : > { %218 = vst [vmem:[%s4281_s23 + $0x170] sm:$0xff] %v217_v46  ;;  %v345_v46 = vld [vmem:[%s4276_s22 + $0x670] sm:$0xff] }
  0x3f   : > { %220 = vst [vmem:[%s4281_s23 + $0x178] sm:$0xff] %v219_v47  ;;  %v347_v47 = vld [vmem:[%s4276_s22 + $0x678] sm:$0xff] }
  0x40   : > { %222 = vst [vmem:[%s4281_s23 + $0x180] sm:$0xff] %v221_v48  ;;  %v349_v48 = vld [vmem:[%s4276_s22 + $0x700] sm:$0xff] }
  0x41   : > { %224 = vst [vmem:[%s4281_s23 + $0x188] sm:$0xff] %v223_v49  ;;  %v351_v49 = vld [vmem:[%s4276_s22 + $0x708] sm:$0xff] }
  0x42   : > { %226 = vst [vmem:[%s4281_s23 + $0x190] sm:$0xff] %v225_v50  ;;  %v353_v50 = vld [vmem:[%s4276_s22 + $0x710] sm:$0xff] }
  0x43   : > { %228 = vst [vmem:[%s4281_s23 + $0x198] sm:$0xff] %v227_v51  ;;  %v355_v51 = vld [vmem:[%s4276_s22 + $0x718] sm:$0xff] }
  0x44   : > { %230 = vst [vmem:[%s4281_s23 + $0x1a0] sm:$0xff] %v229_v52  ;;  %v357_v52 = vld [vmem:[%s4276_s22 + $0x720] sm:$0xff] }
  0x45   : > { %232 = vst [vmem:[%s4281_s23 + $0x1a8] sm:$0xff] %v231_v53  ;;  %v359_v53 = vld [vmem:[%s4276_s22 + $0x728] sm:$0xff] }
  0x46   : > { %234 = vst [vmem:[%s4281_s23 + $0x1b0] sm:$0xff] %v233_v54  ;;  %v361_v54 = vld [vmem:[%s4276_s22 + $0x730] sm:$0xff] }
  0x47   : > { %236 = vst [vmem:[%s4281_s23 + $0x1b8] sm:$0xff] %v235_v55  ;;  %v363_v55 = vld [vmem:[%s4276_s22 + $0x738] sm:$0xff] }
  0x48   : > { %238 = vst [vmem:[%s4281_s23 + $0x1c0] sm:$0xff] %v237_v56  ;;  %v365_v56 = vld [vmem:[%s4276_s22 + $0x740] sm:$0xff] }
  0x49   : > { %240 = vst [vmem:[%s4281_s23 + $0x1c8] sm:$0xff] %v239_v57  ;;  %v367_v57 = vld [vmem:[%s4276_s22 + $0x748] sm:$0xff] }
  0x4a   : > { %242 = vst [vmem:[%s4281_s23 + $0x1d0] sm:$0xff] %v241_v58  ;;  %v369_v58 = vld [vmem:[%s4276_s22 + $0x750] sm:$0xff] }
  0x4b   : > { %244 = vst [vmem:[%s4281_s23 + $0x1d8] sm:$0xff] %v243_v59  ;;  %v371_v59 = vld [vmem:[%s4276_s22 + $0x758] sm:$0xff] }
  0x4c   : > { %246 = vst [vmem:[%s4281_s23 + $0x1e0] sm:$0xff] %v245_v60  ;;  %v373_v60 = vld [vmem:[%s4276_s22 + $0x760] sm:$0xff] }
  0x4d   : > { %248 = vst [vmem:[%s4281_s23 + $0x1e8] sm:$0xff] %v247_v61  ;;  %v375_v61 = vld [vmem:[%s4276_s22 + $0x768] sm:$0xff] }
  0x4e   : > { %250 = vst [vmem:[%s4281_s23 + $0x1f0] sm:$0xff] %v249_v62  ;;  %v377_v62 = vld [vmem:[%s4276_s22 + $0x770] sm:$0xff] }
  0x4f   : > { %252 = vst [vmem:[%s4281_s23 + $0x1f8] sm:$0xff] %v251_v63  ;;  %v379_v63 = vld [vmem:[%s4276_s22 + $0x778] sm:$0xff] }
  0x50   : > { %254 = vst [vmem:[%s4281_s23 + $0x200] sm:$0xff] %v253_v0  ;;  %v381_v0 = vld [vmem:[%s4276_s22 + $0x800] sm:$0xff] }
  0x51   : > { %256 = vst [vmem:[%s4281_s23 + $0x208] sm:$0xff] %v255_v1  ;;  %v383_v1 = vld [vmem:[%s4276_s22 + $0x808] sm:$0xff] }
  0x52   : > { %258 = vst [vmem:[%s4281_s23 + $0x210] sm:$0xff] %v257_v2  ;;  %v385_v2 = vld [vmem:[%s4276_s22 + $0x810] sm:$0xff] }
  0x53   : > { %260 = vst [vmem:[%s4281_s23 + $0x218] sm:$0xff] %v259_v3  ;;  %v387_v3 = vld [vmem:[%s4276_s22 + $0x818] sm:$0xff] }
  0x54   : > { %262 = vst [vmem:[%s4281_s23 + $0x220] sm:$0xff] %v261_v4  ;;  %v389_v4 = vld [vmem:[%s4276_s22 + $0x820] sm:$0xff] }
  0x55   : > { %264 = vst [vmem:[%s4281_s23 + $0x228] sm:$0xff] %v263_v5  ;;  %v391_v5 = vld [vmem:[%s4276_s22 + $0x828] sm:$0xff] }
  0x56   : > { %266 = vst [vmem:[%s4281_s23 + $0x230] sm:$0xff] %v265_v6  ;;  %v393_v6 = vld [vmem:[%s4276_s22 + $0x830] sm:$0xff] }
  0x57   : > { %268 = vst [vmem:[%s4281_s23 + $0x238] sm:$0xff] %v267_v7  ;;  %v395_v7 = vld [vmem:[%s4276_s22 + $0x838] sm:$0xff] }
  0x58   : > { %270 = vst [vmem:[%s4281_s23 + $0x240] sm:$0xff] %v269_v8  ;;  %v397_v8 = vld [vmem:[%s4276_s22 + $0x840] sm:$0xff] }
  0x59   : > { %272 = vst [vmem:[%s4281_s23 + $0x248] sm:$0xff] %v271_v9  ;;  %v399_v9 = vld [vmem:[%s4276_s22 + $0x848] sm:$0xff] }
  0x5a   : > { %274 = vst [vmem:[%s4281_s23 + $0x250] sm:$0xff] %v273_v10  ;;  %v401_v10 = vld [vmem:[%s4276_s22 + $0x850] sm:$0xff] }
  0x5b   : > { %276 = vst [vmem:[%s4281_s23 + $0x258] sm:$0xff] %v275_v11  ;;  %v403_v11 = vld [vmem:[%s4276_s22 + $0x858] sm:$0xff] }
  0x5c   : > { %278 = vst [vmem:[%s4281_s23 + $0x260] sm:$0xff] %v277_v12  ;;  %v405_v12 = vld [vmem:[%s4276_s22 + $0x860] sm:$0xff] }
  0x5d   : > { %280 = vst [vmem:[%s4281_s23 + $0x268] sm:$0xff] %v279_v13  ;;  %v407_v13 = vld [vmem:[%s4276_s22 + $0x868] sm:$0xff] }
  0x5e   : > { %282 = vst [vmem:[%s4281_s23 + $0x270] sm:$0xff] %v281_v14  ;;  %v409_v14 = vld [vmem:[%s4276_s22 + $0x870] sm:$0xff] }
  0x5f   : > { %284 = vst [vmem:[%s4281_s23 + $0x278] sm:$0xff] %v283_v15  ;;  %v411_v15 = vld [vmem:[%s4276_s22 + $0x878] sm:$0xff] }
  0x60   : > { %286 = vst [vmem:[%s4281_s23 + $0x280] sm:$0xff] %v285_v16  ;;  %v413_v16 = vld [vmem:[%s4276_s22 + $0x900] sm:$0xff] }
  0x61   : > { %288 = vst [vmem:[%s4281_s23 + $0x288] sm:$0xff] %v287_v17  ;;  %v415_v17 = vld [vmem:[%s4276_s22 + $0x908] sm:$0xff] }
  0x62   : > { %290 = vst [vmem:[%s4281_s23 + $0x290] sm:$0xff] %v289_v18  ;;  %v417_v18 = vld [vmem:[%s4276_s22 + $0x910] sm:$0xff] }
  0x63   : > { %292 = vst [vmem:[%s4281_s23 + $0x298] sm:$0xff] %v291_v19  ;;  %v419_v19 = vld [vmem:[%s4276_s22 + $0x918] sm:$0xff] }
  0x64   : > { %294 = vst [vmem:[%s4281_s23 + $0x2a0] sm:$0xff] %v293_v20  ;;  %v421_v20 = vld [vmem:[%s4276_s22 + $0x920] sm:$0xff] }
  0x65   : > { %296 = vst [vmem:[%s4281_s23 + $0x2a8] sm:$0xff] %v295_v21  ;;  %v423_v21 = vld [vmem:[%s4276_s22 + $0x928] sm:$0xff] }
  0x66   : > { %298 = vst [vmem:[%s4281_s23 + $0x2b0] sm:$0xff] %v297_v22  ;;  %v425_v22 = vld [vmem:[%s4276_s22 + $0x930] sm:$0xff] }
  0x67   : > { %300 = vst [vmem:[%s4281_s23 + $0x2b8] sm:$0xff] %v299_v23  ;;  %v427_v23 = vld [vmem:[%s4276_s22 + $0x938] sm:$0xff] }
  0x68   : > { %302 = vst [vmem:[%s4281_s23 + $0x2c0] sm:$0xff] %v301_v24  ;;  %v429_v24 = vld [vmem:[%s4276_s22 + $0x940] sm:$0xff] }
  0x69   : > { %304 = vst [vmem:[%s4281_s23 + $0x2c8] sm:$0xff] %v303_v25  ;;  %v431_v25 = vld [vmem:[%s4276_s22 + $0x948] sm:$0xff] }
  0x6a   : > { %306 = vst [vmem:[%s4281_s23 + $0x2d0] sm:$0xff] %v305_v26  ;;  %v433_v26 = vld [vmem:[%s4276_s22 + $0x950] sm:$0xff] }
  0x6b   : > { %308 = vst [vmem:[%s4281_s23 + $0x2d8] sm:$0xff] %v307_v27  ;;  %v435_v27 = vld [vmem:[%s4276_s22 + $0x958] sm:$0xff] }
  0x6c   : > { %310 = vst [vmem:[%s4281_s23 + $0x2e0] sm:$0xff] %v309_v28  ;;  %v437_v28 = vld [vmem:[%s4276_s22 + $0x960] sm:$0xff] }
  0x6d   : > { %312 = vst [vmem:[%s4281_s23 + $0x2e8] sm:$0xff] %v311_v29  ;;  %v439_v29 = vld [vmem:[%s4276_s22 + $0x968] sm:$0xff] }
  0x6e   : > { %314 = vst [vmem:[%s4281_s23 + $0x2f0] sm:$0xff] %v313_v30  ;;  %v441_v30 = vld [vmem:[%s4276_s22 + $0x970] sm:$0xff] }
  0x6f   : > { %316 = vst [vmem:[%s4281_s23 + $0x2f8] sm:$0xff] %v315_v31  ;;  %v443_v31 = vld [vmem:[%s4276_s22 + $0x978] sm:$0xff] }
  0x70   : > { %318 = vst [vmem:[%s4281_s23 + $0x300] sm:$0xff] %v317_v32  ;;  %v445_v32 = vld [vmem:[%s4276_s22 + $0xa00] sm:$0xff] }
  0x71   : > { %320 = vst [vmem:[%s4281_s23 + $0x308] sm:$0xff] %v319_v33  ;;  %v447_v33 = vld [vmem:[%s4276_s22 + $0xa08] sm:$0xff] }
  0x72   : > { %322 = vst [vmem:[%s4281_s23 + $0x310] sm:$0xff] %v321_v34  ;;  %v449_v34 = vld [vmem:[%s4276_s22 + $0xa10] sm:$0xff] }
  0x73   : > { %324 = vst [vmem:[%s4281_s23 + $0x318] sm:$0xff] %v323_v35  ;;  %v451_v35 = vld [vmem:[%s4276_s22 + $0xa18] sm:$0xff] }
  0x74   : > { %326 = vst [vmem:[%s4281_s23 + $0x320] sm:$0xff] %v325_v36  ;;  %v453_v36 = vld [vmem:[%s4276_s22 + $0xa20] sm:$0xff] }
  0x75   : > { %328 = vst [vmem:[%s4281_s23 + $0x328] sm:$0xff] %v327_v37  ;;  %v455_v37 = vld [vmem:[%s4276_s22 + $0xa28] sm:$0xff] }
  0x76   : > { %330 = vst [vmem:[%s4281_s23 + $0x330] sm:$0xff] %v329_v38  ;;  %v457_v38 = vld [vmem:[%s4276_s22 + $0xa30] sm:$0xff] }
  0x77   : > { %332 = vst [vmem:[%s4281_s23 + $0x338] sm:$0xff] %v331_v39  ;;  %v459_v39 = vld [vmem:[%s4276_s22 + $0xa38] sm:$0xff] }
  0x78   : > { %334 = vst [vmem:[%s4281_s23 + $0x340] sm:$0xff] %v333_v40  ;;  %v461_v40 = vld [vmem:[%s4276_s22 + $0xa40] sm:$0xff] }
  0x79   : > { %336 = vst [vmem:[%s4281_s23 + $0x348] sm:$0xff] %v335_v41  ;;  %v463_v41 = vld [vmem:[%s4276_s22 + $0xa48] sm:$0xff] }
  0x7a   : > { %338 = vst [vmem:[%s4281_s23 + $0x350] sm:$0xff] %v337_v42  ;;  %v465_v42 = vld [vmem:[%s4276_s22 + $0xa50] sm:$0xff] }
  0x7b   : > { %340 = vst [vmem:[%s4281_s23 + $0x358] sm:$0xff] %v339_v43  ;;  %v467_v43 = vld [vmem:[%s4276_s22 + $0xa58] sm:$0xff] }
  0x7c   : > { %342 = vst [vmem:[%s4281_s23 + $0x360] sm:$0xff] %v341_v44  ;;  %v469_v44 = vld [vmem:[%s4276_s22 + $0xa60] sm:$0xff] }
  0x7d   : > { %344 = vst [vmem:[%s4281_s23 + $0x368] sm:$0xff] %v343_v45  ;;  %v471_v45 = vld [vmem:[%s4276_s22 + $0xa68] sm:$0xff] }
  0x7e   : > { %346 = vst [vmem:[%s4281_s23 + $0x370] sm:$0xff] %v345_v46  ;;  %v473_v46 = vld [vmem:[%s4276_s22 + $0xa70] sm:$0xff] }
  0x7f   : > { %348 = vst [vmem:[%s4281_s23 + $0x378] sm:$0xff] %v347_v47  ;;  %v475_v47 = vld [vmem:[%s4276_s22 + $0xa78] sm:$0xff] }
  0x80   : > { %350 = vst [vmem:[%s4281_s23 + $0x380] sm:$0xff] %v349_v48  ;;  %v477_v48 = vld [vmem:[%s4276_s22 + $0xb00] sm:$0xff] }
  0x81   : > { %352 = vst [vmem:[%s4281_s23 + $0x388] sm:$0xff] %v351_v49  ;;  %v479_v49 = vld [vmem:[%s4276_s22 + $0xb08] sm:$0xff] }
  0x82   : > { %354 = vst [vmem:[%s4281_s23 + $0x390] sm:$0xff] %v353_v50  ;;  %v481_v50 = vld [vmem:[%s4276_s22 + $0xb10] sm:$0xff] }
  0x83   : > { %356 = vst [vmem:[%s4281_s23 + $0x398] sm:$0xff] %v355_v51  ;;  %v483_v51 = vld [vmem:[%s4276_s22 + $0xb18] sm:$0xff] }
  0x84   : > { %358 = vst [vmem:[%s4281_s23 + $0x3a0] sm:$0xff] %v357_v52  ;;  %v485_v52 = vld [vmem:[%s4276_s22 + $0xb20] sm:$0xff] }
  0x85   : > { %360 = vst [vmem:[%s4281_s23 + $0x3a8] sm:$0xff] %v359_v53  ;;  %v487_v53 = vld [vmem:[%s4276_s22 + $0xb28] sm:$0xff] }
  0x86   : > { %362 = vst [vmem:[%s4281_s23 + $0x3b0] sm:$0xff] %v361_v54  ;;  %v489_v54 = vld [vmem:[%s4276_s22 + $0xb30] sm:$0xff] }
  0x87   : > { %364 = vst [vmem:[%s4281_s23 + $0x3b8] sm:$0xff] %v363_v55  ;;  %v491_v55 = vld [vmem:[%s4276_s22 + $0xb38] sm:$0xff] }
  0x88   : > { %366 = vst [vmem:[%s4281_s23 + $0x3c0] sm:$0xff] %v365_v56  ;;  %v493_v56 = vld [vmem:[%s4276_s22 + $0xb40] sm:$0xff] }
  0x89   : > { %368 = vst [vmem:[%s4281_s23 + $0x3c8] sm:$0xff] %v367_v57  ;;  %v495_v57 = vld [vmem:[%s4276_s22 + $0xb48] sm:$0xff] }
  0x8a   : > { %370 = vst [vmem:[%s4281_s23 + $0x3d0] sm:$0xff] %v369_v58  ;;  %v497_v58 = vld [vmem:[%s4276_s22 + $0xb50] sm:$0xff] }
  0x8b   : > { %372 = vst [vmem:[%s4281_s23 + $0x3d8] sm:$0xff] %v371_v59  ;;  %v499_v59 = vld [vmem:[%s4276_s22 + $0xb58] sm:$0xff] }
  0x8c   : > { %374 = vst [vmem:[%s4281_s23 + $0x3e0] sm:$0xff] %v373_v60  ;;  %v501_v60 = vld [vmem:[%s4276_s22 + $0xb60] sm:$0xff] }
  0x8d   : > { %376 = vst [vmem:[%s4281_s23 + $0x3e8] sm:$0xff] %v375_v61  ;;  %v503_v61 = vld [vmem:[%s4276_s22 + $0xb68] sm:$0xff] }
  0x8e   : > { %378 = vst [vmem:[%s4281_s23 + $0x3f0] sm:$0xff] %v377_v62  ;;  %v505_v62 = vld [vmem:[%s4276_s22 + $0xb70] sm:$0xff] }
  0x8f   : > { %380 = vst [vmem:[%s4281_s23 + $0x3f8] sm:$0xff] %v379_v63  ;;  %v507_v63 = vld [vmem:[%s4276_s22 + $0xb78] sm:$0xff] }
  0x90   : > { %382 = vst [vmem:[%s4281_s23 + $0x400] sm:$0xff] %v381_v0  ;;  %v509_v0 = vld [vmem:[%s4276_s22 + $0xc00] sm:$0xff] }
  0x91   : > { %384 = vst [vmem:[%s4281_s23 + $0x408] sm:$0xff] %v383_v1  ;;  %v511_v1 = vld [vmem:[%s4276_s22 + $0xc08] sm:$0xff] }
  0x92   : > { %386 = vst [vmem:[%s4281_s23 + $0x410] sm:$0xff] %v385_v2  ;;  %v513_v2 = vld [vmem:[%s4276_s22 + $0xc10] sm:$0xff] }
  0x93   : > { %388 = vst [vmem:[%s4281_s23 + $0x418] sm:$0xff] %v387_v3  ;;  %v515_v3 = vld [vmem:[%s4276_s22 + $0xc18] sm:$0xff] }
  0x94   : > { %390 = vst [vmem:[%s4281_s23 + $0x420] sm:$0xff] %v389_v4  ;;  %v517_v4 = vld [vmem:[%s4276_s22 + $0xc20] sm:$0xff] }
  0x95   : > { %392 = vst [vmem:[%s4281_s23 + $0x428] sm:$0xff] %v391_v5  ;;  %v519_v5 = vld [vmem:[%s4276_s22 + $0xc28] sm:$0xff] }
  0x96   : > { %394 = vst [vmem:[%s4281_s23 + $0x430] sm:$0xff] %v393_v6  ;;  %v521_v6 = vld [vmem:[%s4276_s22 + $0xc30] sm:$0xff] }
  0x97   : > { %396 = vst [vmem:[%s4281_s23 + $0x438] sm:$0xff] %v395_v7  ;;  %v523_v7 = vld [vmem:[%s4276_s22 + $0xc38] sm:$0xff] }
  0x98   : > { %398 = vst [vmem:[%s4281_s23 + $0x440] sm:$0xff] %v397_v8  ;;  %v525_v8 = vld [vmem:[%s4276_s22 + $0xc40] sm:$0xff] }
  0x99   : > { %400 = vst [vmem:[%s4281_s23 + $0x448] sm:$0xff] %v399_v9  ;;  %v527_v9 = vld [vmem:[%s4276_s22 + $0xc48] sm:$0xff] }
  0x9a   : > { %402 = vst [vmem:[%s4281_s23 + $0x450] sm:$0xff] %v401_v10  ;;  %v529_v10 = vld [vmem:[%s4276_s22 + $0xc50] sm:$0xff] }
  0x9b   : > { %404 = vst [vmem:[%s4281_s23 + $0x458] sm:$0xff] %v403_v11  ;;  %v531_v11 = vld [vmem:[%s4276_s22 + $0xc58] sm:$0xff] }
  0x9c   : > { %406 = vst [vmem:[%s4281_s23 + $0x460] sm:$0xff] %v405_v12  ;;  %v533_v12 = vld [vmem:[%s4276_s22 + $0xc60] sm:$0xff] }
  0x9d   : > { %408 = vst [vmem:[%s4281_s23 + $0x468] sm:$0xff] %v407_v13  ;;  %v535_v13 = vld [vmem:[%s4276_s22 + $0xc68] sm:$0xff] }
  0x9e   : > { %410 = vst [vmem:[%s4281_s23 + $0x470] sm:$0xff] %v409_v14  ;;  %v537_v14 = vld [vmem:[%s4276_s22 + $0xc70] sm:$0xff] }
  0x9f   : > { %412 = vst [vmem:[%s4281_s23 + $0x478] sm:$0xff] %v411_v15  ;;  %v539_v15 = vld [vmem:[%s4276_s22 + $0xc78] sm:$0xff] }
  0xa0   : > { %414 = vst [vmem:[%s4281_s23 + $0x480] sm:$0xff] %v413_v16  ;;  %v541_v16 = vld [vmem:[%s4276_s22 + $0xd00] sm:$0xff] }
  0xa1   : > { %416 = vst [vmem:[%s4281_s23 + $0x488] sm:$0xff] %v415_v17  ;;  %v543_v17 = vld [vmem:[%s4276_s22 + $0xd08] sm:$0xff] }
  0xa2   : > { %418 = vst [vmem:[%s4281_s23 + $0x490] sm:$0xff] %v417_v18  ;;  %v545_v18 = vld [vmem:[%s4276_s22 + $0xd10] sm:$0xff] }
  0xa3   : > { %420 = vst [vmem:[%s4281_s23 + $0x498] sm:$0xff] %v419_v19  ;;  %v547_v19 = vld [vmem:[%s4276_s22 + $0xd18] sm:$0xff] }
  0xa4   : > { %422 = vst [vmem:[%s4281_s23 + $0x4a0] sm:$0xff] %v421_v20  ;;  %v549_v20 = vld [vmem:[%s4276_s22 + $0xd20] sm:$0xff] }
  0xa5   : > { %424 = vst [vmem:[%s4281_s23 + $0x4a8] sm:$0xff] %v423_v21  ;;  %v551_v21 = vld [vmem:[%s4276_s22 + $0xd28] sm:$0xff] }
  0xa6   : > { %426 = vst [vmem:[%s4281_s23 + $0x4b0] sm:$0xff] %v425_v22  ;;  %v553_v22 = vld [vmem:[%s4276_s22 + $0xd30] sm:$0xff] }
  0xa7   : > { %428 = vst [vmem:[%s4281_s23 + $0x4b8] sm:$0xff] %v427_v23  ;;  %v555_v23 = vld [vmem:[%s4276_s22 + $0xd38] sm:$0xff] }
  0xa8   : > { %430 = vst [vmem:[%s4281_s23 + $0x4c0] sm:$0xff] %v429_v24  ;;  %v557_v24 = vld [vmem:[%s4276_s22 + $0xd40] sm:$0xff] }
  0xa9   : > { %432 = vst [vmem:[%s4281_s23 + $0x4c8] sm:$0xff] %v431_v25  ;;  %v559_v25 = vld [vmem:[%s4276_s22 + $0xd48] sm:$0xff] }
  0xaa   : > { %434 = vst [vmem:[%s4281_s23 + $0x4d0] sm:$0xff] %v433_v26  ;;  %v561_v26 = vld [vmem:[%s4276_s22 + $0xd50] sm:$0xff] }
  0xab   : > { %436 = vst [vmem:[%s4281_s23 + $0x4d8] sm:$0xff] %v435_v27  ;;  %v563_v27 = vld [vmem:[%s4276_s22 + $0xd58] sm:$0xff] }
  0xac   : > { %438 = vst [vmem:[%s4281_s23 + $0x4e0] sm:$0xff] %v437_v28  ;;  %v565_v28 = vld [vmem:[%s4276_s22 + $0xd60] sm:$0xff] }
  0xad   : > { %440 = vst [vmem:[%s4281_s23 + $0x4e8] sm:$0xff] %v439_v29  ;;  %v567_v29 = vld [vmem:[%s4276_s22 + $0xd68] sm:$0xff] }
  0xae   : > { %442 = vst [vmem:[%s4281_s23 + $0x4f0] sm:$0xff] %v441_v30  ;;  %v569_v30 = vld [vmem:[%s4276_s22 + $0xd70] sm:$0xff] }
  0xaf   : > { %444 = vst [vmem:[%s4281_s23 + $0x4f8] sm:$0xff] %v443_v31  ;;  %v571_v31 = vld [vmem:[%s4276_s22 + $0xd78] sm:$0xff] }
  0xb0   : > { %446 = vst [vmem:[%s4281_s23 + $0x500] sm:$0xff] %v445_v32  ;;  %v573_v32 = vld [vmem:[%s4276_s22 + $0xe00] sm:$0xff] }
  0xb1   : > { %448 = vst [vmem:[%s4281_s23 + $0x508] sm:$0xff] %v447_v33  ;;  %v575_v33 = vld [vmem:[%s4276_s22 + $0xe08] sm:$0xff] }
  0xb2   : > { %450 = vst [vmem:[%s4281_s23 + $0x510] sm:$0xff] %v449_v34  ;;  %v577_v34 = vld [vmem:[%s4276_s22 + $0xe10] sm:$0xff] }
  0xb3   : > { %452 = vst [vmem:[%s4281_s23 + $0x518] sm:$0xff] %v451_v35  ;;  %v579_v35 = vld [vmem:[%s4276_s22 + $0xe18] sm:$0xff] }
  0xb4   : > { %454 = vst [vmem:[%s4281_s23 + $0x520] sm:$0xff] %v453_v36  ;;  %v581_v36 = vld [vmem:[%s4276_s22 + $0xe20] sm:$0xff] }
  0xb5   : > { %456 = vst [vmem:[%s4281_s23 + $0x528] sm:$0xff] %v455_v37  ;;  %v583_v37 = vld [vmem:[%s4276_s22 + $0xe28] sm:$0xff] }
  0xb6   : > { %458 = vst [vmem:[%s4281_s23 + $0x530] sm:$0xff] %v457_v38  ;;  %v585_v38 = vld [vmem:[%s4276_s22 + $0xe30] sm:$0xff] }
  0xb7   : > { %460 = vst [vmem:[%s4281_s23 + $0x538] sm:$0xff] %v459_v39  ;;  %v587_v39 = vld [vmem:[%s4276_s22 + $0xe38] sm:$0xff] }
  0xb8   : > { %462 = vst [vmem:[%s4281_s23 + $0x540] sm:$0xff] %v461_v40  ;;  %v589_v40 = vld [vmem:[%s4276_s22 + $0xe40] sm:$0xff] }
  0xb9   : > { %464 = vst [vmem:[%s4281_s23 + $0x548] sm:$0xff] %v463_v41  ;;  %v591_v41 = vld [vmem:[%s4276_s22 + $0xe48] sm:$0xff] }
  0xba   : > { %466 = vst [vmem:[%s4281_s23 + $0x550] sm:$0xff] %v465_v42  ;;  %v593_v42 = vld [vmem:[%s4276_s22 + $0xe50] sm:$0xff] }
  0xbb   : > { %468 = vst [vmem:[%s4281_s23 + $0x558] sm:$0xff] %v467_v43  ;;  %v595_v43 = vld [vmem:[%s4276_s22 + $0xe58] sm:$0xff] }
  0xbc   : > { %470 = vst [vmem:[%s4281_s23 + $0x560] sm:$0xff] %v469_v44  ;;  %v597_v44 = vld [vmem:[%s4276_s22 + $0xe60] sm:$0xff] }
  0xbd   : > { %472 = vst [vmem:[%s4281_s23 + $0x568] sm:$0xff] %v471_v45  ;;  %v599_v45 = vld [vmem:[%s4276_s22 + $0xe68] sm:$0xff] }
  0xbe   : > { %474 = vst [vmem:[%s4281_s23 + $0x570] sm:$0xff] %v473_v46  ;;  %v601_v46 = vld [vmem:[%s4276_s22 + $0xe70] sm:$0xff] }
  0xbf   : > { %476 = vst [vmem:[%s4281_s23 + $0x578] sm:$0xff] %v475_v47  ;;  %v603_v47 = vld [vmem:[%s4276_s22 + $0xe78] sm:$0xff] }
  0xc0   : > { %478 = vst [vmem:[%s4281_s23 + $0x580] sm:$0xff] %v477_v48  ;;  %v605_v48 = vld [vmem:[%s4276_s22 + $0xf00] sm:$0xff] }
  0xc1   : > { %480 = vst [vmem:[%s4281_s23 + $0x588] sm:$0xff] %v479_v49  ;;  %v607_v49 = vld [vmem:[%s4276_s22 + $0xf08] sm:$0xff] }
  0xc2   : > { %482 = vst [vmem:[%s4281_s23 + $0x590] sm:$0xff] %v481_v50  ;;  %v609_v50 = vld [vmem:[%s4276_s22 + $0xf10] sm:$0xff] }
  0xc3   : > { %484 = vst [vmem:[%s4281_s23 + $0x598] sm:$0xff] %v483_v51  ;;  %v611_v51 = vld [vmem:[%s4276_s22 + $0xf18] sm:$0xff] }
  0xc4   : > { %486 = vst [vmem:[%s4281_s23 + $0x5a0] sm:$0xff] %v485_v52  ;;  %v613_v52 = vld [vmem:[%s4276_s22 + $0xf20] sm:$0xff] }
  0xc5   : > { %488 = vst [vmem:[%s4281_s23 + $0x5a8] sm:$0xff] %v487_v53  ;;  %v615_v53 = vld [vmem:[%s4276_s22 + $0xf28] sm:$0xff] }
  0xc6   : > { %490 = vst [vmem:[%s4281_s23 + $0x5b0] sm:$0xff] %v489_v54  ;;  %v617_v54 = vld [vmem:[%s4276_s22 + $0xf30] sm:$0xff] }
  0xc7   : > { %492 = vst [vmem:[%s4281_s23 + $0x5b8] sm:$0xff] %v491_v55  ;;  %v619_v55 = vld [vmem:[%s4276_s22 + $0xf38] sm:$0xff] }
  0xc8   : > { %494 = vst [vmem:[%s4281_s23 + $0x5c0] sm:$0xff] %v493_v56  ;;  %v621_v56 = vld [vmem:[%s4276_s22 + $0xf40] sm:$0xff] }
  0xc9   : > { %496 = vst [vmem:[%s4281_s23 + $0x5c8] sm:$0xff] %v495_v57  ;;  %v623_v57 = vld [vmem:[%s4276_s22 + $0xf48] sm:$0xff] }
  0xca   : > { %498 = vst [vmem:[%s4281_s23 + $0x5d0] sm:$0xff] %v497_v58  ;;  %v625_v58 = vld [vmem:[%s4276_s22 + $0xf50] sm:$0xff] }
  0xcb   : > { %500 = vst [vmem:[%s4281_s23 + $0x5d8] sm:$0xff] %v499_v59  ;;  %v627_v59 = vld [vmem:[%s4276_s22 + $0xf58] sm:$0xff] }
  0xcc   : > { %502 = vst [vmem:[%s4281_s23 + $0x5e0] sm:$0xff] %v501_v60  ;;  %v629_v60 = vld [vmem:[%s4276_s22 + $0xf60] sm:$0xff] }
  0xcd   : > { %504 = vst [vmem:[%s4281_s23 + $0x5e8] sm:$0xff] %v503_v61  ;;  %v631_v61 = vld [vmem:[%s4276_s22 + $0xf68] sm:$0xff] }
  0xce   : > { %506 = vst [vmem:[%s4281_s23 + $0x5f0] sm:$0xff] %v505_v62  ;;  %v633_v62 = vld [vmem:[%s4276_s22 + $0xf70] sm:$0xff] }
  0xcf   : > { %508 = vst [vmem:[%s4281_s23 + $0x5f8] sm:$0xff] %v507_v63  ;;  %v635_v63 = vld [vmem:[%s4276_s22 + $0xf78] sm:$0xff] }
  0xd0   : > { %510 = vst [vmem:[%s4281_s23 + $0x600] sm:$0xff] %v509_v0 }
  0xd1   : > { %512 = vst [vmem:[%s4281_s23 + $0x608] sm:$0xff] %v511_v1 }
  0xd2   : > { %514 = vst [vmem:[%s4281_s23 + $0x610] sm:$0xff] %v513_v2 }
  0xd3   : > { %516 = vst [vmem:[%s4281_s23 + $0x618] sm:$0xff] %v515_v3 }
  0xd4   : > { %518 = vst [vmem:[%s4281_s23 + $0x620] sm:$0xff] %v517_v4 }
  0xd5   : > { %520 = vst [vmem:[%s4281_s23 + $0x628] sm:$0xff] %v519_v5 }
  0xd6   : > { %522 = vst [vmem:[%s4281_s23 + $0x630] sm:$0xff] %v521_v6 }
  0xd7   : > { %524 = vst [vmem:[%s4281_s23 + $0x638] sm:$0xff] %v523_v7 }
  0xd8   : > { %526 = vst [vmem:[%s4281_s23 + $0x640] sm:$0xff] %v525_v8 }
  0xd9   : > { %528 = vst [vmem:[%s4281_s23 + $0x648] sm:$0xff] %v527_v9 }
  0xda   : > { %530 = vst [vmem:[%s4281_s23 + $0x650] sm:$0xff] %v529_v10 }
  0xdb   : > { %532 = vst [vmem:[%s4281_s23 + $0x658] sm:$0xff] %v531_v11 }
  0xdc   : > { %534 = vst [vmem:[%s4281_s23 + $0x660] sm:$0xff] %v533_v12 }
  0xdd   : > { %536 = vst [vmem:[%s4281_s23 + $0x668] sm:$0xff] %v535_v13 }
  0xde   : > { %538 = vst [vmem:[%s4281_s23 + $0x670] sm:$0xff] %v537_v14 }
  0xdf   : > { %540 = vst [vmem:[%s4281_s23 + $0x678] sm:$0xff] %v539_v15 }
  0xe0   : > { %542 = vst [vmem:[%s4281_s23 + $0x680] sm:$0xff] %v541_v16 }
  0xe1   : > { %544 = vst [vmem:[%s4281_s23 + $0x688] sm:$0xff] %v543_v17 }
  0xe2   : > { %546 = vst [vmem:[%s4281_s23 + $0x690] sm:$0xff] %v545_v18 }
  0xe3   : > { %548 = vst [vmem:[%s4281_s23 + $0x698] sm:$0xff] %v547_v19 }
  0xe4   : > { %550 = vst [vmem:[%s4281_s23 + $0x6a0] sm:$0xff] %v549_v20 }
  0xe5   : > { %552 = vst [vmem:[%s4281_s23 + $0x6a8] sm:$0xff] %v551_v21 }
  0xe6   : > { %554 = vst [vmem:[%s4281_s23 + $0x6b0] sm:$0xff] %v553_v22 }
  0xe7   : > { %556 = vst [vmem:[%s4281_s23 + $0x6b8] sm:$0xff] %v555_v23 }
  0xe8   : > { %558 = vst [vmem:[%s4281_s23 + $0x6c0] sm:$0xff] %v557_v24 }
  0xe9   : > { %560 = vst [vmem:[%s4281_s23 + $0x6c8] sm:$0xff] %v559_v25 }
  0xea   : > { %562 = vst [vmem:[%s4281_s23 + $0x6d0] sm:$0xff] %v561_v26 }
  0xeb   : > { %564 = vst [vmem:[%s4281_s23 + $0x6d8] sm:$0xff] %v563_v27 }
  0xec   : > { %566 = vst [vmem:[%s4281_s23 + $0x6e0] sm:$0xff] %v565_v28 }
  0xed   : > { %568 = vst [vmem:[%s4281_s23 + $0x6e8] sm:$0xff] %v567_v29 }
  0xee   : > { %570 = vst [vmem:[%s4281_s23 + $0x6f0] sm:$0xff] %v569_v30 }
  0xef   : > { %572 = vst [vmem:[%s4281_s23 + $0x6f8] sm:$0xff] %v571_v31 }
  0xf0   : > { %574 = vst [vmem:[%s4281_s23 + $0x700] sm:$0xff] %v573_v32 }
  0xf1   : > { %576 = vst [vmem:[%s4281_s23 + $0x708] sm:$0xff] %v575_v33 }
  0xf2   : > { %578 = vst [vmem:[%s4281_s23 + $0x710] sm:$0xff] %v577_v34 }
  0xf3   : > { %580 = vst [vmem:[%s4281_s23 + $0x718] sm:$0xff] %v579_v35 }
  0xf4   : > { %582 = vst [vmem:[%s4281_s23 + $0x720] sm:$0xff] %v581_v36 }
  0xf5   : > { %584 = vst [vmem:[%s4281_s23 + $0x728] sm:$0xff] %v583_v37 }
  0xf6   : > { %586 = vst [vmem:[%s4281_s23 + $0x730] sm:$0xff] %v585_v38 }
  0xf7   : > { %588 = vst [vmem:[%s4281_s23 + $0x738] sm:$0xff] %v587_v39 }
  0xf8   : > { %590 = vst [vmem:[%s4281_s23 + $0x740] sm:$0xff] %v589_v40 }
  0xf9   : > { %592 = vst [vmem:[%s4281_s23 + $0x748] sm:$0xff] %v591_v41 }
  0xfa   : > { %594 = vst [vmem:[%s4281_s23 + $0x750] sm:$0xff] %v593_v42 }
  0xfb   : > { %596 = vst [vmem:[%s4281_s23 + $0x758] sm:$0xff] %v595_v43 }
  0xfc   : > { %598 = vst [vmem:[%s4281_s23 + $0x760] sm:$0xff] %v597_v44 }
  0xfd   : > { %600 = vst [vmem:[%s4281_s23 + $0x768] sm:$0xff] %v599_v45 }
  0xfe   : > { %602 = vst [vmem:[%s4281_s23 + $0x770] sm:$0xff] %v601_v46 }
  0xff   : > { %604 = vst [vmem:[%s4281_s23 + $0x778] sm:$0xff] %v603_v47 }
 0x100   : > { %606 = vst [vmem:[%s4281_s23 + $0x780] sm:$0xff] %v605_v48 }
 0x101   : > { %608 = vst [vmem:[%s4281_s23 + $0x788] sm:$0xff] %v607_v49 }
 0x102   : > { %610 = vst [vmem:[%s4281_s23 + $0x790] sm:$0xff] %v609_v50 }
 0x103   : > { %612 = vst [vmem:[%s4281_s23 + $0x798] sm:$0xff] %v611_v51 }
 0x104   : > { %614 = vst [vmem:[%s4281_s23 + $0x7a0] sm:$0xff] %v613_v52 }
 0x105   : > { %616 = vst [vmem:[%s4281_s23 + $0x7a8] sm:$0xff] %v615_v53 }
 0x106   : > { %618 = vst [vmem:[%s4281_s23 + $0x7b0] sm:$0xff] %v617_v54 }
 0x107   : > { %620 = vst [vmem:[%s4281_s23 + $0x7b8] sm:$0xff] %v619_v55 }
 0x108   : > { %622 = vst [vmem:[%s4281_s23 + $0x7c0] sm:$0xff] %v621_v56 }
 0x109   : > { %624 = vst [vmem:[%s4281_s23 + $0x7c8] sm:$0xff] %v623_v57 }
 0x10a   : > { %626 = vst [vmem:[%s4281_s23 + $0x7d0] sm:$0xff] %v625_v58 }
 0x10b   : > { %628 = vst [vmem:[%s4281_s23 + $0x7d8] sm:$0xff] %v627_v59 }
 0x10c   : > { %630 = vst [vmem:[%s4281_s23 + $0x7e0] sm:$0xff] %v629_v60 }
 0x10d   : > { %632 = vst [vmem:[%s4281_s23 + $0x7e8] sm:$0xff] %v631_v61 }
 0x10e   : > { %634 = vst [vmem:[%s4281_s23 + $0x7f0] sm:$0xff] %v633_v62 }
 0x10f   : > { %636 = vst [vmem:[%s4281_s23 + $0x7f8] sm:$0xff] %v635_v63 }
 0x110 PF: > { %p2827_p5 = scmp.ge.s32.totalorder %s4225_s11, 1  ;;  %p641_p6 = scmp.lt.s32.totalorder %s4225_s11, 3 }
 0x112   : > { %p642_p7 = pnand %p2827_p5, %p641_p6 }
 0x113   : > { %s648_s24 = sand.u32 (!%p642_p7), 1, %s4217_s9   ;;  %s5172_s3 = sshll.u32 (!%p642_p7), %s2820_s12, 5 }
 0x114   : > { %645 = sbr.rel (%p642_p7) target bundleno = 685 (0x2ad), region = 47  ;;  %s2828_s25 = sshll.u32 (!%p642_p7), %s648_s24, 11 }
 0x115   : > { %s4795_s26 = scalar_lea.vmem (!%p642_p7), [#allocation2], %s2828_s25  ;;  %p671_p8 = scmp.lt.s32.totalorder (!%p642_p7), %s5172_s3, 63 }
 0x119   : > { %v3729_v0 = vld [vmem:[%s4795_s26 + $0x700] sm:$0xf]  ;;  %v4082_v2 = vld [vmem:[%s4795_s26 + $0x704] sm:$0xf]  ;;  %v3737_v5 = vld [vmem:[%s4795_s26 + $0x708] sm:$0xf] }
 0x11a   : > { %v4098_v1 = vld [vmem:[%s4795_s26 + $0x77c] sm:$0xf0]  ;;  %v3731_v4 = vld [vmem:[%s4795_s26 + $0x780] sm:$0xf0]  ;;  %v4099_v6 = vld [vmem:[%s4795_s26 + $0x784] sm:$0xf0] }
 0x11b   : > { %v3730_v3 = vor.u32 %v4098_v1, %v3729_v0  ;;  %v3734_v7 = vor.u32 %v4082_v2, %v3731_v4  ;;  %v3738_v8 = vor.u32 %v4099_v6, %v3737_v5  ;;  %v4083_v9 = vld [vmem:[%s4795_s26 + $0x70c] sm:$0xf]  ;;  %v3601_v11 = vld [vmem:[%s4795_s26 + $0x600] sm:$0xf]  ;;  %v4050_v14 = vld [vmem:[%s4795_s26 + $0x604] sm:$0xf] }
 0x11c   : > { %v3739_v10 = vld [vmem:[%s4795_s26 + $0x788] sm:$0xf0]  ;;  %v4066_v13 = vld [vmem:[%s4795_s26 + $0x67c] sm:$0xf0]  ;;  %v3603_v15 = vld [vmem:[%s4795_s26 + $0x680] sm:$0xf0] }
 0x11d   : > { %2213 = vmatpush.bf16.msra.mxu0 %v3730_v3  ;;  %v3742_v12 = vor.u32 %v4083_v9, %v3739_v10  ;;  %2226 = vmatpush.bf16.msra.mxu1 %v3734_v7  ;;  %v3602_v16 = vor.u32 %v4066_v13, %v3601_v11  ;;  %v3606_v17 = vor.u32 %v4050_v14, %v3603_v15  ;;  %v3609_v18 = vld [vmem:[%s4795_s26 + $0x608] sm:$0xf]  ;;  %v4051_v20 = vld [vmem:[%s4795_s26 + $0x60c] sm:$0xf]  ;;  %v3473_v23 = vld [vmem:[%s4795_s26 + $0x500] sm:$0xf] }
 0x11e   : > { %2239 = vmatpush.bf16.msra.mxu2 %v3738_v8  ;;  %v4067_v19 = vld [vmem:[%s4795_s26 + $0x684] sm:$0xf0]  ;;  %v3611_v22 = vld [vmem:[%s4795_s26 + $0x688] sm:$0xf0]  ;;  %v4034_v24 = vld [vmem:[%s4795_s26 + $0x57c] sm:$0xf0] }
 0x11f   : > { %2252 = vmatpush.bf16.msra.mxu3 %v3742_v12  ;;  %v3610_v21 = vor.u32 %v4067_v19, %v3609_v18  ;;  %v3614_v25 = vor.u32 %v4051_v20, %v3611_v22  ;;  %v4018_v26 = vld [vmem:[%s4795_s26 + $0x504] sm:$0xf]  ;;  %v3481_v28 = vld [vmem:[%s4795_s26 + $0x508] sm:$0xf]  ;;  %v3474_v29 = vor.u32 %v4034_v24, %v3473_v23  ;;  %v4019_v31 = vld [vmem:[%s4795_s26 + $0x50c] sm:$0xf] }
 0x120   : > { %v3475_v27 = vld [vmem:[%s4795_s26 + $0x580] sm:$0xf0]  ;;  %v4035_v30 = vld [vmem:[%s4795_s26 + $0x584] sm:$0xf0]  ;;  %v3483_v32 = vld [vmem:[%s4795_s26 + $0x588] sm:$0xf0] }
 0x121   : > { %2214 = vmatpush.bf16.msra.mxu0 %v3602_v16  ;;  %2227 = vmatpush.bf16.msra.mxu1 %v3606_v17  ;;  %v3478_v33 = vor.u32 %v4018_v26, %v3475_v27  ;;  %v3482_v34 = vor.u32 %v4035_v30, %v3481_v28  ;;  %v3345_v35 = vld [vmem:[%s4795_s26 + $0x400] sm:$0xf]  ;;  %v3986_v37 = vld [vmem:[%s4795_s26 + $0x404] sm:$0xf]  ;;  %v3486_v38 = vor.u32 %v4019_v31, %v3483_v32  ;;  %v3353_v40 = vld [vmem:[%s4795_s26 + $0x408] sm:$0xf] }
 0x122   : > { %2240 = vmatpush.bf16.msra.mxu2 %v3610_v21  ;;  %v4002_v36 = vld [vmem:[%s4795_s26 + $0x47c] sm:$0xf0]  ;;  %v3347_v39 = vld [vmem:[%s4795_s26 + $0x480] sm:$0xf0]  ;;  %v4003_v41 = vld [vmem:[%s4795_s26 + $0x484] sm:$0xf0] }
 0x123   : > { %2253 = vmatpush.bf16.msra.mxu3 %v3614_v25  ;;  %v3987_v42 = vld [vmem:[%s4795_s26 + $0x40c] sm:$0xf]  ;;  %v3346_v44 = vor.u32 %v4002_v36, %v3345_v35  ;;  %v3350_v45 = vor.u32 %v3986_v37, %v3347_v39  ;;  %v3354_v46 = vor.u32 %v4003_v41, %v3353_v40  ;;  %v3217_v47 = vld [vmem:[%s4795_s26 + $0x300] sm:$0xf]  ;;  %v3954_v49 = vld [vmem:[%s4795_s26 + $0x304] sm:$0xf] }
 0x124   : > { %v3355_v43 = vld [vmem:[%s4795_s26 + $0x488] sm:$0xf0]  ;;  %v3970_v48 = vld [vmem:[%s4795_s26 + $0x37c] sm:$0xf0]  ;;  %v3219_v51 = vld [vmem:[%s4795_s26 + $0x380] sm:$0xf0] }
 0x125   : > { %2215 = vmatpush.bf16.msra.mxu0 %v3474_v29  ;;  %2228 = vmatpush.bf16.msra.mxu1 %v3478_v33  ;;  %v3358_v50 = vor.u32 %v3987_v42, %v3355_v43  ;;  %v3225_v52 = vld [vmem:[%s4795_s26 + $0x308] sm:$0xf]  ;;  %v3955_v54 = vld [vmem:[%s4795_s26 + $0x30c] sm:$0xf]  ;;  %v3218_v56 = vor.u32 %v3970_v48, %v3217_v47  ;;  %v3222_v57 = vor.u32 %v3954_v49, %v3219_v51  ;;  %v3089_v59 = vld [vmem:[%s4795_s26 + $0x200] sm:$0xf] }
 0x126   : > { %2241 = vmatpush.bf16.msra.mxu2 %v3482_v34  ;;  %v3971_v53 = vld [vmem:[%s4795_s26 + $0x384] sm:$0xf0]  ;;  %v3227_v55 = vld [vmem:[%s4795_s26 + $0x388] sm:$0xf0]  ;;  %v3938_v60 = vld [vmem:[%s4795_s26 + $0x27c] sm:$0xf0] }
 0x127   : > { %2254 = vmatpush.bf16.msra.mxu3 %v3486_v38  ;;  %v3226_v58 = vor.u32 %v3971_v53, %v3225_v52  ;;  %v3922_v61 = vld [vmem:[%s4795_s26 + $0x204] sm:$0xf]  ;;  %v3230_v62 = vor.u32 %v3955_v54, %v3227_v55  ;;  %v3097_v0 = vld [vmem:[%s4795_s26 + $0x208] sm:$0xf]  ;;  %v3923_v2 = vld [vmem:[%s4795_s26 + $0x20c] sm:$0xf]  ;;  %v3090_v4 = vor.u32 %v3938_v60, %v3089_v59 }
 0x128   : > { %v3091_v63 = vld [vmem:[%s4795_s26 + $0x280] sm:$0xf0]  ;;  %v3939_v1 = vld [vmem:[%s4795_s26 + $0x284] sm:$0xf0]  ;;  %v3099_v3 = vld [vmem:[%s4795_s26 + $0x288] sm:$0xf0] }
 0x129   : > { %2216 = vmatpush.bf16.msra.mxu0 %v3346_v44  ;;  %2229 = vmatpush.bf16.msra.mxu1 %v3350_v45  ;;  %v3094_v5 = vor.u32 %v3922_v61, %v3091_v63  ;;  %v3098_v6 = vor.u32 %v3939_v1, %v3097_v0  ;;  %v2961_v7 = vld [vmem:[%s4795_s26 + $0x100] sm:$0xf]  ;;  %v3890_v9 = vld [vmem:[%s4795_s26 + $0x104] sm:$0xf]  ;;  %v3102_v10 = vor.u32 %v3923_v2, %v3099_v3  ;;  %v2969_v12 = vld [vmem:[%s4795_s26 + $0x108] sm:$0xf] }
 0x12a   : > { %2242 = vmatpush.bf16.msra.mxu2 %v3354_v46  ;;  %v3906_v8 = vld [vmem:[%s4795_s26 + $0x17c] sm:$0xf0]  ;;  %v2963_v11 = vld [vmem:[%s4795_s26 + $0x180] sm:$0xf0]  ;;  %v3907_v13 = vld [vmem:[%s4795_s26 + $0x184] sm:$0xf0] }
 0x12b   : > { %2255 = vmatpush.bf16.msra.mxu3 %v3358_v50  ;;  %v3891_v14 = vld [vmem:[%s4795_s26 + $0x10c] sm:$0xf]  ;;  %v2962_v16 = vor.u32 %v3906_v8, %v2961_v7  ;;  %v2833_v17 = vld [vmem:[%s4795_s26] sm:$0xf]  ;;  %v2966_v19 = vor.u32 %v3890_v9, %v2963_v11  ;;  %v2970_v20 = vor.u32 %v3907_v13, %v2969_v12  ;;  %v3858_v21 = vld [vmem:[%s4795_s26 + $0x4] sm:$0xf] }
 0x12c   : > { %v2971_v15 = vld [vmem:[%s4795_s26 + $0x188] sm:$0xf0]  ;;  %v3874_v18 = vld [vmem:[%s4795_s26 + $0x7c] sm:$0xf0]  ;;  %v2835_v22 = vld [vmem:[%s4795_s26 + $0x80] sm:$0xf0] }
 0x12d   : > { %2217 = vmatpush.bf16.msra.mxu0 %v3218_v56  ;;  %2230 = vmatpush.bf16.msra.mxu1 %v3222_v57  ;;  %v2841_v23 = vld [vmem:[%s4795_s26 + $0x8] sm:$0xf]  ;;  %v2974_v24 = vor.u32 %v3891_v14, %v2971_v15  ;;  %v3859_v26 = vld [vmem:[%s4795_s26 + $0xc] sm:$0xf]  ;;  %v3745_v28 = vld [vmem:[%s4795_s26 + $0x710] sm:$0xf]  ;;  %v2834_v31 = vor.u32 %v3874_v18, %v2833_v17  ;;  %v2838_v35 = vor.u32 %v3858_v21, %v2835_v22 }
 0x12e   : > { %2243 = vmatpush.bf16.msra.mxu2 %v3226_v58  ;;  %v3875_v25 = vld [vmem:[%s4795_s26 + $0x84] sm:$0xf0]  ;;  %v2843_v27 = vld [vmem:[%s4795_s26 + $0x88] sm:$0xf0]  ;;  %v4100_v29 = vld [vmem:[%s4795_s26 + $0x78c] sm:$0xf0] }
 0x12f   : > { %2256 = vmatpush.bf16.msra.mxu3 %v3230_v62  ;;  %v4084_v30 = vld [vmem:[%s4795_s26 + $0x714] sm:$0xf]  ;;  %v3753_v33 = vld [vmem:[%s4795_s26 + $0x718] sm:$0xf]  ;;  %v2842_v36 = vor.u32 %v3875_v25, %v2841_v23  ;;  %v4085_v37 = vld [vmem:[%s4795_s26 + $0x71c] sm:$0xf]  ;;  %v2846_v39 = vor.u32 %v3859_v26, %v2843_v27  ;;  %v3746_v40 = vor.u32 %v4100_v29, %v3745_v28 }
 0x130   : > { %v3747_v32 = vld [vmem:[%s4795_s26 + $0x790] sm:$0xf0]  ;;  %v4101_v34 = vld [vmem:[%s4795_s26 + $0x794] sm:$0xf0]  ;;  %v3755_v38 = vld [vmem:[%s4795_s26 + $0x798] sm:$0xf0] }
 0x131   : > { %2218 = vmatpush.bf16.msra.mxu0 %v3090_v4  ;;  %2231 = vmatpush.bf16.msra.mxu1 %v3094_v5  ;;  %v3750_v41 = vor.u32 %v4084_v30, %v3747_v32  ;;  %v3754_v42 = vor.u32 %v4101_v34, %v3753_v33  ;;  %v3617_v43 = vld [vmem:[%s4795_s26 + $0x610] sm:$0xf]  ;;  %v4052_v45 = vld [vmem:[%s4795_s26 + $0x614] sm:$0xf]  ;;  %v3758_v46 = vor.u32 %v4085_v37, %v3755_v38  ;;  %v3625_v48 = vld [vmem:[%s4795_s26 + $0x618] sm:$0xf] }
 0x132   : > { %2244 = vmatpush.bf16.msra.mxu2 %v3098_v6  ;;  %v4068_v44 = vld [vmem:[%s4795_s26 + $0x68c] sm:$0xf0]  ;;  %v3619_v47 = vld [vmem:[%s4795_s26 + $0x690] sm:$0xf0]  ;;  %v4069_v49 = vld [vmem:[%s4795_s26 + $0x694] sm:$0xf0] }
 0x133   : > { %2257 = vmatpush.bf16.msra.mxu3 %v3102_v10  ;;  %v4053_v50 = vld [vmem:[%s4795_s26 + $0x61c] sm:$0xf]  ;;  %v3618_v52 = vor.u32 %v4068_v44, %v3617_v43  ;;  %v3622_v53 = vor.u32 %v4052_v45, %v3619_v47  ;;  %v3626_v54 = vor.u32 %v4069_v49, %v3625_v48  ;;  %v3489_v55 = vld [vmem:[%s4795_s26 + $0x510] sm:$0xf]  ;;  %v4020_v57 = vld [vmem:[%s4795_s26 + $0x514] sm:$0xf] }
 0x134   : > { %v3627_v51 = vld [vmem:[%s4795_s26 + $0x698] sm:$0xf0]  ;;  %v4036_v56 = vld [vmem:[%s4795_s26 + $0x58c] sm:$0xf0]  ;;  %v3491_v59 = vld [vmem:[%s4795_s26 + $0x590] sm:$0xf0] }
 0x135   : > { %2219 = vmatpush.bf16.msra.mxu0 %v2962_v16  ;;  %2232 = vmatpush.bf16.msra.mxu1 %v2966_v19  ;;  %v3630_v58 = vor.u32 %v4053_v50, %v3627_v51  ;;  %v3497_v60 = vld [vmem:[%s4795_s26 + $0x518] sm:$0xf]  ;;  %v4021_v62 = vld [vmem:[%s4795_s26 + $0x51c] sm:$0xf]  ;;  %v3490_v0 = vor.u32 %v4036_v56, %v3489_v55  ;;  %v4888_v1 = vld [vmem:[%s5411_s0] sm:$0x3]  ;;  %v3494_v2 = vor.u32 %v4020_v57, %v3491_v59 }
 0x136   : > { %2245 = vmatpush.bf16.msra.mxu2 %v2970_v20  ;;  %v4037_v61 = vld [vmem:[%s4795_s26 + $0x594] sm:$0xf0]  ;;  %v3499_v63 = vld [vmem:[%s4795_s26 + $0x598] sm:$0xf0]  ;;  %v3361_v4 = vld [vmem:[%s4795_s26 + $0x410] sm:$0xf] }
 0x137   : > { %2258 = vmatpush.bf16.msra.mxu3 %v2974_v24  ;;  %v3498_v3 = vor.u32 %v4037_v61, %v3497_v60  ;;  %v4004_v5 = vld [vmem:[%s4795_s26 + $0x48c] sm:$0xf0]  ;;  %v3988_v6 = vld [vmem:[%s4795_s26 + $0x414] sm:$0xf]  ;;  %v3502_v7 = vor.u32 %v4021_v62, %v3499_v63  ;;  %v3369_v9 = vld [vmem:[%s4795_s26 + $0x418] sm:$0xf] }
 0x138   : > { %v3363_v8 = vld [vmem:[%s4795_s26 + $0x490] sm:$0xf0]  ;;  %v4005_v10 = vld [vmem:[%s4795_s26 + $0x494] sm:$0xf0]  ;;  %v3989_v11 = vld [vmem:[%s4795_s26 + $0x41c] sm:$0xf]  ;;  %v3362_v13 = vor.u32 %v4004_v5, %v3361_v4 }
 0x139   : > { %2220 = vmatpush.bf16.msra.mxu0 %v2834_v31  ;;  %2233 = vmatpush.bf16.msra.mxu1 %v2838_v35  ;;  %v3371_v12 = vld [vmem:[%s4795_s26 + $0x498] sm:$0xf0]  ;;  %v3366_v14 = vor.u32 %v3988_v6, %v3363_v8  ;;  %v3370_v15 = vor.u32 %v4005_v10, %v3369_v9  ;;  %v3233_v16 = vld [vmem:[%s4795_s26 + $0x310] sm:$0xf]  ;;  %v3956_v18 = vld [vmem:[%s4795_s26 + $0x314] sm:$0xf] }
 0x13a   : > { %2246 = vmatpush.bf16.msra.mxu2 %v2842_v36  ;;  %v3972_v17 = vld [vmem:[%s4795_s26 + $0x38c] sm:$0xf0]  ;;  %v3374_v19 = vor.u32 %v3989_v11, %v3371_v12  ;;  %v3235_v20 = vld [vmem:[%s4795_s26 + $0x390] sm:$0xf0]  ;;  %v3241_v21 = vld [vmem:[%s4795_s26 + $0x318] sm:$0xf] }
 0x13b   : > { %2259 = vmatpush.bf16.msra.mxu3 %v2846_v39  ;;  %v3973_v22 = vld [vmem:[%s4795_s26 + $0x394] sm:$0xf0]  ;;  %v3957_v23 = vld [vmem:[%s4795_s26 + $0x31c] sm:$0xf]  ;;  %v3234_v25 = vor.u32 %v3972_v17, %v3233_v16  ;;  %v3238_v26 = vor.u32 %v3956_v18, %v3235_v20  ;;  %v3105_v28 = vld [vmem:[%s4795_s26 + $0x210] sm:$0xf] }
 0x13c   : > { %2234 = vmatmul.bf16.vlgmr.msra.gmra.mxu1 %v4888_v1  ;;  %2221 = vmatmul.bf16.vlgmr.msra.gmra.mxu0 %v4888_v1  ;;  %v3243_v24 = vld [vmem:[%s4795_s26 + $0x398] sm:$0xf0]  ;;  %v3242_v27 = vor.u32 %v3973_v22, %v3241_v21  ;;  %v3940_v29 = vld [vmem:[%s4795_s26 + $0x28c] sm:$0xf0]  ;;  %v3924_v30 = vld [vmem:[%s4795_s26 + $0x214] sm:$0xf] }
 0x13d   : > { %2265 = vmatpush.bf16.msrb.mxu0 %v3746_v40  ;;  %2278 = vmatpush.bf16.msrb.mxu1 %v3750_v41  ;;  %v3246_v31 = vor.u32 %v3957_v23, %v3243_v24  ;;  %v3107_v32 = vld [vmem:[%s4795_s26 + $0x290] sm:$0xf0]  ;;  %v3113_v33 = vld [vmem:[%s4795_s26 + $0x218] sm:$0xf]  ;;  %v3925_v35 = vld [vmem:[%s4795_s26 + $0x21c] sm:$0xf]  ;;  %v3106_v37 = vor.u32 %v3940_v29, %v3105_v28 }
 0x13e   : > { %2291 = vmatpush.bf16.msrb.mxu2 %v3754_v42  ;;  %2260 = vmatmul.bf16.vlgmr.msra.gmra.mxu3 %v4888_v1  ;;  %v3941_v34 = vld [vmem:[%s4795_s26 + $0x294] sm:$0xf0]  ;;  %v3115_v36 = vld [vmem:[%s4795_s26 + $0x298] sm:$0xf0]  ;;  %v3110_v38 = vor.u32 %v3924_v30, %v3107_v32  ;;  %v2977_v40 = vld [vmem:[%s4795_s26 + $0x110] sm:$0xf] }
 0x13f   : > { %2304 = vmatpush.bf16.msrb.mxu3 %v3758_v46  ;;  %2247 = vmatmul.bf16.vlgmr.msra.gmra.mxu2 %v4888_v1  ;;  %v3114_v39 = vor.u32 %v3941_v34, %v3113_v33  ;;  %v3908_v41 = vld [vmem:[%s4795_s26 + $0x18c] sm:$0xf0]  ;;  %v3892_v42 = vld [vmem:[%s4795_s26 + $0x114] sm:$0xf]  ;;  %v3118_v43 = vor.u32 %v3925_v35, %v3115_v36  ;;  %v2985_v45 = vld [vmem:[%s4795_s26 + $0x118] sm:$0xf] }
 0x140   : > { %v2979_v44 = vld [vmem:[%s4795_s26 + $0x190] sm:$0xf0]  ;;  %v3909_v46 = vld [vmem:[%s4795_s26 + $0x194] sm:$0xf0]  ;;  %v3893_v47 = vld [vmem:[%s4795_s26 + $0x11c] sm:$0xf]  ;;  %v2978_v49 = vor.u32 %v3908_v41, %v2977_v40 }
 0x141   : > { %2266 = vmatpush.bf16.msrb.mxu0 %v3618_v52  ;;  %2279 = vmatpush.bf16.msrb.mxu1 %v3622_v53  ;;  %v2987_v48 = vld [vmem:[%s4795_s26 + $0x198] sm:$0xf0]  ;;  %v2849_v50 = vld [vmem:[%s4795_s26 + $0x10] sm:$0xf]  ;;  %v2982_v52 = vor.u32 %v3892_v42, %v2979_v44  ;;  %v2986_v53 = vor.u32 %v3909_v46, %v2985_v45  ;;  %v2851_v55 = vld [vmem:[%s4795_s26 + $0x90] sm:$0xf0] }
 0x142   : > { %2292 = vmatpush.bf16.msrb.mxu2 %v3626_v54  ;;  %v3876_v51 = vld [vmem:[%s4795_s26 + $0x8c] sm:$0xf0]  ;;  %v3860_v54 = vld [vmem:[%s4795_s26 + $0x14] sm:$0xf]  ;;  %v2857_v56 = vld [vmem:[%s4795_s26 + $0x18] sm:$0xf]  ;;  %v2990_v57 = vor.u32 %v3893_v47, %v2987_v48 }
 0x143   : > { %2305 = vmatpush.bf16.msrb.mxu3 %v3630_v58  ;;  %v3877_v58 = vld [vmem:[%s4795_s26 + $0x94] sm:$0xf0]  ;;  %v3861_v59 = vld [vmem:[%s4795_s26 + $0x1c] sm:$0xf]  ;;  %v3761_v61 = vld [vmem:[%s4795_s26 + $0x720] sm:$0xf]  ;;  %v2854_v5 = vor.u32 %v3860_v54, %v2851_v55 }
 0x144   : > { %v2859_v60 = vld [vmem:[%s4795_s26 + $0x98] sm:$0xf0]  ;;  %v4102_v62 = vld [vmem:[%s4795_s26 + $0x79c] sm:$0xf0]  ;;  %v4086_v63 = vld [vmem:[%s4795_s26 + $0x724] sm:$0xf]  ;;  %v2858_v6 = vor.u32 %v3877_v58, %v2857_v56 }
 0x145   : > { %2267 = vmatpush.bf16.msrb.mxu0 %v3490_v0  ;;  %2280 = vmatpush.bf16.msrb.mxu1 %v3494_v2  ;;  %v2850_v0 = vor.u32 %v3876_v51, %v2849_v50  ;;  %v3763_v2 = vld [vmem:[%s4795_s26 + $0x7a0] sm:$0xf0]  ;;  %v4103_v4 = vld [vmem:[%s4795_s26 + $0x7a4] sm:$0xf0]  ;;  %v3771_v8 = vld [vmem:[%s4795_s26 + $0x7a8] sm:$0xf0]  ;;  %v2862_v9 = vor.u32 %v3861_v59, %v2859_v60  ;;  %v3762_v10 = vor.u32 %v4102_v62, %v3761_v61 }
 0x146   : > { %2293 = vmatpush.bf16.msrb.mxu2 %v3498_v3  ;;  %v3769_v3 = vld [vmem:[%s4795_s26 + $0x728] sm:$0xf]  ;;  %v3766_v11 = vor.u32 %v4086_v63, %v3763_v2  ;;  %v3635_v17 = vld [vmem:[%s4795_s26 + $0x6a0] sm:$0xf0]  ;;  %v4055_v20 = vld [vmem:[%s4795_s26 + $0x62c] sm:$0xf] }
 0x147   : > { %2306 = vmatpush.bf16.msrb.mxu3 %v3502_v7  ;;  %v4087_v7 = vld [vmem:[%s4795_s26 + $0x72c] sm:$0xf]  ;;  %v3770_v12 = vor.u32 %v4103_v4, %v3769_v3  ;;  %v3641_v18 = vld [vmem:[%s4795_s26 + $0x628] sm:$0xf]  ;;  %v3507_v29 = vld [vmem:[%s4795_s26 + $0x5a0] sm:$0xf0] }
 0x148   : > { %v3774_v16 = vor.u32 %v4087_v7, %v3771_v8  ;;  %v3643_v21 = vld [vmem:[%s4795_s26 + $0x6a8] sm:$0xf0]  ;;  %v3513_v30 = vld [vmem:[%s4795_s26 + $0x528] sm:$0xf]  ;;  %v3379_v41 = vld [vmem:[%s4795_s26 + $0x4a0] sm:$0xf0] }
 0x149   : > { %2268 = vmatpush.bf16.msrb.mxu0 %v3362_v13  ;;  %2281 = vmatpush.bf16.msrb.mxu1 %v3366_v14  ;;  %v3633_v13 = vld [vmem:[%s4795_s26 + $0x620] sm:$0xf]  ;;  %v3646_v28 = vor.u32 %v4055_v20, %v3643_v21  ;;  %v4023_v32 = vld [vmem:[%s4795_s26 + $0x52c] sm:$0xf]  ;;  %v3385_v42 = vld [vmem:[%s4795_s26 + $0x428] sm:$0xf] }
 0x14a   : > { %2294 = vmatpush.bf16.msrb.mxu2 %v3370_v15  ;;  %v4070_v14 = vld [vmem:[%s4795_s26 + $0x69c] sm:$0xf0]  ;;  %v4054_v15 = vld [vmem:[%s4795_s26 + $0x624] sm:$0xf]  ;;  %v3515_v33 = vld [vmem:[%s4795_s26 + $0x5a8] sm:$0xf0] }
 0x14b   : > { %2307 = vmatpush.bf16.msrb.mxu3 %v3374_v19  ;;  %v4071_v19 = vld [vmem:[%s4795_s26 + $0x6a4] sm:$0xf0]  ;;  %v3634_v22 = vor.u32 %v4070_v14, %v3633_v13  ;;  %v3638_v23 = vor.u32 %v4054_v15, %v3635_v17  ;;  %v3518_v40 = vor.u32 %v4023_v32, %v3515_v33  ;;  %v3991_v44 = vld [vmem:[%s4795_s26 + $0x42c] sm:$0xf]  ;;  %v3974_v50 = vld [vmem:[%s4795_s26 + $0x39c] sm:$0xf0] }
 0x14c   : > { %v3642_v24 = vor.u32 %v4071_v19, %v3641_v18  ;;  %v3387_v45 = vld [vmem:[%s4795_s26 + $0x4a8] sm:$0xf0]  ;;  %v3958_v51 = vld [vmem:[%s4795_s26 + $0x324] sm:$0xf]  ;;  %v3257_v54 = vld [vmem:[%s4795_s26 + $0x328] sm:$0xf] }
 0x14d   : > { %2269 = vmatpush.bf16.msrb.mxu0 %v3234_v25  ;;  %2282 = vmatpush.bf16.msrb.mxu1 %v3238_v26  ;;  %v3505_v25 = vld [vmem:[%s4795_s26 + $0x520] sm:$0xf]  ;;  %v3975_v55 = vld [vmem:[%s4795_s26 + $0x3a4] sm:$0xf0]  ;;  %v3959_v56 = vld [vmem:[%s4795_s26 + $0x32c] sm:$0xf] }
 0x14e   : > { %2295 = vmatpush.bf16.msrb.mxu2 %v3242_v27  ;;  %v4038_v26 = vld [vmem:[%s4795_s26 + $0x59c] sm:$0xf0]  ;;  %v4022_v27 = vld [vmem:[%s4795_s26 + $0x524] sm:$0xf]  ;;  %v3258_v60 = vor.u32 %v3975_v55, %v3257_v54  ;;  %v3129_v3 = vld [vmem:[%s4795_s26 + $0x228] sm:$0xf] }
 0x14f   : > { %2308 = vmatpush.bf16.msrb.mxu3 %v3246_v31  ;;  %v4039_v31 = vld [vmem:[%s4795_s26 + $0x5a4] sm:$0xf0]  ;;  %v3506_v34 = vor.u32 %v4038_v26, %v3505_v25  ;;  %v3510_v35 = vor.u32 %v4022_v27, %v3507_v29  ;;  %v3121_v61 = vld [vmem:[%s4795_s26 + $0x220] sm:$0xf]  ;;  %v3926_v63 = vld [vmem:[%s4795_s26 + $0x224] sm:$0xf] }
 0x150   : > { %v3514_v36 = vor.u32 %v4039_v31, %v3513_v30  ;;  %v3942_v62 = vld [vmem:[%s4795_s26 + $0x29c] sm:$0xf0]  ;;  %v3123_v2 = vld [vmem:[%s4795_s26 + $0x2a0] sm:$0xf0]  ;;  %v3943_v4 = vld [vmem:[%s4795_s26 + $0x2a4] sm:$0xf0] }
 0x151   : > { %2270 = vmatpush.bf16.msrb.mxu0 %v3106_v37  ;;  %2283 = vmatpush.bf16.msrb.mxu1 %v3110_v38  ;;  %v3377_v37 = vld [vmem:[%s4795_s26 + $0x420] sm:$0xf]  ;;  %v3122_v7 = vor.u32 %v3942_v62, %v3121_v61  ;;  %v3126_v8 = vor.u32 %v3926_v63, %v3123_v2  ;;  %v2995_v14 = vld [vmem:[%s4795_s26 + $0x1a0] sm:$0xf0]  ;;  %v3001_v15 = vld [vmem:[%s4795_s26 + $0x128] sm:$0xf] }
 0x152   : > { %2296 = vmatpush.bf16.msrb.mxu2 %v3114_v39  ;;  %v4006_v38 = vld [vmem:[%s4795_s26 + $0x49c] sm:$0xf0]  ;;  %v3990_v39 = vld [vmem:[%s4795_s26 + $0x424] sm:$0xf]  ;;  %v3895_v17 = vld [vmem:[%s4795_s26 + $0x12c] sm:$0xf] }
 0x153   : > { %2309 = vmatpush.bf16.msrb.mxu3 %v3118_v43  ;;  %v4007_v43 = vld [vmem:[%s4795_s26 + $0x4a4] sm:$0xf0]  ;;  %v3378_v46 = vor.u32 %v4006_v38, %v3377_v37  ;;  %v3382_v47 = vor.u32 %v3990_v39, %v3379_v41  ;;  %v3003_v18 = vld [vmem:[%s4795_s26 + $0x1a8] sm:$0xf0]  ;;  %v2865_v20 = vld [vmem:[%s4795_s26 + $0x20] sm:$0xf] }
 0x154   : > { %v3386_v48 = vor.u32 %v4007_v43, %v3385_v42  ;;  %v3878_v21 = vld [vmem:[%s4795_s26 + $0x9c] sm:$0xf0]  ;;  %v2867_v25 = vld [vmem:[%s4795_s26 + $0xa0] sm:$0xf0]  ;;  %v2873_v26 = vld [vmem:[%s4795_s26 + $0x28] sm:$0xf]  ;;  %v3006_v27 = vor.u32 %v3895_v17, %v3003_v18 }
 0x155   : > { %2271 = vmatpush.bf16.msrb.mxu0 %v2978_v49  ;;  %2284 = vmatpush.bf16.msrb.mxu1 %v2982_v52  ;;  %v3249_v49 = vld [vmem:[%s4795_s26 + $0x320] sm:$0xf]  ;;  %v3390_v52 = vor.u32 %v3991_v44, %v3387_v45  ;;  %v3863_v29 = vld [vmem:[%s4795_s26 + $0x2c] sm:$0xf]  ;;  %v3777_v31 = vld [vmem:[%s4795_s26 + $0x730] sm:$0xf] }
 0x156   : > { %2297 = vmatpush.bf16.msrb.mxu2 %v2986_v53  ;;  %v3251_v53 = vld [vmem:[%s4795_s26 + $0x3a0] sm:$0xf0]  ;;  %v3250_v58 = vor.u32 %v3974_v50, %v3249_v49  ;;  %v2875_v30 = vld [vmem:[%s4795_s26 + $0xa8] sm:$0xf0]  ;;  %v4104_v32 = vld [vmem:[%s4795_s26 + $0x7ac] sm:$0xf0] }
 0x157   : > { %2310 = vmatpush.bf16.msrb.mxu3 %v2990_v57  ;;  %v3259_v57 = vld [vmem:[%s4795_s26 + $0x3a8] sm:$0xf0]  ;;  %v3254_v59 = vor.u32 %v3958_v51, %v3251_v53  ;;  %v4088_v33 = vld [vmem:[%s4795_s26 + $0x734] sm:$0xf]  ;;  %v4105_v37 = vld [vmem:[%s4795_s26 + $0x7b4] sm:$0xf0]  ;;  %v2878_v42 = vor.u32 %v3863_v29, %v2875_v30  ;;  %v3778_v43 = vor.u32 %v4104_v32, %v3777_v31 }
 0x158   : > { %v3787_v41 = vld [vmem:[%s4795_s26 + $0x7b8] sm:$0xf0]  ;;  %v3651_v50 = vld [vmem:[%s4795_s26 + $0x6b0] sm:$0xf0]  ;;  %v3657_v51 = vld [vmem:[%s4795_s26 + $0x638] sm:$0xf] }
 0x159   : > { %2272 = vmatpush.bf16.msrb.mxu0 %v2850_v0  ;;  %2285 = vmatpush.bf16.msrb.mxu1 %v2854_v5  ;;  %v3262_v0 = vor.u32 %v3959_v56, %v3259_v57  ;;  %v3927_v5 = vld [vmem:[%s4795_s26 + $0x22c] sm:$0xf]  ;;  %v4057_v53 = vld [vmem:[%s4795_s26 + $0x63c] sm:$0xf]  ;;  %v3523_v62 = vld [vmem:[%s4795_s26 + $0x5b0] sm:$0xf0] }
 0x15a   : > { %2298 = vmatpush.bf16.msrb.mxu2 %v2858_v6  ;;  %v3131_v6 = vld [vmem:[%s4795_s26 + $0x2a8] sm:$0xf0]  ;;  %v3659_v54 = vld [vmem:[%s4795_s26 + $0x6b8] sm:$0xf0]  ;;  %v3529_v63 = vld [vmem:[%s4795_s26 + $0x538] sm:$0xf] }
 0x15b   : > { %2311 = vmatpush.bf16.msrb.mxu3 %v2862_v9  ;;  %v3130_v9 = vor.u32 %v3943_v4, %v3129_v3  ;;  %v3134_v13 = vor.u32 %v3927_v5, %v3131_v6  ;;  %v3662_v61 = vor.u32 %v4057_v53, %v3659_v54  ;;  %v4025_v2 = vld [vmem:[%s4795_s26 + $0x53c] sm:$0xf]  ;;  %v3137_v31 = vld [vmem:[%s4795_s26 + $0x230] sm:$0xf]  ;;  %s5418_s3 = smov (!%p671_p8, %s5172_s3), 63  ;;  %vm2709_vm0 = vcmask 1043456  }
 0x15c   : > { %2286 = vmatmul.bf16.vlgmr.msrb.gmra.mxu1 %v4888_v1  ;;  %2273 = vmatmul.bf16.vlgmr.msrb.gmra.mxu0 %v4888_v1  ;;  %v3531_v3 = vld [vmem:[%s4795_s26 + $0x5b8] sm:$0xf0]  ;;  %v3944_v32 = vld [vmem:[%s4795_s26 + $0x2ac] sm:$0xf0]  ;;  %s2830_s4 = sshll.u32 %s5418_s3, 2 }
 0x15d   : > { %2317 = vmatpush.bf16.msra.mxu0 %v3762_v10  ;;  %2330 = vmatpush.bf16.msra.mxu1 %v3766_v11  ;;  %v2993_v10 = vld [vmem:[%s4795_s26 + $0x120] sm:$0xf]  ;;  %v2881_v53 = vld [vmem:[%s4795_s26 + $0x30] sm:$0xf]  ;;  %s5225_s7 = scalar_lea.vmem %s5413_s2, %s2830_s4 }
 0x15e   : > { %2343 = vmatpush.bf16.msra.mxu2 %v3770_v12  ;;  %2312 = vmatmul.bf16.vlgmr.msrb.gmra.mxu3 %v4888_v1  ;;  %v3910_v11 = vld [vmem:[%s4795_s26 + $0x19c] sm:$0xf0]  ;;  %v3894_v12 = vld [vmem:[%s4795_s26 + $0x124] sm:$0xf]  ;;  %v3880_v54 = vld [vmem:[%s4795_s26 + $0xac] sm:$0xf0] }
 0x15f   : > { %2356 = vmatpush.bf16.msra.mxu3 %v3774_v16  ;;  %2299 = vmatmul.bf16.vlgmr.msrb.gmra.mxu2 %v4888_v1  ;;  %v3911_v16 = vld [vmem:[%s4795_s26 + $0x1a4] sm:$0xf0]  ;;  %v2994_v19 = vor.u32 %v3910_v11, %v2993_v10  ;;  %v3534_v10 = vor.u32 %v4025_v2, %v3531_v3  ;;  %v3395_v11 = vld [vmem:[%s4795_s26 + $0x4b0] sm:$0xf0]  ;;  %v4106_v2 = vld [vmem:[%s4795_s26 + $0x7bc] sm:$0xf0] }
 0x160   : > { %v4090_v3 = vld [vmem:[%s4795_s26 + $0x744] sm:$0xf] }
 0x161   : > { %2318 = vmatpush.bf16.msra.mxu0 %v3634_v22  ;;  %2331 = vmatpush.bf16.msra.mxu1 %v3638_v23  ;;  %v2998_v22 = vor.u32 %v3894_v12, %v2995_v14  ;;  %v3002_v23 = vor.u32 %v3911_v16, %v3001_v15  ;;  %v3401_v12 = vld [vmem:[%s4795_s26 + $0x438] sm:$0xf]  ;;  %v3993_v14 = vld [vmem:[%s4795_s26 + $0x43c] sm:$0xf] }
 0x162   : > { %2344 = vmatpush.bf16.msra.mxu2 %v3642_v24  ;;  %v3862_v24 = vld [vmem:[%s4795_s26 + $0x24] sm:$0xf]  ;;  %v3403_v15 = vld [vmem:[%s4795_s26 + $0x4b8] sm:$0xf0] }
 0x163   : > { %2357 = vmatpush.bf16.msra.mxu3 %v3646_v28  ;;  %v3879_v28 = vld [vmem:[%s4795_s26 + $0xa4] sm:$0xf0]  ;;  %v2870_v38 = vor.u32 %v3862_v24, %v2867_v25  ;;  %v3273_v24 = vld [vmem:[%s4795_s26 + $0x338] sm:$0xf] }
 0x164   : > { %v2874_v39 = vor.u32 %v3879_v28, %v2873_v26  ;;  %v3977_v25 = vld [vmem:[%s4795_s26 + $0x3b4] sm:$0xf0]  ;;  %v3961_v26 = vld [vmem:[%s4795_s26 + $0x33c] sm:$0xf] }
 0x165   : > { %2319 = vmatpush.bf16.msra.mxu0 %v3506_v34  ;;  %2332 = vmatpush.bf16.msra.mxu1 %v3510_v35  ;;  %v2866_v34 = vor.u32 %v3878_v21, %v2865_v20  ;;  %v3779_v35 = vld [vmem:[%s4795_s26 + $0x7b0] sm:$0xf0]  ;;  %v3976_v20 = vld [vmem:[%s4795_s26 + $0x3ac] sm:$0xf0]  ;;  %v3274_v30 = vor.u32 %v3977_v25, %v3273_v24  ;;  %v3675_v24 = vld [vmem:[%s4795_s26 + $0x6c8] sm:$0xf0] }
 0x166   : > { %2345 = vmatpush.bf16.msra.mxu2 %v3514_v36  ;;  %v3785_v36 = vld [vmem:[%s4795_s26 + $0x738] sm:$0xf]  ;;  %v3782_v44 = vor.u32 %v4088_v33, %v3779_v35  ;;  %v3960_v21 = vld [vmem:[%s4795_s26 + $0x334] sm:$0xf] }
 0x167   : > { %2358 = vmatpush.bf16.msra.mxu3 %v3518_v40  ;;  %v4089_v40 = vld [vmem:[%s4795_s26 + $0x73c] sm:$0xf]  ;;  %v3786_v45 = vor.u32 %v4105_v37, %v3785_v36  ;;  %v3928_v33 = vld [vmem:[%s4795_s26 + $0x234] sm:$0xf]  ;;  %v3145_v36 = vld [vmem:[%s4795_s26 + $0x238] sm:$0xf] }
 0x168   : > { %v3790_v49 = vor.u32 %v4089_v40, %v3787_v41  ;;  %v3139_v35 = vld [vmem:[%s4795_s26 + $0x2b0] sm:$0xf0]  ;;  %v3945_v37 = vld [vmem:[%s4795_s26 + $0x2b4] sm:$0xf0]  ;;  %v3138_v40 = vor.u32 %v3944_v32, %v3137_v31  ;;  %v3539_v32 = vld [vmem:[%s4795_s26 + $0x5c0] sm:$0xf0] }
 0x169   : > { %2320 = vmatpush.bf16.msra.mxu0 %v3378_v46  ;;  %2333 = vmatpush.bf16.msra.mxu1 %v3382_v47  ;;  %v3649_v46 = vld [vmem:[%s4795_s26 + $0x630] sm:$0xf]  ;;  %v3142_v41 = vor.u32 %v3928_v33, %v3139_v35  ;;  %v3545_v33 = vld [vmem:[%s4795_s26 + $0x548] sm:$0xf]  ;;  %v4027_v35 = vld [vmem:[%s4795_s26 + $0x54c] sm:$0xf] }
 0x16a   : > { %2346 = vmatpush.bf16.msra.mxu2 %v3386_v48  ;;  %v4072_v47 = vld [vmem:[%s4795_s26 + $0x6ac] sm:$0xf0]  ;;  %v4056_v48 = vld [vmem:[%s4795_s26 + $0x634] sm:$0xf] }
 0x16b   : > { %2359 = vmatpush.bf16.msra.mxu3 %v3390_v52  ;;  %v4073_v52 = vld [vmem:[%s4795_s26 + $0x6b4] sm:$0xf0]  ;;  %v3650_v55 = vor.u32 %v4072_v47, %v3649_v46  ;;  %v3654_v56 = vor.u32 %v4056_v48, %v3651_v50  ;;  %v3011_v47 = vld [vmem:[%s4795_s26 + $0x1b0] sm:$0xf0]  ;;  %v3897_v50 = vld [vmem:[%s4795_s26 + $0x13c] sm:$0xf] }
 0x16c   : > { %v3658_v57 = vor.u32 %v4073_v52, %v3657_v51  ;;  %v3017_v48 = vld [vmem:[%s4795_s26 + $0x138] sm:$0xf]  ;;  %v3019_v51 = vld [vmem:[%s4795_s26 + $0x1b8] sm:$0xf0] }
 0x16d   : > { %2321 = vmatpush.bf16.msra.mxu0 %v3250_v58  ;;  %2334 = vmatpush.bf16.msra.mxu1 %v3254_v59  ;;  %v3521_v58 = vld [vmem:[%s4795_s26 + $0x530] sm:$0xf] }
 0x16e   : > { %2347 = vmatpush.bf16.msra.mxu2 %v3258_v60  ;;  %v4040_v59 = vld [vmem:[%s4795_s26 + $0x5ac] sm:$0xf0]  ;;  %v4024_v60 = vld [vmem:[%s4795_s26 + $0x534] sm:$0xf] }
 0x16f   : > { %2360 = vmatpush.bf16.msra.mxu3 %v3262_v0  ;;  %v4041_v0 = vld [vmem:[%s4795_s26 + $0x5b4] sm:$0xf0]  ;;  %v3522_v4 = vor.u32 %v4040_v59, %v3521_v58  ;;  %v3526_v5 = vor.u32 %v4024_v60, %v3523_v62  ;;  %v2883_v58 = vld [vmem:[%s4795_s26 + $0xb0] sm:$0xf0]  ;;  %v3022_v60 = vor.u32 %v3897_v50, %v3019_v51  ;;  %v3865_v62 = vld [vmem:[%s4795_s26 + $0x3c] sm:$0xf] }
 0x170   : > { %v3530_v6 = vor.u32 %v4041_v0, %v3529_v63  ;;  %v2889_v59 = vld [vmem:[%s4795_s26 + $0x38] sm:$0xf]  ;;  %v2891_v63 = vld [vmem:[%s4795_s26 + $0xb8] sm:$0xf0]  ;;  %v3793_v0 = vld [vmem:[%s4795_s26 + $0x740] sm:$0xf] }
 0x171   : > { %2322 = vmatpush.bf16.msra.mxu0 %v3122_v7  ;;  %2335 = vmatpush.bf16.msra.mxu1 %v3126_v8  ;;  %v3393_v7 = vld [vmem:[%s4795_s26 + $0x430] sm:$0xf] }
 0x172   : > { %2348 = vmatpush.bf16.msra.mxu2 %v3130_v9  ;;  %v4008_v8 = vld [vmem:[%s4795_s26 + $0x4ac] sm:$0xf0]  ;;  %v3992_v9 = vld [vmem:[%s4795_s26 + $0x434] sm:$0xf] }
 0x173   : > { %2361 = vmatpush.bf16.msra.mxu3 %v3134_v13  ;;  %v4009_v13 = vld [vmem:[%s4795_s26 + $0x4b4] sm:$0xf0]  ;;  %v3394_v16 = vor.u32 %v4008_v8, %v3393_v7  ;;  %v3398_v17 = vor.u32 %v3992_v9, %v3395_v11  ;;  %v4107_v7 = vld [vmem:[%s4795_s26 + $0x7c4] sm:$0xf0]  ;;  %v3803_v11 = vld [vmem:[%s4795_s26 + $0x7c8] sm:$0xf0] }
 0x174   : > { %v3402_v18 = vor.u32 %v4009_v13, %v3401_v12  ;;  %v2894_v12 = vor.u32 %v3865_v62, %v2891_v63  ;;  %v3794_v13 = vor.u32 %v4106_v2, %v3793_v0  ;;  %v3153_v63 = vld [vmem:[%s4795_s26 + $0x240] sm:$0xf]  ;;  %v3930_v2 = vld [vmem:[%s4795_s26 + $0x244] sm:$0xf] }
 0x175   : > { %2323 = vmatpush.bf16.msra.mxu0 %v2994_v19  ;;  %2336 = vmatpush.bf16.msra.mxu1 %v2998_v22  ;;  %v3265_v19 = vld [vmem:[%s4795_s26 + $0x330] sm:$0xf]  ;;  %v3406_v22 = vor.u32 %v3993_v14, %v3403_v15  ;;  %v3946_v0 = vld [vmem:[%s4795_s26 + $0x2bc] sm:$0xf0] }
 0x176   : > { %2349 = vmatpush.bf16.msra.mxu2 %v3002_v23  ;;  %v3267_v23 = vld [vmem:[%s4795_s26 + $0x3b0] sm:$0xf0]  ;;  %v3266_v28 = vor.u32 %v3976_v20, %v3265_v19  ;;  %v3667_v20 = vld [vmem:[%s4795_s26 + $0x6c0] sm:$0xf0] }
 0x177   : > { %2362 = vmatpush.bf16.msra.mxu3 %v3006_v27  ;;  %v3275_v27 = vld [vmem:[%s4795_s26 + $0x3b8] sm:$0xf0]  ;;  %v3270_v29 = vor.u32 %v3960_v21, %v3267_v23  ;;  %v3673_v21 = vld [vmem:[%s4795_s26 + $0x648] sm:$0xf]  ;;  %v4059_v23 = vld [vmem:[%s4795_s26 + $0x64c] sm:$0xf] }
 0x178   : > { %v3678_v31 = vor.u32 %v4059_v23, %v3675_v24  ;;  %v3882_v23 = vld [vmem:[%s4795_s26 + $0xbc] sm:$0xf0] }
 0x179   : > { %2324 = vmatpush.bf16.msra.mxu0 %v2866_v34  ;;  %2337 = vmatpush.bf16.msra.mxu1 %v2870_v38  ;;  %v3278_v34 = vor.u32 %v3961_v26, %v3275_v27  ;;  %v3929_v38 = vld [vmem:[%s4795_s26 + $0x23c] sm:$0xf] }
 0x17a   : > { %2350 = vmatpush.bf16.msra.mxu2 %v2874_v39  ;;  %v3147_v39 = vld [vmem:[%s4795_s26 + $0x2b8] sm:$0xf0] }
 0x17b   : > { %2363 = vmatpush.bf16.msra.mxu3 %v2878_v42  ;;  %v3146_v42 = vor.u32 %v3945_v37, %v3145_v36  ;;  %v3150_v46 = vor.u32 %v3929_v38, %v3147_v39  ;;  %v3547_v36 = vld [vmem:[%s4795_s26 + $0x5c8] sm:$0xf0] }
 0x17c   : > { %2338 = vmatmul.bf16.vlgmr.msra.gmra.mxu1 %v4888_v1  ;;  %2325 = vmatmul.bf16.vlgmr.msra.gmra.mxu0 %v4888_v1 }
 0x17d   : > { %2369 = vmatpush.bf16.msrb.mxu0 %v3778_v43  ;;  %2382 = vmatpush.bf16.msrb.mxu1 %v3782_v44  ;;  %v3009_v43 = vld [vmem:[%s4795_s26 + $0x130] sm:$0xf] }
 0x17e   : > { %2395 = vmatpush.bf16.msrb.mxu2 %v3786_v45  ;;  %2364 = vmatmul.bf16.vlgmr.msra.gmra.mxu3 %v4888_v1  ;;  %v3912_v44 = vld [vmem:[%s4795_s26 + $0x1ac] sm:$0xf0]  ;;  %v3896_v45 = vld [vmem:[%s4795_s26 + $0x134] sm:$0xf] }
 0x17f   : > { %2408 = vmatpush.bf16.msrb.mxu3 %v3790_v49  ;;  %2351 = vmatmul.bf16.vlgmr.msra.gmra.mxu2 %v4888_v1  ;;  %v3913_v49 = vld [vmem:[%s4795_s26 + $0x1b4] sm:$0xf0]  ;;  %v3010_v52 = vor.u32 %v3912_v44, %v3009_v43  ;;  %v3550_v43 = vor.u32 %v4027_v35, %v3547_v36  ;;  %v3411_v44 = vld [vmem:[%s4795_s26 + $0x4c0] sm:$0xf0]  ;;  %v4092_v35 = vld [vmem:[%s4795_s26 + $0x754] sm:$0xf] }
 0x181   : > { %2370 = vmatpush.bf16.msrb.mxu0 %v3650_v55  ;;  %2383 = vmatpush.bf16.msrb.mxu1 %v3654_v56  ;;  %v3014_v55 = vor.u32 %v3896_v45, %v3011_v47  ;;  %v3018_v56 = vor.u32 %v3913_v49, %v3017_v48  ;;  %v3417_v45 = vld [vmem:[%s4795_s26 + $0x448] sm:$0xf]  ;;  %v3995_v47 = vld [vmem:[%s4795_s26 + $0x44c] sm:$0xf] }
 0x182   : > { %2396 = vmatpush.bf16.msrb.mxu2 %v3658_v57  ;;  %v3864_v57 = vld [vmem:[%s4795_s26 + $0x34] sm:$0xf]  ;;  %v3419_v48 = vld [vmem:[%s4795_s26 + $0x4c8] sm:$0xf0] }
 0x183   : > { %2409 = vmatpush.bf16.msrb.mxu3 %v3662_v61  ;;  %v3881_v61 = vld [vmem:[%s4795_s26 + $0xb4] sm:$0xf0]  ;;  %v2886_v8 = vor.u32 %v3864_v57, %v2883_v58  ;;  %v3979_v57 = vld [vmem:[%s4795_s26 + $0x3c4] sm:$0xf0]  ;;  %v3963_v58 = vld [vmem:[%s4795_s26 + $0x34c] sm:$0xf] }
 0x184   : > { %v2890_v9 = vor.u32 %v3881_v61, %v2889_v59  ;;  %v3291_v59 = vld [vmem:[%s4795_s26 + $0x3c8] sm:$0xf0] }
 0x185   : > { %2371 = vmatpush.bf16.msrb.mxu0 %v3522_v4  ;;  %2384 = vmatpush.bf16.msrb.mxu1 %v3526_v5  ;;  %v2882_v4 = vor.u32 %v3880_v54, %v2881_v53  ;;  %v3795_v5 = vld [vmem:[%s4795_s26 + $0x7c0] sm:$0xf0]  ;;  %v3978_v53 = vld [vmem:[%s4795_s26 + $0x3bc] sm:$0xf0] }
 0x186   : > { %2397 = vmatpush.bf16.msrb.mxu2 %v3530_v6  ;;  %v3801_v6 = vld [vmem:[%s4795_s26 + $0x748] sm:$0xf]  ;;  %v3798_v14 = vor.u32 %v4090_v3, %v3795_v5  ;;  %v3962_v54 = vld [vmem:[%s4795_s26 + $0x344] sm:$0xf]  ;;  %v3294_v3 = vor.u32 %v3963_v58, %v3291_v59  ;;  %v3553_v59 = vld [vmem:[%s4795_s26 + $0x550] sm:$0xf] }
 0x187   : > { %2410 = vmatpush.bf16.msrb.mxu3 %v3534_v10  ;;  %v4091_v10 = vld [vmem:[%s4795_s26 + $0x74c] sm:$0xf]  ;;  %v3802_v15 = vor.u32 %v4107_v7, %v3801_v6  ;;  %v3161_v5 = vld [vmem:[%s4795_s26 + $0x248] sm:$0xf] }
 0x188   : > { %v3806_v19 = vor.u32 %v4091_v10, %v3803_v11  ;;  %v3947_v6 = vld [vmem:[%s4795_s26 + $0x2c4] sm:$0xf0]  ;;  %v3931_v7 = vld [vmem:[%s4795_s26 + $0x24c] sm:$0xf] }
 0x189   : > { %2372 = vmatpush.bf16.msrb.mxu0 %v3394_v16  ;;  %2385 = vmatpush.bf16.msrb.mxu1 %v3398_v17  ;;  %v3665_v16 = vld [vmem:[%s4795_s26 + $0x640] sm:$0xf]  ;;  %v3162_v11 = vor.u32 %v3947_v6, %v3161_v5  ;;  %v3563_v5 = vld [vmem:[%s4795_s26 + $0x5d8] sm:$0xf0] }
 0x18a   : > { %2398 = vmatpush.bf16.msrb.mxu2 %v3402_v18  ;;  %v4074_v17 = vld [vmem:[%s4795_s26 + $0x6bc] sm:$0xf0]  ;;  %v4058_v18 = vld [vmem:[%s4795_s26 + $0x644] sm:$0xf] }
 0x18b   : > { %2411 = vmatpush.bf16.msrb.mxu3 %v3406_v22  ;;  %v4075_v22 = vld [vmem:[%s4795_s26 + $0x6c4] sm:$0xf0]  ;;  %v3666_v25 = vor.u32 %v4074_v17, %v3665_v16  ;;  %v3670_v26 = vor.u32 %v4058_v18, %v3667_v20  ;;  %v3027_v16 = vld [vmem:[%s4795_s26 + $0x1c0] sm:$0xf0]  ;;  %v3035_v20 = vld [vmem:[%s4795_s26 + $0x1c8] sm:$0xf0] }
 0x18c   : > { %v3674_v27 = vor.u32 %v4075_v22, %v3673_v21  ;;  %v3033_v17 = vld [vmem:[%s4795_s26 + $0x148] sm:$0xf]  ;;  %v2897_v22 = vld [vmem:[%s4795_s26 + $0x40] sm:$0xf] }
 0x18d   : > { %2373 = vmatpush.bf16.msrb.mxu0 %v3266_v28  ;;  %2386 = vmatpush.bf16.msrb.mxu1 %v3270_v29  ;;  %v3537_v28 = vld [vmem:[%s4795_s26 + $0x540] sm:$0xf]  ;;  %v3915_v18 = vld [vmem:[%s4795_s26 + $0x1c4] sm:$0xf0]  ;;  %v2898_v36 = vor.u32 %v3882_v23, %v2897_v22  ;;  %v3980_v22 = vld [vmem:[%s4795_s26 + $0x3cc] sm:$0xf0] }
 0x18e   : > { %2399 = vmatpush.bf16.msrb.mxu2 %v3274_v30  ;;  %v4042_v29 = vld [vmem:[%s4795_s26 + $0x5bc] sm:$0xf0]  ;;  %v4026_v30 = vld [vmem:[%s4795_s26 + $0x544] sm:$0xf]  ;;  %v3964_v23 = vld [vmem:[%s4795_s26 + $0x354] sm:$0xf] }
 0x18f   : > { %2412 = vmatpush.bf16.msrb.mxu3 %v3278_v34  ;;  %v4043_v34 = vld [vmem:[%s4795_s26 + $0x5c4] sm:$0xf0]  ;;  %v3538_v37 = vor.u32 %v4042_v29, %v3537_v28  ;;  %v3542_v38 = vor.u32 %v4026_v30, %v3539_v32  ;;  %v2907_v32 = vld [vmem:[%s4795_s26 + $0xc8] sm:$0xf0] }
 0x190   : > { %v3546_v39 = vor.u32 %v4043_v34, %v3545_v33  ;;  %v2905_v28 = vld [vmem:[%s4795_s26 + $0x48] sm:$0xf]  ;;  %v3809_v33 = vld [vmem:[%s4795_s26 + $0x750] sm:$0xf] }
 0x191   : > { %2374 = vmatpush.bf16.msrb.mxu0 %v3138_v40  ;;  %2387 = vmatpush.bf16.msrb.mxu1 %v3142_v41  ;;  %v3409_v40 = vld [vmem:[%s4795_s26 + $0x440] sm:$0xf]  ;;  %v3883_v30 = vld [vmem:[%s4795_s26 + $0xc4] sm:$0xf0]  ;;  %v4108_v34 = vld [vmem:[%s4795_s26 + $0x7cc] sm:$0xf0] }
 0x192   : > { %2400 = vmatpush.bf16.msrb.mxu2 %v3146_v42  ;;  %v4010_v41 = vld [vmem:[%s4795_s26 + $0x4bc] sm:$0xf0]  ;;  %v3994_v42 = vld [vmem:[%s4795_s26 + $0x444] sm:$0xf] }
 0x193   : > { %2413 = vmatpush.bf16.msrb.mxu3 %v3150_v46  ;;  %v4011_v46 = vld [vmem:[%s4795_s26 + $0x4c4] sm:$0xf0]  ;;  %v3410_v49 = vor.u32 %v4010_v41, %v3409_v40  ;;  %v3414_v50 = vor.u32 %v3994_v42, %v3411_v44  ;;  %v2906_v41 = vor.u32 %v3883_v30, %v2905_v28  ;;  %v4093_v42 = vld [vmem:[%s4795_s26 + $0x75c] sm:$0xf] }
 0x194   : > { %v3418_v51 = vor.u32 %v4011_v46, %v3417_v45  ;;  %v3810_v45 = vor.u32 %v4108_v34, %v3809_v33  ;;  %v3965_v28 = vld [vmem:[%s4795_s26 + $0x35c] sm:$0xf]  ;;  %v3169_v34 = vld [vmem:[%s4795_s26 + $0x250] sm:$0xf] }
 0x195   : > { %2375 = vmatpush.bf16.msrb.mxu0 %v3010_v52  ;;  %2388 = vmatpush.bf16.msrb.mxu1 %v3014_v55  ;;  %v3281_v52 = vld [vmem:[%s4795_s26 + $0x340] sm:$0xf]  ;;  %v3422_v55 = vor.u32 %v3995_v47, %v3419_v48  ;;  %v3681_v48 = vld [vmem:[%s4795_s26 + $0x650] sm:$0xf] }
 0x196   : > { %2401 = vmatpush.bf16.msrb.mxu2 %v3018_v56  ;;  %v3289_v56 = vld [vmem:[%s4795_s26 + $0x348] sm:$0xf] }
 0x197   : > { %2414 = vmatpush.bf16.msrb.mxu3 %v3022_v60  ;;  %v3282_v60 = vor.u32 %v3978_v53, %v3281_v52  ;;  %v3290_v62 = vor.u32 %v3979_v57, %v3289_v56  ;;  %v3683_v52 = vld [vmem:[%s4795_s26 + $0x6d0] sm:$0xf0]  ;;  %v3689_v53 = vld [vmem:[%s4795_s26 + $0x658] sm:$0xf] }
 0x199   : > { %2376 = vmatpush.bf16.msrb.mxu0 %v2882_v4  ;;  %2389 = vmatpush.bf16.msrb.mxu1 %v2886_v8  ;;  %v3155_v4 = vld [vmem:[%s4795_s26 + $0x2c0] sm:$0xf0]  ;;  %v3163_v8 = vld [vmem:[%s4795_s26 + $0x2c8] sm:$0xf0] }
 0x19a   : > { %2402 = vmatpush.bf16.msrb.mxu2 %v2890_v9  ;;  %v3154_v9 = vor.u32 %v3946_v0, %v3153_v63  ;;  %v3158_v10 = vor.u32 %v3930_v2, %v3155_v4  ;;  %v3555_v63 = vld [vmem:[%s4795_s26 + $0x5d0] sm:$0xf0]  ;;  %v3561_v0 = vld [vmem:[%s4795_s26 + $0x558] sm:$0xf]  ;;  %v4029_v4 = vld [vmem:[%s4795_s26 + $0x55c] sm:$0xf] }
 0x19b   : > { %2415 = vmatpush.bf16.msrb.mxu3 %v2894_v12  ;;  %v3025_v12 = vld [vmem:[%s4795_s26 + $0x140] sm:$0xf]  ;;  %v4045_v2 = vld [vmem:[%s4795_s26 + $0x5d4] sm:$0xf0] }
 0x19c   : > { %2390 = vmatmul.bf16.vlgmr.msrb.gmra.mxu1 %v4888_v1  ;;  %2377 = vmatmul.bf16.vlgmr.msrb.gmra.mxu0 %v4888_v1 }
 0x19d   : > { %2421 = vmatpush.bf16.msra.mxu0 %v3794_v13  ;;  %2434 = vmatpush.bf16.msra.mxu1 %v3798_v14  ;;  %v3914_v13 = vld [vmem:[%s4795_s26 + $0x1bc] sm:$0xf0]  ;;  %v3898_v14 = vld [vmem:[%s4795_s26 + $0x144] sm:$0xf] }
 0x19e   : > { %2447 = vmatpush.bf16.msra.mxu2 %v3802_v15  ;;  %2416 = vmatmul.bf16.vlgmr.msrb.gmra.mxu3 %v4888_v1  ;;  %v3166_v15 = vor.u32 %v3931_v7, %v3163_v8  ;;  %v3026_v21 = vor.u32 %v3914_v13, %v3025_v12  ;;  %v3030_v24 = vor.u32 %v3898_v14, %v3027_v16  ;;  %v3427_v13 = vld [vmem:[%s4795_s26 + $0x4d0] sm:$0xf0]  ;;  %v3433_v14 = vld [vmem:[%s4795_s26 + $0x458] sm:$0xf]  ;;  %v3997_v16 = vld [vmem:[%s4795_s26 + $0x45c] sm:$0xf] }
 0x19f   : > { %2460 = vmatpush.bf16.msra.mxu3 %v3806_v19  ;;  %2403 = vmatmul.bf16.vlgmr.msrb.gmra.mxu2 %v4888_v1  ;;  %v3283_v1 = vld [vmem:[%s4795_s26 + $0x3c0] sm:$0xf0]  ;;  %v3899_v19 = vld [vmem:[%s4795_s26 + $0x14c] sm:$0xf]  ;;  %v3562_v8 = vor.u32 %v4045_v2, %v3561_v0  ;;  %v3566_v12 = vor.u32 %v4029_v4, %v3563_v5  ;;  %v2915_v4 = vld [vmem:[%s4795_s26 + $0xd0] sm:$0xf0] }
 0x1a0   : > { %v3286_v61 = vor.u32 %v3962_v54, %v3283_v1  ;;  %v3038_v29 = vor.u32 %v3899_v19, %v3035_v20  ;;  %v4077_v54 = vld [vmem:[%s4795_s26 + $0x6d4] sm:$0xf0]  ;;  %v3691_v1 = vld [vmem:[%s4795_s26 + $0x6d8] sm:$0xf0] }
 0x1a1   : > { %2422 = vmatpush.bf16.msra.mxu0 %v3666_v25  ;;  %2435 = vmatpush.bf16.msra.mxu1 %v3670_v26  ;;  %v3034_v25 = vor.u32 %v3915_v18, %v3033_v17  ;;  %v3866_v26 = vld [vmem:[%s4795_s26 + $0x44] sm:$0xf]  ;;  %v3690_v58 = vor.u32 %v4077_v54, %v3689_v53  ;;  %v3435_v17 = vld [vmem:[%s4795_s26 + $0x4d8] sm:$0xf0]  ;;  %v3049_v53 = vld [vmem:[%s4795_s26 + $0x158] sm:$0xf] }
 0x1a2   : > { %2448 = vmatpush.bf16.msra.mxu2 %v3674_v27  ;;  %v2899_v27 = vld [vmem:[%s4795_s26 + $0xc0] sm:$0xf0]  ;;  %v3917_v54 = vld [vmem:[%s4795_s26 + $0x1d4] sm:$0xf0] }
 0x1a3   : > { %2461 = vmatpush.bf16.msra.mxu3 %v3678_v31  ;;  %v3867_v31 = vld [vmem:[%s4795_s26 + $0x4c] sm:$0xf]  ;;  %v2902_v40 = vor.u32 %v3866_v26, %v2899_v27  ;;  %v3305_v26 = vld [vmem:[%s4795_s26 + $0x358] sm:$0xf]  ;;  %v3050_v2 = vor.u32 %v3917_v54, %v3049_v53 }
 0x1a4   : > { %v2910_v44 = vor.u32 %v3867_v31, %v2907_v32  ;;  %v3981_v27 = vld [vmem:[%s4795_s26 + $0x3d4] sm:$0xf0]  ;;  %v4031_v53 = vld [vmem:[%s4795_s26 + $0x56c] sm:$0xf] }
 0x1a5   : > { %2423 = vmatpush.bf16.msra.mxu0 %v3538_v37  ;;  %2436 = vmatpush.bf16.msra.mxu1 %v3542_v38  ;;  %v3811_v37 = vld [vmem:[%s4795_s26 + $0x7d0] sm:$0xf0]  ;;  %v3817_v38 = vld [vmem:[%s4795_s26 + $0x758] sm:$0xf]  ;;  %v3306_v33 = vor.u32 %v3981_v27, %v3305_v26  ;;  %v3579_v54 = vld [vmem:[%s4795_s26 + $0x5e8] sm:$0xf0] }
 0x1a6   : > { %2449 = vmatpush.bf16.msra.mxu2 %v3546_v39  ;;  %v4109_v39 = vld [vmem:[%s4795_s26 + $0x7d4] sm:$0xf0]  ;;  %v3814_v46 = vor.u32 %v4092_v35, %v3811_v37  ;;  %v3948_v35 = vld [vmem:[%s4795_s26 + $0x2cc] sm:$0xf0] }
 0x1a7   : > { %2462 = vmatpush.bf16.msra.mxu3 %v3550_v43  ;;  %v3819_v43 = vld [vmem:[%s4795_s26 + $0x7d8] sm:$0xf0]  ;;  %v3818_v47 = vor.u32 %v4109_v39, %v3817_v38  ;;  %v3171_v38 = vld [vmem:[%s4795_s26 + $0x2d0] sm:$0xf0]  ;;  %v3177_v39 = vld [vmem:[%s4795_s26 + $0x258] sm:$0xf] }
 0x1a8   : > { %v2921_v5 = vld [vmem:[%s4795_s26 + $0x58] sm:$0xf] }
 0x1a9   : > { %2424 = vmatpush.bf16.msra.mxu0 %v3410_v49  ;;  %2437 = vmatpush.bf16.msra.mxu1 %v3414_v50  ;;  %v4076_v49 = vld [vmem:[%s4795_s26 + $0x6cc] sm:$0xf0]  ;;  %v4060_v50 = vld [vmem:[%s4795_s26 + $0x654] sm:$0xf] }
 0x1aa   : > { %2450 = vmatpush.bf16.msra.mxu2 %v3418_v51  ;;  %v3822_v51 = vor.u32 %v4093_v42, %v3819_v43  ;;  %v3682_v56 = vor.u32 %v4076_v49, %v3681_v48  ;;  %v3686_v57 = vor.u32 %v4060_v50, %v3683_v52  ;;  %v3179_v42 = vld [vmem:[%s4795_s26 + $0x2d8] sm:$0xf0]  ;;  %v3916_v48 = vld [vmem:[%s4795_s26 + $0x1cc] sm:$0xf0]  ;;  %v3900_v49 = vld [vmem:[%s4795_s26 + $0x154] sm:$0xf] }
 0x1ab   : > { %2463 = vmatpush.bf16.msra.mxu3 %v3422_v55  ;;  %v4061_v55 = vld [vmem:[%s4795_s26 + $0x65c] sm:$0xf]  ;;  %v3043_v52 = vld [vmem:[%s4795_s26 + $0x1d0] sm:$0xf0] }
 0x1ac   : > { %v3046_v0 = vor.u32 %v3900_v49, %v3043_v52  ;;  %v4047_v52 = vld [vmem:[%s4795_s26 + $0x5e4] sm:$0xf0] }
 0x1ad   : > { %2425 = vmatpush.bf16.msra.mxu0 %v3282_v60  ;;  %2438 = vmatpush.bf16.msra.mxu1 %v3286_v61  ;;  %v4044_v60 = vld [vmem:[%s4795_s26 + $0x5cc] sm:$0xf0]  ;;  %v4028_v61 = vld [vmem:[%s4795_s26 + $0x554] sm:$0xf] }
 0x1ae   : > { %2451 = vmatpush.bf16.msra.mxu2 %v3290_v62  ;;  %v3694_v62 = vor.u32 %v4061_v55, %v3691_v1  ;;  %v3554_v6 = vor.u32 %v4044_v60, %v3553_v59  ;;  %v3558_v7 = vor.u32 %v4028_v61, %v3555_v63  ;;  %v3884_v60 = vld [vmem:[%s4795_s26 + $0xcc] sm:$0xf0]  ;;  %v3868_v61 = vld [vmem:[%s4795_s26 + $0x54] sm:$0xf] }
 0x1af   : > { %2464 = vmatpush.bf16.msra.mxu3 %v3294_v3  ;;  %v5163_v3 = vld [vmem:[%s5411_s0] sm:$0x3] }
 0x1b1   : > { %2426 = vmatpush.bf16.msra.mxu0 %v3154_v9  ;;  %2439 = vmatpush.bf16.msra.mxu1 %v3158_v10  ;;  %v3425_v9 = vld [vmem:[%s4795_s26 + $0x450] sm:$0xf] }
 0x1b2   : > { %2452 = vmatpush.bf16.msra.mxu2 %v3162_v11  ;;  %v4012_v10 = vld [vmem:[%s4795_s26 + $0x4cc] sm:$0xf0]  ;;  %v3996_v11 = vld [vmem:[%s4795_s26 + $0x454] sm:$0xf] }
 0x1b3   : > { %2465 = vmatpush.bf16.msra.mxu3 %v3166_v15  ;;  %v4013_v15 = vld [vmem:[%s4795_s26 + $0x4d4] sm:$0xf0]  ;;  %v3426_v18 = vor.u32 %v4012_v10, %v3425_v9  ;;  %v3430_v19 = vor.u32 %v3996_v11, %v3427_v13  ;;  %v3869_v9 = vld [vmem:[%s4795_s26 + $0x5c] sm:$0xf]  ;;  %v3825_v11 = vld [vmem:[%s4795_s26 + $0x760] sm:$0xf] }
 0x1b4   : > { %v3434_v20 = vor.u32 %v4013_v15, %v3433_v14  ;;  %v2923_v10 = vld [vmem:[%s4795_s26 + $0xd8] sm:$0xf0]  ;;  %v4094_v13 = vld [vmem:[%s4795_s26 + $0x764] sm:$0xf] }
 0x1b5   : > { %2427 = vmatpush.bf16.msra.mxu0 %v3026_v21  ;;  %2440 = vmatpush.bf16.msra.mxu1 %v3030_v24  ;;  %v3297_v21 = vld [vmem:[%s4795_s26 + $0x350] sm:$0xf]  ;;  %v3438_v24 = vor.u32 %v3997_v16, %v3435_v17  ;;  %v3827_v14 = vld [vmem:[%s4795_s26 + $0x7e0] sm:$0xf0]  ;;  %v2926_v27 = vor.u32 %v3869_v9, %v2923_v10  ;;  %v3982_v9 = vld [vmem:[%s4795_s26 + $0x3dc] sm:$0xf0] }
 0x1b6   : > { %2453 = vmatpush.bf16.msra.mxu2 %v3034_v25  ;;  %v3299_v25 = vld [vmem:[%s4795_s26 + $0x3d0] sm:$0xf0]  ;;  %v3298_v30 = vor.u32 %v3980_v22, %v3297_v21  ;;  %v2918_v22 = vor.u32 %v3868_v61, %v2915_v4  ;;  %v3443_v61 = vld [vmem:[%s4795_s26 + $0x4e0] sm:$0xf0] }
 0x1b7   : > { %2466 = vmatpush.bf16.msra.mxu3 %v3038_v29  ;;  %v3307_v29 = vld [vmem:[%s4795_s26 + $0x3d8] sm:$0xf0]  ;;  %v3302_v32 = vor.u32 %v3964_v23, %v3299_v25  ;;  %v3835_v25 = vld [vmem:[%s4795_s26 + $0x7e8] sm:$0xf0]  ;;  %v3966_v10 = vld [vmem:[%s4795_s26 + $0x364] sm:$0xf] }
 0x1b8   : > { %v3310_v37 = vor.u32 %v3965_v28, %v3307_v29 }
 0x1b9   : > { %2428 = vmatpush.bf16.msra.mxu0 %v2898_v36  ;;  %2441 = vmatpush.bf16.msra.mxu1 %v2902_v40  ;;  %v2235_v31 = vpop.f32.mrf.mxu1  ;;  %v3932_v36 = vld [vmem:[%s4795_s26 + $0x254] sm:$0xf]  ;;  %v3949_v40 = vld [vmem:[%s4795_s26 + $0x2d4] sm:$0xf0]  ;;  %v2222_v43 = vpop.f32.mrf.mxu0 }
 0x1ba   : > { %2454 = vmatpush.bf16.msra.mxu2 %v2906_v41  ;;  %4138 = vtanh.f32 %v2235_v31  ;;  %v3933_v41 = vld [vmem:[%s4795_s26 + $0x25c] sm:$0xf]  ;;  %v3830_v31 = vor.u32 %v4094_v13, %v3827_v14  ;;  %v3321_v13 = vld [vmem:[%s4795_s26 + $0x368] sm:$0xf] }
 0x1bb   : > { %2467 = vmatpush.bf16.msra.mxu3 %v2910_v44  ;;  %v3170_v44 = vor.u32 %v3948_v35, %v3169_v34  ;;  %4140 = vtanh.f32 %v2222_v43  ;;  %v4078_v34 = vld [vmem:[%s4795_s26 + $0x6dc] sm:$0xf0]  ;;  %v4062_v35 = vld [vmem:[%s4795_s26 + $0x664] sm:$0xf]  ;;  %v3983_v14 = vld [vmem:[%s4795_s26 + $0x3e4] sm:$0xf0] }
 0x1bc   : > { %2442 = vmatmul.bf16.vlgmr.msra.gmra.mxu1 %v5163_v3  ;;  %2429 = vmatmul.bf16.vlgmr.msra.gmra.mxu0 %v5163_v3 }
 0x1bd   : > { %2473 = vmatpush.bf16.msrb.mxu0 %v3810_v45  ;;  %2486 = vmatpush.bf16.msrb.mxu1 %v3814_v46  ;;  %v3174_v45 = vor.u32 %v3932_v36, %v3171_v38  ;;  %v3178_v46 = vor.u32 %v3949_v40, %v3177_v39  ;;  %v3705_v38 = vld [vmem:[%s4795_s26 + $0x668] sm:$0xf] }
 0x1be   : > { %2499 = vmatpush.bf16.msrb.mxu2 %v3818_v47  ;;  %2468 = vmatmul.bf16.vlgmr.msra.gmra.mxu3 %v5163_v3  ;;  %v3041_v47 = vld [vmem:[%s4795_s26 + $0x150] sm:$0xf]  ;;  %v4079_v39 = vld [vmem:[%s4795_s26 + $0x6e4] sm:$0xf0] }
 0x1bf   : > { %2512 = vmatpush.bf16.msrb.mxu3 %v3822_v51  ;;  %2455 = vmatmul.bf16.vlgmr.msra.gmra.mxu2 %v5163_v3  ;;  %v3182_v51 = vor.u32 %v3933_v41, %v3179_v42  ;;  %v3042_v59 = vor.u32 %v3916_v48, %v3041_v47  ;;  %v4063_v41 = vld [vmem:[%s4795_s26 + $0x66c] sm:$0xf]  ;;  %v4046_v47 = vld [vmem:[%s4795_s26 + $0x5dc] sm:$0xf0]  ;;  %v4030_v48 = vld [vmem:[%s4795_s26 + $0x564] sm:$0xf] }
 0x1c0   : > { %v4139_v1 = vpop.eup %4138  ;;  %v3707_v42 = vld [vmem:[%s4795_s26 + $0x6e8] sm:$0xf0] }
 0x1c1   : > { %2474 = vmatpush.bf16.msrb.mxu0 %v3682_v56  ;;  %2487 = vmatpush.bf16.msrb.mxu1 %v3686_v57  ;;  %v2261_v55 = vpop.f32.mrf.mxu3  ;;  %v3901_v56 = vld [vmem:[%s4795_s26 + $0x15c] sm:$0xf]  ;;  %v2237_v63 = vpop.f32.mrf.mxu1  ;;  %v3710_v49 = vor.u32 %v4063_v41, %v3707_v42 }
 0x1c2   : > { %2500 = vmatpush.bf16.msrb.mxu2 %v3690_v58  ;;  %v2248_v50 = vpop.f32.mrf.mxu2  ;;  %v3051_v57 = vld [vmem:[%s4795_s26 + $0x1d8] sm:$0xf0]  ;;  %v2913_v58 = vld [vmem:[%s4795_s26 + $0x50] sm:$0xf]  ;;  %v2224_v16 = vpop.f32.mrf.mxu0  ;;  %v4015_v63 = vld [vmem:[%s4795_s26 + $0x4e4] sm:$0xf0] }
 0x1c3   : > { %2513 = vmatpush.bf16.msrb.mxu3 %v3694_v62  ;;  %4142 = vtanh.f32 %v2248_v50  ;;  %v2693_v62 = vrot.slane %v4139_v1, 4  ;;  %v3571_v50 = vld [vmem:[%s4795_s26 + $0x5e0] sm:$0xf0]  ;;  %v3323_v16 = vld [vmem:[%s4795_s26 + $0x3e8] sm:$0xf0] }
 0x1c4   : > { %4144 = vtanh.f32 %v2261_v55  ;;  %v3574_v1 = vor.u32 %v4030_v48, %v3571_v50  ;;  %v2929_v48 = vld [vmem:[%s4795_s26 + $0x60] sm:$0xf] }
 0x1c5   : > { %2475 = vmatpush.bf16.msrb.mxu0 %v3554_v6  ;;  %2488 = vmatpush.bf16.msrb.mxu1 %v3558_v7  ;;  %v3885_v6 = vld [vmem:[%s4795_s26 + $0xd4] sm:$0xf0]  ;;  %v4141_v7 = vpop.eup %4140 }
 0x1c6   : > { %2501 = vmatpush.bf16.msrb.mxu2 %v3562_v8  ;;  %v3054_v8 = vor.u32 %v3901_v56, %v3051_v57  ;;  %v2710_v15 = vsel %vm2709_vm0, %v4141_v7, %v2693_v62  ;;  %v2922_v23 = vor.u32 %v3885_v6, %v2921_v5  ;;  %v3441_v57 = vld [vmem:[%s4795_s26 + $0x460] sm:$0xf]  ;;  %v3449_v62 = vld [vmem:[%s4795_s26 + $0x468] sm:$0xf] }
 0x1c7   : > { %2514 = vmatpush.bf16.msrb.mxu3 %v3566_v12  ;;  %v4110_v12 = vld [vmem:[%s4795_s26 + $0x7dc] sm:$0xf0]  ;;  %2742 = vst [vmem:[%s5225_s7] sm:$0x77] %v2710_v15  ;;  %v3450_v7 = vor.u32 %v4015_v63, %v3449_v62  ;;  %v3967_v15 = vld [vmem:[%s4795_s26 + $0x36c] sm:$0xf] }
 0x1c8   : > { %v3826_v28 = vor.u32 %v4110_v12, %v3825_v11  ;;  %v3315_v12 = vld [vmem:[%s4795_s26 + $0x3e0] sm:$0xf0]  ;;  %v3871_v62 = vld [vmem:[%s4795_s26 + $0x6c] sm:$0xf] }
 0x1c9   : > { %2476 = vmatpush.bf16.msrb.mxu0 %v3426_v18  ;;  %2489 = vmatpush.bf16.msrb.mxu1 %v3430_v19  ;;  %v4143_v17 = vpop.eup %4142  ;;  %v2914_v18 = vor.u32 %v3884_v60, %v2913_v58  ;;  %v3833_v19 = vld [vmem:[%s4795_s26 + $0x768] sm:$0xf]  ;;  %v4014_v58 = vld [vmem:[%s4795_s26 + $0x4dc] sm:$0xf0]  ;;  %v3582_v60 = vor.u32 %v4031_v53, %v3579_v54  ;;  %v3870_v54 = vld [vmem:[%s4795_s26 + $0x64] sm:$0xf] }
 0x1ca   : > { %2502 = vmatpush.bf16.msrb.mxu2 %v3434_v20  ;;  %v4111_v20 = vld [vmem:[%s4795_s26 + $0x7e4] sm:$0xf0]  ;;  %v4145_v21 = vpop.eup %4144  ;;  %v2250_v26 = vpop.f32.mrf.mxu2  ;;  %v3442_v4 = vor.u32 %v4014_v58, %v3441_v57  ;;  %v3886_v53 = vld [vmem:[%s4795_s26 + $0xdc] sm:$0xf0]  ;;  %v2931_v57 = vld [vmem:[%s4795_s26 + $0xe0] sm:$0xf0] }
 0x1cb   : > { %2515 = vmatpush.bf16.msrb.mxu3 %v3438_v24  ;;  %v4095_v24 = vld [vmem:[%s4795_s26 + $0x76c] sm:$0xf]  ;;  %v2694_v29 = vrot.slane %v4145_v21, 4  ;;  %v3185_v21 = vld [vmem:[%s4795_s26 + $0x260] sm:$0xf] }
 0x1cc   : > { %v3838_v36 = vor.u32 %v4095_v24, %v3835_v25  ;;  %v3326_v25 = vor.u32 %v3967_v15, %v3323_v16  ;;  %v3187_v26 = vld [vmem:[%s4795_s26 + $0x2e0] sm:$0xf0]  ;;  %v2937_v58 = vld [vmem:[%s4795_s26 + $0x68] sm:$0xf]  ;;  %v2939_v63 = vld [vmem:[%s4795_s26 + $0xe8] sm:$0xf0] }
 0x1cd   : > { %2477 = vmatpush.bf16.msrb.mxu0 %v3298_v30  ;;  %2490 = vmatpush.bf16.msrb.mxu1 %v3302_v32  ;;  %v2263_v30 = vpop.f32.mrf.mxu3  ;;  %v3834_v32 = vor.u32 %v4111_v20, %v3833_v19  ;;  %v2711_v40 = vsel %vm2709_vm0, %v4143_v17, %v2694_v29  ;;  %v3318_v19 = vor.u32 %v3966_v10, %v3315_v12  ;;  %v4113_v10 = vld [vmem:[%s4795_s26 + $0x7f4] sm:$0xf0]  ;;  %v3851_v15 = vld [vmem:[%s4795_s26 + $0x7f8] sm:$0xf0] }
 0x1ce   : > { %2503 = vmatpush.bf16.msrb.mxu2 %v3306_v33  ;;  %v3697_v33 = vld [vmem:[%s4795_s26 + $0x660] sm:$0xf]  ;;  %2743 = vst [vmem:[%s5225_s7 + $0x8] sm:$0x77] %v2711_v40  ;;  %v3322_v20 = vor.u32 %v3983_v14, %v3321_v13  ;;  %v3902_v40 = vld [vmem:[%s4795_s26 + $0x164] sm:$0xf]  ;;  %v2934_v12 = vor.u32 %v3870_v54, %v2931_v57  ;;  %v2942_v16 = vor.u32 %v3871_v62, %v2939_v63 }
 0x1cf   : > { %2516 = vmatpush.bf16.msrb.mxu3 %v3310_v37  ;;  %v3699_v37 = vld [vmem:[%s4795_s26 + $0x6e0] sm:$0xf0]  ;;  %v3698_v43 = vor.u32 %v4078_v34, %v3697_v33  ;;  %v4097_v14 = vld [vmem:[%s4795_s26 + $0x77c] sm:$0xf]  ;;  %v3984_v57 = vld [vmem:[%s4795_s26 + $0x3ec] sm:$0xf0] }
 0x1d0   : > { %v3985_v62 = vld [vmem:[%s4795_s26 + $0x3f4] sm:$0xf0]  ;;  %v3969_v63 = vld [vmem:[%s4795_s26 + $0x37c] sm:$0xf] }
 0x1d1   : > { %2478 = vmatpush.bf16.msrb.mxu0 %v3170_v44  ;;  %2491 = vmatpush.bf16.msrb.mxu1 %v3174_v45  ;;  %v3702_v44 = vor.u32 %v4062_v35, %v3699_v37  ;;  %v3706_v45 = vor.u32 %v4079_v39, %v3705_v38  ;;  %v3057_v38 = vld [vmem:[%s4795_s26 + $0x160] sm:$0xf] }
 0x1d2   : > { %2504 = vmatpush.bf16.msrb.mxu2 %v3178_v46  ;;  %v3569_v46 = vld [vmem:[%s4795_s26 + $0x560] sm:$0xf] }
 0x1d3   : > { %2517 = vmatpush.bf16.msrb.mxu3 %v3182_v51  ;;  %v3577_v51 = vld [vmem:[%s4795_s26 + $0x568] sm:$0xf]  ;;  %v3570_v55 = vor.u32 %v4046_v47, %v3569_v46  ;;  %v3918_v39 = vld [vmem:[%s4795_s26 + $0x1dc] sm:$0xf0]  ;;  %v3903_v46 = vld [vmem:[%s4795_s26 + $0x16c] sm:$0xf] }
 0x1d4   : > { %v3578_v56 = vor.u32 %v4047_v52, %v3577_v51  ;;  %v3067_v47 = vld [vmem:[%s4795_s26 + $0x1e8] sm:$0xf0]  ;;  %v3058_v52 = vor.u32 %v3918_v39, %v3057_v38  ;;  %v4049_v38 = vld [vmem:[%s4795_s26 + $0x5f4] sm:$0xf0]  ;;  %v4033_v39 = vld [vmem:[%s4795_s26 + $0x57c] sm:$0xf] }
 0x1d5   : > { %2479 = vmatpush.bf16.msrb.mxu0 %v3042_v59  ;;  %2492 = vmatpush.bf16.msrb.mxu1 %v3046_v0  ;;  %v3998_v59 = vld [vmem:[%s4795_s26 + $0x464] sm:$0xf]  ;;  %v3999_v0 = vld [vmem:[%s4795_s26 + $0x46c] sm:$0xf] }
 0x1d6   : > { %2505 = vmatpush.bf16.msrb.mxu2 %v3050_v2  ;;  %v3451_v2 = vld [vmem:[%s4795_s26 + $0x4e8] sm:$0xf0]  ;;  %v3446_v6 = vor.u32 %v3998_v59, %v3443_v61  ;;  %v3887_v59 = vld [vmem:[%s4795_s26 + $0xe4] sm:$0xf0]  ;;  %v3070_v61 = vor.u32 %v3903_v46, %v3067_v47  ;;  %v4000_v46 = vld [vmem:[%s4795_s26 + $0x474] sm:$0xf] }
 0x1d7   : > { %2518 = vmatpush.bf16.msrb.mxu3 %v3054_v8  ;;  %v3313_v8 = vld [vmem:[%s4795_s26 + $0x360] sm:$0xf]  ;;  %v3454_v11 = vor.u32 %v3999_v0, %v3451_v2  ;;  %v2938_v13 = vor.u32 %v3887_v59, %v2937_v58  ;;  %v3968_v58 = vld [vmem:[%s4795_s26 + $0x374] sm:$0xf] }
 0x1d9   : > { %2480 = vmatpush.bf16.msrb.mxu0 %v2914_v18  ;;  %2493 = vmatpush.bf16.msrb.mxu1 %v2918_v22  ;;  %v2287_v5 = vpop.f32.mrf.mxu1  ;;  %v2274_v17 = vpop.f32.mrf.mxu0  ;;  %v3314_v18 = vor.u32 %v3982_v9, %v3313_v8  ;;  %v3950_v22 = vld [vmem:[%s4795_s26 + $0x2dc] sm:$0xf0]  ;;  %v3843_v8 = vld [vmem:[%s4795_s26 + $0x7f0] sm:$0xf0]  ;;  %v3849_v9 = vld [vmem:[%s4795_s26 + $0x778] sm:$0xf] }
 0x1da   : > { %2506 = vmatpush.bf16.msrb.mxu2 %v2922_v23  ;;  %4146 = vtanh.f32 %v2287_v5  ;;  %v3934_v23 = vld [vmem:[%s4795_s26 + $0x264] sm:$0xf]  ;;  %v3186_v33 = vor.u32 %v3950_v22, %v3185_v21  ;;  %v4112_v5 = vld [vmem:[%s4795_s26 + $0x7ec] sm:$0xf0]  ;;  %v4064_v22 = vld [vmem:[%s4795_s26 + $0x674] sm:$0xf] }
 0x1db   : > { %2519 = vmatpush.bf16.msrb.mxu3 %v2926_v27  ;;  %4148 = vtanh.f32 %v2274_v17  ;;  %v3193_v27 = vld [vmem:[%s4795_s26 + $0x268] sm:$0xf]  ;;  %v4080_v21 = vld [vmem:[%s4795_s26 + $0x6ec] sm:$0xf0] }
 0x1dc   : > { %2494 = vmatmul.bf16.vlgmr.msrb.gmra.mxu1 %v5163_v3  ;;  %2481 = vmatmul.bf16.vlgmr.msrb.gmra.mxu0 %v5163_v3 }
 0x1dd   : > { %2525 = vmatpush.bf16.msra.mxu0 %v3826_v28  ;;  %2538 = vmatpush.bf16.msra.mxu1 %v3830_v31  ;;  %v3951_v28 = vld [vmem:[%s4795_s26 + $0x2e4] sm:$0xf0]  ;;  %v3935_v31 = vld [vmem:[%s4795_s26 + $0x26c] sm:$0xf] }
 0x1de   : > { %2551 = vmatpush.bf16.msra.mxu2 %v3834_v32  ;;  %2520 = vmatmul.bf16.vlgmr.msrb.gmra.mxu3 %v5163_v3  ;;  %v3195_v32 = vld [vmem:[%s4795_s26 + $0x2e8] sm:$0xf0]  ;;  %v3194_v37 = vor.u32 %v3951_v28, %v3193_v27  ;;  %v4065_v27 = vld [vmem:[%s4795_s26 + $0x67c] sm:$0xf] }
 0x1df   : > { %2564 = vmatpush.bf16.msra.mxu3 %v3838_v36  ;;  %2507 = vmatmul.bf16.vlgmr.msrb.gmra.mxu2 %v5163_v3  ;;  %v3190_v36 = vor.u32 %v3934_v23, %v3187_v26  ;;  %v3198_v42 = vor.u32 %v3935_v31, %v3195_v32  ;;  %v3854_v23 = vor.u32 %v4097_v14, %v3851_v15  ;;  %v4081_v26 = vld [vmem:[%s4795_s26 + $0x6f4] sm:$0xf0]  ;;  %v3723_v28 = vld [vmem:[%s4795_s26 + $0x6f8] sm:$0xf0]  ;;  %v3585_v32 = vld [vmem:[%s4795_s26 + $0x570] sm:$0xf] }
 0x1e0   : > { %v4147_v30 = vpop.eup %4146  ;;  %v3953_v14 = vld [vmem:[%s4795_s26 + $0x2f4] sm:$0xf0] }
 0x1e1   : > { %2526 = vmatpush.bf16.msra.mxu0 %v3698_v43  ;;  %2539 = vmatpush.bf16.msra.mxu1 %v3702_v44  ;;  %v2313_v29 = vpop.f32.mrf.mxu3  ;;  %v2695_v34 = vrot.slane %v4147_v30, 4  ;;  %v2289_v35 = vpop.f32.mrf.mxu1  ;;  %v3059_v43 = vld [vmem:[%s4795_s26 + $0x1e0] sm:$0xf0]  ;;  %v3065_v44 = vld [vmem:[%s4795_s26 + $0x168] sm:$0xf] }
 0x1e2   : > { %2552 = vmatpush.bf16.msra.mxu2 %v3706_v45  ;;  %v2300_v24 = vpop.f32.mrf.mxu2  ;;  %v4149_v41 = vpop.eup %4148  ;;  %v3919_v45 = vld [vmem:[%s4795_s26 + $0x1e4] sm:$0xf0]  ;;  %v3726_v35 = vor.u32 %v4065_v27, %v3723_v28 }
 0x1e3   : > { %2565 = vmatpush.bf16.msra.mxu3 %v3710_v49  ;;  %4150 = vtanh.f32 %v2300_v24  ;;  %v2712_v49 = vsel %vm2709_vm0, %v4149_v41, %v2695_v34  ;;  %v2276_v50 = vpop.f32.mrf.mxu0  ;;  %v3715_v24 = vld [vmem:[%s4795_s26 + $0x6f0] sm:$0xf0] }
 0x1e4   : > { %4152 = vtanh.f32 %v2313_v29  ;;  %2744 = vst [vmem:[%s5225_s7 + $0x10] sm:$0x77] %v2712_v49  ;;  %v3718_v30 = vor.u32 %v4064_v22, %v3715_v24  ;;  %v4032_v34 = vld [vmem:[%s4795_s26 + $0x574] sm:$0xf]  ;;  %v3465_v49 = vld [vmem:[%s4795_s26 + $0x478] sm:$0xf] }
 0x1e5   : > { %2527 = vmatpush.bf16.msra.mxu0 %v3570_v55  ;;  %2540 = vmatpush.bf16.msra.mxu1 %v3574_v1  ;;  %v3062_v1 = vor.u32 %v3902_v40, %v3059_v43  ;;  %v3595_v40 = vld [vmem:[%s4795_s26 + $0x5f8] sm:$0xf0]  ;;  %v4017_v50 = vld [vmem:[%s4795_s26 + $0x4f4] sm:$0xf0]  ;;  %v3073_v24 = vld [vmem:[%s4795_s26 + $0x170] sm:$0xf] }
 0x1e6   : > { %2553 = vmatpush.bf16.msra.mxu2 %v3578_v56  ;;  %v3066_v56 = vor.u32 %v3919_v45, %v3065_v44  ;;  %v3457_v44 = vld [vmem:[%s4795_s26 + $0x470] sm:$0xf]  ;;  %v3598_v47 = vor.u32 %v4033_v39, %v3595_v40 }
 0x1e7   : > { %2566 = vmatpush.bf16.msra.mxu3 %v3582_v60  ;;  %v4016_v45 = vld [vmem:[%s4795_s26 + $0x4ec] sm:$0xf0] }
 0x1e9   : > { %2528 = vmatpush.bf16.msra.mxu0 %v3442_v4  ;;  %2541 = vmatpush.bf16.msra.mxu1 %v3446_v6  ;;  %v4151_v51 = vpop.eup %4150  ;;  %v2315_v2 = vpop.f32.mrf.mxu3  ;;  %v3841_v4 = vld [vmem:[%s4795_s26 + $0x770] sm:$0xf]  ;;  %v4096_v6 = vld [vmem:[%s4795_s26 + $0x774] sm:$0xf] }
 0x1ea   : > { %2554 = vmatpush.bf16.msra.mxu2 %v3450_v7  ;;  %v4153_v55 = vpop.eup %4152  ;;  %v2302_v60 = vpop.f32.mrf.mxu2  ;;  %v2930_v7 = vor.u32 %v3886_v53, %v2929_v48  ;;  %v3842_v17 = vor.u32 %v4112_v5, %v3841_v4  ;;  %v3459_v48 = vld [vmem:[%s4795_s26 + $0x4f0] sm:$0xf0]  ;;  %v3458_v53 = vor.u32 %v4016_v45, %v3457_v44 }
 0x1eb   : > { %2567 = vmatpush.bf16.msra.mxu3 %v3454_v11  ;;  %v2696_v0 = vrot.slane %v4153_v55, 4  ;;  %v3462_v55 = vor.u32 %v4000_v46, %v3459_v48  ;;  %v3331_v60 = vld [vmem:[%s4795_s26 + $0x3f0] sm:$0xf0]  ;;  %v3889_v48 = vld [vmem:[%s4795_s26 + $0xf4] sm:$0xf0] }
 0x1ec   : > { %v3334_v5 = vor.u32 %v3968_v58, %v3331_v60  ;;  %v2947_v44 = vld [vmem:[%s4795_s26 + $0xf0] sm:$0xf0] }
 0x1ed   : > { %2529 = vmatpush.bf16.msra.mxu0 %v3314_v18  ;;  %2542 = vmatpush.bf16.msra.mxu1 %v3318_v19  ;;  %v2713_v11 = vsel %vm2709_vm0, %v4151_v51, %v2696_v0  ;;  %v3846_v18 = vor.u32 %v4096_v6, %v3843_v8  ;;  %v3850_v19 = vor.u32 %v4113_v10, %v3849_v9  ;;  %v4001_v51 = vld [vmem:[%s4795_s26 + $0x47c] sm:$0xf]  ;;  %v3952_v8 = vld [vmem:[%s4795_s26 + $0x2ec] sm:$0xf0]  ;;  %v3936_v9 = vld [vmem:[%s4795_s26 + $0x274] sm:$0xf] }
 0x1ee   : > { %2555 = vmatpush.bf16.msra.mxu2 %v3322_v20  ;;  %2745 = vst [vmem:[%s5225_s7 + $0x18] sm:$0x77] %v2713_v11  ;;  %v3713_v20 = vld [vmem:[%s4795_s26 + $0x670] sm:$0xf]  ;;  %v3339_v0 = vld [vmem:[%s4795_s26 + $0x3f8] sm:$0xf0] }
 0x1ef   : > { %2568 = vmatpush.bf16.msra.mxu3 %v3326_v25  ;;  %v3721_v25 = vld [vmem:[%s4795_s26 + $0x678] sm:$0xf]  ;;  %v3714_v29 = vor.u32 %v4080_v21, %v3713_v20  ;;  %v3342_v11 = vor.u32 %v3969_v63, %v3339_v0 }
 0x1f0   : > { %v3722_v31 = vor.u32 %v4081_v26, %v3721_v25  ;;  %v3920_v25 = vld [vmem:[%s4795_s26 + $0x1ec] sm:$0xf0]  ;;  %v3904_v26 = vld [vmem:[%s4795_s26 + $0x174] sm:$0xf] }
 0x1f1   : > { %2530 = vmatpush.bf16.msra.mxu0 %v3186_v33  ;;  %2543 = vmatpush.bf16.msra.mxu1 %v3190_v36  ;;  %v4048_v33 = vld [vmem:[%s4795_s26 + $0x5ec] sm:$0xf0]  ;;  %v3587_v36 = vld [vmem:[%s4795_s26 + $0x5f0] sm:$0xf0] }
 0x1f2   : > { %2556 = vmatpush.bf16.msra.mxu2 %v3194_v37  ;;  %v3593_v37 = vld [vmem:[%s4795_s26 + $0x578] sm:$0xf]  ;;  %v3586_v41 = vor.u32 %v4048_v33, %v3585_v32  ;;  %v3905_v32 = vld [vmem:[%s4795_s26 + $0x17c] sm:$0xf] }
 0x1f3   : > { %2569 = vmatpush.bf16.msra.mxu3 %v3198_v42  ;;  %v3590_v42 = vor.u32 %v4032_v34, %v3587_v36  ;;  %v3594_v43 = vor.u32 %v4049_v38, %v3593_v37  ;;  %v3083_v33 = vld [vmem:[%s4795_s26 + $0x1f8] sm:$0xf0]  ;;  %v3074_v37 = vor.u32 %v3920_v25, %v3073_v24  ;;  %v2945_v38 = vld [vmem:[%s4795_s26 + $0x70] sm:$0xf] }
 0x1f4   : > { %v3086_v46 = vor.u32 %v3905_v32, %v3083_v33 }
 0x1f5   : > { %2531 = vmatpush.bf16.msra.mxu0 %v3058_v52  ;;  %2544 = vmatpush.bf16.msra.mxu1 %v3062_v1  ;;  %v3467_v52 = vld [vmem:[%s4795_s26 + $0x4f8] sm:$0xf0]  ;;  %v3466_v1 = vor.u32 %v4017_v50, %v3465_v49 }
 0x1f6   : > { %2557 = vmatpush.bf16.msra.mxu2 %v3066_v56  ;;  %v3329_v56 = vld [vmem:[%s4795_s26 + $0x370] sm:$0xf]  ;;  %v3470_v59 = vor.u32 %v4001_v51, %v3467_v52  ;;  %v3873_v51 = vld [vmem:[%s4795_s26 + $0x7c] sm:$0xf] }
 0x1f7   : > { %2570 = vmatpush.bf16.msra.mxu3 %v3070_v61  ;;  %v3337_v61 = vld [vmem:[%s4795_s26 + $0x378] sm:$0xf]  ;;  %v3330_v4 = vor.u32 %v3984_v57, %v3329_v56  ;;  %v2955_v52 = vld [vmem:[%s4795_s26 + $0xf8] sm:$0xf0] }
 0x1f8   : > { %v3338_v6 = vor.u32 %v3985_v62, %v3337_v61  ;;  %v2958_v56 = vor.u32 %v3873_v51, %v2955_v52 }
 0x1f9   : > { %2532 = vmatpush.bf16.msra.mxu0 %v2930_v7  ;;  %2545 = vmatpush.bf16.msra.mxu1 %v2934_v12  ;;  %v2339_v54 = vpop.f32.mrf.mxu1  ;;  %v2326_v2 = vpop.f32.mrf.mxu0  ;;  %v3201_v7 = vld [vmem:[%s4795_s26 + $0x270] sm:$0xf]  ;;  %v3203_v12 = vld [vmem:[%s4795_s26 + $0x2f0] sm:$0xf0] }
 0x1fa   : > { %2558 = vmatpush.bf16.msra.mxu2 %v2938_v13  ;;  %4154 = vtanh.f32 %v2339_v54  ;;  %v3209_v13 = vld [vmem:[%s4795_s26 + $0x278] sm:$0xf]  ;;  %v3206_v22 = vor.u32 %v3936_v9, %v3203_v12 }
 0x1fb   : > { %2571 = vmatpush.bf16.msra.mxu3 %v2942_v16  ;;  %4156 = vtanh.f32 %v2326_v2 }
 0x1fc   : > { %2546 = vmatmul.bf16.vlgmr.msra.gmra.mxu1 %v5163_v3  ;;  %2533 = vmatmul.bf16.vlgmr.msra.gmra.mxu0 %v5163_v3 }
 0x1fd   : > { %2577 = vmatpush.bf16.msrb.mxu0 %v3842_v17  ;;  %2590 = vmatpush.bf16.msrb.mxu1 %v3846_v18  ;;  %v3937_v17 = vld [vmem:[%s4795_s26 + $0x27c] sm:$0xf] }
 0x1fe   : > { %2603 = vmatpush.bf16.msrb.mxu2 %v3850_v19  ;;  %2572 = vmatmul.bf16.vlgmr.msra.gmra.mxu3 %v5163_v3  ;;  %v3211_v18 = vld [vmem:[%s4795_s26 + $0x2f8] sm:$0xf0]  ;;  %v3202_v19 = vor.u32 %v3952_v8, %v3201_v7 }
 0x1ff   : > { %2616 = vmatpush.bf16.msrb.mxu3 %v3854_v23  ;;  %2559 = vmatmul.bf16.vlgmr.msra.gmra.mxu2 %v5163_v3  ;;  %v3210_v23 = vor.u32 %v3953_v14, %v3209_v13  ;;  %v3214_v28 = vor.u32 %v3937_v17, %v3211_v18 }
 0x200   : > { %v4155_v16 = vpop.eup %4154 }
 0x201   : > { %2578 = vmatpush.bf16.msrb.mxu0 %v3714_v29  ;;  %2591 = vmatpush.bf16.msrb.mxu1 %v3718_v30  ;;  %v2365_v15 = vpop.f32.mrf.mxu3  ;;  %v2697_v20 = vrot.slane %v4155_v16, 4  ;;  %v2341_v21 = vpop.f32.mrf.mxu1  ;;  %v3075_v29 = vld [vmem:[%s4795_s26 + $0x1f0] sm:$0xf0]  ;;  %v3081_v30 = vld [vmem:[%s4795_s26 + $0x178] sm:$0xf] }
 0x202   : > { %2604 = vmatpush.bf16.msrb.mxu2 %v3722_v31  ;;  %v2352_v10 = vpop.f32.mrf.mxu2  ;;  %v4157_v27 = vpop.eup %4156  ;;  %v3921_v31 = vld [vmem:[%s4795_s26 + $0x1f4] sm:$0xf0]  ;;  %v3078_v40 = vor.u32 %v3904_v26, %v3075_v29 }
 0x203   : > { %2617 = vmatpush.bf16.msrb.mxu3 %v3726_v35  ;;  %4158 = vtanh.f32 %v2352_v10  ;;  %v2714_v34 = vsel %vm2709_vm0, %v4157_v27, %v2697_v20  ;;  %v2328_v35 = vpop.f32.mrf.mxu0 }
 0x204   : > { %4160 = vtanh.f32 %v2365_v15  ;;  %2746 = vst [vmem:[%s5225_s7 + $0x20] sm:$0x77] %v2714_v34 }
 0x205   : > { %2579 = vmatpush.bf16.msrb.mxu0 %v3586_v41  ;;  %2592 = vmatpush.bf16.msrb.mxu1 %v3590_v42  ;;  %v3082_v41 = vor.u32 %v3921_v31, %v3081_v30  ;;  %v3888_v42 = vld [vmem:[%s4795_s26 + $0xec] sm:$0xf0] }
 0x206   : > { %2605 = vmatpush.bf16.msrb.mxu2 %v3594_v43  ;;  %v3872_v43 = vld [vmem:[%s4795_s26 + $0x74] sm:$0xf] }
 0x207   : > { %2618 = vmatpush.bf16.msrb.mxu3 %v3598_v47  ;;  %v2953_v47 = vld [vmem:[%s4795_s26 + $0x78] sm:$0xf] }
 0x209   : > { %2580 = vmatpush.bf16.msrb.mxu0 %v3458_v53  ;;  %2593 = vmatpush.bf16.msrb.mxu1 %v3462_v55  ;;  %v4159_v36 = vpop.eup %4158  ;;  %v2367_v50 = vpop.f32.mrf.mxu3  ;;  %v2946_v53 = vor.u32 %v3888_v42, %v2945_v38  ;;  %v2950_v55 = vor.u32 %v3872_v43, %v2947_v44 }
 0x20a   : > { %2606 = vmatpush.bf16.msrb.mxu2 %v3466_v1  ;;  %v4161_v39 = vpop.eup %4160  ;;  %v2354_v45 = vpop.f32.mrf.mxu2  ;;  %v2954_v1 = vor.u32 %v3889_v48, %v2953_v47 }
 0x20b   : > { %2619 = vmatpush.bf16.msrb.mxu3 %v3470_v59  ;;  %v2698_v49 = vrot.slane %v4161_v39, 4 }
 0x20d   : > { %2581 = vmatpush.bf16.msrb.mxu0 %v3330_v4  ;;  %2594 = vmatpush.bf16.msrb.mxu1 %v3334_v5  ;;  %v2715_v54 = vsel %vm2709_vm0, %v4159_v36, %v2698_v49 }
 0x20e   : > { %2607 = vmatpush.bf16.msrb.mxu2 %v3338_v6  ;;  %2747 = vst [vmem:[%s5225_s7 + $0x28] sm:$0x77] %v2715_v54 }
 0x20f   : > { %2620 = vmatpush.bf16.msrb.mxu3 %v3342_v11 }
 0x211   : > { %2582 = vmatpush.bf16.msrb.mxu0 %v3202_v19  ;;  %2595 = vmatpush.bf16.msrb.mxu1 %v3206_v22 }
 0x212   : > { %2608 = vmatpush.bf16.msrb.mxu2 %v3210_v23 }
 0x213   : > { %2621 = vmatpush.bf16.msrb.mxu3 %v3214_v28 }
 0x215   : > { %2583 = vmatpush.bf16.msrb.mxu0 %v3074_v37  ;;  %2596 = vmatpush.bf16.msrb.mxu1 %v3078_v40 }
 0x216   : > { %2609 = vmatpush.bf16.msrb.mxu2 %v3082_v41 }
 0x217   : > { %2622 = vmatpush.bf16.msrb.mxu3 %v3086_v46 }
 0x219   : > { %2584 = vmatpush.bf16.msrb.mxu0 %v2946_v53  ;;  %2597 = vmatpush.bf16.msrb.mxu1 %v2950_v55  ;;  %v2391_v57 = vpop.f32.mrf.mxu1  ;;  %v2378_v58 = vpop.f32.mrf.mxu0 }
 0x21a   : > { %2610 = vmatpush.bf16.msrb.mxu2 %v2954_v1  ;;  %4162 = vtanh.f32 %v2391_v57 }
 0x21b   : > { %2623 = vmatpush.bf16.msrb.mxu3 %v2958_v56  ;;  %4164 = vtanh.f32 %v2378_v58 }
 0x21c   : > { %2585 = vmatmul.bf16.vlgmr.msrb.gmra.mxu0 %v5163_v3  ;;  %2598 = vmatmul.bf16.vlgmr.msrb.gmra.mxu1 %v5163_v3 }
 0x21d   : > { %2611 = vmatmul.bf16.vlgmr.msrb.gmra.mxu2 %v5163_v3 }
 0x21e   : > { %2624 = vmatmul.bf16.vlgmr.msrb.gmra.mxu3 %v5163_v3 }
 0x220   : > { %v4163_v61 = vpop.eup %4162 }
 0x221   : > { %v2417_v60 = vpop.f32.mrf.mxu3  ;;  %v2699_v62 = vrot.slane %v4163_v61, 4  ;;  %v2393_v63 = vpop.f32.mrf.mxu1 }
 0x222   : > { %v2404_v59 = vpop.f32.mrf.mxu2  ;;  %v4165_v0 = vpop.eup %4164 }
 0x223   : > { %4166 = vtanh.f32 %v2404_v59  ;;  %v2716_v2 = vsel %vm2709_vm0, %v4165_v0, %v2699_v62  ;;  %v2380_v4 = vpop.f32.mrf.mxu0 }
 0x224   : > { %4168 = vtanh.f32 %v2417_v60  ;;  %2748 = vst [vmem:[%s5225_s7 + $0x30] sm:$0x77] %v2716_v2 }
 0x229   : > { %v4167_v5 = vpop.eup %4166  ;;  %v2419_v8 = vpop.f32.mrf.mxu3 }
 0x22a   : > { %v4169_v3 = vpop.eup %4168  ;;  %v2406_v6 = vpop.f32.mrf.mxu2 }
 0x22b   : > { %v2700_v7 = vrot.slane %v4169_v3, 4 }
 0x22d   : > { %v2717_v9 = vsel %vm2709_vm0, %v4167_v5, %v2700_v7 }
 0x22e   : > { %2749 = vst [vmem:[%s5225_s7 + $0x38] sm:$0x77] %v2717_v9 }
 0x239   : > { %v2443_v10 = vpop.f32.mrf.mxu1  ;;  %v2430_v11 = vpop.f32.mrf.mxu0 }
 0x23a   : > { %4170 = vtanh.f32 %v2443_v10 }
 0x23b   : > { %4172 = vtanh.f32 %v2430_v11 }
 0x240   : > { %v4171_v14 = vpop.eup %4170 }
 0x241   : > { %v2469_v13 = vpop.f32.mrf.mxu3  ;;  %v2701_v15 = vrot.slane %v4171_v14, 4  ;;  %v2445_v16 = vpop.f32.mrf.mxu1 }
 0x242   : > { %v2456_v12 = vpop.f32.mrf.mxu2  ;;  %v4173_v17 = vpop.eup %4172 }
 0x243   : > { %4174 = vtanh.f32 %v2456_v12  ;;  %v2718_v18 = vsel %vm2709_vm0, %v4173_v17, %v2701_v15  ;;  %v2432_v19 = vpop.f32.mrf.mxu0 }
 0x244   : > { %4176 = vtanh.f32 %v2469_v13  ;;  %2750 = vst [vmem:[%s5225_s7 + $0x40] sm:$0x77] %v2718_v18 }
 0x249   : > { %v4175_v20 = vpop.eup %4174  ;;  %v2471_v24 = vpop.f32.mrf.mxu3 }
 0x24a   : > { %v4177_v21 = vpop.eup %4176  ;;  %v2458_v22 = vpop.f32.mrf.mxu2 }
 0x24b   : > { %v2702_v23 = vrot.slane %v4177_v21, 4 }
 0x24d   : > { %v2719_v25 = vsel %vm2709_vm0, %v4175_v20, %v2702_v23 }
 0x24e   : > { %2751 = vst [vmem:[%s5225_s7 + $0x48] sm:$0x77] %v2719_v25 }
 0x259   : > { %v2495_v26 = vpop.f32.mrf.mxu1  ;;  %v2482_v27 = vpop.f32.mrf.mxu0 }
 0x25a   : > { %4178 = vtanh.f32 %v2495_v26 }
 0x25b   : > { %4180 = vtanh.f32 %v2482_v27 }
 0x260   : > { %v4179_v30 = vpop.eup %4178 }
 0x261   : > { %v2521_v29 = vpop.f32.mrf.mxu3  ;;  %v2703_v31 = vrot.slane %v4179_v30, 4  ;;  %v2497_v32 = vpop.f32.mrf.mxu1 }
 0x262   : > { %v2508_v28 = vpop.f32.mrf.mxu2  ;;  %v4181_v33 = vpop.eup %4180 }
 0x263   : > { %4182 = vtanh.f32 %v2508_v28  ;;  %v2720_v34 = vsel %vm2709_vm0, %v4181_v33, %v2703_v31  ;;  %v2484_v35 = vpop.f32.mrf.mxu0 }
 0x264   : > { %4184 = vtanh.f32 %v2521_v29  ;;  %2752 = vst [vmem:[%s5225_s7 + $0x50] sm:$0x77] %v2720_v34 }
 0x269   : > { %v4183_v36 = vpop.eup %4182  ;;  %v2523_v40 = vpop.f32.mrf.mxu3 }
 0x26a   : > { %v4185_v37 = vpop.eup %4184  ;;  %v2510_v38 = vpop.f32.mrf.mxu2 }
 0x26b   : > { %v2704_v39 = vrot.slane %v4185_v37, 4 }
 0x26d   : > { %v2721_v41 = vsel %vm2709_vm0, %v4183_v36, %v2704_v39 }
 0x26e   : > { %2753 = vst [vmem:[%s5225_s7 + $0x58] sm:$0x77] %v2721_v41 }
 0x279   : > { %v2547_v42 = vpop.f32.mrf.mxu1  ;;  %v2534_v43 = vpop.f32.mrf.mxu0 }
 0x27a   : > { %4186 = vtanh.f32 %v2547_v42 }
 0x27b   : > { %4188 = vtanh.f32 %v2534_v43 }
 0x280   : > { %v4187_v46 = vpop.eup %4186 }
 0x281   : > { %v2573_v45 = vpop.f32.mrf.mxu3  ;;  %v2705_v47 = vrot.slane %v4187_v46, 4  ;;  %v2549_v48 = vpop.f32.mrf.mxu1 }
 0x282   : > { %v2560_v44 = vpop.f32.mrf.mxu2  ;;  %v4189_v49 = vpop.eup %4188 }
 0x283   : > { %4190 = vtanh.f32 %v2560_v44  ;;  %v2722_v50 = vsel %vm2709_vm0, %v4189_v49, %v2705_v47  ;;  %v2536_v51 = vpop.f32.mrf.mxu0 }
 0x284   : > { %4192 = vtanh.f32 %v2573_v45  ;;  %2754 = vst [vmem:[%s5225_s7 + $0x60] sm:$0x77] %v2722_v50 }
 0x289   : > { %v4191_v52 = vpop.eup %4190  ;;  %v2575_v1 = vpop.f32.mrf.mxu3 }
 0x28a   : > { %v4193_v53 = vpop.eup %4192  ;;  %v2562_v54 = vpop.f32.mrf.mxu2 }
 0x28b   : > { %v2706_v55 = vrot.slane %v4193_v53, 4 }
 0x28d   : > { %v2723_v56 = vsel %vm2709_vm0, %v4191_v52, %v2706_v55 }
 0x28e   : > { %2755 = vst [vmem:[%s5225_s7 + $0x68] sm:$0x77] %v2723_v56 }
 0x299   : > { %v2586_v57 = vpop.f32.mrf.mxu0  ;;  %v2599_v58 = vpop.f32.mrf.mxu1 }
 0x29a   : > { %4194 = vtanh.f32 %v2586_v57 }
 0x29b   : > { %4196 = vtanh.f32 %v2599_v58 }
 0x2a0   : > { %v4195_v59 = vpop.eup %4194  ;;  %v2612_v60 = vpop.f32.mrf.mxu2 }
 0x2a1   : > { %v4197_v61 = vpop.eup %4196  ;;  %4198 = vtanh.f32 %v2612_v60  ;;  %v2625_v62 = vpop.f32.mrf.mxu3 }
 0x2a2   : > { %v2588_v63 = vpop.f32.mrf.mxu0  ;;  %v2707_v0 = vrot.slane %v4197_v61, 4  ;;  %4200 = vtanh.f32 %v2625_v62  ;;  %v2601_v2 = vpop.f32.mrf.mxu1 }
 0x2a4   : > { %v2724_v4 = vsel %vm2709_vm0, %v4195_v59, %v2707_v0 }
 0x2a5   : > { %2756 = vst [vmem:[%s5225_s7 + $0x70] sm:$0x77] %v2724_v4 }
 0x2a7   : > { %v4199_v5 = vpop.eup %4198 }
 0x2a8   : > { %v4201_v3 = vpop.eup %4200  ;;  %v2614_v6 = vpop.f32.mrf.mxu2 }
 0x2a9   : > { %v2708_v7 = vrot.slane %v4201_v3, 4  ;;  %v2627_v8 = vpop.f32.mrf.mxu3 }
 0x2ab   : > { %v2725_v9 = vsel %vm2709_vm0, %v4199_v5, %v2708_v7 }
 0x2ac   : > { %2757 = vst [vmem:[%s5225_s7 + $0x78] sm:$0x77] %v2725_v9 }
 0x2ad PF: > { %p9_p9 = scmp.ge.s32.totalorder %s4259_s13, 4   ;;  %s5414_s9 = smov %s4221_s10 }
 0x2ae   : > { %s5415_s10 = smov %s4268_s16  ;;  %s5416_s11 = smov %s4259_s13 }
 0x2af   :  { %11 = sbr.rel (!%p9_p9) target bundleno = 2 (0x2), region = 86 }

</bundles_post_ra>
